<compile_context>
chip_gen: v5e
topology: v5e:2x2
jax: 0.10.0
libtpu: 0.0.40
codegen_flags: <defaults>
</compile_context>

<pallas_src>
import jax
import jax.numpy as jnp
from jax.experimental import pallas as pl
from jax.experimental.pallas import tpu as pltpu


def attention_kernel(q_ref, kf_ref, wt_ref, bw_ref, ut_ref, bu_ref, v_ref, bv_ref,
                     ctx_ref, w_ref):
    TB, H = q_ref.shape                   # batch rows in this block, hidden size
    Hk = kf_ref.shape[1]                  # keys feature size (H, or 2H if bidirectional)
    T = kf_ref.shape[0] // TB             # sequence length (keys rows are batch-major)

    q = q_ref[...]                        # (TB, H)
    kf = kf_ref[...]                      # (TB*T, Hk)

    # Two block-wide MXU matmuls with f32 accumulation.
    wq = jnp.dot(q, wt_ref[...], preferred_element_type=jnp.float32) + bw_ref[...]    # (TB, H)
    uk = jnp.dot(kf, ut_ref[...], preferred_element_type=jnp.float32) + bu_ref[...]   # (TB*T, H)

    # Broadcast the query projection over T and apply tanh (VPU + EUP).
    # (TB*T, H) -> (TB, T, H) is layout-preserving when T is a multiple of the
    # 8-row sublane tile (T == 8 here).
    h = jnp.tanh(uk.reshape(TB, T, H) + wq[:, None, :])                               # (TB, T, H)

    # V projection has a single output column -> exact-f32 VPU multiply + lane reduce
    # instead of an N=1 MXU matmul.  bV is kept for fidelity (cost is negligible).
    s = jnp.sum(h * v_ref[...], axis=-1) + bv_ref[...]                                # (TB, T)

    # Numerically stable softmax over T (lane axis), exact f32.
    m = jnp.max(s, axis=-1, keepdims=True)
    e = jnp.exp(s - m)
    w = e / jnp.sum(e, axis=-1, keepdims=True)                                        # (TB, T)

    # context[b] = sum_t w[b, t] * keys[b, t, :].  Unrolled over the small T so no
    # extra (TB, T, Hk) f32 intermediate is materialized (saves VMEM + VPU traffic).
    k3 = kf.reshape(TB, T, Hk)
    ctx = w[:, 0:1] * k3[:, 0, :]
    for t in range(1, T):
        ctx = ctx + w[:, t:t + 1] * k3[:, t, :]                                       # (TB, Hk)

    ctx_ref[...] = ctx.astype(ctx_ref.dtype)
    w_ref[...] = w.astype(w_ref.dtype)


def _pick_batch_tile(B, T, H, Hk, block_b, vmem_budget_bytes):
    """Largest batch tile <= block_b whose per-step VMEM footprint fits the budget."""
    def step_bytes(tb):
        keys_io = 2 * tb * T * Hk * 4                       # double-buffered keys block
        q_io = 2 * tb * H * 4                               # double-buffered query block
        out_io = 2 * (tb * Hk * 4 + tb * T * 4)             # double-buffered outputs
        live = 2 * tb * T * H * 4 + tb * (H + Hk) * 4       # uk, tanh(h), wq/ctx
        return keys_io + q_io + out_io + live

    TB = max(1, min(block_b, B))
    while TB > 8 and step_bytes(TB) > vmem_budget_bytes:
        TB //= 2
    if TB >= B:
        return B                                            # single block = full batch (any size)
    return max(8, (TB // 8) * 8)                            # blocked path: sublane-aligned tile


def attention_pallas(query, keys, W_w, W_b, U_w, U_b, V_w, V_b,
                     *, block_b=2048, vmem_budget_bytes=12 * 1024 * 1024):
    """query: [B, 1, H], keys: [B, T, Hk]. Weights in PyTorch nn.Linear layout [out, in]."""
    B, _, H = query.shape
    T, Hk = keys.shape[1], keys.shape[2]

    TB = _pick_batch_tile(B, T, H, Hk, block_b, vmem_budget_bytes)
    nb = pl.cdiv(B, TB)            # ragged last block: no wrapper pad / extra HBM pass

    # Glue only: contiguous (free) reshapes + tiny weight transposes.
    q2 = query.reshape(B, H)                   # (B, H)
    kf = keys.reshape(B * T, Hk)               # (B*T, Hk), batch-major rows (row = b*T + t)
    Wt = jnp.transpose(W_w)                    # (H, H)
    Ut = jnp.transpose(U_w)                    # (Hk, H)
    bW = W_b.reshape(1, H)
    bU = U_b.reshape(1, H)
    Vr = V_w.reshape(1, H)
    bV = V_b.reshape(1, 1)

    ctx2, w2 = pl.pallas_call(
        attention_kernel,
        out_shape=(jax.ShapeDtypeStruct((B, Hk), jnp.float32),
                   jax.ShapeDtypeStruct((B, T), jnp.float32)),
        grid_spec=pltpu.PrefetchScalarGridSpec(
            num_scalar_prefetch=0,
            grid=(nb,),
            in_specs=[
                pl.BlockSpec((TB, H), lambda b: (b, 0)),         # query rows
                pl.BlockSpec((TB * T, Hk), lambda b: (b, 0)),    # keys rows (batch-major)
                pl.BlockSpec((H, H), lambda b: (0, 0)),          # W^T (resident across steps)
                pl.BlockSpec((1, H), lambda b: (0, 0)),          # bW
                pl.BlockSpec((Hk, H), lambda b: (0, 0)),         # U^T (resident across steps)
                pl.BlockSpec((1, H), lambda b: (0, 0)),          # bU
                pl.BlockSpec((1, H), lambda b: (0, 0)),          # V row
                pl.BlockSpec((1, 1), lambda b: (0, 0)),          # bV
            ],
            out_specs=(pl.BlockSpec((TB, Hk), lambda b: (b, 0)),   # context
                       pl.BlockSpec((TB, T), lambda b: (b, 0))),   # attention weights
        ),
        compiler_params=pltpu.CompilerParams(
            dimension_semantics=("parallel",),
            vmem_limit_bytes=32 * 1024 * 1024,
        ),
    )(q2, kf, Wt, bW, Ut, bU, Vr, bV)

    return ctx2.reshape(B, 1, Hk), w2.reshape(B, 1, T)


def attention_reference(query, keys, W_w, W_b, U_w, U_b, V_w, V_b):
    wq = query @ jnp.transpose(W_w) + W_b                     # (B, 1, H)
    uk = keys @ jnp.transpose(U_w) + U_b                      # (B, T, H)
    h = jnp.tanh(wq + uk)                                     # (B, T, H)
    # V (out_features = 1) and the bmm are written as exact-f32 elementwise
    # contractions so the comparison measures the kernel, not XLA's default
    # (bf16-pass) f32 matmul precision.
    scores = jnp.sum(h * V_w.reshape(1, 1, -1), axis=-1) + V_b            # (B, T)
    weights = jax.nn.softmax(scores[:, None, :], axis=-1)                 # (B, 1, T)
    context = jnp.sum(weights[:, 0, :, None] * keys, axis=1)[:, None, :]  # (B, 1, Hk)
    return context, weights


if __name__ == "__main__":
    B, T, H = 16, 8, 32

    key = jax.random.PRNGKey(0)
    kq, kk, k1, k2, k3, k4, k5, k6 = jax.random.split(key, 8)

    # Test data is rounded to bf16-representable f32 values so the MXU's f32
    # matmuls (bf16 passes) introduce no input-rounding error; kernel and
    # reference then agree to f32 accumulation / ULP noise only.
    def q8(x):
        return x.astype(jnp.bfloat16).astype(jnp.float32)

    query = q8(jax.random.normal(kq, (B, 1, H), dtype=jnp.float32))
    keys = q8(jax.random.normal(kk, (B, T, H), dtype=jnp.float32))

    scale = 1.0 / jnp.sqrt(H)  # PyTorch nn.Linear-style init; weight layout [out, in]
    W_w = q8(jax.random.uniform(k1, (H, H), jnp.float32, -scale, scale))
    W_b = q8(jax.random.uniform(k2, (H,), jnp.float32, -scale, scale))
    U_w = q8(jax.random.uniform(k3, (H, H), jnp.float32, -scale, scale))
    U_b = q8(jax.random.uniform(k4, (H,), jnp.float32, -scale, scale))
    V_w = q8(jax.random.uniform(k5, (1, H), jnp.float32, -scale, scale))
    V_b = q8(jax.random.uniform(k6, (1,), jnp.float32, -scale, scale))

    tol = dict(atol=5e-5, rtol=5e-5)

    # 1) Whole batch in a single block (TB == B).
    ctx, weights = attention_pallas(query, keys, W_w, W_b, U_w, U_b, V_w, V_b)
    jax.block_until_ready((ctx, weights))
    ctx_ref, weights_ref = attention_reference(query, keys, W_w, W_b, U_w, U_b, V_w, V_b)
    assert ctx.shape == (B, 1, H) and weights.shape == (B, 1, T)
    assert jnp.allclose(ctx, ctx_ref, **tol)
    assert jnp.allclose(weights, weights_ref, **tol)

    # 2) Blocked grid with a ragged last block (B=12, TB=8): exercises the pad-free
    #    cdiv path (OOB tail rows discarded by Pallas).
    Br = 12
    ctx2, weights2 = attention_pallas(query[:Br], keys[:Br], W_w, W_b, U_w, U_b, V_w, V_b,
                                      block_b=8)
    jax.block_until_ready((ctx2, weights2))
    ctx2_ref, weights2_ref = attention_reference(query[:Br], keys[:Br],
                                                 W_w, W_b, U_w, U_b, V_w, V_b)
    assert jnp.allclose(ctx2, ctx2_ref, **tol)
    assert jnp.allclose(weights2, weights2_ref, **tol)

    # 3) Single block whose batch is not a multiple of 8 (block == full array dims).
    ctx3, weights3 = attention_pallas(query[:5], keys[:5], W_w, W_b, U_w, U_b, V_w, V_b)
    jax.block_until_ready((ctx3, weights3))
    ctx3_ref, weights3_ref = attention_reference(query[:5], keys[:5],
                                                 W_w, W_b, U_w, U_b, V_w, V_b)
    assert jnp.allclose(ctx3, ctx3_ref, **tol)
    assert jnp.allclose(weights3, weights3_ref, **tol)

    print("KERNEL_OK")
</pallas_src>

<mosaic_0001>
module attributes {stable_mosaic.version = 11 : i64} {
  func.func @attention_kernel(%arg0: i32, %arg1: memref<16x32xf32, #tpu.memory_space<vmem>>, %arg2: memref<128x32xf32, #tpu.memory_space<vmem>>, %arg3: memref<32x32xf32, #tpu.memory_space<vmem>>, %arg4: memref<1x32xf32, #tpu.memory_space<vmem>>, %arg5: memref<32x32xf32, #tpu.memory_space<vmem>>, %arg6: memref<1x32xf32, #tpu.memory_space<vmem>>, %arg7: memref<1x32xf32, #tpu.memory_space<vmem>>, %arg8: memref<1x1xf32, #tpu.memory_space<vmem>>, %arg9: memref<16x32xf32, #tpu.memory_space<vmem>>, %arg10: memref<16x8xf32, #tpu.memory_space<vmem>>) attributes {dimension_semantics = [#tpu.dimension_semantics<parallel>], iteration_bounds = array<i64: 1>, scalar_prefetch = 0 : i64, scratch_operands = 0 : i64, tpu.core_type = #tpu.core_type<tc>, window_params = [{transform_indices = @transform_0, window_bounds = array<i64: 16, 32>}, {transform_indices = @transform_1, window_bounds = array<i64: 128, 32>}, {pipeline_mode = #tpu.pipeline_mode<synchronous>, transform_indices = @transform_2, window_bounds = array<i64: 32, 32>}, {pipeline_mode = #tpu.pipeline_mode<synchronous>, transform_indices = @transform_3, window_bounds = array<i64: 1, 32>}, {pipeline_mode = #tpu.pipeline_mode<synchronous>, transform_indices = @transform_4, window_bounds = array<i64: 32, 32>}, {pipeline_mode = #tpu.pipeline_mode<synchronous>, transform_indices = @transform_5, window_bounds = array<i64: 1, 32>}, {pipeline_mode = #tpu.pipeline_mode<synchronous>, transform_indices = @transform_6, window_bounds = array<i64: 1, 32>}, {pipeline_mode = #tpu.pipeline_mode<synchronous>, transform_indices = @transform_7, window_bounds = array<i64: 1, 1>}, {transform_indices = @transform_8, window_bounds = array<i64: 16, 32>}, {transform_indices = @transform_9, window_bounds = array<i64: 16, 8>}]} {
    %c0 = arith.constant 0 : index
    %c0_0 = arith.constant 0 : index
    %0 = vector.load %arg1[%c0, %c0_0] : memref<16x32xf32, #tpu.memory_space<vmem>>, vector<16x32xf32>
    %c0_1 = arith.constant 0 : index
    %c0_2 = arith.constant 0 : index
    %1 = vector.load %arg2[%c0_1, %c0_2] : memref<128x32xf32, #tpu.memory_space<vmem>>, vector<128x32xf32>
    %c0_3 = arith.constant 0 : index
    %c0_4 = arith.constant 0 : index
    %2 = vector.load %arg3[%c0_3, %c0_4] : memref<32x32xf32, #tpu.memory_space<vmem>>, vector<32x32xf32>
    %cst = arith.constant dense<0.000000e+00> : vector<16x32xf32>
    %3 = tpu.matmul %0, %2, %cst {dimension_numbers = #tpu.dot_dimension_numbers<[1], [0], [0], [1], [0, 0, 1, 1], [], []>} : vector<16x32xf32>, vector<32x32xf32>, vector<16x32xf32> -> vector<16x32xf32>
    %c0_5 = arith.constant 0 : index
    %c0_6 = arith.constant 0 : index
    %4 = vector.load %arg4[%c0_5, %c0_6] : memref<1x32xf32, #tpu.memory_space<vmem>>, vector<1x32xf32>
    %5 = vector.broadcast %4 : vector<1x32xf32> to vector<16x32xf32>
    %6 = arith.addf %3, %5 : vector<16x32xf32>
    %c0_7 = arith.constant 0 : index
    %c0_8 = arith.constant 0 : index
    %7 = vector.load %arg5[%c0_7, %c0_8] : memref<32x32xf32, #tpu.memory_space<vmem>>, vector<32x32xf32>
    %cst_9 = arith.constant dense<0.000000e+00> : vector<128x32xf32>
    %8 = tpu.matmul %1, %7, %cst_9 {dimension_numbers = #tpu.dot_dimension_numbers<[1], [0], [0], [1], [0, 0, 1, 1], [], []>} : vector<128x32xf32>, vector<32x32xf32>, vector<128x32xf32> -> vector<128x32xf32>
    %c0_10 = arith.constant 0 : index
    %c0_11 = arith.constant 0 : index
    %9 = vector.load %arg6[%c0_10, %c0_11] : memref<1x32xf32, #tpu.memory_space<vmem>>, vector<1x32xf32>
    %10 = vector.broadcast %9 : vector<1x32xf32> to vector<128x32xf32>
    %11 = arith.addf %8, %10 : vector<128x32xf32>
    %12 = vector.shape_cast %11 : vector<128x32xf32> to vector<16x8x32xf32>
    %13 = vector.shape_cast %6 : vector<16x32xf32> to vector<16x1x32xf32>
    %14 = vector.broadcast %13 : vector<16x1x32xf32> to vector<16x8x32xf32>
    %15 = arith.addf %12, %14 : vector<16x8x32xf32>
    %16 = math.tanh %15 : vector<16x8x32xf32>
    %c0_12 = arith.constant 0 : index
    %c0_13 = arith.constant 0 : index
    %17 = vector.load %arg7[%c0_12, %c0_13] : memref<1x32xf32, #tpu.memory_space<vmem>>, vector<1x32xf32>
    %18 = vector.shape_cast %17 : vector<1x32xf32> to vector<1x1x32xf32>
    %19 = vector.broadcast %18 : vector<1x1x32xf32> to vector<16x8x32xf32>
    %20 = arith.mulf %16, %19 : vector<16x8x32xf32>
    %cst_14 = arith.constant dense<0.000000e+00> : vector<16x8xf32>
    %21 = vector.multi_reduction <add>, %20, %cst_14 [2] : vector<16x8x32xf32> to vector<16x8xf32>
    %c0_15 = arith.constant 0 : index
    %c0_16 = arith.constant 0 : index
    %22 = vector.load %arg8[%c0_15, %c0_16] : memref<1x1xf32, #tpu.memory_space<vmem>>, vector<1x1xf32>
    %23 = vector.broadcast %22 : vector<1x1xf32> to vector<16x8xf32>
    %24 = arith.addf %21, %23 : vector<16x8xf32>
    %cst_17 = arith.constant dense<0xFF800000> : vector<16xf32>
    %25 = vector.multi_reduction <maximumf>, %24, %cst_17 [1] : vector<16x8xf32> to vector<16xf32>
    %26 = vector.shape_cast %25 : vector<16xf32> to vector<16x1xf32>
    %27 = vector.broadcast %26 : vector<16x1xf32> to vector<16x8xf32>
    %28 = arith.subf %24, %27 : vector<16x8xf32>
    %29 = math.exp %28 : vector<16x8xf32>
    %cst_18 = arith.constant dense<0.000000e+00> : vector<16xf32>
    %30 = vector.multi_reduction <add>, %29, %cst_18 [1] : vector<16x8xf32> to vector<16xf32>
    %31 = vector.shape_cast %30 : vector<16xf32> to vector<16x1xf32>
    %32 = vector.broadcast %31 : vector<16x1xf32> to vector<16x8xf32>
    %33 = arith.divf %29, %32 : vector<16x8xf32>
    %34 = vector.shape_cast %1 : vector<128x32xf32> to vector<16x8x32xf32>
    %35 = vector.extract_strided_slice %33 {offsets = [0, 0], sizes = [16, 1], strides = [1, 1]} : vector<16x8xf32> to vector<16x1xf32>
    %36 = vector.extract_strided_slice %34 {offsets = [0, 0, 0], sizes = [16, 1, 32], strides = [1, 1, 1]} : vector<16x8x32xf32> to vector<16x1x32xf32>
    %37 = vector.shape_cast %36 : vector<16x1x32xf32> to vector<16x32xf32>
    %38 = vector.broadcast %35 : vector<16x1xf32> to vector<16x32xf32>
    %39 = arith.mulf %38, %37 : vector<16x32xf32>
    %40 = vector.extract_strided_slice %33 {offsets = [0, 1], sizes = [16, 1], strides = [1, 1]} : vector<16x8xf32> to vector<16x1xf32>
    %41 = vector.extract_strided_slice %34 {offsets = [0, 1, 0], sizes = [16, 1, 32], strides = [1, 1, 1]} : vector<16x8x32xf32> to vector<16x1x32xf32>
    %42 = vector.shape_cast %41 : vector<16x1x32xf32> to vector<16x32xf32>
    %43 = vector.broadcast %40 : vector<16x1xf32> to vector<16x32xf32>
    %44 = arith.mulf %43, %42 : vector<16x32xf32>
    %45 = arith.addf %39, %44 : vector<16x32xf32>
    %46 = vector.extract_strided_slice %33 {offsets = [0, 2], sizes = [16, 1], strides = [1, 1]} : vector<16x8xf32> to vector<16x1xf32>
    %47 = vector.extract_strided_slice %34 {offsets = [0, 2, 0], sizes = [16, 1, 32], strides = [1, 1, 1]} : vector<16x8x32xf32> to vector<16x1x32xf32>
    %48 = vector.shape_cast %47 : vector<16x1x32xf32> to vector<16x32xf32>
    %49 = vector.broadcast %46 : vector<16x1xf32> to vector<16x32xf32>
    %50 = arith.mulf %49, %48 : vector<16x32xf32>
    %51 = arith.addf %45, %50 : vector<16x32xf32>
    %52 = vector.extract_strided_slice %33 {offsets = [0, 3], sizes = [16, 1], strides = [1, 1]} : vector<16x8xf32> to vector<16x1xf32>
    %53 = vector.extract_strided_slice %34 {offsets = [0, 3, 0], sizes = [16, 1, 32], strides = [1, 1, 1]} : vector<16x8x32xf32> to vector<16x1x32xf32>
    %54 = vector.shape_cast %53 : vector<16x1x32xf32> to vector<16x32xf32>
    %55 = vector.broadcast %52 : vector<16x1xf32> to vector<16x32xf32>
    %56 = arith.mulf %55, %54 : vector<16x32xf32>
    %57 = arith.addf %51, %56 : vector<16x32xf32>
    %58 = vector.extract_strided_slice %33 {offsets = [0, 4], sizes = [16, 1], strides = [1, 1]} : vector<16x8xf32> to vector<16x1xf32>
    %59 = vector.extract_strided_slice %34 {offsets = [0, 4, 0], sizes = [16, 1, 32], strides = [1, 1, 1]} : vector<16x8x32xf32> to vector<16x1x32xf32>
    %60 = vector.shape_cast %59 : vector<16x1x32xf32> to vector<16x32xf32>
    %61 = vector.broadcast %58 : vector<16x1xf32> to vector<16x32xf32>
    %62 = arith.mulf %61, %60 : vector<16x32xf32>
    %63 = arith.addf %57, %62 : vector<16x32xf32>
    %64 = vector.extract_strided_slice %33 {offsets = [0, 5], sizes = [16, 1], strides = [1, 1]} : vector<16x8xf32> to vector<16x1xf32>
    %65 = vector.extract_strided_slice %34 {offsets = [0, 5, 0], sizes = [16, 1, 32], strides = [1, 1, 1]} : vector<16x8x32xf32> to vector<16x1x32xf32>
    %66 = vector.shape_cast %65 : vector<16x1x32xf32> to vector<16x32xf32>
    %67 = vector.broadcast %64 : vector<16x1xf32> to vector<16x32xf32>
    %68 = arith.mulf %67, %66 : vector<16x32xf32>
    %69 = arith.addf %63, %68 : vector<16x32xf32>
    %70 = vector.extract_strided_slice %33 {offsets = [0, 6], sizes = [16, 1], strides = [1, 1]} : vector<16x8xf32> to vector<16x1xf32>
    %71 = vector.extract_strided_slice %34 {offsets = [0, 6, 0], sizes = [16, 1, 32], strides = [1, 1, 1]} : vector<16x8x32xf32> to vector<16x1x32xf32>
    %72 = vector.shape_cast %71 : vector<16x1x32xf32> to vector<16x32xf32>
    %73 = vector.broadcast %70 : vector<16x1xf32> to vector<16x32xf32>
    %74 = arith.mulf %73, %72 : vector<16x32xf32>
    %75 = arith.addf %69, %74 : vector<16x32xf32>
    %76 = vector.extract_strided_slice %33 {offsets = [0, 7], sizes = [16, 1], strides = [1, 1]} : vector<16x8xf32> to vector<16x1xf32>
    %77 = vector.extract_strided_slice %34 {offsets = [0, 7, 0], sizes = [16, 1, 32], strides = [1, 1, 1]} : vector<16x8x32xf32> to vector<16x1x32xf32>
    %78 = vector.shape_cast %77 : vector<16x1x32xf32> to vector<16x32xf32>
    %79 = vector.broadcast %76 : vector<16x1xf32> to vector<16x32xf32>
    %80 = arith.mulf %79, %78 : vector<16x32xf32>
    %81 = arith.addf %75, %80 : vector<16x32xf32>
    %c0_19 = arith.constant 0 : index
    %c0_20 = arith.constant 0 : index
    %82 = vector.load %arg9[%c0_19, %c0_20] : memref<16x32xf32, #tpu.memory_space<vmem>>, vector<16x32xf32>
    tpu.vector_store %arg9[%c0_19, %c0_20], %81 {strides = array<i32>} : memref<16x32xf32, #tpu.memory_space<vmem>>, vector<16x32xf32>,
    %c0_21 = arith.constant 0 : index
    %c0_22 = arith.constant 0 : index
    %83 = vector.load %arg10[%c0_21, %c0_22] : memref<16x8xf32, #tpu.memory_space<vmem>>, vector<16x8xf32>
    tpu.vector_store %arg10[%c0_21, %c0_22], %33 {strides = array<i32>} : memref<16x8xf32, #tpu.memory_space<vmem>>, vector<16x8xf32>,
    return
  }
  func.func @transform_0(%arg0: i32) -> (i32, i32) {
    %c0_i32 = arith.constant 0 : i32
    %c0_i32_0 = arith.constant 0 : i32
    return %arg0, %c0_i32 : i32, i32
  }
  func.func @transform_1(%arg0: i32) -> (i32, i32) {
    %c0_i32 = arith.constant 0 : i32
    %c0_i32_0 = arith.constant 0 : i32
    return %arg0, %c0_i32 : i32, i32
  }
  func.func @transform_2(%arg0: i32) -> (i32, i32) {
    %c0_i32 = arith.constant 0 : i32
    %c0_i32_0 = arith.constant 0 : i32
    %c0_i32_1 = arith.constant 0 : i32
    return %c0_i32, %c0_i32_0 : i32, i32
  }
  func.func @transform_3(%arg0: i32) -> (i32, i32) {
    %c0_i32 = arith.constant 0 : i32
    %c0_i32_0 = arith.constant 0 : i32
    %c0_i32_1 = arith.constant 0 : i32
    return %c0_i32, %c0_i32_0 : i32, i32
  }
  func.func @transform_4(%arg0: i32) -> (i32, i32) {
    %c0_i32 = arith.constant 0 : i32
    %c0_i32_0 = arith.constant 0 : i32
    %c0_i32_1 = arith.constant 0 : i32
    return %c0_i32, %c0_i32_0 : i32, i32
  }
  func.func @transform_5(%arg0: i32) -> (i32, i32) {
    %c0_i32 = arith.constant 0 : i32
    %c0_i32_0 = arith.constant 0 : i32
    %c0_i32_1 = arith.constant 0 : i32
    return %c0_i32, %c0_i32_0 : i32, i32
  }
  func.func @transform_6(%arg0: i32) -> (i32, i32) {
    %c0_i32 = arith.constant 0 : i32
    %c0_i32_0 = arith.constant 0 : i32
    %c0_i32_1 = arith.constant 0 : i32
    return %c0_i32, %c0_i32_0 : i32, i32
  }
  func.func @transform_7(%arg0: i32) -> (i32, i32) {
    %c0_i32 = arith.constant 0 : i32
    %c0_i32_0 = arith.constant 0 : i32
    %c0_i32_1 = arith.constant 0 : i32
    return %c0_i32, %c0_i32_0 : i32, i32
  }
  func.func @transform_8(%arg0: i32) -> (i32, i32) {
    %c0_i32 = arith.constant 0 : i32
    %c0_i32_0 = arith.constant 0 : i32
    return %arg0, %c0_i32 : i32, i32
  }
  func.func @transform_9(%arg0: i32) -> (i32, i32) {
    %c0_i32 = arith.constant 0 : i32
    %c0_i32_0 = arith.constant 0 : i32
    return %arg0, %c0_i32 : i32, i32
  }
}

</mosaic_0001>

<bundles_post_ra>
// kernel: tpu_custom_call.1
= control target key start
LH: loop header
LB: loop body
LE: loop exit
PB: predicated region body
PF: predicated region fallthrough
CT: control target
= control target key end

     0   :  { %s11506_s0 = inlined_call_operand.vmem [shape: f32[16,32], index: 0, kind: input, shape index: {}]   ;;  %s11507_s1 = inlined_call_operand.vmem [shape: f32[128,32], index: 1, kind: input, shape index: {}]   ;;  %s11508_s2 = inlined_call_operand.vmem [shape: f32[32,32], index: 2, kind: input, shape index: {}]   ;;  %s11509_s3 = inlined_call_operand.vmem [shape: f32[1,32], index: 3, kind: input, shape index: {}]   ;;  %s11510_s4 = inlined_call_operand.vmem [shape: f32[32,32], index: 4, kind: input, shape index: {}]   ;;  %s11511_s5 = inlined_call_operand.vmem [shape: f32[1,32], index: 5, kind: input, shape index: {}]   ;;  %s11512_s6 = inlined_call_operand.vmem [shape: f32[1,32], index: 6, kind: input, shape index: {}]   ;;  %s11513_s7 = inlined_call_operand.<no memory space> [shape: f32[1,1], index: 7, kind: input, shape index: {}]   ;;  %s11514_s8 = inlined_call_operand.hbm [shape: f32[16,32], index: 8, kind: output, shape index: {0}]   ;;  %s11515_s9 = inlined_call_operand.vmem [shape: f32[16,8], index: 9, kind: output, shape index: {1}]  }
   0x1   :  { %v15_v0 = vstv %s11513_s7 }
   0x2   :  { %16 = vst [vmem:[#allocation2] sm:$0x1] %v15_v0 }
   0x3   :  { %v55_v1 = vld [vmem:[%s11508_s2 + $0x18] sm:$0xff]  ;;  %v11518_v3 = vlaneseq  ;;  %v11516_v4 = vmov 0   ;;  %v54_v5 = vld [vmem:[%s11508_s2 + $0x10] sm:$0xff]  ;;  %v53_v7 = vld [vmem:[%s11508_s2 + $0x8] sm:$0xff]  ;;  %vm60_vm0 = vcmask 261120  }
   0x4   :  { %79 = vmatpush.msra.mxu0 %v55_v1  ;;  %6250 = vset.pattern.permute.xlu1 %v11516_v4  ;;  %v93_v6 = vld [vmem:[%s11510_s4 + $0x18] sm:$0xff]  ;;  %v92_v9 = vld [vmem:[%s11510_s4 + $0x10] sm:$0xff]  ;;  %v52_v11 = vld [vmem:[%s11508_s2] sm:$0xff] }
   0x5   :  { %6234 = vmatpush.msra.mxu1 %v93_v6  ;;  %v6908_v8 = vshrl.u32 %v11518_v3, 7  ;;  %6235 = vmatpush.msra.mxu2 %v93_v6  ;;  %v91_v12 = vld [vmem:[%s11510_s4 + $0x8] sm:$0xff]  ;;  %v34_v13 = vld [vmem:[%s11506_s0] sm:$0xff] }
   0x6   :  { %80 = vmatpush.msra.mxu0 %v54_v5  ;;  %6236 = vmatpush.msra.mxu3 %v93_v6  ;;  %v90_v14 = vld [vmem:[%s11510_s4] sm:$0xff]  ;;  %v6932_v15 = vld [vmem:[%s11507_s1 + $0x8] sm:$0xff] }
   0x7   :  { %v6914_v10 = vadd.s32 24, %v6908_v8  ;;  %6237 = vmatpush.msra.mxu1 %v92_v9  ;;  %6238 = vmatpush.msra.mxu2 %v92_v9  ;;  %v6937_v16 = vld [vmem:[%s11507_s1] sm:$0xff] }
   0x8   :  { %81 = vmatpush.msra.mxu0 %v53_v7  ;;  %6239 = vmatpush.msra.mxu3 %v92_v9 }
   0x9   :  { %v6669_v2 = vld [vmem:[#allocation2] ss:$0 sm:$0xff]  ;;  %6252 = vset.pattern.permute.xlu2 %v6914_v10  ;;  %6240 = vmatpush.msra.mxu1 %v91_v12 }
   0xa   :  { %363 = vperm.xlu1 %6250, %v6669_v2   ;;  %82 = vmatpush.msra.mxu0 %v52_v11 }
   0xb   :  { %17 = vsyncpa [#allocation4], 0  ;;  %6216 = vmatmul.msk.f32.vlgmr.msra.gmra.mxu0 %vm60_vm0, %v34_v13  ;;  %6241 = vmatpush.msra.mxu2 %v91_v12  ;;  %v6943_v17 = vld [vmem:[%s11507_s1 + $0x30] sm:$0xff]  ;;  %v6948_v18 = vld [vmem:[%s11507_s1 + $0x58] sm:$0xff]  ;;  %v6954_v19 = vperm.slane %v6937_v16, 0  ;;  %v6957_v20 = vadd.s32 8, %v6908_v8 }
   0xc   :  { %6242 = vmatpush.msra.mxu3 %v91_v12  ;;  %6243 = vmatpush.msra.mxu1 %v90_v14  ;;  %v35_v21 = vld [vmem:[%s11506_s0 + $0x8] sm:$0xff]  ;;  %v945_v22 = vperm.slane %v6932_v15, 0  ;;  %v6973_v23 = vld [vmem:[%s11507_s1 + $0x38] sm:$0xff]  ;;  %v6978_v24 = vld [vmem:[%s11507_s1 + $0x60] sm:$0xff]  ;;  %v6986_v26 = vadd.s32 16, %v6908_v8  ;;  %v1070_v49 = vperm.slane %v6943_v17, 0 }
   0xd   :  { %6219 = vmatmul.msk.f32.vlgmr.msra.gmra.mxu1 %vm60_vm0, %v6932_v15  ;;  %11794 = vst [vmem:[#allocation6_spill] sm:$0xff] %v6954_v19  ;;  %6244 = vmatpush.msra.mxu2 %v90_v14  ;;  %v6983_v25 = vld [vmem:[%s11507_s1 + $0x10] sm:$0xff]  ;;  %v7001_v27 = vld [vmem:[%s11507_s1 + $0x40] sm:$0xff]  ;;  %v7009_v28 = vld [vmem:[%s11507_s1 + $0x18] sm:$0xff]  ;;  %v7317_v4 = vperm.slane %v6978_v24, 0  ;;  %vm416_vm1 = vcmask 1041409  }
   0xe   :  { %6245 = vmatpush.msra.mxu3 %v90_v14  ;;  %6224 = vmatmul.msk.f32.vlgmr.msra.gmra.mxu2 %vm60_vm0, %v6943_v17  ;;  %v7016_v29 = vld [vmem:[%s11507_s1 + $0x48] sm:$0xff]  ;;  %v995_v30 = vperm.slane %v7009_v28, 0  ;;  %v7024_v31 = vperm.slane %v6983_v25, 0  ;;  %v7038_v33 = vld [vmem:[%s11507_s1 + $0x20] sm:$0xff]  ;;  %v7048_v34 = vld [vmem:[%s11507_s1 + $0x70] sm:$0xff]  ;;  %v7062_v36 = vperm.slane %v7001_v27, 0 }
   0xf   :  { %6229 = vmatmul.msk.f32.vlgmr.msra.gmra.mxu3 %vm60_vm0, %v6948_v18  ;;  %158 = vmatpush.msrb.mxu0 %v93_v6  ;;  %v7033_v32 = vld [vmem:[%s11507_s1 + $0x68] sm:$0xff]  ;;  %v7057_v35 = vld [vmem:[%s11507_s1 + $0x78] sm:$0xff]  ;;  %v7075_v38 = vld [vmem:[%s11507_s1 + $0x50] sm:$0xff]  ;;  %v7082_v39 = vperm.slane %v7038_v33, 0  ;;  %11824 = vst [vmem:[#allocation36_spill] sm:$0xff] %v7317_v4  ;;  %vm418_vm2 = vcmask 1042434  }
  0x10   :  { %6251 = vset.pattern.permute.xlu0 %v6957_v20  ;;  %11795 = vst [vmem:[#allocation7_spill] sm:$0xff] %v7024_v31  ;;  %v7068_v37 = vld [vmem:[%s11507_s1 + $0x28] sm:$0xff]  ;;  %v6670_v41 = vld [vmem:[%s11509_s3] ss:$0 sm:$0xff]  ;;  %vm420_vm3 = vcmask 1043459   ;;  %vm424_vm4 = vcmask 1045509  }
  0x11   :  { %943 = vperm.xlu2 %6252, %v6954_v19   ;;  %159 = vmatpush.msrb.mxu0 %v92_v9  ;;  %v7090_v40 = vperm.slane %v7068_v37, 0  ;;  %v7103_v42 = vld [vmem:[%s11511_s5] ss:$0 sm:$0xff]  ;;  %vm422_vm5 = vcmask 1044484   ;;  %vm426_vm6 = vcmask 1046534   ;;  %vm428_vm7 = vcmask 1047559  }
  0x12   :  { %6253 = vset.pattern.permute.xlu1 %v6908_v8  ;;  %v7121_v58 = vld [vmem:[%s11512_s6] ss:$0 sm:$0xff]  ;;  %vm439_vm8 = vcmask 64512   ;;  %s6200_s18 = sshll.u32 %s11514_s8, 4  ;;  %s6839_s8 = smov 128   ;;  %s6201_s18 = int_to_ptr.hbm [resolvable:$true] %s6200_s18 }
  0x13   :  { %6217 = vmatmul.msk.f32.gmra.mxu0 %vm60_vm0, %v35_v21  ;;  %s6840_s19 = smov 8  }
  0x14   :  { %160 = vmatpush.msrb.mxu0 %v91_v12 }
  0x15   :  { %6220 = vmatmul.msk.f32.gmra.mxu1 %vm60_vm0, %v6983_v25 }
  0x16   :  { %161 = vmatpush.msrb.mxu0 %v90_v14  ;;  %6225 = vmatmul.msk.f32.gmra.mxu2 %vm60_vm0, %v6973_v23 }
  0x17   :  { %6230 = vmatmul.msk.f32.gmra.mxu3 %vm60_vm0, %v6978_v24 }
  0x18   :  { %931 = vperm.xlu0 %6251, %v6954_v19  }
  0x19   :  { %6254 = vset.pattern.permute.xlu2 %v6986_v26 }
  0x1a   :  { %950 = vperm.xlu1 %6253, %v945_v22  }
  0x1b   :  { %6218 = vmatmul.msk.f32.vlgmr.msrb.gmra.mxu0 %vm60_vm0, %v6937_v16 }
  0x1d   :  { %6221 = vmatmul.msk.f32.gmra.mxu1 %vm60_vm0, %v7009_v28 }
  0x1e   :  { %6226 = vmatmul.msk.f32.gmra.mxu2 %vm60_vm0, %v7001_v27 }
  0x1f   :  { %6231 = vmatmul.msk.f32.gmra.mxu3 %vm60_vm0, %v7033_v32 }
  0x20   :  { %956 = vperm.xlu0 %6251, %v945_v22  }
  0x21   :  { %962 = vperm.xlu2 %6254, %v945_v22  }
  0x22   :  { %6255 = vset.pattern.permute.xlu1 %v6914_v10 }
  0x25   :  { %6222 = vmatmul.msk.f32.gmra.mxu1 %vm60_vm0, %v7038_v33 }
  0x26   :  { %6227 = vmatmul.msk.f32.gmra.mxu2 %vm60_vm0, %v7016_v29 }
  0x27   :  { %6232 = vmatmul.msk.f32.gmra.mxu3 %vm60_vm0, %v7048_v34 }
  0x28   :  { %1006 = vperm.xlu0 %6251, %v995_v30  }
  0x29   :  { %6256 = vset.pattern.permute.xlu2 %v6957_v20 }
  0x2a   :  { %968 = vperm.xlu1 %6255, %v945_v22  }
  0x2d   :  { %6223 = vmatmul.msk.f32.gmra.mxu1 %vm60_vm0, %v7068_v37 }
  0x2e   :  { %6228 = vmatmul.msk.f32.gmra.mxu2 %vm60_vm0, %v7075_v38 }
  0x2f   :  { %6233 = vmatmul.msk.f32.gmra.mxu3 %vm60_vm0, %v7057_v35 }
  0x30   :  { %1131 = vperm.xlu0 %6251, %v7062_v36  }
  0x31   :  { %981 = vperm.xlu2 %6256, %v7024_v31  }
  0x32   :  { %6257 = vset.pattern.permute.xlu1 %v6986_v26 }
  0x39   :  { %6258 = vset.pattern.permute.xlu2 %v6914_v10 }
  0x3a   :  { %987 = vperm.xlu1 %6257, %v7024_v31  }
  0x41   :  { %993 = vperm.xlu2 %6258, %v7024_v31  }
  0x42   :  { %6259 = vset.pattern.permute.xlu1 %v6908_v8 }
  0x49   :  { %6260 = vset.pattern.permute.xlu2 %v6986_v26 }
  0x4a   :  { %1000 = vperm.xlu1 %6259, %v995_v30  }
  0x51   :  { %1012 = vperm.xlu2 %6260, %v995_v30  }
  0x52   :  { %6261 = vset.pattern.permute.xlu1 %v6914_v10 }
  0x59   :  { %6262 = vset.pattern.permute.xlu2 %v6908_v8 }
  0x5a   :  { %1018 = vperm.xlu1 %6261, %v995_v30  }
  0x61   :  { %1025 = vperm.xlu2 %6262, %v7082_v39  }
  0x62   :  { %6263 = vset.pattern.permute.xlu1 %v6957_v20 }
  0x69   :  { %6264 = vset.pattern.permute.xlu2 %v6914_v10 }
  0x6a   :  { %1031 = vperm.xlu1 %6263, %v7082_v39  }
  0x71   :  { %1043 = vperm.xlu2 %6264, %v7082_v39  }
  0x72   :  { %6265 = vset.pattern.permute.xlu1 %v6908_v8 }
  0x79   :  { %6266 = vset.pattern.permute.xlu2 %v6957_v20 }
  0x7a   :  { %1050 = vperm.xlu1 %6265, %v7090_v40  }
  0x81   :  { %1056 = vperm.xlu2 %6266, %v7090_v40  }
  0x82   :  { %6267 = vset.pattern.permute.xlu1 %v6986_v26 }
  0x88   :  { %v84_v43 = vpop.f32.mrf.mxu0 }
  0x89   :  { %v7105_v44 = vadd.f32 %v6670_v41, %v84_v43  ;;  %6268 = vset.pattern.permute.xlu2 %v6908_v8 }
  0x8a   :  { %1062 = vperm.xlu1 %6267, %v7090_v40   ;;  %v166_v45 = vpop.f32.mrf.mxu1 }
  0x8b   :  { %v167_v46 = vadd.f32 %v7103_v42, %v166_v45  ;;  %v213_v47 = vrot.slane %v7105_v44, 1  ;;  %v218_v50 = vrot.slane %v7105_v44, 6  ;;  %v219_v60 = vrot.slane %v7105_v44, 7 }
  0x8c   :  { %v227_v13 = vperm.slane %v7105_v44, 0 }
  0x8d   :  { %v228_v48 = vperm.slane %v213_v47, 0  ;;  %v233_v53 = vperm.slane %v218_v50, 0  ;;  %v234_v1 = vperm.slane %v219_v60, 0 }
  0x8f   :  { %v260_v51 = vadd.f32 %v228_v48, %v167_v46 }
  0x90   :  { %v87_v52 = vpop.f32.mrf.mxu0 }
  0x91   :  { %6673 = vtanh.f32 %v260_v51  ;;  %1075 = vperm.xlu2 %6268, %v1070_v49   ;;  %v7113_v54 = vadd.f32 %v6670_v41, %v87_v52  ;;  %v181_v55 = vpop.f32.mrf.mxu2 }
  0x92   :  { %6269 = vset.pattern.permute.xlu1 %v6957_v20  ;;  %v7115_v56 = vpop.f32.mrf.mxu3  ;;  %v182_v57 = vadd.f32 %v7103_v42, %v181_v55 }
  0x93   :  { %v223_v61 = vrot.slane %v7113_v54, 4  ;;  %v220_v46 = vrot.slane %v7113_v54, 1 }
  0x94   :  { %v265_v59 = vadd.f32 %v233_v53, %v182_v57 }
  0x95   :  { %v239_v2 = vperm.slane %v223_v61, 0  ;;  %v236_v52 = vperm.slane %v220_v46, 0 }
  0x96   :  { %6675 = vtanh.f32 %v265_v59 }
  0x97   :  { %v6674_v62 = vpop.eup %6673 }
  0x98   :  { %v296_v63 = vmul.f32 %v6674_v62, %v7121_v58  ;;  %v163_v0 = vpop.f32.mrf.mxu0 }
  0x99   :  { %6270 = vset.pattern.permute.xlu2 %v6986_v26  ;;  %v184_v6 = vpop.f32.mrf.mxu2  ;;  %v164_v12 = vadd.f32 %v7103_v42, %v163_v0  ;;  %v7160_v0 = vperm.slane %v7033_v32, 0  ;;  %v7174_v32 = vperm.slane %v7016_v29, 0 }
  0x9a   :  { %1081 = vperm.xlu1 %6269, %v1070_v49   ;;  %v314_v5 = vsel %vm60_vm0, %v296_v63, 0.0  ;;  %v199_v7 = vpop.f32.mrf.mxu3  ;;  %v185_v9 = vadd.f32 %v7103_v42, %v184_v6  ;;  %v214_v6 = vrot.slane %v7105_v44, 2 }
  0x9b   :  { %315 = vadd.xlane.f32.xlu0 %v314_v5  ;;  %v200_v11 = vadd.f32 %v7103_v42, %v199_v7  ;;  %v259_v41 = vadd.f32 %v227_v13, %v164_v12  ;;  %v169_v7 = vpop.f32.mrf.mxu1 }
  0x9c   :  { %v6676_v14 = vpop.eup %6675  ;;  %v7132_v21 = vadd.f32 %v234_v1, %v185_v9 }
  0x9d   :  { %v271_v22 = vadd.f32 %v239_v2, %v200_v11  ;;  %v301_v30 = vmul.f32 %v6676_v14, %v7121_v58  ;;  %v7166_v2 = vperm.slane %v6983_v25, 1  ;;  %v226_v25 = vrot.slane %v7113_v54, 7 }
  0x9e   :  { %v229_v11 = vperm.slane %v214_v6, 0 }
  0x9f   :  { %6677 = vtanh.f32 %v271_v22  ;;  %v329_v43 = vsel %vm60_vm0, %v301_v30, 0.0  ;;  %v242_v13 = vperm.slane %v226_v25, 0  ;;  %v222_v30 = vrot.slane %v7113_v54, 3 }
  0xa0   :  { %6679 = vtanh.f32 %v259_v41  ;;  %v197_v41 = vadd.f32 %v7103_v42, %v7115_v56 }
  0xa1   :  { %1087 = vperm.xlu2 %6270, %v1070_v49   ;;  %v7137_v45 = vpop.f32.mrf.mxu2 }
  0xa2   :  { %6271 = vset.pattern.permute.xlu1 %v6914_v10  ;;  %v202_v1 = vpop.f32.mrf.mxu3  ;;  %v188_v56 = vadd.f32 %v7103_v42, %v7137_v45 }
  0xa3   :  { %330 = vadd.xlane.f32.xlu0 %v329_v43  ;;  %v238_v43 = vperm.slane %v222_v30, 0 }
  0xa5   :  { %v6678_v47 = vpop.eup %6677 }
  0xa6   :  { %v307_v48 = vmul.f32 %v6678_v47, %v7121_v58  ;;  %v6680_v50 = vpop.eup %6679  ;;  %v215_v47 = vrot.slane %v7105_v44, 3 }
  0xa7   :  { %v295_v57 = vmul.f32 %v6680_v50, %v7121_v58 }
  0xa8   :  { %v347_v51 = vsel %vm60_vm0, %v307_v48, 0.0  ;;  %v270_v48 = vadd.f32 %v238_v43, %v197_v41 }
  0xa9   :  { %6272 = vset.pattern.permute.xlu2 %v6957_v20  ;;  %v190_v53 = vpop.f32.mrf.mxu2  ;;  %v311_v60 = vsel %vm60_vm0, %v295_v57, 0.0 }
  0xaa   :  { %1093 = vperm.xlu1 %6271, %v1070_v49   ;;  %v191_v55 = vadd.f32 %v7103_v42, %v190_v53  ;;  %v7147_v49 = vperm.slane %v6973_v23, 0  ;;  %v7171_v5 = vpop.f32.mrf.mxu3 }
  0xab   :  { %348 = vadd.xlane.f32.xlu0 %v347_v51  ;;  %v172_v51 = vpop.f32.mrf.mxu1 }
  0xac   :  { %v268_v59 = vadd.f32 %v236_v52, %v191_v55  ;;  %11796 = vst [vmem:[#allocation8_spill] sm:$0xff] %v7147_v49  ;;  %v173_v53 = vadd.f32 %v7103_v42, %v172_v51  ;;  %v230_v55 = vperm.slane %v215_v47, 0 }
  0xae   :  { %6681 = vtanh.f32 %v268_v59  ;;  %v235_v59 = vperm.slane %v7113_v54, 0 }
  0xb0   :  { %v267_v25 = vadd.f32 %v235_v59, %v188_v56 }
  0xb1   :  { %1106 = vperm.xlu2 %6272, %v7147_v49  }
  0xb2   :  { %6273 = vset.pattern.permute.xlu1 %v6986_v26  ;;  %v208_v9 = vpop.f32.mrf.mxu3 }
  0xb3   :  { %312 = vadd.xlane.f32.xlu0 %v311_v60  ;;  %v209_v12 = vadd.f32 %v7103_v42, %v208_v9 }
  0xb4   :  { %v6682_v61 = vpop.eup %6681 }
  0xb5   :  { %v304_v62 = vmul.f32 %v6682_v61, %v7121_v58  ;;  %v274_v22 = vadd.f32 %v242_v13, %v209_v12  ;;  %v224_v61 = vrot.slane %v7113_v54, 5 }
  0xb7   :  { %v338_v63 = vsel %vm60_vm0, %v304_v62, 0.0  ;;  %v262_v62 = vadd.f32 %v230_v55, %v173_v53  ;;  %v240_v9 = vperm.slane %v224_v61, 0  ;;  %v7217_v53 = vpop.permute.xlu2 %943  ;;  %v175_v55 = vpop.f32.mrf.mxu1  ;;  %v225_v61 = vrot.slane %v7113_v54, 6 }
  0xb8   :  { %11798 = vst [vmem:[#allocation10_spill] sm:$0xff] %v7217_v53 }
  0xb9   :  { %6274 = vset.pattern.permute.xlu2 %v6914_v10 }
  0xba   :  { %1112 = vperm.xlu1 %6273, %v7147_v49  }
  0xbb   :  { %339 = vadd.xlane.f32.xlu0 %v338_v63 }
  0xc1   :  { %1118 = vperm.xlu2 %6274, %v7147_v49  }
  0xc2   :  { %6275 = vset.pattern.permute.xlu1 %v6908_v8 }
  0xc9   :  { %6276 = vset.pattern.permute.xlu2 %v6986_v26 }
  0xca   :  { %1125 = vperm.xlu1 %6275, %v7062_v36  }
  0xcf   :  { %1256 = vperm.xlu0 %6251, %v7160_v0  }
  0xd1   :  { %1137 = vperm.xlu2 %6276, %v7062_v36  }
  0xd2   :  { %6277 = vset.pattern.permute.xlu1 %v6914_v10 }
  0xd7   :  { %1525 = vperm.xlu0 %6251, %v7166_v2  }
  0xd9   :  { %6278 = vset.pattern.permute.xlu2 %v6908_v8 }
  0xda   :  { %1143 = vperm.xlu1 %6277, %v7062_v36   ;;  %v170_v36 = vadd.f32 %v7103_v42, %v169_v7  ;;  %v203_v7 = vadd.f32 %v7103_v42, %v202_v1 }
  0xdc   :  { %v261_v14 = vadd.f32 %v229_v11, %v170_v36  ;;  %v272_v11 = vadd.f32 %v240_v9, %v203_v7  ;;  %v206_v7 = vadd.f32 %v7103_v42, %v7171_v5  ;;  %v241_v9 = vperm.slane %v225_v61, 0 }
  0xde   :  { %6683 = vtanh.f32 %v261_v14 }
  0xdf   :  { %6685 = vtanh.f32 %v274_v22 }
  0xe0   :  { %6687 = vtanh.f32 %v7132_v21 }
  0xe1   :  { %1150 = vperm.xlu2 %6278, %v7174_v32   ;;  %6689 = vtanh.f32 %v270_v48 }
  0xe2   :  { %6279 = vset.pattern.permute.xlu1 %v6957_v20  ;;  %6691 = vtanh.f32 %v262_v62 }
  0xe3   :  { %6693 = vtanh.f32 %v267_v25 }
  0xe4   :  { %v6684_v46 = vpop.eup %6683  ;;  %6695 = vtanh.f32 %v272_v11  ;;  %v273_v11 = vadd.f32 %v241_v9, %v206_v7 }
  0xe5   :  { %v6686_v50 = vpop.eup %6685  ;;  %v297_v52 = vmul.f32 %v6684_v46, %v7121_v58 }
  0xe6   :  { %v310_v57 = vmul.f32 %v6686_v50, %v7121_v58  ;;  %v6688_v6 = vpop.eup %6687  ;;  %v7209_v50 = vpop.permute.xlu1 %363 }
  0xe7   :  { %v317_v60 = vsel %vm60_vm0, %v297_v52, 0.0  ;;  %v6690_v21 = vpop.eup %6689  ;;  %v302_v45 = vmul.f32 %v6688_v6, %v7121_v58  ;;  %v216_v52 = vrot.slane %v7105_v44, 4  ;;  %v7224_v6 = vpop.permute.xlu2 %962 }
  0xe8   :  { %v356_v63 = vsel %vm60_vm0, %v310_v57, 0.0  ;;  %v306_v36 = vmul.f32 %v6690_v21, %v7121_v58  ;;  %v6692_v13 = vpop.eup %6691  ;;  %v176_v57 = vadd.f32 %v7103_v42, %v175_v55  ;;  %11799 = vst [vmem:[#allocation11_spill] sm:$0xff] %v7224_v6 }
  0xe9   :  { %6280 = vset.pattern.permute.xlu2 %v6914_v10  ;;  %v332_v12 = vsel %vm60_vm0, %v302_v45, 0.0  ;;  %v6694_v22 = vpop.eup %6693  ;;  %v298_v1 = vmul.f32 %v6692_v13, %v7121_v58  ;;  %v231_v56 = vperm.slane %v216_v52, 0 }
  0xea   :  { %v344_v14 = vsel %vm60_vm0, %v306_v36, 0.0  ;;  %v303_v30 = vmul.f32 %v6694_v22, %v7121_v58  ;;  %v6696_v43 = vpop.eup %6695 }
  0xeb   :  { %v320_v41 = vsel %vm60_vm0, %v298_v1, 0.0  ;;  %v308_v47 = vmul.f32 %v6696_v43, %v7121_v58  ;;  %v263_v62 = vadd.f32 %v231_v56, %v176_v57 }
  0xec   :  { %v335_v46 = vsel %vm60_vm0, %v303_v30, 0.0 }
  0xed   :  { %v350_v48 = vsel %vm60_vm0, %v308_v47, 0.0  ;;  %6697 = vtanh.f32 %v263_v62 }
  0xee   :  { %v7213_v51 = vpop.permute.xlu1 %950 }
  0xef   :  { %11797 = vst [vmem:[#allocation9_spill] sm:$0xff] %v7213_v51  ;;  %v7232_v13 = vpop.permute.xlu2 %981 }
  0xf0   :  { %11801 = vst [vmem:[#allocation13_spill] sm:$0xff] %v7232_v13 }
  0xf6   :  { %v7220_v59 = vpop.permute.xlu1 %968 }
  0xfe   :  { %v7229_v45 = vpop.permute.xlu1 %987 }
  0xff   :  { %11800 = vst [vmem:[#allocation12_spill] sm:$0xff] %v7229_v45 }
 0x101   :  { %357 = vadd.xlane.f32.xlu0 %v356_v63  ;;  %v193_v63 = vpop.f32.mrf.mxu2 }
 0x102   :  { %v194_v21 = vadd.f32 %v7103_v42, %v193_v63 }
 0x104   :  { %318 = vadd.xlane.f32.xlu1 %v317_v60  ;;  %v221_v60 = vrot.slane %v7113_v54, 2  ;;  %v178_v54 = vpop.f32.mrf.mxu1 }
 0x105   :  { %v179_v22 = vadd.f32 %v7103_v42, %v178_v54 }
 0x106   :  { %v237_v25 = vperm.slane %v221_v60, 0  ;;  %v7236_v5 = vpop.permute.xlu1 %1000 }
 0x107   :  { %11802 = vst [vmem:[#allocation14_spill] sm:$0xff] %v7236_v5 }
 0x108   :  { %v269_v36 = vadd.f32 %v237_v25, %v194_v21  ;;  %v7254_v21 = vpop.permute.xlu0 %931 }
 0x109   :  { %11806 = vst [vmem:[#allocation18_spill] sm:$0xff] %v7254_v21 }
 0x10a   :  { %345 = vadd.xlane.f32.xlu2 %v344_v14  ;;  %v6698_v14 = vpop.eup %6697  ;;  %6699 = vtanh.f32 %v269_v36 }
 0x10b   :  { %6701 = vtanh.f32 %v273_v11  ;;  %v299_v30 = vmul.f32 %v6698_v14, %v7121_v58 }
 0x10c   :  { %333 = vadd.xlane.f32.xlu1 %v332_v12  ;;  %v217_v12 = vrot.slane %v7105_v44, 5 }
 0x10d   :  { %v323_v47 = vsel %vm60_vm0, %v299_v30, 0.0 }
 0x10e   :  { %v232_v1 = vperm.slane %v217_v12, 0  ;;  %v7243_v55 = vpop.permute.xlu1 %1018  ;;  %v7266_v12 = vperm.slane %v7075_v38, 0 }
 0x10f   :  { %11803 = vst [vmem:[#allocation15_spill] sm:$0xff] %v7243_v55 }
 0x110   :  { %v6700_v43 = vpop.eup %6699  ;;  %v7261_v36 = vpop.permute.xlu0 %956  ;;  %11811 = vst [vmem:[#allocation23_spill] sm:$0xff] %v7266_v12 }
 0x111   :  { %v6702_v44 = vpop.eup %6701  ;;  %11809 = vst [vmem:[#allocation21_spill] sm:$0xff] %v7261_v36  ;;  %v7916_v36 = vld [vmem:[%s11507_s1 + $0x60] sm:$0xff] }
 0x112   :  { %336 = vadd.xlane.f32.xlu2 %v335_v46  ;;  %v7238_v46 = vpop.permute.xlu2 %993  ;;  %v309_v52 = vmul.f32 %v6702_v44, %v7121_v58 }
 0x114   :  { %321 = vadd.xlane.f32.xlu1 %v320_v41  ;;  %v264_v41 = vadd.f32 %v232_v1, %v179_v22  ;;  %v353_v56 = vsel %vm60_vm0, %v309_v52, 0.0  ;;  %v7280_v1 = vperm.slane %v6973_v23, 1 }
 0x116   :  { %6703 = vtanh.f32 %v264_v41  ;;  %v7250_v62 = vpop.permute.xlu1 %1031  ;;  %1650 = vperm.xlu0 %6251, %v7280_v1  }
 0x117   :  { %11804 = vst [vmem:[#allocation16_spill] sm:$0xff] %v7250_v62 }
 0x118   :  { %v7271_v54 = vpop.permute.xlu0 %1006 }
 0x11a   :  { %v7246_v57 = vpop.permute.xlu2 %1012 }
 0x11c   :  { %351 = vadd.xlane.f32.xlu1 %v350_v48  ;;  %v305_v48 = vmul.f32 %v6700_v43, %v7121_v58  ;;  %v6704_v60 = vpop.eup %6703 }
 0x11d   :  { %v300_v61 = vmul.f32 %v6704_v60, %v7121_v58 }
 0x11e   :  { %v341_v42 = vsel %vm60_vm0, %v305_v48, 0.0  ;;  %v7257_v7 = vpop.permute.xlu1 %1050 }
 0x11f   :  { %v326_v25 = vsel %vm60_vm0, %v300_v61, 0.0  ;;  %11807 = vst [vmem:[#allocation19_spill] sm:$0xff] %v7257_v7 }
 0x120   :  { %v7285_v30 = vpop.permute.xlu0 %1131 }
 0x121   :  { %11816 = vst [vmem:[#allocation28_spill] sm:$0xff] %v7285_v30 }
 0x122   :  { %v7252_v63 = vpop.permute.xlu2 %1025 }
 0x123   :  { %11805 = vst [vmem:[#allocation17_spill] sm:$0xff] %v7252_v63 }
 0x126   :  { %v7263_v11 = vpop.permute.xlu1 %1062 }
 0x127   :  { %11810 = vst [vmem:[#allocation22_spill] sm:$0xff] %v7263_v11 }
 0x128   :  { %v7296_v23 = vpop.xlane.xlu0 %315 }
 0x12a   :  { %1168 = vperm.xlu2 %6280, %v7174_v32   ;;  %v7259_v9 = vpop.permute.xlu2 %1043 }
 0x12b   :  { %11808 = vst [vmem:[#allocation20_spill] sm:$0xff] %v7259_v9 }
 0x12e   :  { %v7273_v14 = vpop.permute.xlu1 %1081 }
 0x12f   :  { %11813 = vst [vmem:[#allocation25_spill] sm:$0xff] %v7273_v14 }
 0x132   :  { %6282 = vset.pattern.permute.xlu2 %v6957_v20  ;;  %v7268_v58 = vpop.permute.xlu2 %1056 }
 0x133   :  { %11812 = vst [vmem:[#allocation24_spill] sm:$0xff] %v7268_v58 }
 0x135   :  { %1156 = vperm.xlu1 %6279, %v7174_v32  }
 0x136   :  { %v7283_v38 = vpop.permute.xlu1 %1093 }
 0x137   :  { %11815 = vst [vmem:[#allocation27_spill] sm:$0xff] %v7283_v38 }
 0x13a   :  { %v7275_v22 = vpop.permute.xlu2 %1075 }
 0x13b   :  { %11814 = vst [vmem:[#allocation26_spill] sm:$0xff] %v7275_v22 }
 0x13d   :  { %6281 = vset.pattern.permute.xlu1 %v6908_v8 }
 0x13e   :  { %v7291_v43 = vpop.permute.xlu1 %1112 }
 0x13f   :  { %11818 = vst [vmem:[#allocation30_spill] sm:$0xff] %v7291_v43 }
 0x142   :  { %v7287_v41 = vpop.permute.xlu2 %1087 }
 0x143   :  { %11817 = vst [vmem:[#allocation29_spill] sm:$0xff] %v7287_v41 }
 0x146   :  { %v7299_v48 = vpop.permute.xlu1 %1125 }
 0x14a   :  { %v7294_v44 = vpop.permute.xlu2 %1106 }
 0x14b   :  { %11819 = vst [vmem:[#allocation31_spill] sm:$0xff] %v7294_v44 }
 0x152   :  { %v7301_v52 = vpop.permute.xlu2 %1118 }
 0x153   :  { %324 = vadd.xlane.f32.xlu2 %v323_v47  ;;  %v1195_v47 = vperm.slane %v6948_v18, 0  ;;  %11820 = vst [vmem:[#allocation32_spill] sm:$0xff] %v7301_v52 }
 0x15a   :  { %v7308_v60 = vpop.permute.xlu2 %1137 }
 0x15b   :  { %354 = vadd.xlane.f32.xlu2 %v353_v56  ;;  %v7306_v56 = vpop.permute.xlu1 %1143  ;;  %11822 = vst [vmem:[#allocation34_spill] sm:$0xff] %v7308_v60 }
 0x15c   :  { %11821 = vst [vmem:[#allocation33_spill] sm:$0xff] %v7306_v56 }
 0x15f   :  { %342 = vadd.xlane.f32.xlu1 %v341_v42  ;;  %v7304_v42 = vpop.xlane.xlu0 %330 }
 0x163   :  { %327 = vadd.xlane.f32.xlu2 %v326_v25  ;;  %v7313_v25 = vpop.permute.xlu2 %1150 }
 0x164   :  { %11823 = vst [vmem:[#allocation35_spill] sm:$0xff] %v7313_v25 }
 0x167   :  { %v349_v18 = vpop.xlane.xlu0 %348 }
 0x16f   :  { %v7319_v3 = vpop.xlane.xlu0 %312 }
 0x177   :  { %v7311_v61 = vpop.xlane.xlu1 %318  ;;  %v340_v38 = vpop.xlane.xlu0 %339 }
 0x178   :  { %1175 = vperm.xlu1 %6281, %v7266_v12   ;;  %v7350_v53 = vadd.f32 %v7209_v50, %v340_v38 }
 0x17b   :  { %1181 = vperm.xlu2 %6282, %v7266_v12  }
 0x17d   :  { %v346_v43 = vpop.xlane.xlu2 %345 }
 0x17f   :  { %v7321_v30 = vpop.xlane.xlu1 %333  ;;  %v7329_v25 = vpop.permute.xlu0 %1256 }
 0x180   :  { %6283 = vset.pattern.permute.xlu1 %v6986_v26  ;;  %11825 = vst [vmem:[#allocation37_spill] sm:$0xff] %v7329_v25  ;;  %v11829_v25 = vlaneseq }
 0x182   :  { %v7347_v11 = vand.u32 127, %v11829_v25 }
 0x183   :  { %6284 = vset.pattern.permute.xlu2 %v6908_v8 }
 0x184   :  { %11830 = vst [vmem:[#allocation41_spill] sm:$0xff] %v7347_v11  ;;  %v409_v38 = vperm.slane %v7350_v53, %v7347_v11 }
 0x187   :  { %v7325_v22 = vpop.xlane.xlu1 %321  ;;  %v7337_v5 = vpop.permute.xlu0 %1525 }
 0x188   :  { %1187 = vperm.xlu1 %6283, %v7266_v12   ;;  %11827 = vst [vmem:[#allocation39_spill] sm:$0xff] %v7337_v5 }
 0x18b   :  { %1200 = vperm.xlu2 %6284, %v1195_v47  }
 0x18f   :  { %v352_v58 = vpop.xlane.xlu1 %351  ;;  %v358_v41 = vpop.xlane.xlu0 %357 }
 0x190   :  { %6285 = vset.pattern.permute.xlu1 %v6957_v20  ;;  %v7368_v44 = vadd.f32 %v7209_v50, %v352_v58 }
 0x193   :  { %6286 = vset.pattern.permute.xlu2 %v6986_v26 }
 0x198   :  { %1206 = vperm.xlu1 %6285, %v1195_v47  }
 0x19b   :  { %1212 = vperm.xlu2 %6286, %v1195_v47  }
 0x1a0   :  { %6287 = vset.pattern.permute.xlu1 %v6914_v10 }
 0x1a3   :  { %6288 = vset.pattern.permute.xlu2 %v6957_v20 }
 0x1a7   :  { %v7339_v13 = vpop.permute.xlu1 %1156 }
 0x1a8   :  { %1218 = vperm.xlu1 %6287, %v1195_v47   ;;  %v337_v47 = vpop.xlane.xlu2 %336  ;;  %11828 = vst [vmem:[#allocation40_spill] sm:$0xff] %v7339_v13 }
 0x1a9   :  { %v7344_v21 = vadd.f32 %v7209_v50, %v337_v47  ;;  %v7360_v47 = vadd.f32 %v7209_v50, %v349_v18  ;;  %v7376_v18 = vadd.f32 %v7209_v50, %v358_v41 }
 0x1ab   :  { %1231 = vperm.xlu2 %6288, %v7317_v4   ;;  %v408_v5 = vperm.slane %v7344_v21, %v7347_v11  ;;  %v412_v58 = vperm.slane %v7360_v47, %v7347_v11 }
 0x1ad   :  { %v430_v51 = vsel %vm416_vm1, %v409_v38, %v408_v5 }
 0x1b0   :  { %6289 = vset.pattern.permute.xlu1 %v6986_v26  ;;  %v7333_v55 = vpop.permute.xlu2 %1168 }
 0x1b1   :  { %11826 = vst [vmem:[#allocation38_spill] sm:$0xff] %v7333_v55  ;;  %v7355_v55 = vadd.f32 %v7209_v50, %v346_v43 }
 0x1b3   :  { %6290 = vset.pattern.permute.xlu2 %v6914_v10 }
 0x1b8   :  { %1237 = vperm.xlu1 %6289, %v7317_v4  }
 0x1bb   :  { %1243 = vperm.xlu2 %6290, %v7317_v4  }
 0x1c0   :  { %6291 = vset.pattern.permute.xlu1 %v6908_v8 }
 0x1c3   :  { %6292 = vset.pattern.permute.xlu2 %v6986_v26 }
 0x1c6   :  { %v7341_v6 = vpop.xlane.xlu2 %324 }
 0x1c8   :  { %1250 = vperm.xlu1 %6291, %v7160_v0  }
 0x1cb   :  { %1262 = vperm.xlu2 %6292, %v7160_v0  }
 0x1ce   :  { %v355_v25 = vpop.xlane.xlu2 %354 }
 0x1cf   :  { %v7371_v43 = vadd.f32 %v7209_v50, %v355_v25  ;;  %v413_v25 = vperm.slane %v7368_v44, %v7347_v11 }
 0x1d0   :  { %6293 = vset.pattern.permute.xlu1 %v6914_v10 }
 0x1d1   :  { %v414_v5 = vperm.slane %v7371_v43, %v7347_v11 }
 0x1d2   :  { %v343_v14 = vpop.xlane.xlu1 %342 }
 0x1d3   :  { %v7363_v52 = vadd.f32 %v7209_v50, %v343_v14  ;;  %v411_v14 = vperm.slane %v7355_v55, %v7347_v11  ;;  %6294 = vset.pattern.permute.xlu2 %v6908_v8 }
 0x1d5   :  { %v410_v7 = vperm.slane %v7363_v52, %v7347_v11 }
 0x1d7   :  { %v431_v4 = vsel %vm418_vm2, %v410_v7, %v430_v51  ;;  %v415_v51 = vperm.slane %v7376_v18, %v7347_v11 }
 0x1d8   :  { %v432_v41 = vsel %vm420_vm3, %v411_v14, %v431_v4  ;;  %1268 = vperm.xlu1 %6293, %v7160_v0   ;;  %v7398_v4 = vperm.slane %v7048_v34, 0  ;;  %v7406_v14 = vperm.slane %v6978_v24, 1  ;;  %v11832_v34 = vmov 0  }
 0x1d9   :  { %v433_v38 = vsel %vm422_vm5, %v412_v58, %v432_v41  ;;  %v1464_v24 = vperm.slane %v6937_v16, 1  ;;  %v7451_v16 = vperm.slane %v7038_v33, 1  ;;  %v7466_v58 = vadd.f32 %v7209_v50, %v7296_v23 }
 0x1da   :  { %v434_v7 = vsel %vm424_vm4, %v413_v25, %v433_v38  ;;  %v7470_v33 = vadd.f32 %v7209_v50, %v7325_v22  ;;  %v7474_v25 = vadd.f32 %v7209_v50, %v7341_v6 }
 0x1db   :  { %v435_v49 = vsel %vm426_vm6, %v414_v5, %v434_v7  ;;  %1275 = vperm.xlu2 %6294, %v7398_v4   ;;  %11834 = vst [vmem:[#allocation44_spill] sm:$0xff] %v7451_v16  ;;  %v401_v23 = vperm.slane %v7466_v58, %v7347_v11  ;;  %v7497_v7 = vadd.f32 %v7209_v50, %v7304_v42 }
 0x1dc   :  { %v436_v31 = vsel %vm428_vm7, %v415_v51, %v435_v49  ;;  %v7458_v49 = vadd.f32 %v7209_v50, %v7319_v3  ;;  %v403_v22 = vperm.slane %v7470_v33, %v7347_v11  ;;  %v404_v6 = vperm.slane %v7474_v25, %v7347_v11 }
 0x1dd   :  { %v443_v0 = vsel %vm439_vm8, %v436_v31, -inf  ;;  %v7412_v31 = vperm.slane %v7057_v35, 0  ;;  %v7427_v35 = vperm.slane %v6932_v15, 1  ;;  %v7442_v15 = vperm.slane %v7009_v28, 1  ;;  %v328_v28 = vpop.xlane.xlu2 %327 }
 0x1de   :  { %444 = vmax.xlane.f32.xlu0 %v443_v0  ;;  %v400_v3 = vperm.slane %v7458_v49, %v7347_v11  ;;  %v7479_v41 = vadd.f32 %v7209_v50, %v328_v28 }
 0x1df   :  { %11831 = vst [vmem:[#allocation42_spill] sm:$0xff] %v7412_v31 }
 0x1e0   :  { %6295 = vset.pattern.permute.xlu1 %v6957_v20  ;;  %11833 = vst [vmem:[#allocation43_spill] sm:$0xff] %v7427_v35  ;;  %v417_v38 = vsel %vm416_vm1, %v401_v23, %v400_v3  ;;  %v405_v51 = vperm.slane %v7479_v41, %v7347_v11  ;;  %v406_v3 = vperm.slane %v7497_v7, %v7347_v11 }
 0x1e3   :  { %6296 = vset.pattern.permute.xlu2 %v6914_v10 }
 0x1e5   :  { %v7490_v5 = vpop.permute.xlu2 %1181 }
 0x1e6   :  { %11835 = vst [vmem:[#allocation45_spill] sm:$0xff] %v7490_v5 }
 0x1e8   :  { %1281 = vperm.xlu1 %6295, %v7398_v4  }
 0x1eb   :  { %1293 = vperm.xlu2 %6296, %v7398_v4  }
 0x1ed   :  { %v7513_v23 = vpop.permute.xlu2 %1200 }
 0x1ee   :  { %11836 = vst [vmem:[#allocation46_spill] sm:$0xff] %v7513_v23 }
 0x1f0   :  { %6297 = vset.pattern.permute.xlu1 %v6908_v8 }
 0x1f2   :  { %1775 = vperm.xlu0 %6251, %v7406_v14  }
 0x1f3   :  { %6298 = vset.pattern.permute.xlu2 %v6957_v20 }
 0x1f8   :  { %1300 = vperm.xlu1 %6297, %v7412_v31  }
 0x1fa   :  { %6342 = vset.pattern.permute.xlu0 %v11832_v34 }
 0x1fb   :  { %1306 = vperm.xlu2 %6298, %v7412_v31  }
 0x200   :  { %6299 = vset.pattern.permute.xlu1 %v6986_v26 }
 0x203   :  { %6300 = vset.pattern.permute.xlu2 %v6908_v8 }
 0x208   :  { %1312 = vperm.xlu1 %6299, %v7412_v31  }
 0x20b   :  { %1469 = vperm.xlu2 %6300, %v1464_v24  }
 0x210   :  { %6301 = vset.pattern.permute.xlu1 %v6957_v20 }
 0x213   :  { %6302 = vset.pattern.permute.xlu2 %v6986_v26 }
 0x218   :  { %1475 = vperm.xlu1 %6301, %v1464_v24  }
 0x21b   :  { %1481 = vperm.xlu2 %6302, %v1464_v24  }
 0x220   :  { %6303 = vset.pattern.permute.xlu1 %v6914_v10 }
 0x223   :  { %6304 = vset.pattern.permute.xlu2 %v6957_v20 }
 0x228   :  { %1487 = vperm.xlu1 %6303, %v1464_v24  }
 0x22b   :  { %1500 = vperm.xlu2 %6304, %v7427_v35  }
 0x230   :  { %6305 = vset.pattern.permute.xlu1 %v6986_v26 }
 0x233   :  { %6306 = vset.pattern.permute.xlu2 %v6914_v10 }
 0x238   :  { %1506 = vperm.xlu1 %6305, %v7427_v35  }
 0x23b   :  { %1512 = vperm.xlu2 %6306, %v7427_v35   ;;  %v7504_v35 = vadd.f32 %v7209_v50, %v7321_v30  ;;  %v7518_v30 = vpop.permute.xlu2 %1212 }
 0x23c   :  { %11837 = vst [vmem:[#allocation47_spill] sm:$0xff] %v7518_v30 }
 0x240   :  { %6307 = vset.pattern.permute.xlu1 %v6908_v8 }
 0x243   :  { %6308 = vset.pattern.permute.xlu2 %v6986_v26 }
 0x248   :  { %1519 = vperm.xlu1 %6307, %v7166_v2  }
 0x24b   :  { %1531 = vperm.xlu2 %6308, %v7166_v2  }
 0x250   :  { %6309 = vset.pattern.permute.xlu1 %v6914_v10 }
 0x253   :  { %6310 = vset.pattern.permute.xlu2 %v6908_v8 }
 0x258   :  { %1537 = vperm.xlu1 %6309, %v7166_v2   ;;  %v7462_v2 = vadd.f32 %v7209_v50, %v7311_v61 }
 0x25a   :  { %v402_v61 = vperm.slane %v7462_v2, %v7347_v11 }
 0x25b   :  { %1544 = vperm.xlu2 %6310, %v7442_v15  }
 0x25c   :  { %v419_v0 = vsel %vm418_vm2, %v402_v61, %v417_v38  ;;  %v407_v61 = vperm.slane %v7504_v35, %v7347_v11  ;;  %v7521_v38 = vpop.permute.xlu2 %1231 }
 0x25d   :  { %v421_v24 = vsel %vm420_vm3, %v403_v22, %v419_v0  ;;  %v1589_v22 = vperm.slane %v7068_v37, 1  ;;  %11838 = vst [vmem:[#allocation48_spill] sm:$0xff] %v7521_v38 }
 0x25e   :  { %v423_v28 = vsel %vm422_vm5, %v404_v6, %v421_v24 }
 0x25f   :  { %v425_v5 = vsel %vm424_vm4, %v405_v51, %v423_v28  ;;  %v7530_v51 = vperm.slane %v6943_v17, 1 }
 0x260   :  { %6311 = vset.pattern.permute.xlu1 %v6957_v20  ;;  %v427_v42 = vsel %vm426_vm6, %v406_v3, %v425_v5 }
 0x261   :  { %v429_v6 = vsel %vm428_vm7, %v407_v61, %v427_v42  ;;  %11841 = vst [vmem:[#allocation51_spill] sm:$0xff] %v7530_v51  ;;  %v7555_v61 = vperm.slane %v7001_v27, 1 }
 0x262   :  { %v440_v50 = vsel %vm439_vm8, %v429_v6, -inf }
 0x263   :  { %6312 = vset.pattern.permute.xlu2 %v6914_v10 }
 0x264   :  { %v7523_v5 = vpop.permute.xlu2 %1243 }
 0x265   :  { %11839 = vst [vmem:[#allocation49_spill] sm:$0xff] %v7523_v5  ;;  %v7580_v5 = vpop.permute.xlu0 %1650 }
 0x266   :  { %11854 = vst [vmem:[#allocation64_spill] sm:$0xff] %v7580_v5 }
 0x268   :  { %1550 = vperm.xlu1 %6311, %v7442_v15  }
 0x26b   :  { %1562 = vperm.xlu2 %6312, %v7442_v15  }
 0x26c   :  { %v7527_v37 = vpop.permute.xlu2 %1262 }
 0x26d   :  { %11840 = vst [vmem:[#allocation50_spill] sm:$0xff] %v7527_v37  ;;  %v7588_v30 = vpop.xlane.xlu0 %444 }
 0x270   :  { %6313 = vset.pattern.permute.xlu1 %v6908_v8 }
 0x273   :  { %6314 = vset.pattern.permute.xlu2 %v6957_v20 }
 0x274   :  { %v7534_v0 = vpop.permute.xlu2 %1275 }
 0x275   :  { %11842 = vst [vmem:[#allocation52_spill] sm:$0xff] %v7534_v0  ;;  %v460_v0 = vperm.slane %v7588_v30, 4 }
 0x278   :  { %1569 = vperm.xlu1 %6313, %v7451_v16  }
 0x27c   :  { %v7537_v24 = vpop.permute.xlu2 %1293 }
 0x27d   :  { %11843 = vst [vmem:[#allocation53_spill] sm:$0xff] %v7537_v24 }
 0x280   :  { %6315 = vset.pattern.permute.xlu1 %v6986_v26 }
 0x284   :  { %v7541_v28 = vpop.permute.xlu2 %1306 }
 0x285   :  { %11844 = vst [vmem:[#allocation54_spill] sm:$0xff] %v7541_v28  ;;  %v7568_v28 = vpop.permute.xlu1 %1175 }
 0x286   :  { %11850 = vst [vmem:[#allocation60_spill] sm:$0xff] %v7568_v28 }
 0x288   :  { %1581 = vperm.xlu1 %6315, %v7451_v16  }
 0x28c   :  { %v7544_v17 = vpop.permute.xlu2 %1469 }
 0x28d   :  { %11845 = vst [vmem:[#allocation55_spill] sm:$0xff] %v7544_v17  ;;  %v7574_v37 = vpop.permute.xlu1 %1187 }
 0x28e   :  { %11852 = vst [vmem:[#allocation62_spill] sm:$0xff] %v7574_v37 }
 0x290   :  { %6317 = vset.pattern.permute.xlu1 %v6957_v20 }
 0x294   :  { %441 = vmax.xlane.f32.xlu2 %v440_v50  ;;  %v7548_v3 = vpop.permute.xlu2 %1481  ;;  %v7566_v50 = vperm.slane %v7016_v29, 1 }
 0x295   :  { %11846 = vst [vmem:[#allocation56_spill] sm:$0xff] %v7548_v3  ;;  %v7582_v29 = vpop.permute.xlu1 %1206 }
 0x296   :  { %11849 = vst [vmem:[#allocation59_spill] sm:$0xff] %v7566_v50 }
 0x297   :  { %11855 = vst [vmem:[#allocation65_spill] sm:$0xff] %v7582_v29  ;;  %v457_v29 = vperm.slane %v7588_v30, 1 }
 0x298   :  { %1600 = vperm.xlu1 %6317, %v1589_v22  }
 0x29c   :  { %v7552_v42 = vpop.permute.xlu2 %1500 }
 0x29d   :  { %11847 = vst [vmem:[#allocation57_spill] sm:$0xff] %v7552_v42  ;;  %v7595_v28 = vpop.permute.xlu1 %1218 }
 0x29e   :  { %11856 = vst [vmem:[#allocation66_spill] sm:$0xff] %v7595_v28 }
 0x2a0   :  { %6319 = vset.pattern.permute.xlu1 %v6914_v10 }
 0x2a8   :  { %1612 = vperm.xlu1 %6319, %v1589_v22  }
 0x2ac   :  { %1575 = vperm.xlu2 %6314, %v7451_v16  }
 0x2b0   :  { %6321 = vset.pattern.permute.xlu1 %v6986_v26 }
 0x2b4   :  { %6316 = vset.pattern.permute.xlu2 %v6908_v8 }
 0x2b8   :  { %1631 = vperm.xlu1 %6321, %v7530_v51  }
 0x2bc   :  { %1594 = vperm.xlu2 %6316, %v1589_v22  }
 0x2c0   :  { %6323 = vset.pattern.permute.xlu1 %v6908_v8 }
 0x2c4   :  { %6318 = vset.pattern.permute.xlu2 %v6986_v26 }
 0x2c8   :  { %1644 = vperm.xlu1 %6323, %v7280_v1  }
 0x2cc   :  { %1606 = vperm.xlu2 %6318, %v1589_v22   ;;  %v7559_v22 = vpop.permute.xlu2 %1512 }
 0x2d0   :  { %6325 = vset.pattern.permute.xlu1 %v6914_v10 }
 0x2d4   :  { %6320 = vset.pattern.permute.xlu2 %v6957_v20  ;;  %v7563_v6 = vpop.permute.xlu2 %1531 }
 0x2d5   :  { %11848 = vst [vmem:[#allocation58_spill] sm:$0xff] %v7563_v6  ;;  %v7879_v6 = vld [vmem:[%s11507_s1 + $0x10] sm:$0xff] }
 0x2d8   :  { %1662 = vperm.xlu1 %6325, %v7280_v1  }
 0x2dc   :  { %1625 = vperm.xlu2 %6320, %v7530_v51   ;;  %v7572_v27 = vpop.permute.xlu2 %1544 }
 0x2dd   :  { %11851 = vst [vmem:[#allocation61_spill] sm:$0xff] %v7572_v27 }
 0x2e0   :  { %6327 = vset.pattern.permute.xlu1 %v6957_v20 }
 0x2e4   :  { %6322 = vset.pattern.permute.xlu2 %v6914_v10  ;;  %v7578_v38 = vpop.permute.xlu2 %1562 }
 0x2e5   :  { %11853 = vst [vmem:[#allocation63_spill] sm:$0xff] %v7578_v38 }
 0x2e8   :  { %1675 = vperm.xlu1 %6327, %v7555_v61  }
 0x2ec   :  { %1637 = vperm.xlu2 %6322, %v7530_v51  }
 0x2f0   :  { %6329 = vset.pattern.permute.xlu1 %v6908_v8 }
 0x2f4   :  { %6324 = vset.pattern.permute.xlu2 %v6986_v26 }
 0x2f8   :  { %1694 = vperm.xlu1 %6329, %v7566_v50  }
 0x2fc   :  { %1656 = vperm.xlu2 %6324, %v7280_v1  }
 0x300   :  { %6331 = vset.pattern.permute.xlu1 %v6986_v26 }
 0x304   :  { %6326 = vset.pattern.permute.xlu2 %v6908_v8 }
 0x307   :  { %v7586_v3 = vpop.xlane.xlu2 %441 }
 0x308   :  { %1706 = vperm.xlu1 %6331, %v7566_v50   ;;  %v450_v37 = vperm.slane %v7586_v3, 2  ;;  %v449_v27 = vperm.slane %v7586_v3, 1  ;;  %v452_v5 = vperm.slane %v7586_v3, 4 }
 0x30a   :  { %v482_v1 = vsub.f32 %v7462_v2, %v450_v37  ;;  %v481_v38 = vsub.f32 %v7466_v58, %v449_v27  ;;  %v484_v24 = vsub.f32 %v7474_v25, %v452_v5  ;;  %v489_v2 = vsub.f32 %v7350_v53, %v457_v29  ;;  %v7603_v27 = vpop.permute.xlu1 %1237 }
 0x30b   :  { %v454_v58 = vperm.slane %v7586_v3, 6  ;;  %11857 = vst [vmem:[#allocation67_spill] sm:$0xff] %v7603_v27  ;;  %v492_v25 = vsub.f32 %v7360_v47, %v460_v0  ;;  %v459_v0 = vperm.slane %v7588_v30, 3 }
 0x30c   :  { %1669 = vperm.xlu2 %6326, %v7555_v61   ;;  %v500_v17 = vmul.f32 1.442695, %v482_v1  ;;  %v498_v23 = vmul.f32 1.442695, %v481_v38  ;;  %v504_v37 = vmul.f32 1.442695, %v484_v24 }
 0x30d   :  { %v514_v28 = vmul.f32 1.442695, %v489_v2  ;;  %v486_v53 = vsub.f32 %v7497_v7, %v454_v58  ;;  %v520_v24 = vmul.f32 1.442695, %v492_v25 }
 0x30e   :  { %6705 = vpow2.f32 %v500_v17  ;;  %v463_v17 = vperm.slane %v7588_v30, 7 }
 0x30f   :  { %6707 = vpow2.f32 %v498_v23  ;;  %v456_v23 = vperm.slane %v7588_v30, 0  ;;  %v508_v38 = vmul.f32 1.442695, %v486_v53 }
 0x310   :  { %6333 = vset.pattern.permute.xlu1 %v11832_v34  ;;  %6709 = vpow2.f32 %v504_v37  ;;  %v495_v47 = vsub.f32 %v7376_v18, %v463_v17  ;;  %v448_v37 = vperm.slane %v7586_v3, 0  ;;  %v451_v17 = vperm.slane %v7586_v3, 3 }
 0x311   :  { %6711 = vpow2.f32 %v514_v28  ;;  %v488_v7 = vsub.f32 %v7344_v21, %v456_v23  ;;  %v491_v21 = vsub.f32 %v7355_v55, %v459_v0  ;;  %v462_v23 = vperm.slane %v7588_v30, 6 }
 0x312   :  { %v7616_v5 = vpop.permute.xlu1 %1250  ;;  %6713 = vpow2.f32 %v508_v38  ;;  %v526_v53 = vmul.f32 1.442695, %v495_v47  ;;  %v480_v18 = vsub.f32 %v7458_v49, %v448_v37  ;;  %v483_v49 = vsub.f32 %v7470_v33, %v451_v17 }
 0x313   :  { %11858 = vst [vmem:[#allocation68_spill] sm:$0xff] %v7616_v5  ;;  %6715 = vpow2.f32 %v520_v24  ;;  %v512_v28 = vmul.f32 1.442695, %v488_v7  ;;  %v518_v38 = vmul.f32 1.442695, %v491_v21  ;;  %v494_v0 = vsub.f32 %v7371_v43, %v462_v23  ;;  %v7670_v23 = vld [vmem:[%s11507_s1 + $0x8] sm:$0xff] }
 0x314   :  { %v7606_v51 = vpop.eup %6705  ;;  %6328 = vset.pattern.permute.xlu2 %v6914_v10  ;;  %v496_v24 = vmul.f32 1.442695, %v480_v18  ;;  %v502_v37 = vmul.f32 1.442695, %v483_v49  ;;  %v455_v33 = vperm.slane %v7586_v3, 7 }
 0x315   :  { %v7609_v1 = vpop.eup %6707  ;;  %551 = vperm.xlu1 %6333, %v7606_v51   ;;  %6717 = vpow2.f32 %v512_v28  ;;  %v524_v28 = vmul.f32 1.442695, %v494_v0 }
 0x316   :  { %548 = vperm.xlu0 %6342, %v7609_v1   ;;  %v7619_v29 = vpop.eup %6709  ;;  %6719 = vpow2.f32 %v526_v53  ;;  %v453_v53 = vperm.slane %v7586_v3, 5  ;;  %v458_v3 = vperm.slane %v7588_v30, 2 }
 0x317   :  { %11859 = vst [vmem:[#allocation69_spill] sm:$0xff] %v7619_v29  ;;  %v7622_v2 = vpop.eup %6711  ;;  %6721 = vpow2.f32 %v518_v38  ;;  %v7673_v38 = vperm.slane %v7670_v23, 2 }
 0x318   :  { %11860 = vst [vmem:[#allocation70_spill] sm:$0xff] %v7622_v2  ;;  %v7632_v25 = vpop.eup %6713  ;;  %6723 = vpow2.f32 %v496_v24  ;;  %v485_v43 = vsub.f32 %v7479_v41, %v453_v53  ;;  %v487_v41 = vsub.f32 %v7504_v35, %v455_v33  ;;  %v490_v35 = vsub.f32 %v7363_v52, %v458_v3  ;;  %v7705_v33 = vld [vmem:[%s11507_s1 + $0x50] sm:$0xff] }
 0x319   :  { %11862 = vst [vmem:[#allocation72_spill] sm:$0xff] %v7632_v25  ;;  %v7635_v27 = vpop.eup %6715  ;;  %6725 = vpow2.f32 %v524_v28 }
 0x31a   :  { %v7630_v58 = vpop.permute.xlu1 %1268  ;;  %11863 = vst [vmem:[#allocation73_spill] sm:$0xff] %v7635_v27  ;;  %6727 = vpow2.f32 %v502_v37  ;;  %v506_v24 = vmul.f32 1.442695, %v485_v43  ;;  %v510_v28 = vmul.f32 1.442695, %v487_v41  ;;  %v7689_v37 = vld [vmem:[%s11507_s1 + $0x30] sm:$0xff] }
 0x31b   :  { %11861 = vst [vmem:[#allocation71_spill] sm:$0xff] %v7630_v58  ;;  %v7645_v47 = vpop.eup %6717  ;;  %v7692_v53 = vperm.slane %v7689_v37, 2  ;;  %v461_v41 = vperm.slane %v7588_v30, 5  ;;  %v7941_v16 = vperm.slane %v7689_v37, 7 }
 0x31c   :  { %1687 = vperm.xlu2 %6328, %v7555_v61   ;;  %v7648_v55 = vpop.eup %6719  ;;  %6729 = vpow2.f32 %v506_v24  ;;  %v1714_v24 = vperm.slane %v7705_v33, 1 }
 0x31d   :  { %557 = vperm.xlu1 %6333, %v7619_v29   ;;  %11865 = vst [vmem:[#allocation75_spill] sm:$0xff] %v7648_v55  ;;  %v7655_v21 = vpop.eup %6721  ;;  %6731 = vpow2.f32 %v510_v28 }
 0x31e   :  { %572 = vperm.xlu0 %6342, %v7622_v2   ;;  %11866 = vst [vmem:[#allocation76_spill] sm:$0xff] %v7655_v21  ;;  %v7659_v58 = vpop.eup %6723 }
 0x31f   :  { %11868 = vst [vmem:[#allocation78_spill] sm:$0xff] %v7659_v58  ;;  %v7675_v17 = vpop.eup %6725 }
 0x320   :  { %11869 = vst [vmem:[#allocation79_spill] sm:$0xff] %v7675_v17  ;;  %v7679_v49 = vpop.eup %6727 }
 0x321   :  { %11919 = vst [vmem:[#allocation129_spill] sm:$0xff] %v7941_v16 }
 0x322   :  { %v7643_v7 = vpop.permute.xlu1 %1281 }
 0x323   :  { %11864 = vst [vmem:[#allocation74_spill] sm:$0xff] %v7643_v7  ;;  %v7712_v7 = vld [vmem:[%s11507_s1 + $0x58] sm:$0xff] }
 0x324   :  { %6330 = vset.pattern.permute.xlu2 %v6957_v20  ;;  %v7715_v52 = vperm.slane %v7712_v7, 2 }
 0x325   :  { %563 = vperm.xlu1 %6333, %v7632_v25   ;;  %v7762_v25 = vperm.slane %v7712_v7, 1 }
 0x326   :  { %581 = vperm.xlu0 %6342, %v7635_v27   ;;  %11873 = vst [vmem:[#allocation83_spill] sm:$0xff] %v7715_v52 }
 0x327   :  { %11883 = vst [vmem:[#allocation93_spill] sm:$0xff] %v7762_v25 }
 0x32a   :  { %v7657_v18 = vpop.permute.xlu1 %1300 }
 0x32b   :  { %11867 = vst [vmem:[#allocation77_spill] sm:$0xff] %v7657_v18  ;;  %v516_v18 = vmul.f32 1.442695, %v490_v35  ;;  %v7727_v35 = vld [vmem:[%s11507_s1] sm:$0xff] }
 0x32c   :  { %1700 = vperm.xlu2 %6330, %v7566_v50   ;;  %v7730_v27 = vperm.slane %v7727_v35, 3 }
 0x32d   :  { %569 = vperm.xlu1 %6333, %v7645_v47   ;;  %6733 = vpow2.f32 %v516_v18 }
 0x32e   :  { %590 = vperm.xlu0 %6342, %v7648_v55   ;;  %v493_v55 = vsub.f32 %v7368_v44, %v461_v41  ;;  %11876 = vst [vmem:[#allocation86_spill] sm:$0xff] %v7730_v27  ;;  %v7742_v44 = vld [vmem:[%s11507_s1 + $0x28] sm:$0xff] }
 0x330   :  { %v522_v30 = vmul.f32 1.442695, %v493_v55  ;;  %v7745_v55 = vperm.slane %v7742_v44, 3 }
 0x332   :  { %v7677_v0 = vpop.permute.xlu1 %1312  ;;  %6735 = vpow2.f32 %v522_v30  ;;  %11879 = vst [vmem:[#allocation89_spill] sm:$0xff] %v7745_v55 }
 0x333   :  { %11870 = vst [vmem:[#allocation80_spill] sm:$0xff] %v7677_v0  ;;  %v7696_v0 = vpop.eup %6729 }
 0x334   :  { %6332 = vset.pattern.permute.xlu2 %v11832_v34  ;;  %11872 = vst [vmem:[#allocation82_spill] sm:$0xff] %v7696_v0  ;;  %v7719_v28 = vpop.eup %6731 }
 0x335   :  { %545 = vperm.xlu2 %6332, %v7659_v58   ;;  %578 = vperm.xlu1 %6333, %v7655_v21   ;;  %11875 = vst [vmem:[#allocation85_spill] sm:$0xff] %v7719_v28  ;;  %v7810_v21 = vld [vmem:[%s11507_s1 + $0x70] sm:$0xff] }
 0x336   :  { %6359 = vset.pattern.permute.xlu0 %v6957_v20 }
 0x33a   :  { %v7694_v43 = vpop.permute.xlu1 %1475 }
 0x33b   :  { %11871 = vst [vmem:[#allocation81_spill] sm:$0xff] %v7694_v43 }
 0x33d   :  { %554 = vperm.xlu2 %6332, %v7679_v49   ;;  %587 = vperm.xlu1 %6333, %v7675_v17   ;;  %v7813_v17 = vperm.slane %v7810_v21, 4 }
 0x33e   :  { %2108 = vperm.xlu0 %6359, %v7673_v38  }
 0x33f   :  { %11892 = vst [vmem:[#allocation102_spill] sm:$0xff] %v7813_v17 }
 0x342   :  { %v7717_v3 = vpop.permute.xlu1 %1487 }
 0x343   :  { %11874 = vst [vmem:[#allocation84_spill] sm:$0xff] %v7717_v3  ;;  %v7734_v3 = vpop.eup %6733 }
 0x344   :  { %11878 = vst [vmem:[#allocation88_spill] sm:$0xff] %v7734_v3  ;;  %v7749_v41 = vpop.eup %6735 }
 0x345   :  { %560 = vperm.xlu2 %6332, %v7696_v0   ;;  %6335 = vset.pattern.permute.xlu1 %v6957_v20  ;;  %11881 = vst [vmem:[#allocation91_spill] sm:$0xff] %v7749_v41  ;;  %v7789_v0 = vpop.permute.xlu2 %1575 }
 0x346   :  { %2233 = vperm.xlu0 %6359, %v7692_v53   ;;  %11887 = vst [vmem:[#allocation97_spill] sm:$0xff] %v7789_v0 }
 0x34a   :  { %v7732_v43 = vpop.permute.xlu1 %1506 }
 0x34b   :  { %11877 = vst [vmem:[#allocation87_spill] sm:$0xff] %v7732_v43  ;;  %v7754_v43 = vperm.slane %v7705_v33, 3 }
 0x34d   :  { %566 = vperm.xlu2 %6332, %v7719_v28   ;;  %1725 = vperm.xlu1 %6335, %v1714_v24   ;;  %11882 = vst [vmem:[#allocation92_spill] sm:$0xff] %v7754_v43  ;;  %v7767_v28 = vld [vmem:[%s11507_s1 + $0x78] sm:$0xff] }
 0x34e   :  { %2358 = vperm.xlu0 %6359, %v7715_v52   ;;  %v7770_v5 = vperm.slane %v7767_v28, 3 }
 0x350   :  { %11884 = vst [vmem:[#allocation94_spill] sm:$0xff] %v7770_v5 }
 0x352   :  { %v7747_v18 = vpop.permute.xlu1 %1519 }
 0x353   :  { %11880 = vst [vmem:[#allocation90_spill] sm:$0xff] %v7747_v18  ;;  %v7803_v18 = vpop.permute.xlu0 %1775 }
 0x354   :  { %11890 = vst [vmem:[#allocation100_spill] sm:$0xff] %v7803_v18 }
 0x355   :  { %575 = vperm.xlu2 %6332, %v7734_v3   ;;  %6337 = vset.pattern.permute.xlu1 %v6914_v10 }
 0x356   :  { %2691 = vperm.xlu0 %6359, %v7730_v27  }
 0x35a   :  { %v7756_v30 = vpop.permute.xlu1 %1537 }
 0x35d   :  { %584 = vperm.xlu2 %6332, %v7749_v41   ;;  %1737 = vperm.xlu1 %6337, %v1714_v24  }
 0x35e   :  { %2816 = vperm.xlu0 %6359, %v7745_v55  }
 0x362   :  { %v7772_v41 = vpop.permute.xlu1 %1550 }
 0x365   :  { %6334 = vset.pattern.permute.xlu2 %v6908_v8  ;;  %6339 = vset.pattern.permute.xlu1 %v6986_v26 }
 0x366   :  { %2941 = vperm.xlu0 %6359, %v7754_v43   ;;  %v7779_v43 = vld [vmem:[%s11507_s1 + $0x20] sm:$0xff] }
 0x367   :  { %v7782_v34 = vperm.slane %v7779_v43, 4 }
 0x369   :  { %11885 = vst [vmem:[#allocation95_spill] sm:$0xff] %v7782_v34 }
 0x36a   :  { %v7784_v3 = vpop.permute.xlu1 %1569 }
 0x36b   :  { %11886 = vst [vmem:[#allocation96_spill] sm:$0xff] %v7784_v3  ;;  %v7919_v3 = vperm.slane %v7916_v36, 6 }
 0x36d   :  { %1719 = vperm.xlu2 %6334, %v1714_v24   ;;  %1756 = vperm.xlu1 %6339, %v7762_v25   ;;  %11912 = vst [vmem:[#allocation122_spill] sm:$0xff] %v7919_v3 }
 0x36e   :  { %3066 = vperm.xlu0 %6359, %v7770_v5   ;;  %v7794_v5 = vld [vmem:[%s11507_s1 + $0x48] sm:$0xff] }
 0x36f   :  { %v7797_v55 = vperm.slane %v7794_v5, 4 }
 0x371   :  { %11888 = vst [vmem:[#allocation98_spill] sm:$0xff] %v7797_v55 }
 0x372   :  { %v7799_v58 = vpop.permute.xlu1 %1581 }
 0x373   :  { %11889 = vst [vmem:[#allocation99_spill] sm:$0xff] %v7799_v58  ;;  %v7827_v58 = vld [vmem:[%s11507_s1 + $0x18] sm:$0xff] }
 0x375   :  { %6336 = vset.pattern.permute.xlu2 %v6986_v26  ;;  %6341 = vset.pattern.permute.xlu1 %v6908_v8 }
 0x376   :  { %3399 = vperm.xlu0 %6359, %v7782_v34   ;;  %v7805_v34 = vpop.permute.xlu2 %1594 }
 0x377   :  { %11891 = vst [vmem:[#allocation101_spill] sm:$0xff] %v7805_v34 }
 0x37a   :  { %v7815_v27 = vpop.permute.xlu1 %1600 }
 0x37b   :  { %11893 = vst [vmem:[#allocation103_spill] sm:$0xff] %v7815_v27 }
 0x37d   :  { %1731 = vperm.xlu2 %6336, %v1714_v24   ;;  %1769 = vperm.xlu1 %6341, %v7406_v14  }
 0x37e   :  { %3524 = vperm.xlu0 %6359, %v7797_v55   ;;  %v7820_v24 = vpop.permute.xlu2 %1606  ;;  %v7830_v55 = vperm.slane %v7827_v58, 5 }
 0x37f   :  { %11894 = vst [vmem:[#allocation104_spill] sm:$0xff] %v7820_v24  ;;  %v7842_v24 = vld [vmem:[%s11507_s1 + $0x40] sm:$0xff] }
 0x380   :  { %11895 = vst [vmem:[#allocation105_spill] sm:$0xff] %v7830_v55 }
 0x382   :  { %v7832_v34 = vpop.permute.xlu1 %1612 }
 0x383   :  { %11896 = vst [vmem:[#allocation106_spill] sm:$0xff] %v7832_v34  ;;  %v7857_v34 = vld [vmem:[%s11507_s1 + $0x68] sm:$0xff] }
 0x385   :  { %6338 = vset.pattern.permute.xlu2 %v6957_v20  ;;  %6344 = vset.pattern.permute.xlu1 %v6914_v10 }
 0x386   :  { %3649 = vperm.xlu0 %6359, %v7813_v17   ;;  %v7837_v27 = vpop.permute.xlu2 %1625  ;;  %v7845_v17 = vperm.slane %v7842_v24, 5 }
 0x387   :  { %11897 = vst [vmem:[#allocation107_spill] sm:$0xff] %v7837_v27  ;;  %v7860_v27 = vperm.slane %v7857_v34, 1 }
 0x388   :  { %v7822_v18 = vpop.permute.xlu0 %548  ;;  %11898 = vst [vmem:[#allocation108_spill] sm:$0xff] %v7845_v17 }
 0x38a   :  { %v7847_v9 = vpop.permute.xlu1 %1631 }
 0x38b   :  { %11899 = vst [vmem:[#allocation109_spill] sm:$0xff] %v7847_v9  ;;  %v7865_v9 = vperm.slane %v7857_v34, 5 }
 0x38d   :  { %1750 = vperm.xlu2 %6338, %v7762_v25   ;;  %1787 = vperm.xlu1 %6344, %v7406_v14   ;;  %11901 = vst [vmem:[#allocation111_spill] sm:$0xff] %v7865_v9 }
 0x38e   :  { %3982 = vperm.xlu0 %6359, %v7830_v55   ;;  %v7862_v55 = vpop.permute.xlu2 %1637 }
 0x38f   :  { %11900 = vst [vmem:[#allocation110_spill] sm:$0xff] %v7862_v55  ;;  %v7882_v55 = vperm.slane %v7879_v6, 6 }
 0x390   :  { %v7849_v13 = vpop.permute.xlu0 %572 }
 0x391   :  { %11904 = vst [vmem:[#allocation114_spill] sm:$0xff] %v7882_v55 }
 0x392   :  { %v7867_v2 = vpop.permute.xlu1 %1644 }
 0x393   :  { %11902 = vst [vmem:[#allocation112_spill] sm:$0xff] %v7867_v2 }
 0x395   :  { %6340 = vset.pattern.permute.xlu2 %v6914_v10  ;;  %6346 = vset.pattern.permute.xlu1 %v6957_v20 }
 0x396   :  { %4107 = vperm.xlu0 %6359, %v7845_v17   ;;  %v7874_v52 = vpop.permute.xlu2 %1656 }
 0x397   :  { %11903 = vst [vmem:[#allocation113_spill] sm:$0xff] %v7874_v52  ;;  %v7892_v52 = vperm.slane %v7810_v21, 1 }
 0x398   :  { %v7871_v17 = vpop.permute.xlu0 %581 }
 0x399   :  { %11906 = vst [vmem:[#allocation116_spill] sm:$0xff] %v7892_v52 }
 0x39a   :  { %v7884_v45 = vpop.permute.xlu1 %1662 }
 0x39b   :  { %11905 = vst [vmem:[#allocation115_spill] sm:$0xff] %v7884_v45 }
 0x39d   :  { %1762 = vperm.xlu2 %6340, %v7762_v25   ;;  %1800 = vperm.xlu1 %6346, %v7860_v27   ;;  %v7899_v25 = vld [vmem:[%s11507_s1 + $0x38] sm:$0xff] }
 0x39e   :  { %4232 = vperm.xlu0 %6359, %v7865_v9   ;;  %v7894_v9 = vpop.permute.xlu2 %1669  ;;  %v7902_v45 = vperm.slane %v7899_v25, 6 }
 0x39f   :  { %11907 = vst [vmem:[#allocation117_spill] sm:$0xff] %v7894_v9 }
 0x3a0   :  { %v7889_v2 = vpop.permute.xlu0 %590  ;;  %11908 = vst [vmem:[#allocation118_spill] sm:$0xff] %v7902_v45 }
 0x3a2   :  { %v7904_v50 = vpop.permute.xlu1 %1675 }
 0x3a3   :  { %11909 = vst [vmem:[#allocation119_spill] sm:$0xff] %v7904_v50 }
 0x3a5   :  { %6343 = vset.pattern.permute.xlu2 %v6986_v26  ;;  %6348 = vset.pattern.permute.xlu1 %v6908_v8 }
 0x3a6   :  { %4565 = vperm.xlu0 %6359, %v7882_v55   ;;  %v7911_v42 = vpop.permute.xlu2 %1687 }
 0x3a7   :  { %11911 = vst [vmem:[#allocation121_spill] sm:$0xff] %v7911_v42  ;;  %v601_v42 = vperm.slane %v7849_v13, %v7347_v11  ;;  %v604_v13 = vperm.slane %v7871_v17, %v7347_v11 }
 0x3aa   :  { %v7921_v63 = vpop.permute.xlu1 %1694 }
 0x3ab   :  { %11913 = vst [vmem:[#allocation123_spill] sm:$0xff] %v7921_v63 }
 0x3ad   :  { %1781 = vperm.xlu2 %6343, %v7406_v14   ;;  %1819 = vperm.xlu1 %6348, %v7892_v52  }
 0x3ae   :  { %4690 = vperm.xlu0 %6359, %v7902_v45   ;;  %v7928_v50 = vpop.permute.xlu2 %1700  ;;  %v7931_v45 = vperm.slane %v7670_v23, 7 }
 0x3af   :  { %11915 = vst [vmem:[#allocation125_spill] sm:$0xff] %v7928_v50 }
 0x3b0   :  { %v7909_v55 = vpop.permute.xlu0 %2108  ;;  %11916 = vst [vmem:[#allocation126_spill] sm:$0xff] %v7931_v45 }
 0x3b1   :  { %11910 = vst [vmem:[#allocation120_spill] sm:$0xff] %v7909_v55 }
 0x3b2   :  { %v7936_v63 = vpop.permute.xlu1 %1706 }
 0x3b3   :  { %11917 = vst [vmem:[#allocation127_spill] sm:$0xff] %v7936_v63  ;;  %v7954_v63 = vperm.slane %v7712_v7, 7 }
 0x3b5   :  { %6345 = vset.pattern.permute.xlu2 %v6908_v8  ;;  %6350 = vset.pattern.permute.xlu1 %v6986_v26  ;;  %11921 = vst [vmem:[#allocation131_spill] sm:$0xff] %v7954_v63 }
 0x3b6   :  { %4815 = vperm.xlu0 %6359, %v7919_v3   ;;  %v546_v3 = vpop.permute.xlu2 %545 }
 0x3b8   :  { %v7926_v14 = vpop.permute.xlu0 %2233 }
 0x3b9   :  { %11914 = vst [vmem:[#allocation124_spill] sm:$0xff] %v7926_v14 }
 0x3ba   :  { %v7948_v50 = vpop.permute.xlu1 %551 }
 0x3bd   :  { %1794 = vperm.xlu2 %6345, %v7860_v27   ;;  %1831 = vperm.xlu1 %6350, %v7892_v52  }
 0x3be   :  { %5148 = vperm.xlu0 %6359, %v7931_v45   ;;  %v7951_v45 = vperm.slane %v7767_v28, 1 }
 0x3c0   :  { %v7938_v55 = vpop.permute.xlu0 %2358 }
 0x3c1   :  { %11918 = vst [vmem:[#allocation128_spill] sm:$0xff] %v7938_v55  ;;  %v555_v55 = vpop.permute.xlu2 %554 }
 0x3c5   :  { %6347 = vset.pattern.permute.xlu2 %v6914_v10  ;;  %6352 = vset.pattern.permute.xlu1 %v6957_v20 }
 0x3c6   :  { %5273 = vperm.xlu0 %6359, %v7941_v16   ;;  %v558_v16 = vpop.permute.xlu1 %557 }
 0x3c8   :  { %v7946_v14 = vpop.permute.xlu0 %2691 }
 0x3c9   :  { %11920 = vst [vmem:[#allocation130_spill] sm:$0xff] %v7946_v14  ;;  %v561_v14 = vpop.permute.xlu2 %560 }
 0x3cd   :  { %1812 = vperm.xlu2 %6347, %v7860_v27   ;;  %1850 = vperm.xlu1 %6352, %v7951_v45  }
 0x3ce   :  { %5398 = vperm.xlu0 %6359, %v7954_v63   ;;  %v564_v31 = vpop.permute.xlu1 %563 }
 0x3d0   :  { %v7959_v0 = vpop.permute.xlu0 %2816 }
 0x3d1   :  { %11922 = vst [vmem:[#allocation132_spill] sm:$0xff] %v7959_v0  ;;  %v567_v0 = vpop.permute.xlu2 %566 }
 0x3d5   :  { %6349 = vset.pattern.permute.xlu2 %v6957_v20  ;;  %6354 = vset.pattern.permute.xlu1 %v6914_v10 }
 0x3d6   :  { %6648 = vset.pattern.permute.xlu0 %v6986_v26  ;;  %v570_v29 = vpop.permute.xlu1 %569 }
 0x3d8   :  { %v7964_v62 = vpop.permute.xlu0 %2941 }
 0x3d9   :  { %11923 = vst [vmem:[#allocation133_spill] sm:$0xff] %v7964_v62  ;;  %v576_v62 = vpop.permute.xlu2 %575 }
 0x3da   :  { %v602_v60 = vperm.slane %v576_v62, %v7347_v11 }
 0x3dd   :  { %1825 = vperm.xlu2 %6349, %v7892_v52   ;;  %1862 = vperm.xlu1 %6354, %v7951_v45  }
 0x3de   :  { %937 = vperm.xlu0 %6648, %v6954_v19   ;;  %v600_v19 = vperm.slane %v570_v29, %v7347_v11 }
 0x3e0   :  { %v7969_v63 = vpop.permute.xlu0 %3066 }
 0x3e1   :  { %11924 = vst [vmem:[#allocation134_spill] sm:$0xff] %v7969_v63  ;;  %v579_v63 = vpop.permute.xlu1 %578  ;;  %v585_v56 = vpop.permute.xlu2 %584 }
 0x3e2   :  { %v605_v62 = vperm.slane %v585_v56, %v7347_v11  ;;  %v592_v56 = vperm.slane %v546_v3, %v7347_v11 }
 0x3e5   :  { %6351 = vset.pattern.permute.xlu2 %v6908_v8  ;;  %6356 = vset.pattern.permute.xlu1 %v6986_v26 }
 0x3e6   :  { %1037 = vperm.xlu0 %6648, %v7082_v39   ;;  %v615_v39 = vsel %vm416_vm1, %v601_v42, %v600_v19 }
 0x3e8   :  { %v7974_v12 = vpop.permute.xlu0 %3399 }
 0x3e9   :  { %11925 = vst [vmem:[#allocation135_spill] sm:$0xff] %v7974_v12  ;;  %v616_v12 = vsel %vm418_vm2, %v602_v60, %v615_v39  ;;  %v588_v9 = vpop.permute.xlu1 %587  ;;  %v593_v39 = vperm.slane %v7822_v18, %v7347_v11  ;;  %v597_v18 = vperm.slane %v561_v14, %v7347_v11 }
 0x3ea   :  { %v606_v60 = vperm.slane %v588_v9, %v7347_v11  ;;  %v595_v9 = vperm.slane %v555_v55, %v7347_v11 }
 0x3ed   :  { %1844 = vperm.xlu2 %6351, %v7951_v45  }
 0x3ee   :  { %1162 = vperm.xlu0 %6648, %v7174_v32   ;;  %v603_v32 = vperm.slane %v579_v63, %v7347_v11 }
 0x3f0   :  { %v7978_v52 = vpop.permute.xlu0 %3524  ;;  %v617_v29 = vsel %vm420_vm3, %v603_v32, %v616_v12  ;;  %v607_v12 = vperm.slane %v7889_v2, %v7347_v11  ;;  %v608_v32 = vsel %vm416_vm1, %v593_v39, %v592_v56  ;;  %v8047_v56 = vperm.slane %v7916_v36, 2 }
 0x3f1   :  { %11926 = vst [vmem:[#allocation136_spill] sm:$0xff] %v7978_v52  ;;  %v618_v19 = vsel %vm422_vm5, %v604_v13, %v617_v29  ;;  %v594_v29 = vperm.slane %v7948_v50, %v7347_v11  ;;  %v596_v13 = vperm.slane %v558_v16, %v7347_v11  ;;  %v598_v50 = vperm.slane %v564_v31, %v7347_v11 }
 0x3f2   :  { %v619_v42 = vsel %vm424_vm4, %v605_v62, %v618_v19  ;;  %v599_v19 = vperm.slane %v567_v0, %v7347_v11  ;;  %v8040_v31 = vperm.slane %v7727_v35, 2  ;;  %v8054_v39 = vperm.slane %v7670_v23, 3 }
 0x3f3   :  { %v620_v63 = vsel %vm426_vm6, %v606_v60, %v619_v42  ;;  %v609_v3 = vsel %vm418_vm2, %v594_v29, %v608_v32  ;;  %v8060_v32 = vperm.slane %v7689_v37, 3  ;;  %v8068_v23 = vperm.slane %v7712_v7, 3  ;;  %v8088_v29 = vpop.permute.xlu2 %1719 }
 0x3f4   :  { %v621_v17 = vsel %vm428_vm7, %v607_v12, %v620_v63  ;;  %v610_v62 = vsel %vm420_vm3, %v595_v9, %v609_v3  ;;  %v8029_v63 = vperm.slane %v7879_v6, 2  ;;  %v8084_v7 = vperm.slane %v7742_v44, 4 }
 0x3f5   :  { %6353 = vset.pattern.permute.xlu2 %v6986_v26  ;;  %v611_v55 = vsel %vm422_vm5, %v596_v13, %v610_v62  ;;  %11935 = vst [vmem:[#allocation145_spill] sm:$0xff] %v8068_v23  ;;  %v8098_v62 = vpop.permute.xlu1 %1725 }
 0x3f6   :  { %1287 = vperm.xlu0 %6648, %v7398_v4   ;;  %11939 = vst [vmem:[#allocation149_spill] sm:$0xff] %v8084_v7 }
 0x3f7   :  { %11942 = vst [vmem:[#allocation152_spill] sm:$0xff] %v8098_v62 }
 0x3f8   :  { %v7989_v52 = vpop.permute.xlu0 %3649 }
 0x3f9   :  { %11927 = vst [vmem:[#allocation137_spill] sm:$0xff] %v7989_v52  ;;  %v8143_v52 = vperm.slane %v7810_v21, 5 }
 0x3fb   :  { %11954 = vst [vmem:[#allocation164_spill] sm:$0xff] %v8143_v52 }
 0x3fe   :  { %1556 = vperm.xlu0 %6648, %v7442_v15   ;;  %v627_v15 = vsel %vm439_vm8, %v621_v17, 0.0 }
 0x400   :  { %v8000_v4 = vpop.permute.xlu0 %3982 }
 0x401   :  { %11928 = vst [vmem:[#allocation138_spill] sm:$0xff] %v8000_v4 }
 0x406   :  { %1681 = vperm.xlu0 %6648, %v7555_v61   ;;  %v612_v61 = vsel %vm424_vm4, %v597_v18, %v611_v55  ;;  %v8100_v18 = vpop.permute.xlu2 %1731  ;;  %v8106_v55 = vperm.slane %v7767_v28, 4 }
 0x407   :  { %628 = vadd.xlane.f32.xlu1 %v627_v15  ;;  %v613_v60 = vsel %vm426_vm6, %v598_v50, %v612_v61  ;;  %11943 = vst [vmem:[#allocation153_spill] sm:$0xff] %v8100_v18  ;;  %v8109_v61 = vperm.slane %v7827_v58, 2 }
 0x408   :  { %v8014_v2 = vpop.permute.xlu0 %4107  ;;  %v614_v14 = vsel %vm428_vm7, %v599_v19, %v613_v60  ;;  %11945 = vst [vmem:[#allocation155_spill] sm:$0xff] %v8106_v55  ;;  %v8121_v60 = vperm.slane %v7779_v43, 5 }
 0x409   :  { %11929 = vst [vmem:[#allocation139_spill] sm:$0xff] %v8014_v2  ;;  %v624_v16 = vsel %vm439_vm8, %v614_v14, 0.0 }
 0x40a   :  { %11948 = vst [vmem:[#allocation158_spill] sm:$0xff] %v8121_v60 }
 0x40e   :  { %1806 = vperm.xlu0 %6648, %v7860_v27   ;;  %v8037_v27 = vperm.slane %v7899_v25, 2  ;;  %v8115_v19 = vpop.permute.xlu2 %1750 }
 0x40f   :  { %11947 = vst [vmem:[#allocation157_spill] sm:$0xff] %v8115_v19 }
 0x410   :  { %v8025_v42 = vpop.permute.xlu0 %4232 }
 0x411   :  { %11930 = vst [vmem:[#allocation140_spill] sm:$0xff] %v8025_v42 }
 0x416   :  { %2139 = vperm.xlu0 %6648, %v8029_v63   ;;  %625 = vadd.xlane.f32.xlu2 %v624_v16  ;;  %v8127_v14 = vpop.permute.xlu2 %1762 }
 0x417   :  { %11950 = vst [vmem:[#allocation160_spill] sm:$0xff] %v8127_v14 }
 0x418   :  { %v8034_v12 = vpop.permute.xlu0 %4565 }
 0x419   :  { %11931 = vst [vmem:[#allocation141_spill] sm:$0xff] %v8034_v12 }
 0x41e   :  { %2264 = vperm.xlu0 %6648, %v8037_v27  }
 0x420   :  { %2089 = vperm.xlu1 %6356, %v8040_v31   ;;  %v8044_v0 = vpop.permute.xlu0 %4690 }
 0x421   :  { %11932 = vst [vmem:[#allocation142_spill] sm:$0xff] %v8044_v0 }
 0x426   :  { %2389 = vperm.xlu0 %6648, %v8047_v56  }
 0x428   :  { %6358 = vset.pattern.permute.xlu1 %v6908_v8  ;;  %v8051_v17 = vpop.permute.xlu0 %4815 }
 0x429   :  { %11933 = vst [vmem:[#allocation143_spill] sm:$0xff] %v8051_v17 }
 0x42e   :  { %2722 = vperm.xlu0 %6648, %v8054_v39   ;;  %1856 = vperm.xlu2 %6353, %v7951_v45   ;;  %v8076_v45 = vperm.slane %v7727_v35, 4  ;;  %v8094_v35 = vperm.slane %v7705_v33, 4  ;;  %v8113_v33 = vpop.permute.xlu1 %1737 }
 0x42f   :  { %11946 = vst [vmem:[#allocation156_spill] sm:$0xff] %v8113_v33 }
 0x430   :  { %2102 = vperm.xlu1 %6358, %v7673_v38   ;;  %v8062_v9 = vpop.permute.xlu0 %5148  ;;  %11937 = vst [vmem:[#allocation147_spill] sm:$0xff] %v8076_v45 }
 0x431   :  { %11934 = vst [vmem:[#allocation144_spill] sm:$0xff] %v8062_v9 }
 0x432   :  { %11941 = vst [vmem:[#allocation151_spill] sm:$0xff] %v8094_v35 }
 0x436   :  { %2847 = vperm.xlu0 %6648, %v8060_v32   ;;  %6355 = vset.pattern.permute.xlu2 %v6957_v20  ;;  %v8125_v28 = vpop.permute.xlu1 %1756 }
 0x437   :  { %11949 = vst [vmem:[#allocation159_spill] sm:$0xff] %v8125_v28 }
 0x438   :  { %6361 = vset.pattern.permute.xlu1 %v6914_v10  ;;  %v8070_v15 = vpop.permute.xlu0 %5273 }
 0x439   :  { %11936 = vst [vmem:[#allocation146_spill] sm:$0xff] %v8070_v15  ;;  %v8139_v15 = vpop.permute.xlu2 %1781 }
 0x43a   :  { %11953 = vst [vmem:[#allocation163_spill] sm:$0xff] %v8139_v15  ;;  %v2172_v15 = vperm.slane %v7779_v43, 2 }
 0x43e   :  { %2972 = vperm.xlu0 %6648, %v8068_v23   ;;  %2083 = vperm.xlu2 %6355, %v8040_v31   ;;  %v8137_v11 = vpop.permute.xlu1 %1769 }
 0x43f   :  { %11952 = vst [vmem:[#allocation162_spill] sm:$0xff] %v8137_v11 }
 0x440   :  { %2120 = vperm.xlu1 %6361, %v7673_v38   ;;  %v8080_v37 = vpop.permute.xlu0 %5398 }
 0x441   :  { %11938 = vst [vmem:[#allocation148_spill] sm:$0xff] %v8080_v37  ;;  %v8151_v9 = vpop.permute.xlu2 %1794  ;;  %v8155_v37 = vperm.slane %v7827_v58, 6 }
 0x442   :  { %11956 = vst [vmem:[#allocation166_spill] sm:$0xff] %v8151_v9 }
 0x443   :  { %11957 = vst [vmem:[#allocation167_spill] sm:$0xff] %v8155_v37 }
 0x446   :  { %3305 = vperm.xlu0 %6648, %v8076_v45   ;;  %6357 = vset.pattern.permute.xlu2 %v6914_v10  ;;  %v8149_v17 = vpop.permute.xlu1 %1787 }
 0x447   :  { %11955 = vst [vmem:[#allocation165_spill] sm:$0xff] %v8149_v17 }
 0x448   :  { %6363 = vset.pattern.permute.xlu1 %v6957_v20 }
 0x449   :  { %v8164_v19 = vpop.permute.xlu2 %1812 }
 0x44a   :  { %11959 = vst [vmem:[#allocation169_spill] sm:$0xff] %v8164_v19  ;;  %v8182_v19 = vperm.slane %v7842_v24, 6 }
 0x44c   :  { %11963 = vst [vmem:[#allocation173_spill] sm:$0xff] %v8182_v19 }
 0x44e   :  { %3430 = vperm.xlu0 %6648, %v8084_v7   ;;  %2095 = vperm.xlu2 %6357, %v8040_v31   ;;  %v8162_v11 = vpop.permute.xlu1 %1800 }
 0x44f   :  { %11958 = vst [vmem:[#allocation168_spill] sm:$0xff] %v8162_v11 }
 0x450   :  { %v8090_v3 = vpop.permute.xlu0 %937  ;;  %2133 = vperm.xlu1 %6363, %v8029_v63  }
 0x451   :  { %11940 = vst [vmem:[#allocation150_spill] sm:$0xff] %v8090_v3  ;;  %v8169_v18 = vpop.permute.xlu2 %1825 }
 0x452   :  { %11960 = vst [vmem:[#allocation170_spill] sm:$0xff] %v8169_v18 }
 0x456   :  { %3555 = vperm.xlu0 %6648, %v8094_v35   ;;  %6360 = vset.pattern.permute.xlu2 %v6986_v26  ;;  %v8167_v17 = vpop.permute.xlu1 %1819 }
 0x458   :  { %v8102_v13 = vpop.permute.xlu0 %1037  ;;  %6365 = vset.pattern.permute.xlu1 %v6908_v8 }
 0x459   :  { %11944 = vst [vmem:[#allocation154_spill] sm:$0xff] %v8102_v13 }
 0x45e   :  { %3680 = vperm.xlu0 %6648, %v8106_v55   ;;  %2114 = vperm.xlu2 %6360, %v7673_v38   ;;  %v8131_v38 = vperm.slane %v7794_v5, 5  ;;  %v8175_v43 = vpop.permute.xlu1 %1831 }
 0x460   :  { %2152 = vperm.xlu1 %6365, %v8109_v61   ;;  %v8118_v50 = vpop.permute.xlu0 %1162  ;;  %11951 = vst [vmem:[#allocation161_spill] sm:$0xff] %v8131_v38 }
 0x466   :  { %4013 = vperm.xlu0 %6648, %v8121_v60   ;;  %6362 = vset.pattern.permute.xlu2 %v6908_v8  ;;  %v8186_v18 = vpop.permute.xlu1 %1850 }
 0x467   :  { %11964 = vst [vmem:[#allocation174_spill] sm:$0xff] %v8186_v18 }
 0x468   :  { %6367 = vset.pattern.permute.xlu1 %v6986_v26  ;;  %v8133_v16 = vpop.permute.xlu0 %1287 }
 0x46e   :  { %4138 = vperm.xlu0 %6648, %v8131_v38   ;;  %2127 = vperm.xlu2 %6362, %v8029_v63  }
 0x470   :  { %2164 = vperm.xlu1 %6367, %v8109_v61   ;;  %v8145_v42 = vpop.permute.xlu0 %1556 }
 0x476   :  { %4263 = vperm.xlu0 %6648, %v8143_v52   ;;  %6364 = vset.pattern.permute.xlu2 %v6914_v10 }
 0x478   :  { %6369 = vset.pattern.permute.xlu1 %v6957_v20  ;;  %v8160_v21 = vpop.permute.xlu0 %1681 }
 0x47e   :  { %4596 = vperm.xlu0 %6648, %v8155_v37   ;;  %2145 = vperm.xlu2 %6364, %v8029_v63   ;;  %v8177_v63 = vpop.permute.xlu2 %1844 }
 0x47f   :  { %11962 = vst [vmem:[#allocation172_spill] sm:$0xff] %v8177_v63  ;;  %v8194_v63 = vpop.permute.xlu1 %1862 }
 0x480   :  { %2183 = vperm.xlu1 %6369, %v2172_v15   ;;  %v8172_v58 = vpop.permute.xlu0 %1806  ;;  %11967 = vst [vmem:[#allocation177_spill] sm:$0xff] %v8194_v63 }
 0x481   :  { %11961 = vst [vmem:[#allocation171_spill] sm:$0xff] %v8172_v58 }
 0x486   :  { %6366 = vset.pattern.permute.xlu2 %v6957_v20  ;;  %4721 = vperm.xlu0 %6648, %v8182_v19  }
 0x487   :  { %v8200_v18 = vpop.xlane.xlu1 %628 }
 0x488   :  { %6371 = vset.pattern.permute.xlu1 %v6914_v10  ;;  %v8179_v11 = vpop.permute.xlu0 %2139  ;;  %11969 = vst [vmem:[#allocation179_spill] sm:$0xff] %v8200_v18 }
 0x489   :  { %v8188_v2 = vpop.xlane.xlu2 %625 }
 0x48a   :  { %11965 = vst [vmem:[#allocation175_spill] sm:$0xff] %v8188_v2  ;;  %v633_v58 = vperm.slane %v8188_v2, 1  ;;  %v635_v13 = vperm.slane %v8188_v2, 3  ;;  %v8271_v23 = vperm.slane %v8188_v2, 4 }
 0x48c   :  { %6737 = vrcp.f32 %v633_v58  ;;  %vm684_vm10 = vweird.f32 %v633_v58  ;;  %vm714_vm14 = vweird.f32 %v635_v13 }
 0x48d   :  { %6739 = vrcp.f32 %v635_v13 }
 0x48e   :  { %2158 = vperm.xlu2 %6366, %v8109_v61  }
 0x490   :  { %2195 = vperm.xlu1 %6371, %v2172_v15   ;;  %v8192_v0 = vpop.permute.xlu0 %2264 }
 0x491   :  { %11966 = vst [vmem:[#allocation176_spill] sm:$0xff] %v8192_v0  ;;  %v8203_v0 = vperm.slane %v8188_v2, 2  ;;  %v8213_v28 = vpop.permute.xlu2 %1856 }
 0x492   :  { %v6738_v4 = vpop.eup %6737  ;;  %v8205_v37 = vpop.permute.xlu1 %2089  ;;  %11973 = vst [vmem:[#allocation183_spill] sm:$0xff] %v8213_v28 }
 0x493   :  { %v680_v33 = vmul.f32 %v6738_v4, %v633_v58  ;;  %v6740_v19 = vpop.eup %6739  ;;  %11970 = vst [vmem:[#allocation180_spill] sm:$0xff] %v8205_v37  ;;  %6741 = vrcp.f32 %v8203_v0  ;;  %vm685_vm9 = vweird.f32 %v6738_v4  ;;  %v688_v37 = vand.u32 2147483647, %v633_v58 }
 0x494   :  { %v710_v63 = vmul.f32 %v6740_v19, %v635_v13  ;;  %vm686_vm11 = vmor %vm684_vm10, %vm685_vm9  ;;  %vm715_vm13 = vweird.f32 %v6740_v19 }
 0x495   :  { %v681_v62 = vsub.f32 1.0, %v680_v33  ;;  %v690_v33 = vand.u32 2147483648, %v633_v58  ;;  %vm689_vm12 = vcmp.eq.f32.partialorder %v688_v37, 8.507059e+37  ;;  %v8239_v37 = vperm.slane %v7742_v44, 2  ;;  %vm716_vm15 = vmor %vm714_vm14, %vm715_vm13 }
 0x496   :  { %6368 = vset.pattern.permute.xlu2 %v6908_v8 }
 0x497   :  { %v682_v3 = vmul.f32 %v6738_v4, %v681_v62  ;;  %v8217_v62 = vperm.slane %v8200_v18, 0  ;;  %v691_v60 = vor.u32 1.1754944e-38, %v690_v33  ;;  %v720_v33 = vand.u32 2147483648, %v635_v13 }
 0x498   :  { %6373 = vset.pattern.permute.xlu1 %v6986_v26  ;;  %v8198_v12 = vpop.permute.xlu0 %2389 }
 0x499   :  { %11968 = vst [vmem:[#allocation178_spill] sm:$0xff] %v8198_v12  ;;  %v8211_v12 = vperm.slane %v7857_v34, 6  ;;  %v683_v52 = vadd.f32 %v6738_v4, %v682_v3  ;;  %v8220_v38 = vpop.eup %6741  ;;  %v8223_v3 = vperm.slane %v7879_v6, 7  ;;  %6743 = vrcp.f32 %v8217_v62 }
 0x49a   :  { %v695_v58 = vmul.f32 %v8220_v38, %v8203_v0  ;;  %vm700_vm10 = vweird.f32 %v8220_v38  ;;  %6745 = vrcp.f32 %v8271_v23 }
 0x49b   :  { %11972 = vst [vmem:[#allocation182_spill] sm:$0xff] %v8211_v12  ;;  %4846 = vperm.xlu0 %6648, %v8211_v12  }
 0x49c   :  { %11974 = vst [vmem:[#allocation184_spill] sm:$0xff] %v8223_v3 }
 0x49e   :  { %2177 = vperm.xlu2 %6368, %v2172_v15  }
 0x4a0   :  { %v8207_v14 = vpop.permute.xlu0 %2722  ;;  %2214 = vperm.xlu1 %6373, %v8239_v37  }
 0x4a1   :  { %11971 = vst [vmem:[#allocation181_spill] sm:$0xff] %v8207_v14  ;;  %v687_v14 = vsel %vm686_vm11, %v6738_v4, %v683_v52  ;;  %v8233_v52 = vpop.permute.xlu2 %2083  ;;  %vm699_vm11 = vweird.f32 %v8203_v0 }
 0x4a2   :  { %v692_v28 = vsel %vm689_vm12, %v691_v60, %v687_v14  ;;  %11976 = vst [vmem:[#allocation186_spill] sm:$0xff] %v8233_v52  ;;  %v718_v60 = vand.u32 2147483647, %v635_v13  ;;  %v8241_v14 = vpop.eup %6743  ;;  %v8246_v52 = vperm.slane %v7899_v25, 7  ;;  %vm701_vm12 = vmor %vm699_vm11, %vm700_vm10 }
 0x4a3   :  { %5179 = vperm.xlu0 %6648, %v8223_v3   ;;  %v8236_v4 = vmul.f32 %v7609_v1, %v692_v28  ;;  %v721_v1 = vor.u32 1.1754944e-38, %v720_v33  ;;  %vm790_vm14 = vweird.f32 %v8241_v14 }
 0x4a4   :  { %11978 = vst [vmem:[#allocation188_spill] sm:$0xff] %v8246_v52  ;;  %vm719_vm9 = vcmp.eq.f32.partialorder %v718_v60, 8.507059e+37 }
 0x4a5   :  { %11977 = vst [vmem:[#allocation187_spill] sm:$0xff] %v8236_v4  ;;  %v8249_v28 = vperm.slane %v8236_v4, 0  ;;  %v8252_v44 = vperm.slane %v8236_v4, 1  ;;  %v8257_v3 = vperm.slane %v8236_v4, 2 }
 0x4a6   :  { %6370 = vset.pattern.permute.xlu2 %v6986_v26 }
 0x4a7   :  { %11979 = vst [vmem:[#allocation189_spill] sm:$0xff] %v8249_v28  ;;  %v1391_v33 = vmul.f32 %v7220_v59, %v8249_v28 }
 0x4a8   :  { %v8228_v12 = vpop.permute.xlu0 %2847  ;;  %11980 = vst [vmem:[#allocation190_spill] sm:$0xff] %v8252_v44  ;;  %6375 = vset.pattern.permute.xlu1 %v6908_v8 }
 0x4a9   :  { %11975 = vst [vmem:[#allocation185_spill] sm:$0xff] %v8228_v12  ;;  %v1935_v12 = vmul.f32 %v7559_v22, %v8252_v44  ;;  %v8265_v7 = vpop.permute.xlu2 %2095 }
 0x4aa   :  { %11981 = vst [vmem:[#allocation191_spill] sm:$0xff] %v8257_v3 }
 0x4ab   :  { %5304 = vperm.xlu0 %6648, %v8246_v52   ;;  %11982 = vst [vmem:[#allocation192_spill] sm:$0xff] %v8265_v7  ;;  %v1999_v45 = vadd.f32 %v1935_v12, %v1391_v33  ;;  %v8284_v12 = vperm.slane %v7916_v36, 7  ;;  %v12027_v7 = vld [vmem:[#allocation59_spill] sm:$0xff] }
 0x4ad   :  { %11986 = vst [vmem:[#allocation196_spill] sm:$0xff] %v8284_v12 }
 0x4ae   :  { %2189 = vperm.xlu2 %6370, %v2172_v15   ;;  %v711_v15 = vsub.f32 1.0, %v710_v63  ;;  %v8226_v63 = vpop.permute.xlu1 %2102 }
 0x4b0   :  { %v712_v55 = vmul.f32 %v6740_v19, %v711_v15  ;;  %v696_v15 = vsub.f32 1.0, %v695_v58  ;;  %v785_v58 = vmul.f32 %v8241_v14, %v8217_v62  ;;  %v8267_v9 = vpop.permute.xlu0 %2972  ;;  %2227 = vperm.xlu1 %6375, %v7692_v53  }
 0x4b1   :  { %11983 = vst [vmem:[#allocation193_spill] sm:$0xff] %v8267_v9 }
 0x4b2   :  { %v713_v35 = vadd.f32 %v6740_v19, %v712_v55  ;;  %v786_v4 = vsub.f32 1.0, %v785_v58 }
 0x4b3   :  { %5429 = vperm.xlu0 %6648, %v8284_v12  }
 0x4b4   :  { %v717_v55 = vsel %vm716_vm15, %v6740_v19, %v713_v35  ;;  %v697_v35 = vmul.f32 %v8220_v38, %v696_v15  ;;  %vm789_vm15 = vweird.f32 %v8217_v62 }
 0x4b5   :  { %v722_v19 = vsel %vm719_vm9, %v721_v1, %v717_v55  ;;  %v705_v55 = vand.u32 2147483648, %v8203_v0  ;;  %v787_v1 = vmul.f32 %v8241_v14, %v786_v4  ;;  %vm791_vm9 = vmor %vm789_vm15, %vm790_vm14 }
 0x4b6   :  { %6372 = vset.pattern.permute.xlu2 %v6957_v20  ;;  %v2121_v13 = vpop.permute.xlu1 %2120  ;;  %v8274_v15 = vmul.f32 %v7679_v49, %v722_v19  ;;  %v698_v59 = vadd.f32 %v8220_v38, %v697_v35  ;;  %v703_v49 = vand.u32 2147483647, %v8203_v0 }
 0x4b7   :  { %v2543_v60 = vmul.f32 %v2121_v13, %v8257_v3  ;;  %v706_v35 = vor.u32 1.1754944e-38, %v705_v55  ;;  %v788_v33 = vadd.f32 %v8241_v14, %v787_v1  ;;  %v6746_v55 = vpop.eup %6745 }
 0x4b8   :  { %11984 = vst [vmem:[#allocation194_spill] sm:$0xff] %v8274_v15  ;;  %v8291_v13 = vperm.slane %v8274_v15, 0  ;;  %v702_v58 = vsel %vm701_vm12, %v8220_v38, %v698_v59  ;;  %v8298_v19 = vpop.permute.xlu2 %2114  ;;  %vm704_vm13 = vcmp.eq.f32.partialorder %v703_v49, 8.507059e+37  ;;  %v8306_v52 = vpop.permute.xlu0 %3305  ;;  %v795_v59 = vand.u32 2147483648, %v8217_v62  ;;  %6377 = vset.pattern.permute.xlu1 %v6914_v10 }
 0x4b9   :  { %v8279_v22 = vadd.f32 %v2543_v60, %v1999_v45  ;;  %v8294_v45 = vperm.slane %v8274_v15, 1  ;;  %11989 = vst [vmem:[#allocation199_spill] sm:$0xff] %v8298_v19  ;;  %v707_v60 = vsel %vm704_vm13, %v706_v35, %v702_v58  ;;  %v793_v49 = vand.u32 2147483647, %v8217_v62 }
 0x4ba   :  { %11987 = vst [vmem:[#allocation197_spill] sm:$0xff] %v8291_v13  ;;  %v1398_v0 = vmul.f32 %v7246_v57, %v8291_v13  ;;  %v1397_v38 = vmul.f32 %v7271_v54, %v8291_v13  ;;  %v8320_v1 = vmul.f32 %v7606_v51, %v707_v60  ;;  %v792_v58 = vsel %vm791_vm9, %v8241_v14, %v788_v33  ;;  %v12005_v13 = vld [vmem:[#allocation121_spill] sm:$0xff] }
 0x4bb   :  { %11985 = vst [vmem:[#allocation195_spill] sm:$0xff] %v8279_v22  ;;  %v1942_v4 = vmul.f32 %v8145_v42, %v8294_v45  ;;  %v1941_v42 = vmul.f32 %v7772_v41, %v8294_v45  ;;  %v796_v35 = vor.u32 1.1754944e-38, %v795_v59  ;;  %vm794_vm10 = vcmp.eq.f32.partialorder %v793_v49, 8.507059e+37  ;;  %6653 = vset.pattern.permute.xlu0 %v6914_v10 }
 0x4bc   :  { %11988 = vst [vmem:[#allocation198_spill] sm:$0xff] %v8294_v45  ;;  %v8330_v12 = vperm.slane %v8320_v1, 0  ;;  %v8333_v62 = vperm.slane %v8320_v1, 1  ;;  %vm730_vm11 = vweird.f32 %v6746_v55  ;;  %vm729_vm12 = vweird.f32 %v8271_v23 }
 0x4bd   :  { %11990 = vst [vmem:[#allocation200_spill] sm:$0xff] %v8306_v52  ;;  %v8313_v57 = vadd.f32 %v1942_v4, %v1398_v0  ;;  %v8322_v54 = vadd.f32 %v1941_v42, %v1397_v38  ;;  %v725_v0 = vmul.f32 %v6746_v55, %v8271_v23  ;;  %v797_v4 = vsel %vm794_vm10, %v796_v35, %v792_v58  ;;  %vm731_vm13 = vmor %vm729_vm12, %vm730_vm11 }
 0x4be   :  { %2208 = vperm.xlu2 %6372, %v8239_v37   ;;  %11992 = vst [vmem:[#allocation202_spill] sm:$0xff] %v8320_v1  ;;  %v8338_v14 = vmul.f32 %v7645_v47, %v797_v4  ;;  %v1395_v60 = vmul.f32 %v7238_v46, %v8330_v12  ;;  %v1939_v38 = vmul.f32 %v7756_v30, %v8333_v62  ;;  %v8347_v42 = vperm.slane %v8320_v1, 2 }
 0x4bf   :  { %11991 = vst [vmem:[#allocation201_spill] sm:$0xff] %v8313_v57  ;;  %v726_v51 = vsub.f32 1.0, %v725_v0 }
 0x4c0   :  { %11993 = vst [vmem:[#allocation203_spill] sm:$0xff] %v8322_v54  ;;  %v8340_v33 = vpop.permute.xlu0 %3430  ;;  %v8353_v47 = vperm.slane %v8338_v14, 0  ;;  %v2003_v35 = vadd.f32 %v1939_v38, %v1395_v60  ;;  %v8357_v46 = vperm.slane %v8338_v14, 1  ;;  %2245 = vperm.xlu1 %6377, %v7692_v53   ;;  %v733_v60 = vand.u32 2147483647, %v8271_v23 }
 0x4c1   :  { %11994 = vst [vmem:[#allocation204_spill] sm:$0xff] %v8330_v12  ;;  %v727_v59 = vmul.f32 %v6746_v55, %v726_v51  ;;  %v12003_v51 = vld [vmem:[#allocation117_spill] sm:$0xff]  ;;  %v735_v38 = vand.u32 2147483648, %v8271_v23 }
 0x4c2   :  { %11995 = vst [vmem:[#allocation205_spill] sm:$0xff] %v8333_v62  ;;  %v8350_v49 = vpop.permute.xlu1 %2133  ;;  %v1416_v30 = vmul.f32 %v7299_v48, %v8353_v47  ;;  %v1960_v45 = vmul.f32 %v12003_v51, %v8357_v46  ;;  %v1962_v51 = vmul.f32 %v8160_v21, %v8357_v46  ;;  %vm734_vm14 = vcmp.eq.f32.partialorder %v733_v60, 8.507059e+37  ;;  %v12010_v21 = vld [vmem:[#allocation69_spill] sm:$0xff] }
 0x4c3   :  { %11996 = vst [vmem:[#allocation206_spill] sm:$0xff] %v8338_v14  ;;  %1068 = vperm.xlu0 %6653, %v7090_v40   ;;  %v728_v4 = vadd.f32 %v6746_v55, %v727_v59 }
 0x4c4   :  { %11997 = vst [vmem:[#allocation207_spill] sm:$0xff] %v8340_v33  ;;  %v8372_v59 = vadd.f32 %v1960_v45, %v1416_v30  ;;  %v12008_v45 = vld [vmem:[#allocation23_spill] sm:$0xff] }
 0x4c5   :  { %11998 = vst [vmem:[#allocation208_spill] sm:$0xff] %v8347_v42  ;;  %v732_v19 = vsel %vm731_vm13, %v6746_v55, %v728_v4 }
 0x4c6   :  { %6374 = vset.pattern.permute.xlu2 %v6914_v10  ;;  %11999 = vst [vmem:[#allocation209_spill] sm:$0xff] %v8350_v49 }
 0x4c7   :  { %12000 = vst [vmem:[#allocation210_spill] sm:$0xff] %v8353_v47 }
 0x4c8   :  { %v8327_v41 = vpop.permute.xlu2 %2127  ;;  %12001 = vst [vmem:[#allocation211_spill] sm:$0xff] %v8357_v46  ;;  %v8380_v49 = vpop.permute.xlu0 %3555  ;;  %6379 = vset.pattern.permute.xlu1 %v6957_v20 }
 0x4c9   :  { %12007 = vst [vmem:[#allocation117_spill] sm:$0xff] %v8380_v49  ;;  %v12012_v49 = vld [vmem:[#allocation42_spill] sm:$0xff] }
 0x4cb   :  { %1193 = vperm.xlu0 %6653, %v12008_v45  }
 0x4ce   :  { %2220 = vperm.xlu2 %6374, %v8239_v37  }
 0x4d0   :  { %v8395_v55 = vpop.permute.xlu0 %3680  ;;  %2258 = vperm.xlu1 %6379, %v8037_v27  }
 0x4d2   :  { %v8387_v30 = vpop.permute.xlu1 %2152 }
 0x4d3   :  { %1318 = vperm.xlu0 %6653, %v12012_v49  }
 0x4d6   :  { %6376 = vset.pattern.permute.xlu2 %v6986_v26 }
 0x4d8   :  { %v2146_v58 = vpop.permute.xlu2 %2145  ;;  %6381 = vset.pattern.permute.xlu1 %v6908_v8 }
 0x4d9   :  { %v2547_v0 = vmul.f32 %v2146_v58, %v8347_v42  ;;  %v12004_v58 = vld [vmem:[#allocation33_spill] sm:$0xff] }
 0x4da   :  { %v1419_v48 = vmul.f32 %v12004_v58, %v8353_v47  ;;  %v736_v58 = vor.u32 1.1754944e-38, %v735_v38  ;;  %12009 = vst [vmem:[#allocation33_spill] sm:$0xff] %v8387_v30  ;;  %v2272_v30 = vperm.slane %v7842_v24, 2  ;;  %v12030_v24 = vld [vmem:[#allocation58_spill] sm:$0xff] }
 0x4db   :  { %v8362_v40 = vadd.f32 %v2547_v0, %v2003_v35  ;;  %v1963_v35 = vmul.f32 %v12005_v13, %v8357_v46  ;;  %v12006_v0 = vld [vmem:[#allocation34_spill] sm:$0xff]  ;;  %v1938_v1 = vmul.f32 %v12030_v24, %v8333_v62 }
 0x4dc   :  { %v737_v13 = vsel %vm734_vm14, %v736_v58, %v732_v19  ;;  %12013 = vst [vmem:[#allocation34_spill] sm:$0xff] %v8395_v55  ;;  %v12016_v19 = vld [vmem:[#allocation16_spill] sm:$0xff]  ;;  %v8418_v55 = vpop.permute.xlu0 %4013  ;;  %v8526_v24 = vld [vmem:[%s11507_s1 + $0x58] sm:$0xff] }
 0x4dd   :  { %12002 = vst [vmem:[#allocation212_spill] sm:$0xff] %v8362_v40  ;;  %v8382_v33 = vadd.f32 %v1963_v35, %v1419_v48  ;;  %v12017_v35 = vld [vmem:[#allocation97_spill] sm:$0xff] }
 0x4de   :  { %2239 = vperm.xlu2 %6376, %v7692_v53   ;;  %v1418_v53 = vmul.f32 %v12006_v0, %v8353_v47  ;;  %v8392_v0 = vmul.f32 %v12010_v21, %v737_v13  ;;  %12021 = vst [vmem:[#allocation97_spill] sm:$0xff] %v8418_v55  ;;  %v12024_v47 = vld [vmem:[#allocation96_spill] sm:$0xff] }
 0x4e0   :  { %v8384_v23 = vadd.f32 %v1962_v51, %v1418_v53  ;;  %12011 = vst [vmem:[#allocation121_spill] sm:$0xff] %v8392_v0  ;;  %v8400_v38 = vperm.slane %v8392_v0, 0  ;;  %v8403_v48 = vperm.slane %v8392_v0, 1  ;;  %v8412_v53 = vperm.slane %v8392_v0, 2  ;;  %v12019_v51 = vld [vmem:[#allocation44_spill] sm:$0xff]  ;;  %2277 = vperm.xlu1 %6381, %v2272_v30  }
 0x4e1   :  { %1587 = vperm.xlu0 %6653, %v12019_v51  }
 0x4e2   :  { %v8397_v4 = vpop.permute.xlu1 %2164  ;;  %12014 = vst [vmem:[#allocation23_spill] sm:$0xff] %v8400_v38  ;;  %v1401_v60 = vmul.f32 %v12016_v19, %v8400_v38  ;;  %v1945_v49 = vmul.f32 %v12017_v35, %v8403_v48  ;;  %v12023_v19 = vld [vmem:[#allocation17_spill] sm:$0xff]  ;;  %v1944_v51 = vmul.f32 %v12024_v47, %v8403_v48  ;;  %v12029_v47 = vld [vmem:[#allocation12_spill] sm:$0xff] }
 0x4e3   :  { %12015 = vst [vmem:[#allocation69_spill] sm:$0xff] %v8403_v48  ;;  %v1400_v35 = vmul.f32 %v12023_v19, %v8400_v38  ;;  %v12028_v19 = vld [vmem:[#allocation120_spill] sm:$0xff]  ;;  %v1394_v40 = vmul.f32 %v12029_v47, %v8330_v12 }
 0x4e4   :  { %12018 = vst [vmem:[#allocation42_spill] sm:$0xff] %v8412_v53  ;;  %v2009_v13 = vadd.f32 %v1945_v49, %v1401_v60  ;;  %v12025_v60 = vld [vmem:[#allocation21_spill] sm:$0xff]  ;;  %v2541_v22 = vmul.f32 %v12028_v19, %v8257_v3 }
 0x4e5   :  { %v1389_v49 = vmul.f32 %v12025_v60, %v8249_v28 }
 0x4e6   :  { %6378 = vset.pattern.permute.xlu2 %v6908_v8 }
 0x4e8   :  { %v8415_v58 = vpop.permute.xlu2 %2158  ;;  %6383 = vset.pattern.permute.xlu1 %v6986_v26 }
 0x4e9   :  { %12020 = vst [vmem:[#allocation16_spill] sm:$0xff] %v8415_v58  ;;  %1712 = vperm.xlu0 %6653, %v12027_v7  }
 0x4ee   :  { %2252 = vperm.xlu2 %6378, %v8037_v27  }
 0x4f0   :  { %2289 = vperm.xlu1 %6383, %v2272_v30  }
 0x4f2   :  { %v2184_v45 = vpop.permute.xlu1 %2183 }
 0x4f3   :  { %v2553_v21 = vmul.f32 %v2184_v45, %v8412_v53  ;;  %v12026_v45 = vld [vmem:[#allocation57_spill] sm:$0xff] }
 0x4f4   :  { %v1933_v55 = vmul.f32 %v12026_v45, %v8252_v44  ;;  %v12034_v45 = vld [vmem:[#allocation116_spill] sm:$0xff] }
 0x4f5   :  { %v8421_v46 = vadd.f32 %v2553_v21, %v2009_v13  ;;  %v2008_v21 = vadd.f32 %v1944_v51, %v1400_v35  ;;  %v8446_v35 = vpop.permute.xlu0 %4138  ;;  %v2002_v51 = vadd.f32 %v1938_v1, %v1394_v40  ;;  %1837 = vperm.xlu0 %6653, %v12034_v45  }
 0x4f6   :  { %6380 = vset.pattern.permute.xlu2 %v6914_v10  ;;  %v1997_v9 = vadd.f32 %v1933_v55, %v1389_v49  ;;  %12032 = vst [vmem:[#allocation96_spill] sm:$0xff] %v8446_v35  ;;  %v2546_v55 = vmul.f32 %v8179_v11, %v8347_v42  ;;  %v8463_v11 = vperm.slane %v7857_v34, 2  ;;  %v8478_v34 = vperm.slane %v7899_v25, 3  ;;  %v8492_v25 = vld [vmem:[%s11507_s1 + $0x8] sm:$0xff] }
 0x4f7   :  { %12022 = vst [vmem:[#allocation44_spill] sm:$0xff] %v8421_v46  ;;  %v8495_v40 = vperm.slane %v8492_v25, 4 }
 0x4f8   :  { %v2178_v13 = vpop.permute.xlu2 %2177  ;;  %v8444_v7 = vadd.f32 %v2541_v22, %v1997_v9  ;;  %v8450_v49 = vadd.f32 %v2546_v55, %v2002_v51  ;;  %6385 = vset.pattern.permute.xlu1 %v6957_v20  ;;  %v2297_v9 = vperm.slane %v7794_v5, 2  ;;  %v8482_v5 = vperm.slane %v7916_v36, 3  ;;  %v8500_v36 = vld [vmem:[%s11507_s1 + $0x50] sm:$0xff] }
 0x4f9   :  { %v2552_v52 = vmul.f32 %v2178_v13, %v8412_v53  ;;  %12041 = vst [vmem:[#allocation213_spill] sm:$0xff] %v8495_v40  ;;  %v8529_v51 = vperm.slane %v8526_v24, 4 }
 0x4fa   :  { %12031 = vst [vmem:[#allocation17_spill] sm:$0xff] %v8444_v7 }
 0x4fb   :  { %v8441_v60 = vadd.f32 %v2552_v52, %v2008_v21  ;;  %12033 = vst [vmem:[#allocation21_spill] sm:$0xff] %v8450_v49  ;;  %v8513_v21 = vld [vmem:[%s11507_s1 + $0x30] sm:$0xff] }
 0x4fc   :  { %12039 = vst [vmem:[#allocation58_spill] sm:$0xff] %v8482_v5  ;;  %v8516_v19 = vperm.slane %v8513_v21, 4 }
 0x4fd   :  { %v8455_v52 = vpop.permute.xlu0 %4263  ;;  %2170 = vperm.xlu0 %6653, %v8109_v61   ;;  %v8470_v61 = vperm.slane %v7879_v6, 3  ;;  %12045 = vst [vmem:[#allocation217_spill] sm:$0xff] %v8529_v51 }
 0x4fe   :  { %2270 = vperm.xlu2 %6380, %v8037_v27   ;;  %12035 = vst [vmem:[#allocation57_spill] sm:$0xff] %v8455_v52  ;;  %v8543_v52 = vld [vmem:[%s11507_s1] sm:$0xff] }
 0x4ff   :  { %12043 = vst [vmem:[#allocation215_spill] sm:$0xff] %v8516_v19 }
 0x500   :  { %2308 = vperm.xlu1 %6385, %v2297_v9  }
 0x502   :  { %v8531_v55 = vpop.permute.xlu1 %2195 }
 0x505   :  { %2295 = vperm.xlu0 %6653, %v2272_v30   ;;  %v8458_v27 = vpop.permute.xlu0 %4596 }
 0x506   :  { %6382 = vset.pattern.permute.xlu2 %v6957_v20  ;;  %12036 = vst [vmem:[#allocation59_spill] sm:$0xff] %v8458_v27 }
 0x508   :  { %6387 = vset.pattern.permute.xlu1 %v6914_v10 }
 0x50d   :  { %2420 = vperm.xlu0 %6653, %v8463_v11   ;;  %v8467_v22 = vpop.permute.xlu0 %4721 }
 0x50e   :  { %2283 = vperm.xlu2 %6382, %v2272_v30   ;;  %12037 = vst [vmem:[#allocation120_spill] sm:$0xff] %v8467_v22  ;;  %v8503_v30 = vperm.slane %v8500_v36, 2 }
 0x510   :  { %2320 = vperm.xlu1 %6387, %v2297_v9  }
 0x515   :  { %2753 = vperm.xlu0 %6653, %v8470_v61   ;;  %v8475_v1 = vpop.permute.xlu0 %4846 }
 0x516   :  { %6384 = vset.pattern.permute.xlu2 %v6908_v8  ;;  %12038 = vst [vmem:[#allocation12_spill] sm:$0xff] %v8475_v1  ;;  %v8546_v1 = vperm.slane %v8543_v52, 5 }
 0x518   :  { %6389 = vset.pattern.permute.xlu1 %v6986_v26 }
 0x51d   :  { %2878 = vperm.xlu0 %6653, %v8478_v34   ;;  %v8484_v6 = vpop.permute.xlu0 %5179 }
 0x51e   :  { %2302 = vperm.xlu2 %6384, %v2297_v9   ;;  %12040 = vst [vmem:[#allocation116_spill] sm:$0xff] %v8484_v6  ;;  %v8548_v6 = vpop.permute.xlu1 %2214 }
 0x51f   :  { %12050 = vst [vmem:[#allocation220_spill] sm:$0xff] %v8548_v6  ;;  %v641_v6 = vperm.slane %v8200_v18, 1 }
 0x520   :  { %2339 = vperm.xlu1 %6389, %v8503_v30  }
 0x521   :  { %6747 = vrcp.f32 %v641_v6  ;;  %vm804_vm9 = vweird.f32 %v641_v6 }
 0x525   :  { %3003 = vperm.xlu0 %6653, %v8482_v5   ;;  %v8505_v13 = vpop.permute.xlu0 %5304 }
 0x526   :  { %6386 = vset.pattern.permute.xlu2 %v6986_v26  ;;  %12042 = vst [vmem:[#allocation214_spill] sm:$0xff] %v8505_v13  ;;  %v8560_v13 = vld [vmem:[%s11507_s1 + $0x28] sm:$0xff] }
 0x527   :  { %v8563_v27 = vperm.slane %v8560_v13, 5 }
 0x528   :  { %6391 = vset.pattern.permute.xlu1 %v6908_v8 }
 0x529   :  { %12053 = vst [vmem:[#allocation223_spill] sm:$0xff] %v8563_v27 }
 0x52d   :  { %3336 = vperm.xlu0 %6653, %v8495_v40   ;;  %v8519_v47 = vpop.permute.xlu0 %5429 }
 0x52e   :  { %2314 = vperm.xlu2 %6386, %v2297_v9   ;;  %12044 = vst [vmem:[#allocation216_spill] sm:$0xff] %v8519_v47  ;;  %v8536_v9 = vpop.permute.xlu2 %2189  ;;  %v12048_v47 = vld [vmem:[#allocation83_spill] sm:$0xff] }
 0x52f   :  { %12047 = vst [vmem:[#allocation219_spill] sm:$0xff] %v8536_v9  ;;  %v8565_v9 = vpop.permute.xlu1 %2227 }
 0x530   :  { %2352 = vperm.xlu1 %6391, %v12048_v47   ;;  %12049 = vst [vmem:[#allocation83_spill] sm:$0xff] %v8546_v1 }
 0x531   :  { %12054 = vst [vmem:[#allocation224_spill] sm:$0xff] %v8565_v9 }
 0x535   :  { %3461 = vperm.xlu0 %6653, %v8516_v19   ;;  %v8534_v45 = vpop.permute.xlu0 %1068 }
 0x536   :  { %6388 = vset.pattern.permute.xlu2 %v6957_v20  ;;  %12046 = vst [vmem:[#allocation218_spill] sm:$0xff] %v8534_v45  ;;  %v8553_v22 = vpop.permute.xlu2 %2208 }
 0x537   :  { %12052 = vst [vmem:[#allocation222_spill] sm:$0xff] %v8553_v22  ;;  %v8575_v22 = vperm.slane %v8500_v36, 5  ;;  %v8578_v7 = vpop.permute.xlu1 %2245 }
 0x538   :  { %6393 = vset.pattern.permute.xlu1 %v6914_v10  ;;  %12058 = vst [vmem:[#allocation228_spill] sm:$0xff] %v8578_v7 }
 0x539   :  { %12057 = vst [vmem:[#allocation227_spill] sm:$0xff] %v8575_v22 }
 0x53d   :  { %3586 = vperm.xlu0 %6653, %v8529_v51   ;;  %v8551_v35 = vpop.permute.xlu0 %1193  ;;  %v8607_v51 = vld [vmem:[%s11507_s1 + $0x20] sm:$0xff] }
 0x53e   :  { %2333 = vperm.xlu2 %6388, %v8503_v30   ;;  %12051 = vst [vmem:[#allocation221_spill] sm:$0xff] %v8551_v35  ;;  %v8570_v35 = vpop.permute.xlu2 %2220  ;;  %v8610_v49 = vperm.slane %v8607_v51, 6 }
 0x53f   :  { %12056 = vst [vmem:[#allocation226_spill] sm:$0xff] %v8570_v35  ;;  %v6748_v35 = vpop.eup %6747 }
 0x540   :  { %2370 = vperm.xlu1 %6393, %v12048_v47   ;;  %12064 = vst [vmem:[#allocation234_spill] sm:$0xff] %v8610_v49  ;;  %vm805_vm15 = vweird.f32 %v6748_v35 }
 0x541   :  { %vm806_vm10 = vmor %vm804_vm9, %vm805_vm15 }
 0x542   :  { %v8595_v7 = vpop.permute.xlu1 %2258 }
 0x543   :  { %12061 = vst [vmem:[#allocation231_spill] sm:$0xff] %v8595_v7  ;;  %v8613_v7 = vperm.slane %v8338_v14, 2 }
 0x545   :  { %3919 = vperm.xlu0 %6653, %v8546_v1   ;;  %v8568_v45 = vpop.permute.xlu0 %1318  ;;  %12065 = vst [vmem:[#allocation235_spill] sm:$0xff] %v8613_v7 }
 0x546   :  { %6390 = vset.pattern.permute.xlu2 %v6914_v10  ;;  %12055 = vst [vmem:[#allocation225_spill] sm:$0xff] %v8568_v45 }
 0x548   :  { %6395 = vset.pattern.permute.xlu1 %v6957_v20 }
 0x54d   :  { %4044 = vperm.xlu0 %6653, %v8563_v27   ;;  %v8583_v27 = vpop.permute.xlu2 %2239 }
 0x54e   :  { %2345 = vperm.xlu2 %6390, %v8503_v30   ;;  %12059 = vst [vmem:[#allocation229_spill] sm:$0xff] %v8583_v27 }
 0x550   :  { %2383 = vperm.xlu1 %6395, %v8047_v56  }
 0x553   :  { %v8581_v9 = vpop.permute.xlu0 %1587 }
 0x555   :  { %4169 = vperm.xlu0 %6653, %v8575_v22   ;;  %v800_v22 = vmul.f32 %v6748_v35, %v641_v6  ;;  %v8600_v27 = vpop.permute.xlu2 %2252 }
 0x556   :  { %6392 = vset.pattern.permute.xlu2 %v6986_v26  ;;  %12063 = vst [vmem:[#allocation233_spill] sm:$0xff] %v8600_v27 }
 0x557   :  { %v801_v19 = vsub.f32 1.0, %v800_v22  ;;  %v8629_v22 = vld [vmem:[%s11507_s1 + $0x48] sm:$0xff] }
 0x558   :  { %6397 = vset.pattern.permute.xlu1 %v6908_v8 }
 0x559   :  { %v802_v40 = vmul.f32 %v6748_v35, %v801_v19 }
 0x55b   :  { %v8598_v1 = vpop.permute.xlu0 %1712 }
 0x55c   :  { %12062 = vst [vmem:[#allocation232_spill] sm:$0xff] %v8598_v1 }
 0x55d   :  { %v8622_v46 = vpop.permute.xlu2 %2270 }
 0x55e   :  { %2364 = vperm.xlu2 %6392, %v12048_v47   ;;  %v8590_v47 = vld [vmem:[%s11507_s1 + $0x78] sm:$0xff]  ;;  %12067 = vst [vmem:[#allocation237_spill] sm:$0xff] %v8622_v46 }
 0x55f   :  { %v8593_v45 = vperm.slane %v8590_v47, 5 }
 0x560   :  { %2402 = vperm.xlu1 %6397, %v8463_v11  }
 0x561   :  { %12060 = vst [vmem:[#allocation230_spill] sm:$0xff] %v8593_v45  ;;  %4294 = vperm.xlu0 %6653, %v8593_v45   ;;  %v2278_v45 = vpop.permute.xlu1 %2277 }
 0x562   :  { %v2568_v1 = vmul.f32 %v2278_v45, %v8613_v7  ;;  %v8632_v45 = vperm.slane %v8629_v22, 6 }
 0x564   :  { %v8618_v27 = vadd.f32 %v2568_v1, %v8372_v59  ;;  %12068 = vst [vmem:[#allocation238_spill] sm:$0xff] %v8632_v45  ;;  %v810_v59 = vand.u32 2147483648, %v641_v6  ;;  %v808_v1 = vand.u32 2147483647, %v641_v6 }
 0x566   :  { %6394 = vset.pattern.permute.xlu2 %v6908_v8  ;;  %12066 = vst [vmem:[#allocation236_spill] sm:$0xff] %v8618_v27  ;;  %v811_v27 = vor.u32 1.1754944e-38, %v810_v59  ;;  %vm809_vm11 = vcmp.eq.f32.partialorder %v808_v1, 8.507059e+37  ;;  %v12072_v59 = vld [vmem:[#allocation70_spill] sm:$0xff] }
 0x567   :  { %v8620_v5 = vpop.permute.xlu0 %1837 }
 0x568   :  { %v8638_v14 = vpop.permute.xlu2 %2283  ;;  %6399 = vset.pattern.permute.xlu1 %v6986_v26 }
 0x569   :  { %4627 = vperm.xlu0 %6653, %v8610_v49   ;;  %v803_v49 = vadd.f32 %v6748_v35, %v802_v40  ;;  %12070 = vst [vmem:[#allocation240_spill] sm:$0xff] %v8638_v14  ;;  %v8644_v40 = vld [vmem:[%s11507_s1 + $0x70] sm:$0xff] }
 0x56a   :  { %v8647_v6 = vperm.slane %v8644_v40, 6 }
 0x56b   :  { %v807_v19 = vsel %vm806_vm10, %v6748_v35, %v803_v49  ;;  %v2290_v35 = vpop.permute.xlu1 %2289 }
 0x56c   :  { %12071 = vst [vmem:[#allocation241_spill] sm:$0xff] %v8647_v6  ;;  %v2570_v49 = vmul.f32 %v2290_v35, %v8613_v7 }
 0x56e   :  { %2377 = vperm.xlu2 %6394, %v8047_v56  }
 0x56f   :  { %v8635_v46 = vpop.permute.xlu0 %2170 }
 0x570   :  { %12069 = vst [vmem:[#allocation239_spill] sm:$0xff] %v8635_v46  ;;  %2414 = vperm.xlu1 %6399, %v8463_v11  }
 0x571   :  { %4752 = vperm.xlu0 %6653, %v8632_v45   ;;  %v812_v45 = vsel %vm809_vm11, %v811_v27, %v807_v19 }
 0x572   :  { %v8651_v46 = vmul.f32 %v12072_v59, %v812_v45  ;;  %v12080_v59 = vld [vmem:[#allocation127_spill] sm:$0xff] }
 0x574   :  { %12073 = vst [vmem:[#allocation70_spill] sm:$0xff] %v8651_v46  ;;  %v8663_v27 = vperm.slane %v8651_v46, 0  ;;  %v8666_v45 = vperm.slane %v8651_v46, 1  ;;  %v8691_v58 = vperm.slane %v8651_v46, 2 }
 0x576   :  { %6396 = vset.pattern.permute.xlu2 %v6914_v10  ;;  %12076 = vst [vmem:[#allocation244_spill] sm:$0xff] %v8663_v27 }
 0x577   :  { %v2296_v1 = vpop.permute.xlu0 %2295  ;;  %12077 = vst [vmem:[#allocation245_spill] sm:$0xff] %v8666_v45 }
 0x578   :  { %v2571_v14 = vmul.f32 %v2296_v1, %v8613_v7  ;;  %v8659_v54 = vpop.permute.xlu2 %2302  ;;  %v1966_v1 = vmul.f32 %v12080_v59, %v8666_v45  ;;  %v12082_v7 = vld [vmem:[#allocation40_spill] sm:$0xff]  ;;  %6401 = vset.pattern.permute.xlu1 %v6957_v20 }
 0x579   :  { %4877 = vperm.xlu0 %6653, %v8647_v6   ;;  %12075 = vst [vmem:[#allocation243_spill] sm:$0xff] %v8659_v54  ;;  %v1421_v6 = vmul.f32 %v12082_v7, %v8663_v27 }
 0x57a   :  { %v8677_v35 = vadd.f32 %v2571_v14, %v8382_v33  ;;  %12084 = vst [vmem:[#allocation40_spill] sm:$0xff] %v8691_v58  ;;  %v1947_v14 = vmul.f32 %v8581_v9, %v8403_v48  ;;  %v8700_v33 = vld [vmem:[%s11507_s1 + $0x40] sm:$0xff]  ;;  %v2309_v9 = vpop.permute.xlu1 %2308 }
 0x57b   :  { %v8703_v7 = vperm.slane %v8700_v33, 7 }
 0x57c   :  { %12079 = vst [vmem:[#allocation247_spill] sm:$0xff] %v8677_v35  ;;  %v2555_v35 = vmul.f32 %v8531_v55, %v8412_v53 }
 0x57e   :  { %2395 = vperm.xlu2 %6396, %v8047_v56   ;;  %v8655_v56 = vadd.f32 %v2570_v49, %v8384_v23  ;;  %v8671_v23 = vld [vmem:[%s11507_s1 + $0x18] sm:$0xff]  ;;  %v1422_v49 = vmul.f32 %v8118_v50, %v8663_v27  ;;  %v2573_v27 = vmul.f32 %v2309_v9, %v8691_v58  ;;  %v12099_v9 = vld [vmem:[#allocation36_spill] sm:$0xff] }
 0x57f   :  { %v8674_v19 = vperm.slane %v8671_v23, 7  ;;  %v8684_v54 = vpop.permute.xlu0 %2420 }
 0x580   :  { %12074 = vst [vmem:[#allocation242_spill] sm:$0xff] %v8655_v56  ;;  %v12083_v56 = vld [vmem:[#allocation125_spill] sm:$0xff] }
 0x581   :  { %12078 = vst [vmem:[#allocation246_spill] sm:$0xff] %v8674_v19  ;;  %5210 = vperm.xlu0 %6653, %v8674_v19   ;;  %v1965_v57 = vmul.f32 %v12083_v56, %v8666_v45  ;;  %v2030_v56 = vadd.f32 %v1966_v1, %v1422_v49  ;;  %v12095_v1 = vld [vmem:[#allocation7_spill] sm:$0xff] }
 0x582   :  { %12081 = vst [vmem:[#allocation127_spill] sm:$0xff] %v8684_v54  ;;  %v12086_v54 = vld [vmem:[#allocation20_spill] sm:$0xff] }
 0x583   :  { %12085 = vst [vmem:[#allocation125_spill] sm:$0xff] %v8703_v7  ;;  %v1403_v46 = vmul.f32 %v12086_v54, %v8400_v38  ;;  %v2029_v45 = vadd.f32 %v1965_v57, %v1421_v6  ;;  %v8725_v57 = vld [vmem:[%s11507_s1 + $0x68] sm:$0xff]  ;;  %v2422_v6 = vperm.slane %v8644_v40, 2 }
 0x585   :  { %v8712_v19 = vadd.f32 %v2573_v27, %v2029_v45  ;;  %2433 = vperm.xlu1 %6401, %v2422_v6   ;;  %v12093_v45 = vld [vmem:[#allocation6_spill] sm:$0xff] }
 0x586   :  { %6398 = vset.pattern.permute.xlu2 %v6957_v20 }
 0x587   :  { %12088 = vst [vmem:[#allocation248_spill] sm:$0xff] %v8712_v19  ;;  %v8716_v49 = vpop.permute.xlu0 %2753  ;;  %v12105_v19 = vld [vmem:[#allocation51_spill] sm:$0xff] }
 0x588   :  { %v2315_v50 = vpop.permute.xlu2 %2314  ;;  %12089 = vst [vmem:[#allocation249_spill] sm:$0xff] %v8716_v49 }
 0x589   :  { %v2574_v59 = vmul.f32 %v2315_v50, %v8691_v58  ;;  %5335 = vperm.xlu0 %6653, %v8703_v7   ;;  %v2447_v50 = vperm.slane %v8590_v47, 2 }
 0x58b   :  { %v8709_v48 = vadd.f32 %v2574_v59, %v2030_v56  ;;  %v12097_v56 = vld [vmem:[#allocation8_spill] sm:$0xff] }
 0x58d   :  { %12087 = vst [vmem:[#allocation20_spill] sm:$0xff] %v8709_v48  ;;  %6403 = vset.pattern.permute.xlu1 %v6914_v10 }
 0x58e   :  { %2408 = vperm.xlu2 %6398, %v8463_v11   ;;  %v2011_v11 = vadd.f32 %v1947_v14, %v1403_v46  ;;  %v8728_v46 = vperm.slane %v8725_v57, 7 }
 0x58f   :  { %v8732_v55 = vpop.permute.xlu0 %2878 }
 0x590   :  { %v8720_v54 = vadd.f32 %v2555_v35, %v2011_v11  ;;  %12090 = vst [vmem:[#allocation250_spill] sm:$0xff] %v8728_v46 }
 0x591   :  { %5460 = vperm.xlu0 %6653, %v8728_v46   ;;  %12091 = vst [vmem:[#allocation251_spill] sm:$0xff] %v8732_v55 }
 0x595   :  { %2445 = vperm.xlu1 %6403, %v2422_v6  }
 0x596   :  { %6400 = vset.pattern.permute.xlu2 %v6908_v8 }
 0x597   :  { %v8735_v27 = vpop.permute.xlu0 %3003 }
 0x598   :  { %12092 = vst [vmem:[#allocation252_spill] sm:$0xff] %v8735_v27  ;;  %v646_v27 = vperm.slane %v8200_v18, 6 }
 0x599   :  { %6658 = vset.pattern.permute.xlu0 %v6908_v8 }
 0x59a   :  { %6749 = vrcp.f32 %v646_v27  ;;  %vm879_vm13 = vweird.f32 %v646_v27 }
 0x59d   :  { %6405 = vset.pattern.permute.xlu1 %v6986_v26 }
 0x59e   :  { %2427 = vperm.xlu2 %6400, %v2422_v6  }
 0x59f   :  { %v8740_v35 = vpop.permute.xlu0 %3336 }
 0x5a0   :  { %12094 = vst [vmem:[#allocation6_spill] sm:$0xff] %v8740_v35  ;;  %v6750_v46 = vpop.eup %6749 }
 0x5a1   :  { %925 = vperm.xlu0 %6658, %v12093_v45   ;;  %vm880_vm12 = vweird.f32 %v6750_v46 }
 0x5a2   :  { %vm881_vm14 = vmor %vm879_vm13, %vm880_vm12 }
 0x5a5   :  { %2464 = vperm.xlu1 %6405, %v2447_v50  }
 0x5a6   :  { %6402 = vset.pattern.permute.xlu2 %v6986_v26 }
 0x5a7   :  { %v8743_v14 = vpop.permute.xlu0 %3461 }
 0x5a8   :  { %12096 = vst [vmem:[#allocation7_spill] sm:$0xff] %v8743_v14  ;;  %v875_v14 = vmul.f32 %v6750_v46, %v646_v27 }
 0x5a9   :  { %975 = vperm.xlu0 %6658, %v12095_v1   ;;  %v12103_v1 = vld [vmem:[#allocation86_spill] sm:$0xff] }
 0x5aa   :  { %v876_v53 = vsub.f32 1.0, %v875_v14  ;;  %v883_v14 = vand.u32 2147483647, %v646_v27 }
 0x5ac   :  { %vm884_vm15 = vcmp.eq.f32.partialorder %v883_v14, 8.507059e+37 }
 0x5ad   :  { %6407 = vset.pattern.permute.xlu1 %v6908_v8 }
 0x5ae   :  { %2439 = vperm.xlu2 %6402, %v2422_v6   ;;  %v12101_v6 = vld [vmem:[#allocation43_spill] sm:$0xff] }
 0x5af   :  { %v8749_v59 = vpop.permute.xlu0 %3586 }
 0x5b0   :  { %12098 = vst [vmem:[#allocation8_spill] sm:$0xff] %v8749_v59 }
 0x5b1   :  { %1100 = vperm.xlu0 %6658, %v12097_v56   ;;  %v8760_v56 = vpop.permute.xlu2 %2333 }
 0x5b2   :  { %12104 = vst [vmem:[#allocation86_spill] sm:$0xff] %v8760_v56 }
 0x5b5   :  { %2685 = vperm.xlu1 %6407, %v12103_v1  }
 0x5b6   :  { %6404 = vset.pattern.permute.xlu2 %v6957_v20 }
 0x5b7   :  { %v8752_v11 = vpop.permute.xlu0 %3919 }
 0x5b8   :  { %12100 = vst [vmem:[#allocation36_spill] sm:$0xff] %v8752_v11 }
 0x5b9   :  { %1225 = vperm.xlu0 %6658, %v12099_v9   ;;  %v8768_v48 = vpop.permute.xlu2 %2345 }
 0x5ba   :  { %12107 = vst [vmem:[#allocation253_spill] sm:$0xff] %v8768_v48 }
 0x5bd   :  { %6409 = vset.pattern.permute.xlu1 %v6914_v10 }
 0x5be   :  { %2458 = vperm.xlu2 %6404, %v2447_v50  }
 0x5bf   :  { %v8757_v45 = vpop.permute.xlu0 %4044 }
 0x5c0   :  { %12102 = vst [vmem:[#allocation43_spill] sm:$0xff] %v8757_v45  ;;  %v8926_v45 = vld [vmem:[%s11507_s1 + $0x38] sm:$0xff] }
 0x5c1   :  { %1494 = vperm.xlu0 %6658, %v12101_v6   ;;  %v12108_v6 = vld [vmem:[#allocation93_spill] sm:$0xff]  ;;  %v8777_v7 = vpop.permute.xlu2 %2364  ;;  %v8929_v11 = vperm.slane %v8926_v45, 5 }
 0x5c2   :  { %12111 = vst [vmem:[#allocation255_spill] sm:$0xff] %v8777_v7 }
 0x5c3   :  { %12141 = vst [vmem:[#allocation279_spill] sm:$0xff] %v8929_v11 }
 0x5c5   :  { %2703 = vperm.xlu1 %6409, %v12103_v1  }
 0x5c6   :  { %6406 = vset.pattern.permute.xlu2 %v6914_v10 }
 0x5c7   :  { %v8764_v9 = vpop.permute.xlu0 %4169 }
 0x5c8   :  { %12106 = vst [vmem:[#allocation51_spill] sm:$0xff] %v8764_v9 }
 0x5c9   :  { %1619 = vperm.xlu0 %6658, %v12105_v19   ;;  %v8775_v19 = vpop.permute.xlu1 %2320  ;;  %v8786_v9 = vpop.permute.xlu2 %2377 }
 0x5ca   :  { %12110 = vst [vmem:[#allocation254_spill] sm:$0xff] %v8775_v19  ;;  %v885_v19 = vand.u32 2147483648, %v646_v27 }
 0x5cb   :  { %12114 = vst [vmem:[#allocation258_spill] sm:$0xff] %v8786_v9 }
 0x5cd   :  { %6411 = vset.pattern.permute.xlu1 %v6957_v20 }
 0x5ce   :  { %2470 = vperm.xlu2 %6406, %v2447_v50  }
 0x5d1   :  { %1744 = vperm.xlu0 %6658, %v12108_v6   ;;  %v877_v6 = vmul.f32 %v6750_v46, %v876_v53  ;;  %v886_v53 = vor.u32 1.1754944e-38, %v885_v19 }
 0x5d3   :  { %v8771_v58 = vpop.permute.xlu0 %4294 }
 0x5d4   :  { %12109 = vst [vmem:[#allocation93_spill] sm:$0xff] %v8771_v58  ;;  %v8784_v58 = vpop.permute.xlu1 %2339 }
 0x5d5   :  { %12113 = vst [vmem:[#allocation257_spill] sm:$0xff] %v8784_v58  ;;  %2716 = vperm.xlu1 %6411, %v8054_v39  }
 0x5d6   :  { %6408 = vset.pattern.permute.xlu2 %v6986_v26 }
 0x5d8   :  { %v8795_v58 = vpop.permute.xlu2 %2395 }
 0x5d9   :  { %2077 = vperm.xlu0 %6658, %v8040_v31   ;;  %12117 = vst [vmem:[#allocation261_spill] sm:$0xff] %v8795_v58 }
 0x5db   :  { %v8780_v38 = vpop.permute.xlu0 %4627 }
 0x5dc   :  { %12112 = vst [vmem:[#allocation256_spill] sm:$0xff] %v8780_v38  ;;  %v8793_v38 = vpop.permute.xlu1 %2352 }
 0x5dd   :  { %12116 = vst [vmem:[#allocation260_spill] sm:$0xff] %v8793_v38  ;;  %6413 = vset.pattern.permute.xlu1 %v6908_v8 }
 0x5de   :  { %2697 = vperm.xlu2 %6408, %v12103_v1   ;;  %v878_v1 = vadd.f32 %v6750_v46, %v877_v6 }
 0x5e0   :  { %v882_v31 = vsel %vm881_vm14, %v6750_v46, %v878_v1 }
 0x5e1   :  { %2202 = vperm.xlu0 %6658, %v8239_v37   ;;  %v887_v6 = vsel %vm884_vm15, %v886_v53, %v882_v31  ;;  %v12118_v37 = vld [vmem:[#allocation79_spill] sm:$0xff]  ;;  %v8822_v53 = vperm.slane %v8607_v51, 3 }
 0x5e2   :  { %v8799_v9 = vmul.f32 %v12118_v37, %v887_v6 }
 0x5e3   :  { %v8789_v48 = vpop.permute.xlu0 %4752 }
 0x5e4   :  { %12115 = vst [vmem:[#allocation259_spill] sm:$0xff] %v8789_v48  ;;  %v8805_v48 = vpop.permute.xlu1 %2370  ;;  %v8810_v19 = vperm.slane %v8799_v9, 0  ;;  %v8813_v1 = vperm.slane %v8799_v9, 1  ;;  %v8825_v6 = vperm.slane %v8799_v9, 2 }
 0x5e5   :  { %12119 = vst [vmem:[#allocation79_spill] sm:$0xff] %v8799_v9  ;;  %2735 = vperm.xlu1 %6413, %v8470_v61  }
 0x5e6   :  { %6410 = vset.pattern.permute.xlu2 %v6908_v8  ;;  %12121 = vst [vmem:[#allocation263_spill] sm:$0xff] %v8805_v48  ;;  %v1984_v31 = vmul.f32 %v8167_v17, %v8813_v1 }
 0x5e7   :  { %12123 = vst [vmem:[#allocation265_spill] sm:$0xff] %v8810_v19 }
 0x5e8   :  { %v8807_v46 = vpop.permute.xlu2 %2408  ;;  %12124 = vst [vmem:[#allocation266_spill] sm:$0xff] %v8813_v1 }
 0x5e9   :  { %2327 = vperm.xlu0 %6658, %v8503_v30   ;;  %12122 = vst [vmem:[#allocation264_spill] sm:$0xff] %v8807_v46  ;;  %v12125_v30 = vld [vmem:[#allocation52_spill] sm:$0xff] }
 0x5ea   :  { %v1440_v14 = vmul.f32 %v12125_v30, %v8810_v19  ;;  %12126 = vst [vmem:[#allocation52_spill] sm:$0xff] %v8825_v6 }
 0x5eb   :  { %v8803_v27 = vpop.permute.xlu0 %4877 }
 0x5ec   :  { %12120 = vst [vmem:[#allocation262_spill] sm:$0xff] %v8803_v27  ;;  %v8827_v37 = vpop.permute.xlu1 %2383  ;;  %v2048_v46 = vadd.f32 %v1984_v31, %v1440_v14  ;;  %v8852_v14 = vperm.slane %v8644_v40, 3  ;;  %v2755_v40 = vperm.slane %v8671_v23, 3 }
 0x5ed   :  { %12127 = vst [vmem:[#allocation267_spill] sm:$0xff] %v8827_v37  ;;  %6415 = vset.pattern.permute.xlu1 %v6986_v26 }
 0x5ee   :  { %2710 = vperm.xlu2 %6410, %v8054_v39  }
 0x5f1   :  { %2452 = vperm.xlu0 %6658, %v2447_v50  }
 0x5f3   :  { %v8829_v50 = vpop.permute.xlu0 %5210 }
 0x5f4   :  { %12128 = vst [vmem:[#allocation268_spill] sm:$0xff] %v8829_v50  ;;  %v8840_v51 = vpop.permute.xlu1 %2402  ;;  %v8917_v50 = vperm.slane %v8200_v18, 2 }
 0x5f5   :  { %2747 = vperm.xlu1 %6415, %v8470_v61  }
 0x5f6   :  { %6412 = vset.pattern.permute.xlu2 %v6914_v10 }
 0x5f8   :  { %v2428_v27 = vpop.permute.xlu2 %2427 }
 0x5f9   :  { %v2592_v30 = vmul.f32 %v2428_v27, %v8825_v6  ;;  %2785 = vperm.xlu0 %6658, %v8822_v53   ;;  %v1442_v27 = vmul.f32 %v8133_v16, %v8810_v19 }
 0x5fb   :  { %v8833_v17 = vadd.f32 %v2592_v30, %v2048_v46  ;;  %v8842_v37 = vpop.permute.xlu0 %5335  ;;  %v1986_v46 = vmul.f32 %v8175_v43, %v8813_v1  ;;  %v8865_v43 = vperm.slane %v8671_v23, 4  ;;  %v643_v23 = vperm.slane %v8200_v18, 3 }
 0x5fc   :  { %12129 = vst [vmem:[#allocation269_spill] sm:$0xff] %v8842_v37 }
 0x5fd   :  { %v2050_v30 = vadd.f32 %v1986_v46, %v1442_v27  ;;  %6417 = vset.pattern.permute.xlu1 %v6957_v20  ;;  %v1987_v27 = vmul.f32 %v8620_v5, %v8813_v1  ;;  %v12134_v46 = vld [vmem:[#allocation53_spill] sm:$0xff]  ;;  %6751 = vrcp.f32 %v643_v23  ;;  %vm834_vm10 = vweird.f32 %v643_v23 }
 0x5fe   :  { %2728 = vperm.xlu2 %6412, %v8054_v39   ;;  %v8838_v39 = vperm.slane %v8629_v22, 3  ;;  %v8854_v22 = vpop.permute.xlu1 %2414  ;;  %v840_v38 = vand.u32 2147483648, %v643_v23 }
 0x5ff   :  { %12130 = vst [vmem:[#allocation270_spill] sm:$0xff] %v8854_v22 }
 0x601   :  { %2910 = vperm.xlu0 %6658, %v8838_v39  }
 0x603   :  { %v8860_v16 = vpop.permute.xlu0 %5460 }
 0x604   :  { %12132 = vst [vmem:[#allocation272_spill] sm:$0xff] %v8860_v16 }
 0x605   :  { %2766 = vperm.xlu1 %6417, %v2755_v40  }
 0x606   :  { %6414 = vset.pattern.permute.xlu2 %v6957_v20 }
 0x608   :  { %v2440_v31 = vpop.permute.xlu2 %2439 }
 0x609   :  { %v2594_v37 = vmul.f32 %v2440_v31, %v8825_v6  ;;  %3035 = vperm.xlu0 %6658, %v8852_v14   ;;  %v1443_v31 = vmul.f32 %v12134_v46, %v8810_v19  ;;  %v8890_v46 = vperm.slane %v8725_v57, 4 }
 0x60b   :  { %v8858_v58 = vadd.f32 %v2594_v37, %v2050_v30  ;;  %v8878_v30 = vperm.slane %v8700_v33, 4  ;;  %12137 = vst [vmem:[#allocation275_spill] sm:$0xff] %v8890_v46 }
 0x60d   :  { %12131 = vst [vmem:[#allocation271_spill] sm:$0xff] %v8858_v58  ;;  %v2051_v58 = vadd.f32 %v1987_v27, %v1443_v31  ;;  %6419 = vset.pattern.permute.xlu1 %v6914_v10  ;;  %v8893_v27 = vperm.slane %v8188_v2, 0  ;;  %v8905_v31 = vld [vmem:[%s11507_s1 + $0x10] sm:$0xff] }
 0x60e   :  { %2741 = vperm.xlu2 %6414, %v8470_v61   ;;  %v8867_v61 = vpop.permute.xlu1 %2433  ;;  %12135 = vst [vmem:[#allocation53_spill] sm:$0xff] %v8878_v30 }
 0x60f   :  { %12133 = vst [vmem:[#allocation273_spill] sm:$0xff] %v8867_v61  ;;  %6753 = vrcp.f32 %v8893_v27  ;;  %v675_v49 = vand.u32 2147483648, %v8893_v27  ;;  %vm669_vm14 = vweird.f32 %v8893_v27 }
 0x611   :  { %3368 = vperm.xlu0 %6658, %v8865_v43  }
 0x613   :  { %v8873_v37 = vpop.permute.xlu0 %925 }
 0x615   :  { %2778 = vperm.xlu1 %6419, %v2755_v40  }
 0x616   :  { %6416 = vset.pattern.permute.xlu2 %v6908_v8  ;;  %v2446_v16 = vpop.permute.xlu1 %2445 }
 0x617   :  { %v2595_v61 = vmul.f32 %v2446_v16, %v8825_v6  ;;  %v6752_v16 = vpop.eup %6751 }
 0x618   :  { %v830_v6 = vmul.f32 %v6752_v16, %v643_v23  ;;  %v8910_v1 = vpop.eup %6753  ;;  %vm835_vm9 = vweird.f32 %v6752_v16 }
 0x619   :  { %3493 = vperm.xlu0 %6658, %v8878_v30   ;;  %v8883_v22 = vadd.f32 %v2595_v61, %v2051_v58  ;;  %v8900_v61 = vperm.slane %v8188_v2, 5  ;;  %v665_v56 = vmul.f32 %v8910_v1, %v8893_v27  ;;  %vm836_vm11 = vmor %vm834_vm10, %vm835_vm9  ;;  %vm670_vm13 = vweird.f32 %v8910_v1 }
 0x61a   :  { %v831_v19 = vsub.f32 1.0, %v830_v6  ;;  %vm671_vm15 = vmor %vm669_vm14, %vm670_vm13 }
 0x61b   :  { %12136 = vst [vmem:[#allocation274_spill] sm:$0xff] %v8883_v22  ;;  %v8885_v5 = vpop.permute.xlu0 %975  ;;  %v8908_v22 = vperm.slane %v8905_v31, 5  ;;  %6755 = vrcp.f32 %v8900_v61  ;;  %v666_v59 = vsub.f32 1.0, %v665_v56  ;;  %v8946_v56 = vld [vmem:[%s11507_s1 + $0x60] sm:$0xff] }
 0x61c   :  { %v832_v6 = vmul.f32 %v6752_v16, %v831_v19  ;;  %6757 = vrcp.f32 %v8917_v50  ;;  %v12142_v19 = vld [vmem:[#allocation9_spill] sm:$0xff] }
 0x61d   :  { %12139 = vst [vmem:[#allocation277_spill] sm:$0xff] %v8908_v22  ;;  %6421 = vset.pattern.permute.xlu1 %v6986_v26  ;;  %v1388_v55 = vmul.f32 %v12142_v19, %v8249_v28 }
 0x61e   :  { %2760 = vperm.xlu2 %6416, %v2755_v40   ;;  %v833_v48 = vadd.f32 %v6752_v16, %v832_v6  ;;  %12143 = vst [vmem:[#allocation9_spill] sm:$0xff] %v8946_v56  ;;  %v8949_v6 = vperm.slane %v8946_v56, 5 }
 0x621   :  { %3618 = vperm.xlu0 %6658, %v8890_v46   ;;  %v667_v46 = vmul.f32 %v8910_v1, %v666_v59  ;;  %v837_v59 = vsel %vm836_vm11, %v6752_v16, %v833_v48  ;;  %v676_v16 = vor.u32 1.1754944e-38, %v675_v49  ;;  %vm744_vm11 = vweird.f32 %v8900_v61 }
 0x623   :  { %v8897_v58 = vpop.permute.xlu0 %1100  ;;  %v668_v28 = vadd.f32 %v8910_v1, %v667_v46 }
 0x624   :  { %12138 = vst [vmem:[#allocation276_spill] sm:$0xff] %v8897_v58 }
 0x625   :  { %2797 = vperm.xlu1 %6421, %v8822_v53  }
 0x626   :  { %6418 = vset.pattern.permute.xlu2 %v6986_v26 }
 0x629   :  { %3951 = vperm.xlu0 %6658, %v8908_v22   ;;  %v838_v22 = vand.u32 2147483647, %v643_v23 }
 0x62b   :  { %vm839_vm12 = vcmp.eq.f32.partialorder %v838_v22, 8.507059e+37  ;;  %v672_v22 = vsel %vm671_vm15, %v8910_v1, %v668_v28  ;;  %vm819_vm15 = vweird.f32 %v8917_v50 }
 0x62d   :  { %6423 = vset.pattern.permute.xlu1 %v6908_v8 }
 0x62e   :  { %2772 = vperm.xlu2 %6418, %v2755_v40   ;;  %v8914_v40 = vpop.permute.xlu0 %1225 }
 0x62f   :  { %12140 = vst [vmem:[#allocation278_spill] sm:$0xff] %v8914_v40  ;;  %v8931_v40 = vpop.eup %6755 }
 0x630   :  { %v740_v7 = vmul.f32 %v8931_v40, %v8900_v61  ;;  %v8951_v23 = vpop.eup %6757  ;;  %vm745_vm10 = vweird.f32 %v8931_v40 }
 0x631   :  { %4076 = vperm.xlu0 %6658, %v8929_v11   ;;  %v815_v56 = vmul.f32 %v8951_v23, %v8917_v50  ;;  %vm820_vm14 = vweird.f32 %v8951_v23 }
 0x632   :  { %v741_v11 = vsub.f32 1.0, %v740_v7  ;;  %v12145_v7 = vld [vmem:[#allocation76_spill] sm:$0xff] }
 0x633   :  { %v816_v46 = vsub.f32 1.0, %v815_v56 }
 0x635   :  { %v817_v56 = vmul.f32 %v8951_v23, %v816_v46 }
 0x636   :  { %6420 = vset.pattern.permute.xlu2 %v6957_v20  ;;  %v1495_v35 = vpop.permute.xlu0 %1494 }
 0x637   :  { %v1932_v58 = vmul.f32 %v1495_v35, %v8252_v44  ;;  %v2540_v35 = vmul.f32 %v8226_v63, %v8257_v3  ;;  %v841_v44 = vor.u32 1.1754944e-38, %v840_v38  ;;  %v673_v63 = vand.u32 2147483647, %v8893_v27 }
 0x638   :  { %v742_v38 = vmul.f32 %v8931_v40, %v741_v11  ;;  %v8977_v27 = vperm.slane %v8492_v25, 6 }
 0x639   :  { %v1996_v19 = vadd.f32 %v1932_v58, %v1388_v55  ;;  %v842_v30 = vsel %vm839_vm12, %v841_v44, %v837_v59  ;;  %4201 = vperm.xlu0 %6658, %v8949_v6   ;;  %v1392_v44 = vmul.f32 %v8885_v5, %v8330_v12  ;;  %vm674_vm9 = vcmp.eq.f32.partialorder %v673_v63, 8.507059e+37  ;;  %vm8990_vm12 = vmor %vm744_vm11, %vm745_vm10  ;;  %v12156_v59 = vld [vmem:[#allocation82_spill] sm:$0xff] }
 0x63a   :  { %v8969_v55 = vmul.f32 %v12145_v7, %v842_v30  ;;  %v743_v11 = vadd.f32 %v8931_v40, %v742_v38  ;;  %v12147_v30 = vld [vmem:[#allocation90_spill] sm:$0xff]  ;;  %v677_v1 = vsel %vm674_vm9, %v676_v16, %v672_v22  ;;  %v750_v5 = vand.u32 2147483648, %v8900_v61  ;;  %vm9034_vm9 = vmor %vm819_vm15, %vm820_vm14 }
 0x63b   :  { %v8957_v2 = vadd.f32 %v2540_v35, %v1996_v19  ;;  %v1936_v28 = vmul.f32 %v12147_v30, %v8333_v62  ;;  %v748_v58 = vand.u32 2147483647, %v8900_v61  ;;  %v12151_v35 = vld [vmem:[#allocation78_spill] sm:$0xff]  ;;  %v2544_v61 = vmul.f32 %v8327_v41, %v8347_v42  ;;  %v12155_v30 = vld [vmem:[#allocation89_spill] sm:$0xff] }
 0x63c   :  { %12146 = vst [vmem:[#allocation76_spill] sm:$0xff] %v8969_v55  ;;  %v8987_v49 = vperm.slane %v8969_v55, 0  ;;  %v8996_v19 = vmul.f32 %v12151_v35, %v677_v1  ;;  %v747_v63 = vsel %vm8990_vm12, %v8931_v40, %v743_v11  ;;  %v9004_v38 = vperm.slane %v8969_v55, 1  ;;  %2810 = vperm.xlu1 %6423, %v12155_v30  }
 0x63d   :  { %v2000_v25 = vadd.f32 %v1936_v28, %v1392_v44  ;;  %v751_v7 = vor.u32 1.1754944e-38, %v750_v5  ;;  %vm749_vm13 = vcmp.eq.f32.partialorder %v748_v58, 8.507059e+37  ;;  %v12154_v44 = vld [vmem:[#allocation46_spill] sm:$0xff]  ;;  %v9015_v40 = vperm.slane %v8513_v21, 6 }
 0x63e   :  { %2791 = vperm.xlu2 %6420, %v8822_v53   ;;  %v8966_v48 = vpop.permute.xlu0 %1619  ;;  %12148 = vst [vmem:[#allocation90_spill] sm:$0xff] %v8987_v49  ;;  %v1428_v46 = vmul.f32 %v12154_v44, %v8987_v49  ;;  %v818_v11 = vadd.f32 %v8951_v23, %v817_v56  ;;  %v9019_v1 = vperm.slane %v8996_v19, 0  ;;  %v9022_v5 = vperm.slane %v8996_v19, 1 }
 0x63f   :  { %12144 = vst [vmem:[#allocation280_spill] sm:$0xff] %v8966_v48  ;;  %v9011_v28 = vadd.f32 %v2544_v61, %v2000_v25  ;;  %v752_v41 = vsel %vm749_vm13, %v751_v7, %v747_v63  ;;  %v825_v25 = vand.u32 2147483648, %v8917_v50  ;;  %v9043_v61 = vperm.slane %v8996_v19, 2  ;;  %v12171_v48 = vld [vmem:[#allocation60_spill] sm:$0xff] }
 0x640   :  { %12152 = vst [vmem:[#allocation78_spill] sm:$0xff] %v8996_v19  ;;  %v9030_v35 = vmul.f32 %v12156_v59, %v752_v41  ;;  %v1384_v21 = vmul.f32 %v8873_v37, %v9019_v1  ;;  %v822_v63 = vsel %vm9034_vm9, %v8951_v23, %v818_v11  ;;  %v9053_v41 = vpop.permute.xlu2 %2458  ;;  %v12162_v59 = vld [vmem:[#allocation88_spill] sm:$0xff]  ;;  %v12182_v12 = vmov 0  }
 0x641   :  { %4534 = vperm.xlu0 %6658, %v8977_v27   ;;  %12153 = vst [vmem:[#allocation281_spill] sm:$0xff] %v9004_v38 }
 0x642   :  { %v9048_v37 = vperm.slane %v9030_v35, 0  ;;  %12160 = vst [vmem:[#allocation46_spill] sm:$0xff] %v9053_v41 }
 0x644   :  { %6425 = vset.pattern.permute.xlu1 %v6914_v10 }
 0x646   :  { %6422 = vset.pattern.permute.xlu2 %v6914_v10  ;;  %v1745_v22 = vpop.permute.xlu0 %1744 }
 0x647   :  { %v1972_v16 = vmul.f32 %v1745_v22, %v9004_v38  ;;  %v826_v22 = vor.u32 1.1754944e-38, %v825_v25 }
 0x649   :  { %v9024_v58 = vadd.f32 %v1972_v16, %v1428_v46  ;;  %4659 = vperm.xlu0 %6658, %v9015_v40   ;;  %v9051_v46 = vperm.slane %v9030_v35, 1 }
 0x64c   :  { %2828 = vperm.xlu1 %6425, %v12155_v30  }
 0x64e   :  { %2803 = vperm.xlu2 %6422, %v8822_v53   ;;  %v823_v53 = vand.u32 2147483647, %v8917_v50  ;;  %v12159_v50 = vld [vmem:[#allocation55_spill] sm:$0xff]  ;;  %v2078_v44 = vpop.permute.xlu0 %2077 }
 0x64f   :  { %v1928_v7 = vmul.f32 %v12159_v50, %v9022_v5  ;;  %v2536_v23 = vmul.f32 %v2078_v44, %v9043_v61  ;;  %v12164_v50 = vld [vmem:[#allocation19_spill] sm:$0xff]  ;;  %v9072_v44 = vperm.slane %v9030_v35, 2 }
 0x650   :  { %vm824_vm10 = vcmp.eq.f32.partialorder %v823_v53, 8.507059e+37  ;;  %v9059_v53 = vperm.slane %v8526_v24, 6 }
 0x651   :  { %v1992_v16 = vadd.f32 %v1928_v7, %v1384_v21  ;;  %v827_v11 = vsel %vm824_vm10, %v826_v22, %v822_v63  ;;  %v1404_v21 = vmul.f32 %v12164_v50, %v9048_v37  ;;  %v12165_v7 = vld [vmem:[#allocation101_spill] sm:$0xff]  ;;  %v9088_v50 = vpop.permute.xlu1 %2464 }
 0x652   :  { %12161 = vst [vmem:[#allocation89_spill] sm:$0xff] %v9059_v53  ;;  %v9064_v56 = vmul.f32 %v12162_v59, %v827_v11  ;;  %v1948_v41 = vmul.f32 %v12165_v7, %v9051_v46  ;;  %4784 = vperm.xlu0 %6658, %v9059_v53   ;;  %v9086_v59 = vperm.slane %v8543_v52, 7 }
 0x653   :  { %v9061_v25 = vadd.f32 %v2536_v23, %v1992_v16  ;;  %v9080_v16 = vpop.permute.xlu2 %2470  ;;  %12170 = vst [vmem:[#allocation282_spill] sm:$0xff] %v9088_v50 }
 0x654   :  { %12163 = vst [vmem:[#allocation82_spill] sm:$0xff] %v9064_v56  ;;  %v9075_v24 = vperm.slane %v9064_v56, 0  ;;  %v9078_v22 = vperm.slane %v9064_v56, 1  ;;  %v2012_v23 = vadd.f32 %v1948_v41, %v1404_v21  ;;  %v9098_v41 = vperm.slane %v9064_v56, 2  ;;  %6427 = vset.pattern.permute.xlu1 %v6957_v20 }
 0x655   :  { %12168 = vst [vmem:[#allocation19_spill] sm:$0xff] %v9080_v16 }
 0x656   :  { %6424 = vset.pattern.permute.xlu2 %v6986_v26  ;;  %v2203_v63 = vpop.permute.xlu0 %2202  ;;  %12166 = vst [vmem:[#allocation55_spill] sm:$0xff] %v9075_v24  ;;  %v1424_v42 = vmul.f32 %v12171_v48, %v9075_v24  ;;  %v1968_v16 = vmul.f32 %v8088_v29, %v9078_v22  ;;  %v9106_v48 = vperm.slane %v8560_v13, 7  ;;  %v9126_v13 = vperm.slane %v8392_v0, 3 }
 0x657   :  { %12167 = vst [vmem:[#allocation88_spill] sm:$0xff] %v9078_v22  ;;  %v2556_v11 = vmul.f32 %v2203_v63, %v9072_v44 }
 0x658   :  { %12169 = vst [vmem:[#allocation101_spill] sm:$0xff] %v9086_v59  ;;  %v2032_v52 = vadd.f32 %v1968_v16, %v1424_v42  ;;  %v9120_v42 = vperm.slane %v8500_v36, 7 }
 0x659   :  { %v9090_v7 = vadd.f32 %v2556_v11, %v2012_v23  ;;  %12172 = vst [vmem:[#allocation60_spill] sm:$0xff] %v9098_v41  ;;  %v9108_v23 = vpop.permute.xlu1 %2685 }
 0x65a   :  { %5117 = vperm.xlu0 %6658, %v9086_v59   ;;  %12173 = vst [vmem:[#allocation283_spill] sm:$0xff] %v9106_v48 }
 0x65b   :  { %12176 = vst [vmem:[#allocation286_spill] sm:$0xff] %v9120_v42 }
 0x65c   :  { %2841 = vperm.xlu1 %6427, %v8060_v32   ;;  %12177 = vst [vmem:[#allocation287_spill] sm:$0xff] %v9126_v13 }
 0x65e   :  { %2822 = vperm.xlu2 %6424, %v12155_v30   ;;  %v2328_v21 = vpop.permute.xlu0 %2327  ;;  %v9100_v30 = vpop.permute.xlu2 %2697 }
 0x65f   :  { %v2576_v63 = vmul.f32 %v2328_v21, %v9098_v41 }
 0x661   :  { %v9110_v29 = vadd.f32 %v2576_v63, %v2032_v52  ;;  %v9122_v16 = vpop.permute.xlu1 %2703 }
 0x662   :  { %5242 = vperm.xlu0 %6658, %v9106_v48  }
 0x663   :  { %12174 = vst [vmem:[#allocation284_spill] sm:$0xff] %v9110_v29 }
 0x664   :  { %6429 = vset.pattern.permute.xlu1 %v6908_v8 }
 0x666   :  { %6426 = vset.pattern.permute.xlu2 %v6908_v8  ;;  %v9113_v11 = vpop.permute.xlu0 %2452  ;;  %v9115_v50 = vpop.permute.xlu2 %2710 }
 0x667   :  { %12175 = vst [vmem:[#allocation285_spill] sm:$0xff] %v9113_v11  ;;  %v9134_v11 = vperm.slane %v8590_v47, 7  ;;  %v9152_v47 = vperm.slane %v8799_v9, 3 }
 0x669   :  { %12178 = vst [vmem:[#allocation288_spill] sm:$0xff] %v9134_v11  ;;  %v9136_v36 = vpop.permute.xlu1 %2716 }
 0x66a   :  { %5367 = vperm.xlu0 %6658, %v9120_v42   ;;  %12183 = vst [vmem:[#allocation292_spill] sm:$0xff] %v9152_v47 }
 0x66c   :  { %2860 = vperm.xlu1 %6429, %v8478_v34  }
 0x66e   :  { %2835 = vperm.xlu2 %6426, %v8060_v32   ;;  %v2786_v21 = vpop.permute.xlu0 %2785  ;;  %v9129_v63 = vpop.permute.xlu2 %2728 }
 0x66f   :  { %v3160_v52 = vmul.f32 %v2786_v21, %v9126_v13 }
 0x671   :  { %v9139_v62 = vadd.f32 %v3160_v52, %v8441_v60  ;;  %v9148_v0 = vpop.permute.xlu1 %2735 }
 0x672   :  { %5492 = vperm.xlu0 %6658, %v9134_v11  }
 0x673   :  { %12179 = vst [vmem:[#allocation289_spill] sm:$0xff] %v9139_v62 }
 0x674   :  { %6431 = vset.pattern.permute.xlu1 %v6986_v26 }
 0x676   :  { %6428 = vset.pattern.permute.xlu2 %v6914_v10  ;;  %v9142_v42 = vpop.permute.xlu0 %2910  ;;  %v9145_v21 = vpop.permute.xlu2 %2741 }
 0x677   :  { %12180 = vst [vmem:[#allocation290_spill] sm:$0xff] %v9142_v42  ;;  %v9165_v42 = vperm.slane %v8274_v15, 2 }
 0x678   :  { %12181 = vst [vmem:[#allocation291_spill] sm:$0xff] %v9145_v21  ;;  %v12190_v21 = vld [vmem:[#allocation203_spill] sm:$0xff] }
 0x679   :  { %12186 = vst [vmem:[#allocation295_spill] sm:$0xff] %v9165_v42  ;;  %v2550_v9 = vmul.f32 %v8397_v4, %v9165_v42 }
 0x67a   :  { %6667 = vset.pattern.permute.xlu0 %v12182_v12  ;;  %v12187_v12 = vld [vmem:[#allocation16_spill] sm:$0xff] }
 0x67c   :  { %2872 = vperm.xlu1 %6431, %v8478_v34  }
 0x67e   :  { %2853 = vperm.xlu2 %6428, %v8060_v32   ;;  %v3036_v48 = vpop.permute.xlu0 %3035  ;;  %v9156_v52 = vpop.permute.xlu2 %2760 }
 0x67f   :  { %v3200_v60 = vmul.f32 %v3036_v48, %v9152_v47  ;;  %12184 = vst [vmem:[#allocation293_spill] sm:$0xff] %v9156_v52  ;;  %v9162_v32 = vpop.permute.xlu1 %2747  ;;  %v2549_v48 = vmul.f32 %v12187_v12, %v9165_v42  ;;  %v9172_v47 = vperm.slane %v8274_v15, 3  ;;  %v2880_v42 = vperm.slane %v8700_v33, 3  ;;  %v12196_v33 = vld [vmem:[#allocation92_spill] sm:$0xff] }
 0x681   :  { %v9160_v11 = vadd.f32 %v3200_v60, %v8833_v17  ;;  %12188 = vst [vmem:[#allocation16_spill] sm:$0xff] %v9172_v47  ;;  %v12189_v17 = vld [vmem:[#allocation201_spill] sm:$0xff]  ;;  %v2613_v3 = vadd.f32 %v2549_v48, %v12190_v21 }
 0x682   :  { %v2614_v60 = vadd.f32 %v2550_v9, %v12189_v17  ;;  %v12193_v9 = vld [vmem:[#allocation44_spill] sm:$0xff] }
 0x683   :  { %12185 = vst [vmem:[#allocation294_spill] sm:$0xff] %v9160_v11 }
 0x684   :  { %6433 = vset.pattern.permute.xlu1 %v6957_v20 }
 0x686   :  { %6430 = vset.pattern.permute.xlu2 %v6957_v20 }
 0x687   :  { %v2767_v52 = vpop.permute.xlu1 %2766 }
 0x688   :  { %v2773_v62 = vpop.permute.xlu2 %2772  ;;  %v3157_v4 = vmul.f32 %v2767_v52, %v9172_v47 }
 0x689   :  { %v3158_v11 = vmul.f32 %v2773_v62, %v9172_v47 }
 0x68a   :  { %v9182_v12 = vadd.f32 %v3157_v4, %v2613_v3 }
 0x68b   :  { %v9180_v59 = vadd.f32 %v3158_v11, %v2614_v60  ;;  %v12201_v60 = vld [vmem:[#allocation145_spill] sm:$0xff] }
 0x68c   :  { %12192 = vst [vmem:[#allocation203_spill] sm:$0xff] %v9182_v12  ;;  %2891 = vperm.xlu1 %6433, %v2880_v42   ;;  %v12227_v12 = vld [vmem:[#allocation91_spill] sm:$0xff] }
 0x68d   :  { %12191 = vst [vmem:[#allocation201_spill] sm:$0xff] %v9180_v59 }
 0x68e   :  { %2866 = vperm.xlu2 %6430, %v8478_v34  }
 0x694   :  { %6435 = vset.pattern.permute.xlu1 %v6914_v10 }
 0x696   :  { %6432 = vset.pattern.permute.xlu2 %v6908_v8 }
 0x698   :  { %v2792_v34 = vpop.permute.xlu2 %2791 }
 0x699   :  { %v3161_v62 = vmul.f32 %v2792_v34, %v9126_v13 }
 0x69b   :  { %v9189_v17 = vadd.f32 %v3161_v62, %v12193_v9  ;;  %v12202_v62 = vld [vmem:[#allocation206_spill] sm:$0xff] }
 0x69c   :  { %2903 = vperm.xlu1 %6435, %v2880_v42   ;;  %v9230_v9 = vperm.slane %v12202_v62, 3 }
 0x69d   :  { %12194 = vst [vmem:[#allocation44_spill] sm:$0xff] %v9189_v17 }
 0x69e   :  { %2885 = vperm.xlu2 %6432, %v2880_v42   ;;  %12203 = vst [vmem:[#allocation145_spill] sm:$0xff] %v9230_v9 }
 0x6a4   :  { %6437 = vset.pattern.permute.xlu1 %v6986_v26 }
 0x6a6   :  { %6434 = vset.pattern.permute.xlu2 %v6986_v26 }
 0x6a8   :  { %v2804_v3 = vpop.permute.xlu2 %2803 }
 0x6a9   :  { %v3163_v11 = vmul.f32 %v2804_v3, %v9126_v13 }
 0x6ab   :  { %v9195_v21 = vadd.f32 %v3163_v11, %v8720_v54 }
 0x6ac   :  { %2922 = vperm.xlu1 %6437, %v8838_v39  }
 0x6ad   :  { %12195 = vst [vmem:[#allocation296_spill] sm:$0xff] %v9195_v21  ;;  %v12205_v21 = vld [vmem:[#allocation58_spill] sm:$0xff] }
 0x6ae   :  { %2897 = vperm.xlu2 %6434, %v2880_v42   ;;  %v9211_v42 = vpop.permute.xlu1 %2778 }
 0x6af   :  { %12197 = vst [vmem:[#allocation92_spill] sm:$0xff] %v9211_v42  ;;  %v12206_v42 = vld [vmem:[#allocation242_spill] sm:$0xff] }
 0x6b4   :  { %6439 = vset.pattern.permute.xlu1 %v6908_v8 }
 0x6b6   :  { %6436 = vset.pattern.permute.xlu2 %v6957_v20  ;;  %v9217_v48 = vpop.permute.xlu1 %2797 }
 0x6b7   :  { %12199 = vst [vmem:[#allocation298_spill] sm:$0xff] %v9217_v48 }
 0x6b8   :  { %v9207_v54 = vpop.permute.xlu2 %2822 }
 0x6bc   :  { %2935 = vperm.xlu1 %6439, %v12196_v33  }
 0x6be   :  { %2916 = vperm.xlu2 %6436, %v8838_v39   ;;  %v9223_v4 = vpop.permute.xlu1 %2810 }
 0x6c4   :  { %6441 = vset.pattern.permute.xlu1 %v6914_v10 }
 0x6c6   :  { %6438 = vset.pattern.permute.xlu2 %v6914_v10  ;;  %v9232_v3 = vpop.permute.xlu1 %2828 }
 0x6c8   :  { %v9213_v52 = vpop.permute.xlu2 %2835 }
 0x6c9   :  { %12198 = vst [vmem:[#allocation297_spill] sm:$0xff] %v9213_v52 }
 0x6cc   :  { %2953 = vperm.xlu1 %6441, %v12196_v33  }
 0x6ce   :  { %2928 = vperm.xlu2 %6438, %v8838_v39   ;;  %v9238_v17 = vpop.permute.xlu1 %2841 }
 0x6d4   :  { %6443 = vset.pattern.permute.xlu1 %v6957_v20 }
 0x6d6   :  { %6440 = vset.pattern.permute.xlu2 %v6986_v26 }
 0x6d8   :  { %v9219_v39 = vpop.permute.xlu2 %2853 }
 0x6d9   :  { %12200 = vst [vmem:[#allocation299_spill] sm:$0xff] %v9219_v39  ;;  %v12204_v39 = vld [vmem:[#allocation236_spill] sm:$0xff] }
 0x6dc   :  { %2966 = vperm.xlu1 %6443, %v12201_v60  }
 0x6de   :  { %2947 = vperm.xlu2 %6440, %v12196_v33   ;;  %v9242_v48 = vpop.permute.xlu1 %2860 }
 0x6e4   :  { %6445 = vset.pattern.permute.xlu1 %v6908_v8 }
 0x6e6   :  { %6442 = vset.pattern.permute.xlu2 %v6908_v8 }
 0x6e8   :  { %v9225_v34 = vpop.permute.xlu2 %2866 }
 0x6ec   :  { %2985 = vperm.xlu1 %6445, %v12205_v21  }
 0x6ee   :  { %2960 = vperm.xlu2 %6442, %v12201_v60  }
 0x6f4   :  { %6447 = vset.pattern.permute.xlu1 %v6986_v26 }
 0x6f6   :  { %6444 = vset.pattern.permute.xlu2 %v6914_v10 }
 0x6f8   :  { %v2886_v11 = vpop.permute.xlu2 %2885 }
 0x6f9   :  { %v3176_v33 = vmul.f32 %v2886_v11, %v9230_v9  ;;  %v3005_v11 = vperm.slane %v8725_v57, 3  ;;  %v9269_v57 = vpop.permute.xlu0 %3368 }
 0x6fa   :  { %12212 = vst [vmem:[#allocation300_spill] sm:$0xff] %v9269_v57 }
 0x6fb   :  { %v3240_v52 = vadd.f32 %v3176_v33, %v12204_v39  ;;  %v9250_v39 = vpop.permute.xlu1 %2872 }
 0x6fc   :  { %2997 = vperm.xlu1 %6447, %v12205_v21   ;;  %12208 = vst [vmem:[#allocation58_spill] sm:$0xff] %v9250_v39 }
 0x6fe   :  { %2978 = vperm.xlu2 %6444, %v12201_v60  }
 0x703   :  { %v9254_v60 = vpop.permute.xlu1 %2891 }
 0x704   :  { %6449 = vset.pattern.permute.xlu1 %v6957_v20  ;;  %12209 = vst [vmem:[#allocation242_spill] sm:$0xff] %v9254_v60 }
 0x706   :  { %6446 = vset.pattern.permute.xlu2 %v6957_v20 }
 0x708   :  { %v2898_v13 = vpop.permute.xlu2 %2897 }
 0x709   :  { %v3178_v59 = vmul.f32 %v2898_v13, %v9230_v9 }
 0x70b   :  { %v9246_v47 = vadd.f32 %v3178_v59, %v12206_v42  ;;  %v12210_v42 = vld [vmem:[#allocation247_spill] sm:$0xff] }
 0x70c   :  { %3016 = vperm.xlu1 %6449, %v3005_v11  }
 0x70d   :  { %12207 = vst [vmem:[#allocation236_spill] sm:$0xff] %v9246_v47 }
 0x70e   :  { %2991 = vperm.xlu2 %6446, %v12205_v21   ;;  %v2904_v13 = vpop.permute.xlu1 %2903  ;;  %v12213_v21 = vld [vmem:[#allocation94_spill] sm:$0xff] }
 0x70f   :  { %v3179_v59 = vmul.f32 %v2904_v13, %v9230_v9  ;;  %v3494_v13 = vpop.permute.xlu0 %3493 }
 0x711   :  { %v9259_v33 = vadd.f32 %v3179_v59, %v12210_v42 }
 0x713   :  { %12211 = vst [vmem:[#allocation247_spill] sm:$0xff] %v9259_v33 }
 0x714   :  { %6451 = vset.pattern.permute.xlu1 %v6914_v10 }
 0x716   :  { %6448 = vset.pattern.permute.xlu2 %v6908_v8 }
 0x717   :  { %v3619_v41 = vpop.permute.xlu0 %3618 }
 0x71c   :  { %3028 = vperm.xlu1 %6451, %v3005_v11  }
 0x71e   :  { %3010 = vperm.xlu2 %6448, %v3005_v11  }
 0x724   :  { %6453 = vset.pattern.permute.xlu1 %v6986_v26 }
 0x726   :  { %6450 = vset.pattern.permute.xlu2 %v6986_v26 }
 0x72c   :  { %3047 = vperm.xlu1 %6453, %v8852_v14  }
 0x72e   :  { %3022 = vperm.xlu2 %6450, %v3005_v11   ;;  %v9274_v11 = vperm.slane %v12202_v62, 4 }
 0x730   :  { %12214 = vst [vmem:[#allocation94_spill] sm:$0xff] %v9274_v11  ;;  %v3784_v59 = vmul.f32 %v3494_v13, %v9274_v11  ;;  %v12217_v13 = vld [vmem:[#allocation213_spill] sm:$0xff] }
 0x732   :  { %v9279_v42 = vadd.f32 %v3784_v59, %v3240_v52  ;;  %v9293_v52 = vpop.permute.xlu2 %2916 }
 0x734   :  { %6455 = vset.pattern.permute.xlu1 %v6908_v8  ;;  %12215 = vst [vmem:[#allocation301_spill] sm:$0xff] %v9279_v42 }
 0x736   :  { %6452 = vset.pattern.permute.xlu2 %v6957_v20 }
 0x73c   :  { %3060 = vperm.xlu1 %6455, %v12213_v21  }
 0x73e   :  { %3041 = vperm.xlu2 %6452, %v8852_v14  }
 0x744   :  { %6457 = vset.pattern.permute.xlu1 %v6914_v10 }
 0x746   :  { %6454 = vset.pattern.permute.xlu2 %v6914_v10 }
 0x74c   :  { %3078 = vperm.xlu1 %6457, %v12213_v21  }
 0x74e   :  { %3053 = vperm.xlu2 %6454, %v8852_v14   ;;  %v12216_v14 = vld [vmem:[#allocation147_spill] sm:$0xff] }
 0x74f   :  { %12218 = vst [vmem:[#allocation147_spill] sm:$0xff] %v9293_v52  ;;  %v645_v52 = vperm.slane %v8200_v18, 5 }
 0x751   :  { %6759 = vrcp.f32 %v645_v52  ;;  %v870_v9 = vand.u32 2147483648, %v645_v52  ;;  %vm864_vm12 = vweird.f32 %v645_v52  ;;  %v868_v39 = vand.u32 2147483647, %v645_v52 }
 0x753   :  { %vm869_vm14 = vcmp.eq.f32.partialorder %v868_v39, 8.507059e+37 }
 0x754   :  { %6459 = vset.pattern.permute.xlu1 %v6957_v20 }
 0x756   :  { %6456 = vset.pattern.permute.xlu2 %v6986_v26 }
 0x757   :  { %v6760_v47 = vpop.eup %6759 }
 0x758   :  { %vm865_vm11 = vweird.f32 %v6760_v47 }
 0x759   :  { %vm866_vm13 = vmor %vm864_vm12, %vm865_vm11 }
 0x75c   :  { %3299 = vperm.xlu1 %6459, %v12216_v14  }
 0x75e   :  { %3072 = vperm.xlu2 %6456, %v12213_v21   ;;  %v9297_v21 = vpop.permute.xlu2 %2928 }
 0x75f   :  { %12219 = vst [vmem:[#allocation213_spill] sm:$0xff] %v9297_v21 }
 0x764   :  { %6461 = vset.pattern.permute.xlu1 %v6908_v8 }
 0x766   :  { %6458 = vset.pattern.permute.xlu2 %v6908_v8  ;;  %v9301_v59 = vpop.permute.xlu2 %2947 }
 0x767   :  { %12220 = vst [vmem:[#allocation302_spill] sm:$0xff] %v9301_v59  ;;  %v860_v59 = vmul.f32 %v6760_v47, %v645_v52 }
 0x769   :  { %v861_v62 = vsub.f32 1.0, %v860_v59  ;;  %v871_v59 = vor.u32 1.1754944e-38, %v870_v9 }
 0x76b   :  { %v862_v18 = vmul.f32 %v6760_v47, %v861_v62 }
 0x76c   :  { %3318 = vperm.xlu1 %6461, %v12217_v13  }
 0x76e   :  { %3293 = vperm.xlu2 %6458, %v12216_v14   ;;  %v9304_v33 = vpop.permute.xlu2 %2960 }
 0x774   :  { %6463 = vset.pattern.permute.xlu1 %v6986_v26 }
 0x776   :  { %6460 = vset.pattern.permute.xlu2 %v6914_v10  ;;  %v9311_v21 = vpop.permute.xlu2 %2978 }
 0x77c   :  { %3330 = vperm.xlu1 %6463, %v12217_v13  }
 0x77e   :  { %3311 = vperm.xlu2 %6460, %v12216_v14   ;;  %v3338_v14 = vperm.slane %v8905_v31, 4  ;;  %v9315_v42 = vpop.permute.xlu2 %2991 }
 0x77f   :  { %12223 = vst [vmem:[#allocation305_spill] sm:$0xff] %v9315_v42 }
 0x784   :  { %6465 = vset.pattern.permute.xlu1 %v6957_v20 }
 0x786   :  { %6462 = vset.pattern.permute.xlu2 %v6957_v20  ;;  %v3011_v60 = vpop.permute.xlu2 %3010 }
 0x78c   :  { %3349 = vperm.xlu1 %6465, %v3338_v14  }
 0x78e   :  { %3324 = vperm.xlu2 %6462, %v12217_v13   ;;  %v9309_v13 = vpop.permute.xlu1 %2922  ;;  %v9325_v57 = vpop.permute.xlu2 %3022 }
 0x78f   :  { %12221 = vst [vmem:[#allocation303_spill] sm:$0xff] %v9309_v13  ;;  %v863_v13 = vadd.f32 %v6760_v47, %v862_v18 }
 0x790   :  { %12226 = vst [vmem:[#allocation308_spill] sm:$0xff] %v9325_v57 }
 0x794   :  { %6467 = vset.pattern.permute.xlu1 %v6914_v10 }
 0x796   :  { %6464 = vset.pattern.permute.xlu2 %v6908_v8  ;;  %v9313_v31 = vpop.permute.xlu1 %2935 }
 0x797   :  { %12222 = vst [vmem:[#allocation304_spill] sm:$0xff] %v9313_v31  ;;  %v12285_v31 = vld [vmem:[#allocation217_spill] sm:$0xff] }
 0x798   :  { %v9334_v52 = vpop.permute.xlu2 %3041 }
 0x799   :  { %12230 = vst [vmem:[#allocation310_spill] sm:$0xff] %v9334_v52 }
 0x79c   :  { %3361 = vperm.xlu1 %6467, %v3338_v14  }
 0x79e   :  { %3343 = vperm.xlu2 %6464, %v3338_v14   ;;  %v9319_v11 = vpop.permute.xlu1 %2953 }
 0x79f   :  { %12224 = vst [vmem:[#allocation306_spill] sm:$0xff] %v9319_v11 }
 0x7a4   :  { %6469 = vset.pattern.permute.xlu1 %v6986_v26 }
 0x7a6   :  { %6466 = vset.pattern.permute.xlu2 %v6986_v26  ;;  %v9323_v42 = vpop.permute.xlu1 %2966 }
 0x7a7   :  { %12225 = vst [vmem:[#allocation307_spill] sm:$0xff] %v9323_v42 }
 0x7a8   :  { %v9358_v42 = vpop.permute.xlu2 %3053 }
 0x7ac   :  { %3380 = vperm.xlu1 %6469, %v8865_v43  }
 0x7ae   :  { %3355 = vperm.xlu2 %6466, %v3338_v14   ;;  %v867_v14 = vsel %vm866_vm13, %v6760_v47, %v863_v13  ;;  %v9332_v18 = vpop.permute.xlu1 %2985 }
 0x7af   :  { %v872_v62 = vsel %vm869_vm14, %v871_v59, %v867_v14  ;;  %12229 = vst [vmem:[#allocation309_spill] sm:$0xff] %v9332_v18  ;;  %v12235_v14 = vld [vmem:[#allocation166_spill] sm:$0xff] }
 0x7b0   :  { %v9328_v15 = vmul.f32 %v12227_v12, %v872_v62  ;;  %v12234_v12 = vld [vmem:[#allocation68_spill] sm:$0xff]  ;;  %v12236_v62 = vld [vmem:[#allocation95_spill] sm:$0xff] }
 0x7b1   :  { %12239 = vst [vmem:[#allocation95_spill] sm:$0xff] %v9358_v42 }
 0x7b2   :  { %12228 = vst [vmem:[#allocation91_spill] sm:$0xff] %v9328_v15  ;;  %v9337_v47 = vperm.slane %v9328_v15, 0  ;;  %v9340_v9 = vperm.slane %v9328_v15, 1  ;;  %v9343_v39 = vperm.slane %v9328_v15, 2  ;;  %v9354_v57 = vperm.slane %v9328_v15, 3 }
 0x7b4   :  { %6471 = vset.pattern.permute.xlu1 %v6908_v8  ;;  %12231 = vst [vmem:[#allocation311_spill] sm:$0xff] %v9337_v47  ;;  %v1436_v13 = vmul.f32 %v12234_v12, %v9337_v47  ;;  %v1980_v59 = vmul.f32 %v12235_v14, %v9340_v9  ;;  %v2588_v52 = vmul.f32 %v8840_v51, %v9343_v39  ;;  %v9362_v14 = vperm.slane %v9328_v15, 4  ;;  %v12252_v15 = vld [vmem:[#allocation215_spill] sm:$0xff] }
 0x7b5   :  { %12232 = vst [vmem:[#allocation312_spill] sm:$0xff] %v9340_v9  ;;  %v3196_v12 = vmul.f32 %v3011_v60, %v9354_v57 }
 0x7b6   :  { %6468 = vset.pattern.permute.xlu2 %v6957_v20  ;;  %12233 = vst [vmem:[#allocation313_spill] sm:$0xff] %v9343_v39  ;;  %v9356_v18 = vpop.permute.xlu1 %2997  ;;  %v2044_v11 = vadd.f32 %v1980_v59, %v1436_v13  ;;  %v3804_v51 = vmul.f32 %v3619_v41, %v9362_v14  ;;  %v12248_v59 = vld [vmem:[#allocation202_spill] sm:$0xff] }
 0x7b7   :  { %12237 = vst [vmem:[#allocation68_spill] sm:$0xff] %v9354_v57  ;;  %v3952_v57 = vpop.permute.xlu0 %3951  ;;  %v9450_v39 = vperm.slane %v12248_v59, 5 }
 0x7b8   :  { %12238 = vst [vmem:[#allocation166_spill] sm:$0xff] %v9356_v18  ;;  %v2652_v47 = vadd.f32 %v2588_v52, %v2044_v11  ;;  %v9369_v18 = vpop.permute.xlu2 %3072 }
 0x7b9   :  { %12240 = vst [vmem:[#allocation314_spill] sm:$0xff] %v9362_v14 }
 0x7ba   :  { %v3260_v9 = vadd.f32 %v3196_v12, %v2652_v47  ;;  %12242 = vst [vmem:[#allocation316_spill] sm:$0xff] %v9369_v18  ;;  %v12246_v47 = vld [vmem:[#allocation149_spill] sm:$0xff] }
 0x7bc   :  { %3393 = vperm.xlu1 %6471, %v12236_v62   ;;  %v9371_v42 = vadd.f32 %v3804_v51, %v3260_v9  ;;  %v9399_v51 = vperm.slane %v12248_v59, 4 }
 0x7be   :  { %3374 = vperm.xlu2 %6468, %v8865_v43   ;;  %12243 = vst [vmem:[#allocation317_spill] sm:$0xff] %v9371_v42 }
 0x7bf   :  { %12250 = vst [vmem:[#allocation321_spill] sm:$0xff] %v9399_v51 }
 0x7c4   :  { %6473 = vset.pattern.permute.xlu1 %v6914_v10 }
 0x7c6   :  { %6470 = vset.pattern.permute.xlu2 %v6914_v10 }
 0x7c8   :  { %v9377_v11 = vpop.permute.xlu2 %3293 }
 0x7cc   :  { %3411 = vperm.xlu1 %6473, %v12236_v62  }
 0x7ce   :  { %3386 = vperm.xlu2 %6470, %v8865_v43   ;;  %v9367_v43 = vpop.permute.xlu1 %3016 }
 0x7cf   :  { %12241 = vst [vmem:[#allocation315_spill] sm:$0xff] %v9367_v43 }
 0x7d4   :  { %6475 = vset.pattern.permute.xlu1 %v6957_v20 }
 0x7d6   :  { %6472 = vset.pattern.permute.xlu2 %v6986_v26  ;;  %v9375_v60 = vpop.permute.xlu1 %3028 }
 0x7d7   :  { %12244 = vst [vmem:[#allocation318_spill] sm:$0xff] %v9375_v60 }
 0x7d8   :  { %v9383_v41 = vpop.permute.xlu2 %3311 }
 0x7dc   :  { %3424 = vperm.xlu1 %6475, %v12246_v47  }
 0x7de   :  { %3405 = vperm.xlu2 %6472, %v12236_v62   ;;  %v9381_v52 = vpop.permute.xlu1 %3047  ;;  %v9392_v62 = vperm.slane %v12248_v59, 3 }
 0x7df   :  { %12245 = vst [vmem:[#allocation319_spill] sm:$0xff] %v9381_v52 }
 0x7e0   :  { %12249 = vst [vmem:[#allocation320_spill] sm:$0xff] %v9392_v62  ;;  %v3152_v12 = vmul.f32 %v9148_v0, %v9392_v62  ;;  %v3154_v14 = vmul.f32 %v9162_v32, %v9392_v62 }
 0x7e4   :  { %6477 = vset.pattern.permute.xlu1 %v6908_v8 }
 0x7e6   :  { %6474 = vset.pattern.permute.xlu2 %v6908_v8  ;;  %v9387_v9 = vpop.permute.xlu1 %3060 }
 0x7e7   :  { %12247 = vst [vmem:[#allocation149_spill] sm:$0xff] %v9387_v9  ;;  %v3216_v9 = vadd.f32 %v3152_v12, %v9011_v28  ;;  %v12254_v28 = vld [vmem:[#allocation21_spill] sm:$0xff] }
 0x7e8   :  { %v9389_v13 = vpop.permute.xlu2 %3324  ;;  %v3218_v12 = vadd.f32 %v3154_v14, %v12254_v28  ;;  %v12258_v14 = vld [vmem:[#allocation249_spill] sm:$0xff] }
 0x7e9   :  { %v3155_v28 = vmul.f32 %v12258_v14, %v9392_v62  ;;  %v12262_v14 = vld [vmem:[#allocation175_spill] sm:$0xff] }
 0x7ea   :  { %12266 = vst [vmem:[#allocation175_spill] sm:$0xff] %v9450_v39 }
 0x7ec   :  { %3443 = vperm.xlu1 %6477, %v12252_v15  }
 0x7ee   :  { %3418 = vperm.xlu2 %6474, %v12246_v47   ;;  %v9401_v18 = vpop.permute.xlu1 %3078 }
 0x7ef   :  { %12251 = vst [vmem:[#allocation322_spill] sm:$0xff] %v9401_v18 }
 0x7f4   :  { %6479 = vset.pattern.permute.xlu1 %v6986_v26 }
 0x7f6   :  { %6476 = vset.pattern.permute.xlu2 %v6914_v10  ;;  %v9407_v0 = vpop.permute.xlu1 %3299 }
 0x7f7   :  { %12253 = vst [vmem:[#allocation215_spill] sm:$0xff] %v9407_v0 }
 0x7f8   :  { %v3344_v60 = vpop.permute.xlu2 %3343 }
 0x7f9   :  { %v3760_v52 = vmul.f32 %v3344_v60, %v9399_v51 }
 0x7fb   :  { %v3824_v42 = vadd.f32 %v3760_v52, %v3216_v9  ;;  %v3463_v9 = vperm.slane %v8926_v45, 4  ;;  %v12261_v45 = vld [vmem:[#allocation53_spill] sm:$0xff] }
 0x7fc   :  { %3455 = vperm.xlu1 %6479, %v12252_v15  }
 0x7fe   :  { %3436 = vperm.xlu2 %6476, %v12246_v47   ;;  %v9413_v18 = vpop.permute.xlu1 %3318 }
 0x804   :  { %6481 = vset.pattern.permute.xlu1 %v6957_v20 }
 0x806   :  { %6478 = vset.pattern.permute.xlu2 %v6957_v20  ;;  %v9421_v47 = vpop.permute.xlu1 %3330 }
 0x807   :  { %12256 = vst [vmem:[#allocation323_spill] sm:$0xff] %v9421_v47 }
 0x808   :  { %v3356_v43 = vpop.permute.xlu2 %3355 }
 0x809   :  { %v3762_v60 = vmul.f32 %v3356_v43, %v9399_v51 }
 0x80b   :  { %v9417_v52 = vadd.f32 %v3762_v60, %v3218_v12  ;;  %v12259_v12 = vld [vmem:[#allocation212_spill] sm:$0xff] }
 0x80c   :  { %3474 = vperm.xlu1 %6481, %v3463_v9   ;;  %v3219_v60 = vadd.f32 %v3155_v28, %v12259_v12  ;;  %v639_v28 = vperm.slane %v12262_v14, 7  ;;  %v12264_v12 = vld [vmem:[#allocation98_spill] sm:$0xff] }
 0x80d   :  { %12255 = vst [vmem:[#allocation21_spill] sm:$0xff] %v9417_v52 }
 0x80e   :  { %3449 = vperm.xlu2 %6478, %v12252_v15   ;;  %v9425_v32 = vpop.permute.xlu1 %3349  ;;  %6761 = vrcp.f32 %v639_v28  ;;  %v780_v62 = vand.u32 2147483648, %v639_v28  ;;  %vm774_vm9 = vweird.f32 %v639_v28 }
 0x80f   :  { %12257 = vst [vmem:[#allocation324_spill] sm:$0xff] %v9425_v32 }
 0x814   :  { %6483 = vset.pattern.permute.xlu1 %v6914_v10 }
 0x816   :  { %6480 = vset.pattern.permute.xlu2 %v6908_v8  ;;  %v3362_v43 = vpop.permute.xlu1 %3361 }
 0x817   :  { %v3763_v15 = vmul.f32 %v3362_v43, %v9399_v51 }
 0x818   :  { %v9443_v43 = vpop.permute.xlu2 %3374 }
 0x819   :  { %v9432_v52 = vadd.f32 %v3763_v15, %v3219_v60  ;;  %12263 = vst [vmem:[#allocation212_spill] sm:$0xff] %v9443_v43  ;;  %v4368_v43 = vmul.f32 %v3952_v57, %v9450_v39  ;;  %v781_v39 = vor.u32 1.1754944e-38, %v780_v62  ;;  %v12276_v62 = vld [vmem:[#allocation151_spill] sm:$0xff] }
 0x81b   :  { %12260 = vst [vmem:[#allocation249_spill] sm:$0xff] %v9432_v52  ;;  %v9457_v51 = vadd.f32 %v4368_v43, %v3824_v42 }
 0x81c   :  { %3486 = vperm.xlu1 %6483, %v3463_v9  }
 0x81d   :  { %12268 = vst [vmem:[#allocation325_spill] sm:$0xff] %v9457_v51 }
 0x81e   :  { %3468 = vperm.xlu2 %6480, %v3463_v9   ;;  %v9461_v59 = vpop.permute.xlu1 %3380 }
 0x81f   :  { %12269 = vst [vmem:[#allocation326_spill] sm:$0xff] %v9461_v59 }
 0x824   :  { %6485 = vset.pattern.permute.xlu1 %v6986_v26 }
 0x826   :  { %6482 = vset.pattern.permute.xlu2 %v6986_v26 }
 0x828   :  { %v9447_v60 = vpop.permute.xlu2 %3386 }
 0x829   :  { %12265 = vst [vmem:[#allocation53_spill] sm:$0xff] %v9447_v60 }
 0x82c   :  { %3505 = vperm.xlu1 %6485, %v12261_v45  }
 0x82e   :  { %3480 = vperm.xlu2 %6482, %v3463_v9   ;;  %v6762_v9 = vpop.eup %6761 }
 0x82f   :  { %v770_v15 = vmul.f32 %v6762_v9, %v639_v28  ;;  %vm775_vm15 = vweird.f32 %v6762_v9 }
 0x830   :  { %vm776_vm10 = vmor %vm774_vm9, %vm775_vm15 }
 0x831   :  { %v771_v52 = vsub.f32 1.0, %v770_v15  ;;  %v778_v15 = vand.u32 2147483647, %v639_v28 }
 0x833   :  { %vm779_vm11 = vcmp.eq.f32.partialorder %v778_v15, 8.507059e+37 }
 0x834   :  { %6487 = vset.pattern.permute.xlu1 %v6908_v8 }
 0x836   :  { %6484 = vset.pattern.permute.xlu2 %v6957_v20 }
 0x838   :  { %v9455_v32 = vpop.permute.xlu2 %3405 }
 0x839   :  { %12267 = vst [vmem:[#allocation98_spill] sm:$0xff] %v9455_v32 }
 0x83c   :  { %3518 = vperm.xlu1 %6487, %v12264_v12  }
 0x83e   :  { %3499 = vperm.xlu2 %6484, %v12261_v45  }
 0x844   :  { %6489 = vset.pattern.permute.xlu1 %v6914_v10 }
 0x846   :  { %6486 = vset.pattern.permute.xlu2 %v6914_v10 }
 0x848   :  { %v9463_v47 = vpop.permute.xlu2 %3418 }
 0x84c   :  { %3536 = vperm.xlu1 %6489, %v12264_v12  }
 0x84e   :  { %3511 = vperm.xlu2 %6486, %v12261_v45   ;;  %v772_v45 = vmul.f32 %v6762_v9, %v771_v52  ;;  %v9467_v52 = vpop.permute.xlu1 %3393 }
 0x84f   :  { %12270 = vst [vmem:[#allocation327_spill] sm:$0xff] %v9467_v52  ;;  %v12282_v52 = vld [vmem:[#allocation233_spill] sm:$0xff] }
 0x850   :  { %v773_v60 = vadd.f32 %v6762_v9, %v772_v45 }
 0x852   :  { %v777_v57 = vsel %vm776_vm10, %v6762_v9, %v773_v60 }
 0x853   :  { %v782_v42 = vsel %vm779_vm11, %v781_v39, %v777_v57  ;;  %v12277_v39 = vld [vmem:[#allocation276_spill] sm:$0xff] }
 0x854   :  { %6491 = vset.pattern.permute.xlu1 %v6957_v20  ;;  %v12279_v57 = vld [vmem:[#allocation112_spill] sm:$0xff] }
 0x856   :  { %6488 = vset.pattern.permute.xlu2 %v6986_v26  ;;  %v9484_v60 = vpop.permute.xlu1 %3411 }
 0x857   :  { %12278 = vst [vmem:[#allocation151_spill] sm:$0xff] %v9484_v60 }
 0x858   :  { %v9469_v43 = vpop.permute.xlu2 %3436 }
 0x859   :  { %12271 = vst [vmem:[#allocation328_spill] sm:$0xff] %v9469_v43 }
 0x85c   :  { %3549 = vperm.xlu1 %6491, %v12276_v62  }
 0x85e   :  { %3530 = vperm.xlu2 %6488, %v12264_v12   ;;  %v12272_v12 = vld [vmem:[#allocation85_spill] sm:$0xff]  ;;  %v9505_v22 = vpop.permute.xlu1 %3424 }
 0x85f   :  { %v9472_v45 = vmul.f32 %v12272_v12, %v782_v42  ;;  %12284 = vst [vmem:[#allocation331_spill] sm:$0xff] %v9505_v22 }
 0x861   :  { %12273 = vst [vmem:[#allocation85_spill] sm:$0xff] %v9472_v45  ;;  %v9475_v51 = vperm.slane %v9472_v45, 0  ;;  %v9478_v28 = vperm.slane %v9472_v45, 1  ;;  %v9491_v12 = vperm.slane %v9472_v45, 2  ;;  %v9494_v32 = vperm.slane %v9472_v45, 3 }
 0x863   :  { %12274 = vst [vmem:[#allocation329_spill] sm:$0xff] %v9475_v51  ;;  %v1412_v9 = vmul.f32 %v12277_v39, %v9475_v51  ;;  %v1956_v42 = vmul.f32 %v12279_v57, %v9478_v28  ;;  %v2564_v0 = vmul.f32 %v12282_v52, %v9491_v12  ;;  %v3172_v39 = vmul.f32 %v9242_v48, %v9494_v32 }
 0x864   :  { %12275 = vst [vmem:[#allocation330_spill] sm:$0xff] %v9478_v28  ;;  %6493 = vset.pattern.permute.xlu1 %v6908_v8  ;;  %v9503_v57 = vperm.slane %v9472_v45, 4 }
 0x865   :  { %12280 = vst [vmem:[#allocation276_spill] sm:$0xff] %v9491_v12  ;;  %v2020_v59 = vadd.f32 %v1956_v42, %v1412_v9 }
 0x866   :  { %6490 = vset.pattern.permute.xlu2 %v6908_v8  ;;  %12281 = vst [vmem:[#allocation112_spill] sm:$0xff] %v9494_v32  ;;  %v9510_v48 = vpop.permute.xlu1 %3443 }
 0x867   :  { %v2628_v60 = vadd.f32 %v2564_v0, %v2020_v59  ;;  %12283 = vst [vmem:[#allocation233_spill] sm:$0xff] %v9503_v57  ;;  %v12287_v0 = vld [vmem:[#allocation31_spill] sm:$0xff] }
 0x868   :  { %v9486_v15 = vpop.permute.xlu2 %3449  ;;  %12286 = vst [vmem:[#allocation217_spill] sm:$0xff] %v9510_v48  ;;  %v1413_v52 = vmul.f32 %v12287_v0, %v9475_v51 }
 0x869   :  { %v3236_v29 = vadd.f32 %v3172_v39, %v2628_v60  ;;  %v12288_v60 = vld [vmem:[#allocation64_spill] sm:$0xff] }
 0x86a   :  { %v1957_v39 = vmul.f32 %v12288_v60, %v9478_v28 }
 0x86c   :  { %3568 = vperm.xlu1 %6493, %v12285_v31  }
 0x86e   :  { %3543 = vperm.xlu2 %6490, %v12276_v62   ;;  %v9514_v59 = vpop.permute.xlu1 %3455 }
 0x874   :  { %6495 = vset.pattern.permute.xlu1 %v6986_v26 }
 0x876   :  { %6492 = vset.pattern.permute.xlu2 %v6914_v10 }
 0x878   :  { %v3469_v24 = vpop.permute.xlu2 %3468 }
 0x879   :  { %v3780_v9 = vmul.f32 %v3469_v24, %v9503_v57  ;;  %v12289_v24 = vld [vmem:[#allocation231_spill] sm:$0xff] }
 0x87b   :  { %v3844_v42 = vadd.f32 %v3780_v9, %v3236_v29  ;;  %v2565_v29 = vmul.f32 %v12289_v24, %v9491_v12  ;;  %v2021_v9 = vadd.f32 %v1957_v39, %v1413_v52  ;;  %v12291_v52 = vld [vmem:[#allocation32_spill] sm:$0xff]  ;;  %v12293_v24 = vld [vmem:[#allocation9_spill] sm:$0xff] }
 0x87c   :  { %3580 = vperm.xlu1 %6495, %v12285_v31   ;;  %v1415_v60 = vmul.f32 %v12291_v52, %v9475_v51  ;;  %v3588_v43 = vperm.slane %v12293_v24, 4 }
 0x87d   :  { %v2629_v48 = vadd.f32 %v2565_v29, %v2021_v9 }
 0x87e   :  { %3561 = vperm.xlu2 %6492, %v12276_v62   ;;  %v3173_v62 = vmul.f32 %v9225_v34, %v9494_v32  ;;  %v3475_v22 = vpop.permute.xlu1 %3474  ;;  %v12292_v34 = vld [vmem:[#allocation115_spill] sm:$0xff] }
 0x87f   :  { %v3781_v53 = vmul.f32 %v3475_v22, %v9503_v57  ;;  %v1959_v39 = vmul.f32 %v12292_v34, %v9478_v28  ;;  %v12295_v22 = vld [vmem:[#allocation251_spill] sm:$0xff]  ;;  %v4077_v34 = vpop.permute.xlu0 %4076 }
 0x880   :  { %v3237_v56 = vadd.f32 %v3173_v62, %v2629_v48  ;;  %v12335_v28 = vld [vmem:[#allocation195_spill] sm:$0xff] }
 0x881   :  { %v2023_v48 = vadd.f32 %v1959_v39, %v1415_v60  ;;  %v12297_v60 = vld [vmem:[#allocation275_spill] sm:$0xff]  ;;  %v9554_v39 = vperm.slane %v9472_v45, 5 }
 0x882   :  { %v9527_v0 = vadd.f32 %v3781_v53, %v3237_v56  ;;  %v3175_v53 = vmul.f32 %v12295_v22, %v9494_v32 }
 0x883   :  { %12299 = vst [vmem:[#allocation231_spill] sm:$0xff] %v9554_v39 }
 0x884   :  { %12290 = vst [vmem:[#allocation31_spill] sm:$0xff] %v9527_v0  ;;  %6497 = vset.pattern.permute.xlu1 %v6957_v20 }
 0x886   :  { %6494 = vset.pattern.permute.xlu2 %v6957_v20 }
 0x88c   :  { %3599 = vperm.xlu1 %6497, %v3588_v43  }
 0x88e   :  { %3574 = vperm.xlu2 %6494, %v12285_v31   ;;  %v12294_v31 = vld [vmem:[#allocation237_spill] sm:$0xff]  ;;  %v3487_v9 = vpop.permute.xlu1 %3486 }
 0x88f   :  { %v2567_v29 = vmul.f32 %v12294_v31, %v9491_v12  ;;  %v3783_v0 = vmul.f32 %v3487_v9, %v9503_v57  ;;  %v12301_v31 = vld [vmem:[#allocation155_spill] sm:$0xff] }
 0x891   :  { %v2631_v56 = vadd.f32 %v2567_v29, %v2023_v48  ;;  %v12302_v29 = vld [vmem:[#allocation83_spill] sm:$0xff] }
 0x893   :  { %v3239_v62 = vadd.f32 %v3175_v53, %v2631_v56  ;;  %v6801_v56 = vld [vmem:[%s11507_s1 + $0x8] sm:$0xff] }
 0x894   :  { %6499 = vset.pattern.permute.xlu1 %v6914_v10  ;;  %v3921_v9 = vperm.slane %v6801_v56, 5 }
 0x895   :  { %v9541_v52 = vadd.f32 %v3783_v0, %v3239_v62  ;;  %v12298_v0 = vld [vmem:[#allocation102_spill] sm:$0xff] }
 0x896   :  { %6496 = vset.pattern.permute.xlu2 %v6908_v8 }
 0x897   :  { %12296 = vst [vmem:[#allocation64_spill] sm:$0xff] %v9541_v52 }
 0x89c   :  { %3611 = vperm.xlu1 %6499, %v3588_v43  }
 0x89e   :  { %3593 = vperm.xlu2 %6496, %v3588_v43   ;;  %v9588_v62 = vpop.permute.xlu1 %3505 }
 0x89f   :  { %12307 = vst [vmem:[#allocation275_spill] sm:$0xff] %v9588_v62 }
 0x8a4   :  { %6501 = vset.pattern.permute.xlu1 %v6986_v26 }
 0x8a6   :  { %6498 = vset.pattern.permute.xlu2 %v6986_v26 }
 0x8ac   :  { %3630 = vperm.xlu1 %6501, %v12297_v60  }
 0x8ae   :  { %3605 = vperm.xlu2 %6498, %v3588_v43   ;;  %v4388_v43 = vmul.f32 %v4077_v34, %v9554_v39 }
 0x8b0   :  { %v9559_v24 = vadd.f32 %v4388_v43, %v3844_v42  ;;  %v9571_v42 = vpop.permute.xlu2 %3480 }
 0x8b1   :  { %12303 = vst [vmem:[#allocation115_spill] sm:$0xff] %v9571_v42 }
 0x8b2   :  { %12300 = vst [vmem:[#allocation32_spill] sm:$0xff] %v9559_v24 }
 0x8b4   :  { %6503 = vset.pattern.permute.xlu1 %v6908_v8 }
 0x8b6   :  { %6500 = vset.pattern.permute.xlu2 %v6957_v20 }
 0x8b8   :  { %v9575_v48 = vpop.permute.xlu2 %3499 }
 0x8b9   :  { %12304 = vst [vmem:[#allocation9_spill] sm:$0xff] %v9575_v48 }
 0x8bc   :  { %3643 = vperm.xlu1 %6503, %v12298_v0  }
 0x8be   :  { %3624 = vperm.xlu2 %6500, %v12297_v60  }
 0x8c0   :  { %v9579_v22 = vpop.permute.xlu2 %3511 }
 0x8c1   :  { %12305 = vst [vmem:[#allocation237_spill] sm:$0xff] %v9579_v22  ;;  %v12312_v22 = vld [vmem:[#allocation277_spill] sm:$0xff] }
 0x8c4   :  { %6505 = vset.pattern.permute.xlu1 %v6914_v10 }
 0x8c6   :  { %6502 = vset.pattern.permute.xlu2 %v6914_v10 }
 0x8c8   :  { %v9583_v53 = vpop.permute.xlu2 %3530 }
 0x8c9   :  { %12306 = vst [vmem:[#allocation251_spill] sm:$0xff] %v9583_v53 }
 0x8cc   :  { %3661 = vperm.xlu1 %6505, %v12298_v0  }
 0x8ce   :  { %3636 = vperm.xlu2 %6502, %v12297_v60  }
 0x8d0   :  { %v9590_v60 = vpop.permute.xlu2 %3543 }
 0x8d4   :  { %6507 = vset.pattern.permute.xlu1 %v6957_v20 }
 0x8d6   :  { %6504 = vset.pattern.permute.xlu2 %v6986_v26 }
 0x8d8   :  { %v9596_v34 = vpop.permute.xlu2 %3561 }
 0x8dc   :  { %3674 = vperm.xlu1 %6507, %v12301_v31  }
 0x8de   :  { %3655 = vperm.xlu2 %6504, %v12298_v0   ;;  %v9594_v0 = vpop.permute.xlu1 %3518 }
 0x8df   :  { %12308 = vst [vmem:[#allocation102_spill] sm:$0xff] %v9594_v0 }
 0x8e4   :  { %6509 = vset.pattern.permute.xlu1 %v6908_v8 }
 0x8e6   :  { %6506 = vset.pattern.permute.xlu2 %v6908_v8  ;;  %v9598_v43 = vpop.permute.xlu1 %3536 }
 0x8e7   :  { %12309 = vst [vmem:[#allocation155_spill] sm:$0xff] %v9598_v43  ;;  %v12315_v43 = vld [vmem:[#allocation105_spill] sm:$0xff] }
 0x8ec   :  { %3901 = vperm.xlu1 %6509, %v12302_v29  }
 0x8ee   :  { %3668 = vperm.xlu2 %6506, %v12301_v31  }
 0x8f4   :  { %6511 = vset.pattern.permute.xlu1 %v6986_v26 }
 0x8f6   :  { %6508 = vset.pattern.permute.xlu2 %v6914_v10 }
 0x8fc   :  { %3913 = vperm.xlu1 %6511, %v12302_v29  }
 0x8fe   :  { %3686 = vperm.xlu2 %6508, %v12301_v31   ;;  %v9600_v31 = vpop.permute.xlu2 %3574 }
 0x8ff   :  { %12310 = vst [vmem:[#allocation83_spill] sm:$0xff] %v9600_v31 }
 0x904   :  { %6513 = vset.pattern.permute.xlu1 %v6957_v20 }
 0x906   :  { %6510 = vset.pattern.permute.xlu2 %v6957_v20  ;;  %v9606_v56 = vpop.permute.xlu2 %3593 }
 0x907   :  { %12311 = vst [vmem:[#allocation332_spill] sm:$0xff] %v9606_v56 }
 0x90c   :  { %3932 = vperm.xlu1 %6513, %v3921_v9  }
 0x90e   :  { %3907 = vperm.xlu2 %6510, %v12302_v29   ;;  %v9604_v29 = vpop.permute.xlu1 %3549  ;;  %v9612_v62 = vpop.permute.xlu2 %3605 }
 0x90f   :  { %12313 = vst [vmem:[#allocation277_spill] sm:$0xff] %v9612_v62 }
 0x914   :  { %6515 = vset.pattern.permute.xlu1 %v6914_v10 }
 0x916   :  { %6512 = vset.pattern.permute.xlu2 %v6908_v8  ;;  %v9610_v53 = vpop.permute.xlu1 %3568 }
 0x918   :  { %v9618_v31 = vpop.permute.xlu2 %3624 }
 0x919   :  { %12314 = vst [vmem:[#allocation333_spill] sm:$0xff] %v9618_v31 }
 0x91c   :  { %3944 = vperm.xlu1 %6515, %v3921_v9  }
 0x91e   :  { %3926 = vperm.xlu2 %6512, %v3921_v9  }
 0x924   :  { %6517 = vset.pattern.permute.xlu1 %v6986_v26 }
 0x926   :  { %6514 = vset.pattern.permute.xlu2 %v6986_v26 }
 0x928   :  { %v9624_v0 = vpop.permute.xlu2 %3636 }
 0x929   :  { %12317 = vst [vmem:[#allocation334_spill] sm:$0xff] %v9624_v0 }
 0x92c   :  { %3963 = vperm.xlu1 %6517, %v12312_v22  }
 0x92e   :  { %3938 = vperm.xlu2 %6514, %v3921_v9   ;;  %v9616_v9 = vpop.permute.xlu1 %3580 }
 0x934   :  { %6519 = vset.pattern.permute.xlu1 %v6908_v8 }
 0x936   :  { %6516 = vset.pattern.permute.xlu2 %v6957_v20  ;;  %v9622_v56 = vpop.permute.xlu1 %3599 }
 0x937   :  { %12316 = vst [vmem:[#allocation105_spill] sm:$0xff] %v9622_v56  ;;  %v12324_v56 = vld [vmem:[#allocation158_spill] sm:$0xff] }
 0x938   :  { %v9630_v48 = vpop.permute.xlu2 %3655 }
 0x939   :  { %12319 = vst [vmem:[#allocation336_spill] sm:$0xff] %v9630_v48 }
 0x93c   :  { %3976 = vperm.xlu1 %6519, %v12315_v43  }
 0x93e   :  { %3957 = vperm.xlu2 %6516, %v12312_v22   ;;  %v9628_v62 = vpop.permute.xlu1 %3611 }
 0x93f   :  { %12318 = vst [vmem:[#allocation335_spill] sm:$0xff] %v9628_v62 }
 0x944   :  { %6521 = vset.pattern.permute.xlu1 %v6914_v10 }
 0x946   :  { %6518 = vset.pattern.permute.xlu2 %v6914_v10  ;;  %v9634_v31 = vpop.permute.xlu1 %3630 }
 0x947   :  { %12320 = vst [vmem:[#allocation337_spill] sm:$0xff] %v9634_v31 }
 0x948   :  { %v9636_v52 = vpop.permute.xlu2 %3668 }
 0x949   :  { %12321 = vst [vmem:[#allocation338_spill] sm:$0xff] %v9636_v52 }
 0x94c   :  { %3994 = vperm.xlu1 %6521, %v12315_v43  }
 0x94e   :  { %3969 = vperm.xlu2 %6518, %v12312_v22   ;;  %v9640_v22 = vpop.permute.xlu1 %3643 }
 0x94f   :  { %12322 = vst [vmem:[#allocation339_spill] sm:$0xff] %v9640_v22 }
 0x954   :  { %6523 = vset.pattern.permute.xlu1 %v6957_v20 }
 0x956   :  { %6520 = vset.pattern.permute.xlu2 %v6986_v26  ;;  %v9646_v48 = vpop.permute.xlu1 %3661 }
 0x957   :  { %12325 = vst [vmem:[#allocation158_spill] sm:$0xff] %v9646_v48 }
 0x958   :  { %v9642_v0 = vpop.permute.xlu2 %3686 }
 0x959   :  { %12323 = vst [vmem:[#allocation340_spill] sm:$0xff] %v9642_v0 }
 0x95c   :  { %4007 = vperm.xlu1 %6523, %v12324_v56  }
 0x95e   :  { %3988 = vperm.xlu2 %6520, %v12315_v43   ;;  %v12327_v43 = vld [vmem:[#allocation187_spill] sm:$0xff]  ;;  %v9666_v42 = vpop.permute.xlu1 %3674 }
 0x95f   :  { %v9651_v31 = vperm.slane %v12327_v43, 3  ;;  %v9654_v52 = vperm.slane %v12327_v43, 4  ;;  %v9664_v22 = vperm.slane %v12327_v43, 5  ;;  %12331 = vst [vmem:[#allocation345_spill] sm:$0xff] %v9666_v42 }
 0x961   :  { %12328 = vst [vmem:[#allocation342_spill] sm:$0xff] %v9651_v31  ;;  %v3148_v39 = vmul.f32 %v9115_v50, %v9651_v31  ;;  %v3756_v0 = vmul.f32 %v9413_v18, %v9654_v52  ;;  %v12332_v50 = vld [vmem:[#allocation223_spill] sm:$0xff] }
 0x962   :  { %12329 = vst [vmem:[#allocation343_spill] sm:$0xff] %v9654_v52 }
 0x963   :  { %v3212_v48 = vadd.f32 %v3148_v39, %v8957_v2  ;;  %12330 = vst [vmem:[#allocation344_spill] sm:$0xff] %v9664_v22  ;;  %v3149_v39 = vmul.f32 %v9136_v36, %v9651_v31  ;;  %v3151_v36 = vmul.f32 %v9129_v63, %v9651_v31  ;;  %v12338_v63 = vld [vmem:[#allocation279_spill] sm:$0xff] }
 0x964   :  { %6525 = vset.pattern.permute.xlu1 %v6908_v8 }
 0x965   :  { %v3820_v32 = vadd.f32 %v3756_v0, %v3212_v48  ;;  %v3757_v48 = vmul.f32 %v9389_v13, %v9654_v52  ;;  %v6802_v13 = vld [vmem:[%s11507_s1 + $0x30] sm:$0xff] }
 0x966   :  { %6522 = vset.pattern.permute.xlu2 %v6908_v8  ;;  %v9671_v18 = vpop.permute.xlu1 %3901 }
 0x968   :  { %v9648_v62 = vpop.permute.xlu2 %3907 }
 0x969   :  { %12326 = vst [vmem:[#allocation341_spill] sm:$0xff] %v9648_v62 }
 0x96c   :  { %4026 = vperm.xlu1 %6525, %v12332_v50  }
 0x96e   :  { %4001 = vperm.xlu2 %6522, %v12324_v56   ;;  %v9675_v2 = vpop.permute.xlu1 %3913 }
 0x974   :  { %6527 = vset.pattern.permute.xlu1 %v6986_v26 }
 0x976   :  { %6524 = vset.pattern.permute.xlu2 %v6914_v10 }
 0x978   :  { %v3927_v57 = vpop.permute.xlu2 %3926 }
 0x979   :  { %v4364_v12 = vmul.f32 %v3927_v57, %v9664_v22 }
 0x97b   :  { %v4428_v24 = vadd.f32 %v4364_v12, %v3820_v32  ;;  %v12333_v32 = vld [vmem:[#allocation17_spill] sm:$0xff] }
 0x97c   :  { %4038 = vperm.xlu1 %6527, %v12332_v50   ;;  %v3213_v12 = vadd.f32 %v3149_v39, %v12333_v32  ;;  %v3215_v39 = vadd.f32 %v3151_v36, %v12335_v28  ;;  %v9710_v36 = vpop.permute.xlu0 %4201 }
 0x97e   :  { %4019 = vperm.xlu2 %6524, %v12324_v56   ;;  %v3933_v57 = vpop.permute.xlu1 %3932  ;;  %v3821_v0 = vadd.f32 %v3757_v48, %v3213_v12  ;;  %v12336_v48 = vld [vmem:[#allocation6_spill] sm:$0xff] }
 0x97f   :  { %v4365_v56 = vmul.f32 %v3933_v57, %v9664_v22  ;;  %v3759_v32 = vmul.f32 %v12336_v48, %v9654_v52  ;;  %12340 = vst [vmem:[#allocation6_spill] sm:$0xff] %v9710_v36 }
 0x981   :  { %v9685_v42 = vadd.f32 %v4365_v56, %v3821_v0  ;;  %v3823_v57 = vadd.f32 %v3759_v32, %v3215_v39  ;;  %v638_v39 = vperm.slane %v12262_v14, 6 }
 0x983   :  { %12334 = vst [vmem:[#allocation223_spill] sm:$0xff] %v9685_v42  ;;  %6763 = vrcp.f32 %v638_v39  ;;  %vm759_vm13 = vweird.f32 %v638_v39 }
 0x984   :  { %6529 = vset.pattern.permute.xlu1 %v6957_v20  ;;  %v4535_v48 = vpop.permute.xlu0 %4534 }
 0x986   :  { %6526 = vset.pattern.permute.xlu2 %v6957_v20 }
 0x988   :  { %v9708_v28 = vpop.permute.xlu2 %3938 }
 0x989   :  { %12339 = vst [vmem:[#allocation195_spill] sm:$0xff] %v9708_v28 }
 0x98e   :  { %4032 = vperm.xlu2 %6526, %v12332_v50   ;;  %v4046_v50 = vperm.slane %v6802_v13, 5  ;;  %v3945_v12 = vpop.permute.xlu1 %3944  ;;  %v12341_v13 = vld [vmem:[#allocation108_spill] sm:$0xff] }
 0x98f   :  { %v4367_v0 = vmul.f32 %v3945_v12, %v9664_v22  ;;  %v9722_v12 = vperm.slane %v12327_v43, 6 }
 0x990   :  { %4057 = vperm.xlu1 %6529, %v4046_v50  }
 0x991   :  { %v9698_v56 = vadd.f32 %v4367_v0, %v3823_v57  ;;  %12344 = vst [vmem:[#allocation346_spill] sm:$0xff] %v9722_v12  ;;  %v4972_v57 = vmul.f32 %v4535_v48, %v9722_v12  ;;  %v6764_v0 = vpop.eup %6763 }
 0x992   :  { %v755_v14 = vmul.f32 %v6764_v0, %v638_v39  ;;  %vm760_vm12 = vweird.f32 %v6764_v0 }
 0x993   :  { %12337 = vst [vmem:[#allocation17_spill] sm:$0xff] %v9698_v56  ;;  %v9725_v56 = vadd.f32 %v4972_v57, %v4428_v24  ;;  %v765_v57 = vand.u32 2147483648, %v638_v39  ;;  %vm761_vm14 = vmor %vm759_vm13, %vm760_vm12 }
 0x994   :  { %v756_v36 = vsub.f32 1.0, %v755_v14 }
 0x995   :  { %12345 = vst [vmem:[#allocation347_spill] sm:$0xff] %v9725_v56  ;;  %v12350_v56 = vld [vmem:[#allocation161_spill] sm:$0xff] }
 0x996   :  { %6528 = vset.pattern.permute.xlu2 %v6908_v8  ;;  %v757_v51 = vmul.f32 %v6764_v0, %v756_v36 }
 0x998   :  { %6531 = vset.pattern.permute.xlu1 %v6914_v10  ;;  %v758_v24 = vadd.f32 %v6764_v0, %v757_v51 }
 0x99a   :  { %v762_v14 = vsel %vm761_vm14, %v6764_v0, %v758_v24 }
 0x99e   :  { %4051 = vperm.xlu2 %6528, %v4046_v50  }
 0x9a0   :  { %4069 = vperm.xlu1 %6531, %v4046_v50  }
 0x9a6   :  { %6530 = vset.pattern.permute.xlu2 %v6986_v26 }
 0x9a8   :  { %6533 = vset.pattern.permute.xlu1 %v6986_v26 }
 0x9ae   :  { %4063 = vperm.xlu2 %6530, %v4046_v50   ;;  %v9714_v50 = vpop.permute.xlu2 %3957 }
 0x9af   :  { %12342 = vst [vmem:[#allocation279_spill] sm:$0xff] %v9714_v50 }
 0x9b0   :  { %4088 = vperm.xlu1 %6533, %v12338_v63  }
 0x9b6   :  { %6532 = vset.pattern.permute.xlu2 %v6957_v20  ;;  %v9719_v32 = vpop.permute.xlu2 %3969 }
 0x9b7   :  { %12343 = vst [vmem:[#allocation108_spill] sm:$0xff] %v9719_v32 }
 0x9b8   :  { %6535 = vset.pattern.permute.xlu1 %v6908_v8 }
 0x9be   :  { %4082 = vperm.xlu2 %6532, %v12338_v63   ;;  %v9731_v42 = vpop.permute.xlu2 %3988 }
 0x9bf   :  { %12347 = vst [vmem:[#allocation349_spill] sm:$0xff] %v9731_v42 }
 0x9c0   :  { %4101 = vperm.xlu1 %6535, %v12341_v13  }
 0x9c6   :  { %6534 = vset.pattern.permute.xlu2 %v6914_v10 }
 0x9c8   :  { %6537 = vset.pattern.permute.xlu1 %v6914_v10  ;;  %v9737_v48 = vpop.permute.xlu2 %4001 }
 0x9c9   :  { %12349 = vst [vmem:[#allocation351_spill] sm:$0xff] %v9737_v48 }
 0x9ce   :  { %4094 = vperm.xlu2 %6534, %v12338_v63   ;;  %v9729_v63 = vpop.permute.xlu1 %3963 }
 0x9cf   :  { %12346 = vst [vmem:[#allocation348_spill] sm:$0xff] %v9729_v63  ;;  %v766_v63 = vor.u32 1.1754944e-38, %v765_v57 }
 0x9d0   :  { %4119 = vperm.xlu1 %6537, %v12341_v13  }
 0x9d6   :  { %6536 = vset.pattern.permute.xlu2 %v6986_v26  ;;  %v9735_v45 = vpop.permute.xlu1 %3976 }
 0x9d7   :  { %12348 = vst [vmem:[#allocation350_spill] sm:$0xff] %v9735_v45  ;;  %v12353_v45 = vld [vmem:[#allocation72_spill] sm:$0xff] }
 0x9d8   :  { %6539 = vset.pattern.permute.xlu1 %v6957_v20  ;;  %v9743_v50 = vpop.permute.xlu2 %4019 }
 0x9d9   :  { %12352 = vst [vmem:[#allocation352_spill] sm:$0xff] %v9743_v50  ;;  %v12362_v50 = vld [vmem:[#allocation229_spill] sm:$0xff] }
 0x9de   :  { %4113 = vperm.xlu2 %6536, %v12341_v13   ;;  %v763_v13 = vand.u32 2147483647, %v638_v39  ;;  %v9741_v42 = vpop.permute.xlu1 %3994 }
 0x9df   :  { %12351 = vst [vmem:[#allocation161_spill] sm:$0xff] %v9741_v42 }
 0x9e0   :  { %4132 = vperm.xlu1 %6539, %v12350_v56   ;;  %vm764_vm15 = vcmp.eq.f32.partialorder %v763_v13, 8.507059e+37  ;;  %v12360_v13 = vld [vmem:[#allocation109_spill] sm:$0xff] }
 0x9e1   :  { %v767_v36 = vsel %vm764_vm15, %v766_v63, %v762_v14 }
 0x9e2   :  { %v9746_v48 = vmul.f32 %v12353_v45, %v767_v36  ;;  %v12359_v45 = vld [vmem:[#allocation29_spill] sm:$0xff]  ;;  %v12361_v36 = vld [vmem:[#allocation227_spill] sm:$0xff] }
 0x9e4   :  { %12354 = vst [vmem:[#allocation72_spill] sm:$0xff] %v9746_v48  ;;  %v9755_v0 = vperm.slane %v9746_v48, 0  ;;  %v9758_v24 = vperm.slane %v9746_v48, 1  ;;  %v9761_v57 = vperm.slane %v9746_v48, 2  ;;  %v9776_v43 = vperm.slane %v9746_v48, 3 }
 0x9e6   :  { %6538 = vset.pattern.permute.xlu2 %v6908_v8  ;;  %v9750_v51 = vpop.permute.xlu1 %4007  ;;  %12357 = vst [vmem:[#allocation355_spill] sm:$0xff] %v9755_v0  ;;  %v1410_v63 = vmul.f32 %v12359_v45, %v9755_v0  ;;  %v1954_v14 = vmul.f32 %v12360_v13, %v9758_v24  ;;  %v9779_v45 = vperm.slane %v9746_v48, 4  ;;  %v12364_v13 = vld [vmem:[#allocation185_spill] sm:$0xff] }
 0x9e7   :  { %12355 = vst [vmem:[#allocation353_spill] sm:$0xff] %v9750_v51  ;;  %v3170_v28 = vmul.f32 %v12364_v13, %v9776_v43 }
 0x9e8   :  { %6541 = vset.pattern.permute.xlu1 %v6908_v8  ;;  %v9752_v39 = vpop.permute.xlu2 %4032  ;;  %12358 = vst [vmem:[#allocation356_spill] sm:$0xff] %v9758_v24  ;;  %v2018_v32 = vadd.f32 %v1954_v14, %v1410_v63 }
 0x9e9   :  { %12356 = vst [vmem:[#allocation354_spill] sm:$0xff] %v9752_v39  ;;  %v2562_v39 = vmul.f32 %v12362_v50, %v9761_v57  ;;  %v12366_v50 = vld [vmem:[#allocation107_spill] sm:$0xff] }
 0x9ea   :  { %v1953_v52 = vmul.f32 %v12366_v50, %v9758_v24  ;;  %v12367_v50 = vld [vmem:[#allocation124_spill] sm:$0xff] }
 0x9eb   :  { %v2626_v12 = vadd.f32 %v2562_v39, %v2018_v32  ;;  %v9792_v39 = vperm.slane %v9746_v48, 5 }
 0x9ed   :  { %v3234_v32 = vadd.f32 %v3170_v28, %v2626_v12  ;;  %v3777_v28 = vmul.f32 %v9486_v15, %v9779_v45 }
 0x9ee   :  { %4126 = vperm.xlu2 %6538, %v12350_v56   ;;  %v9771_v51 = vpop.permute.xlu1 %4026 }
 0x9f0   :  { %4151 = vperm.xlu1 %6541, %v12361_v36  }
 0x9f6   :  { %6540 = vset.pattern.permute.xlu2 %v6914_v10  ;;  %v9794_v63 = vpop.permute.xlu1 %4038 }
 0x9f8   :  { %v9773_v42 = vpop.permute.xlu2 %4051  ;;  %6543 = vset.pattern.permute.xlu1 %v6986_v26 }
 0x9f9   :  { %12363 = vst [vmem:[#allocation29_spill] sm:$0xff] %v9773_v42  ;;  %v3778_v42 = vmul.f32 %v9514_v59, %v9779_v45  ;;  %v3169_v59 = vmul.f32 %v9238_v17, %v9776_v43  ;;  %v6803_v17 = vld [vmem:[%s11507_s1 + $0x58] sm:$0xff] }
 0x9fa   :  { %v4171_v15 = vperm.slane %v6803_v17, 5 }
 0x9fb   :  { %v3842_v31 = vadd.f32 %v3778_v42, %v3234_v32 }
 0x9fe   :  { %4144 = vperm.xlu2 %6540, %v12350_v56   ;;  %v12365_v56 = vld [vmem:[#allocation25_spill] sm:$0xff] }
 0x9ff   :  { %v1409_v22 = vmul.f32 %v12365_v56, %v9755_v0  ;;  %v2561_v0 = vmul.f32 %v12367_v50, %v9761_v57  ;;  %v12377_v50 = vld [vmem:[#allocation164_spill] sm:$0xff] }
 0xa00   :  { %4163 = vperm.xlu1 %6543, %v12361_v36  }
 0xa01   :  { %v2017_v13 = vadd.f32 %v1953_v52, %v1409_v22 }
 0xa02   :  { %v4058_v42 = vpop.permute.xlu1 %4057 }
 0xa03   :  { %v2625_v62 = vadd.f32 %v2561_v0, %v2017_v13  ;;  %v4385_v12 = vmul.f32 %v4058_v42, %v9792_v39  ;;  %v9855_v42 = vperm.slane %v8969_v55, 2 }
 0xa05   :  { %v3233_v52 = vadd.f32 %v3169_v59, %v2625_v62  ;;  %12380 = vst [vmem:[#allocation358_spill] sm:$0xff] %v9855_v42 }
 0xa06   :  { %6542 = vset.pattern.permute.xlu2 %v6957_v20 }
 0xa07   :  { %v3841_v22 = vadd.f32 %v3777_v28, %v3233_v52  ;;  %v9852_v52 = vperm.slane %v8969_v55, 3 }
 0xa08   :  { %v4064_v14 = vpop.permute.xlu2 %4063  ;;  %6545 = vset.pattern.permute.xlu1 %v6957_v20 }
 0xa09   :  { %v4386_v56 = vmul.f32 %v4064_v14, %v9792_v39  ;;  %v9808_v32 = vadd.f32 %v4385_v12, %v3841_v22  ;;  %12379 = vst [vmem:[#allocation357_spill] sm:$0xff] %v9852_v52  ;;  %v9858_v22 = vperm.slane %v8969_v55, 4  ;;  %v12382_v12 = vld [vmem:[#allocation260_spill] sm:$0xff] }
 0xa0a   :  { %v2580_v17 = vmul.f32 %v12382_v12, %v9855_v42 }
 0xa0b   :  { %v9801_v24 = vadd.f32 %v4386_v56, %v3842_v31  ;;  %12368 = vst [vmem:[#allocation109_spill] sm:$0xff] %v9808_v32  ;;  %v12370_v31 = vld [vmem:[#allocation111_spill] sm:$0xff]  ;;  %v3796_v32 = vmul.f32 %v9610_v53, %v9858_v22 }
 0xa0c   :  { %12381 = vst [vmem:[#allocation359_spill] sm:$0xff] %v9858_v22  ;;  %v12386_v53 = vld [vmem:[#allocation159_spill] sm:$0xff] }
 0xa0e   :  { %4157 = vperm.xlu2 %6542, %v12361_v36  }
 0xa10   :  { %4182 = vperm.xlu1 %6545, %v4171_v15  }
 0xa12   :  { %v9835_v14 = vpop.permute.xlu1 %4069 }
 0xa13   :  { %12373 = vst [vmem:[#allocation25_spill] sm:$0xff] %v9835_v14 }
 0xa16   :  { %6544 = vset.pattern.permute.xlu2 %v6908_v8 }
 0xa18   :  { %6547 = vset.pattern.permute.xlu1 %v6914_v10  ;;  %v9823_v62 = vpop.permute.xlu2 %4082 }
 0xa19   :  { %12369 = vst [vmem:[#allocation227_spill] sm:$0xff] %v9823_v62 }
 0xa1e   :  { %4176 = vperm.xlu2 %6544, %v4171_v15  }
 0xa20   :  { %4194 = vperm.xlu1 %6547, %v4171_v15  }
 0xa26   :  { %6546 = vset.pattern.permute.xlu2 %v6986_v26 }
 0xa28   :  { %6549 = vset.pattern.permute.xlu1 %v6986_v26  ;;  %v9827_v0 = vpop.permute.xlu2 %4094 }
 0xa29   :  { %12371 = vst [vmem:[#allocation229_spill] sm:$0xff] %v9827_v0  ;;  %v1974_v0 = vmul.f32 %v12386_v53, %v9004_v38 }
 0xa2e   :  { %4188 = vperm.xlu2 %6546, %v4171_v15   ;;  %v3188_v15 = vmul.f32 %v9304_v33, %v9852_v52 }
 0xa30   :  { %4213 = vperm.xlu1 %6549, %v8949_v6  }
 0xa36   :  { %6548 = vset.pattern.permute.xlu2 %v6957_v20 }
 0xa38   :  { %6551 = vset.pattern.permute.xlu1 %v6908_v8  ;;  %v9831_v36 = vpop.permute.xlu2 %4113 }
 0xa39   :  { %12372 = vst [vmem:[#allocation185_spill] sm:$0xff] %v9831_v36  ;;  %v9870_v36 = vperm.slane %v8969_v55, 5 }
 0xa3b   :  { %12383 = vst [vmem:[#allocation260_spill] sm:$0xff] %v9870_v36 }
 0xa3e   :  { %4207 = vperm.xlu2 %6548, %v8949_v6  }
 0xa40   :  { %4226 = vperm.xlu1 %6551, %v12370_v31  }
 0xa46   :  { %6550 = vset.pattern.permute.xlu2 %v6914_v10 }
 0xa48   :  { %6553 = vset.pattern.permute.xlu1 %v6914_v10  ;;  %v9837_v13 = vpop.permute.xlu2 %4126 }
 0xa49   :  { %12374 = vst [vmem:[#allocation107_spill] sm:$0xff] %v9837_v13 }
 0xa4e   :  { %4219 = vperm.xlu2 %6550, %v8949_v6   ;;  %v9841_v6 = vpop.permute.xlu1 %4088 }
 0xa4f   :  { %12375 = vst [vmem:[#allocation124_spill] sm:$0xff] %v9841_v6  ;;  %v12387_v6 = vld [vmem:[#allocation230_spill] sm:$0xff] }
 0xa50   :  { %4244 = vperm.xlu1 %6553, %v12370_v31  }
 0xa56   :  { %6552 = vset.pattern.permute.xlu2 %v6986_v26  ;;  %v9847_v59 = vpop.permute.xlu1 %4101 }
 0xa57   :  { %12378 = vst [vmem:[#allocation164_spill] sm:$0xff] %v9847_v59 }
 0xa58   :  { %6555 = vset.pattern.permute.xlu1 %v6957_v20  ;;  %v9843_v56 = vpop.permute.xlu2 %4144 }
 0xa59   :  { %12376 = vst [vmem:[#allocation111_spill] sm:$0xff] %v9843_v56 }
 0xa5e   :  { %4238 = vperm.xlu2 %6552, %v12370_v31   ;;  %v2644_v31 = vadd.f32 %v2580_v17, %v9024_v58  ;;  %v9872_v13 = vpop.permute.xlu1 %4119  ;;  %v12385_v58 = vld [vmem:[#allocation47_spill] sm:$0xff] }
 0xa5f   :  { %12384 = vst [vmem:[#allocation360_spill] sm:$0xff] %v9872_v13  ;;  %v1430_v17 = vmul.f32 %v12385_v58, %v8987_v49 }
 0xa60   :  { %4257 = vperm.xlu1 %6555, %v12377_v50   ;;  %v3252_v56 = vadd.f32 %v3188_v15, %v2644_v31  ;;  %v12388_v15 = vld [vmem:[#allocation255_spill] sm:$0xff] }
 0xa61   :  { %v2582_v31 = vmul.f32 %v12388_v15, %v9855_v42 }
 0xa62   :  { %v3860_v12 = vadd.f32 %v3796_v32, %v3252_v56  ;;  %v2038_v32 = vadd.f32 %v1974_v0, %v1430_v17 }
 0xa64   :  { %v2646_v56 = vadd.f32 %v2582_v31, %v2038_v32  ;;  %v12394_v31 = vld [vmem:[#allocation160_spill] sm:$0xff] }
 0xa65   :  { %v1975_v32 = vmul.f32 %v12394_v31, %v9004_v38 }
 0xa66   :  { %6554 = vset.pattern.permute.xlu2 %v6908_v8  ;;  %v9885_v13 = vpop.permute.xlu1 %4132 }
 0xa67   :  { %12389 = vst [vmem:[#allocation47_spill] sm:$0xff] %v9885_v13 }
 0xa68   :  { %v9849_v28 = vpop.permute.xlu2 %4157  ;;  %6557 = vset.pattern.permute.xlu1 %v6908_v8 }
 0xa6e   :  { %4251 = vperm.xlu2 %6554, %v12377_v50   ;;  %v9893_v53 = vpop.permute.xlu1 %4151 }
 0xa70   :  { %4276 = vperm.xlu1 %6557, %v12387_v6  }
 0xa76   :  { %6556 = vset.pattern.permute.xlu2 %v6914_v10  ;;  %v9900_v0 = vpop.permute.xlu1 %4163 }
 0xa77   :  { %12392 = vst [vmem:[#allocation230_spill] sm:$0xff] %v9900_v0 }
 0xa78   :  { %v4177_v59 = vpop.permute.xlu2 %4176  ;;  %6559 = vset.pattern.permute.xlu1 %v6986_v26 }
 0xa79   :  { %v4404_v62 = vmul.f32 %v4177_v59, %v9870_v36 }
 0xa7b   :  { %v9875_v33 = vadd.f32 %v4404_v62, %v3860_v12  ;;  %v12390_v62 = vld [vmem:[#allocation193_spill] sm:$0xff]  ;;  %v3798_v12 = vmul.f32 %v9616_v9, %v9858_v22  ;;  %v12393_v9 = vld [vmem:[#allocation66_spill] sm:$0xff] }
 0xa7c   :  { %v3190_v59 = vmul.f32 %v12390_v62, %v9852_v52  ;;  %v1431_v17 = vmul.f32 %v12393_v9, %v8987_v49  ;;  %v12397_v9 = vld [vmem:[#allocation8_spill] sm:$0xff] }
 0xa7d   :  { %v3799_v31 = vmul.f32 %v12397_v9, %v9858_v22  ;;  %v12409_v9 = vld [vmem:[#allocation167_spill] sm:$0xff] }
 0xa7e   :  { %4269 = vperm.xlu2 %6556, %v12377_v50   ;;  %v3254_v58 = vadd.f32 %v3190_v59, %v2646_v56  ;;  %v12395_v56 = vld [vmem:[#allocation263_spill] sm:$0xff]  ;;  %v2039_v59 = vadd.f32 %v1975_v32, %v1431_v17  ;;  %v9934_v32 = vpop.permute.xlu0 %4659 }
 0xa7f   :  { %12401 = vst [vmem:[#allocation160_spill] sm:$0xff] %v9934_v32 }
 0xa80   :  { %v3862_v14 = vadd.f32 %v3798_v12, %v3254_v58  ;;  %4288 = vperm.xlu1 %6559, %v12387_v6   ;;  %v6804_v12 = vld [vmem:[%s11507_s1] sm:$0xff] }
 0xa81   :  { %v4504_v58 = vperm.slane %v6804_v12, 6 }
 0xa82   :  { %v9910_v62 = vpop.permute.xlu1 %4182 }
 0xa83   :  { %12396 = vst [vmem:[#allocation255_spill] sm:$0xff] %v9910_v62 }
 0xa86   :  { %6558 = vset.pattern.permute.xlu2 %v6957_v20 }
 0xa88   :  { %v4189_v50 = vpop.permute.xlu2 %4188  ;;  %6561 = vset.pattern.permute.xlu1 %v6957_v20 }
 0xa89   :  { %v4406_v15 = vmul.f32 %v4189_v50, %v9870_v36 }
 0xa8b   :  { %v9896_v13 = vadd.f32 %v4406_v15, %v3862_v14  ;;  %v2583_v14 = vmul.f32 %v12395_v56, %v9855_v42 }
 0xa8d   :  { %12391 = vst [vmem:[#allocation159_spill] sm:$0xff] %v9896_v13  ;;  %v2647_v50 = vadd.f32 %v2583_v14, %v2039_v59  ;;  %v4785_v59 = vpop.permute.xlu0 %4784 }
 0xa8e   :  { %4282 = vperm.xlu2 %6558, %v12387_v6   ;;  %v3191_v6 = vmul.f32 %v9311_v21, %v9852_v52  ;;  %v12460_v52 = vld [vmem:[#allocation284_spill] sm:$0xff] }
 0xa90   :  { %v3255_v15 = vadd.f32 %v3191_v6, %v2647_v50  ;;  %4515 = vperm.xlu1 %6561, %v4504_v58   ;;  %v9943_v6 = vperm.slane %v8969_v55, 6  ;;  %v12416_v55 = vld [vmem:[#allocation234_spill] sm:$0xff] }
 0xa92   :  { %v4195_v13 = vpop.permute.xlu1 %4194  ;;  %v3863_v56 = vadd.f32 %v3799_v31, %v3255_v15  ;;  %v5012_v12 = vmul.f32 %v4785_v59, %v9943_v6  ;;  %v9972_v59 = vperm.slane %v8996_v19, 5 }
 0xa93   :  { %v4407_v62 = vmul.f32 %v4195_v13, %v9870_v36  ;;  %v12400_v13 = vld [vmem:[#allocation114_spill] sm:$0xff] }
 0xa94   :  { %12404 = vst [vmem:[#allocation114_spill] sm:$0xff] %v9943_v6 }
 0xa95   :  { %v9920_v17 = vadd.f32 %v4407_v62, %v3863_v56 }
 0xa96   :  { %6560 = vset.pattern.permute.xlu2 %v6908_v8 }
 0xa97   :  { %12398 = vst [vmem:[#allocation193_spill] sm:$0xff] %v9920_v17 }
 0xa98   :  { %6563 = vset.pattern.permute.xlu1 %v6914_v10  ;;  %v9930_v21 = vpop.permute.xlu2 %4207 }
 0xa99   :  { %12399 = vst [vmem:[#allocation66_spill] sm:$0xff] %v9930_v21 }
 0xa9e   :  { %4509 = vperm.xlu2 %6560, %v4504_v58  }
 0xaa0   :  { %4527 = vperm.xlu1 %6563, %v4504_v58  }
 0xaa2   :  { %v9955_v50 = vpop.permute.xlu1 %4213 }
 0xaa3   :  { %12407 = vst [vmem:[#allocation363_spill] sm:$0xff] %v9955_v50 }
 0xaa6   :  { %6562 = vset.pattern.permute.xlu2 %v6986_v26 }
 0xaa8   :  { %6565 = vset.pattern.permute.xlu1 %v6986_v26  ;;  %v9936_v14 = vpop.permute.xlu2 %4219 }
 0xaa9   :  { %12402 = vst [vmem:[#allocation263_spill] sm:$0xff] %v9936_v14 }
 0xaae   :  { %4521 = vperm.xlu2 %6562, %v4504_v58  }
 0xab0   :  { %4546 = vperm.xlu1 %6565, %v8977_v27  }
 0xab2   :  { %v9961_v31 = vpop.permute.xlu1 %4226 }
 0xab3   :  { %12410 = vst [vmem:[#allocation167_spill] sm:$0xff] %v9961_v31 }
 0xab6   :  { %6564 = vset.pattern.permute.xlu2 %v6957_v20 }
 0xab8   :  { %6567 = vset.pattern.permute.xlu1 %v6908_v8  ;;  %v9940_v62 = vpop.permute.xlu2 %4238 }
 0xab9   :  { %12403 = vst [vmem:[#allocation8_spill] sm:$0xff] %v9940_v62 }
 0xabe   :  { %4540 = vperm.xlu2 %6564, %v8977_v27  }
 0xac0   :  { %4559 = vperm.xlu1 %6567, %v12400_v13  }
 0xac2   :  { %v9986_v31 = vpop.permute.xlu1 %4244 }
 0xac3   :  { %12412 = vst [vmem:[#allocation366_spill] sm:$0xff] %v9986_v31 }
 0xac6   :  { %6566 = vset.pattern.permute.xlu2 %v6914_v10 }
 0xac8   :  { %6569 = vset.pattern.permute.xlu1 %v6914_v10  ;;  %v9951_v58 = vpop.permute.xlu2 %4251 }
 0xac9   :  { %12406 = vst [vmem:[#allocation362_spill] sm:$0xff] %v9951_v58  ;;  %v9984_v58 = vperm.slane %v8996_v19, 6 }
 0xace   :  { %4552 = vperm.xlu2 %6566, %v8977_v27   ;;  %v9949_v27 = vadd.f32 %v5012_v12, %v9875_v33  ;;  %v9966_v33 = vperm.slane %v8996_v19, 4 }
 0xad0   :  { %4577 = vperm.xlu1 %6569, %v12400_v13   ;;  %12405 = vst [vmem:[#allocation361_spill] sm:$0xff] %v9949_v27  ;;  %v3752_v50 = vmul.f32 %v9377_v11, %v9966_v33  ;;  %v12414_v11 = vld [vmem:[#allocation150_spill] sm:$0xff] }
 0xad6   :  { %6568 = vset.pattern.permute.xlu2 %v6986_v26 }
 0xad8   :  { %6571 = vset.pattern.permute.xlu1 %v6957_v20  ;;  %v9957_v15 = vpop.permute.xlu2 %4269 }
 0xad9   :  { %12408 = vst [vmem:[#allocation364_spill] sm:$0xff] %v9957_v15 }
 0xade   :  { %4571 = vperm.xlu2 %6568, %v12400_v13   ;;  %v9969_v13 = vperm.slane %v8996_v19, 3 }
 0xae0   :  { %4590 = vperm.xlu1 %6571, %v12409_v9   ;;  %v3144_v12 = vmul.f32 %v9108_v23, %v9969_v13  ;;  %v12413_v23 = vld [vmem:[#allocation56_spill] sm:$0xff]  ;;  %v3146_v31 = vmul.f32 %v9100_v30, %v9969_v13 }
 0xae1   :  { %v1930_v14 = vmul.f32 %v12413_v23, %v9022_v5  ;;  %v10001_v23 = vpop.permute.xlu1 %4257 }
 0xae2   :  { %v3208_v15 = vadd.f32 %v3144_v12, %v9061_v25  ;;  %v1386_v25 = vmul.f32 %v12414_v11, %v9019_v1  ;;  %12418 = vst [vmem:[#allocation150_spill] sm:$0xff] %v10001_v23  ;;  %v10093_v23 = vperm.slane %v9030_v35, 6 }
 0xae4   :  { %v3816_v62 = vadd.f32 %v3752_v50, %v3208_v15  ;;  %v1994_v27 = vadd.f32 %v1930_v14, %v1386_v25  ;;  %v12417_v50 = vld [vmem:[#allocation180_spill] sm:$0xff]  ;;  %v4362_v14 = vmul.f32 %v9675_v2, %v9972_v59  ;;  %v12423_v2 = vld [vmem:[#allocation10_spill] sm:$0xff] }
 0xae5   :  { %v2538_v15 = vmul.f32 %v12417_v50, %v9043_v61 }
 0xae6   :  { %6570 = vset.pattern.permute.xlu2 %v6908_v8 }
 0xae7   :  { %v2602_v6 = vadd.f32 %v2538_v15, %v1994_v27  ;;  %v1387_v27 = vmul.f32 %v12423_v2, %v9019_v1  ;;  %v12425_v15 = vld [vmem:[#allocation192_spill] sm:$0xff] }
 0xae8   :  { %v9963_v56 = vpop.permute.xlu2 %4282  ;;  %6573 = vset.pattern.permute.xlu1 %v6908_v8 }
 0xae9   :  { %12411 = vst [vmem:[#allocation365_spill] sm:$0xff] %v9963_v56  ;;  %v4360_v56 = vmul.f32 %v9671_v18, %v9972_v59  ;;  %v3210_v11 = vadd.f32 %v3146_v31, %v2602_v6  ;;  %v12424_v31 = vld [vmem:[#allocation84_spill] sm:$0xff] }
 0xaea   :  { %v1931_v50 = vmul.f32 %v12424_v31, %v9022_v5 }
 0xaeb   :  { %v4424_v12 = vadd.f32 %v4360_v56, %v3816_v62  ;;  %v12419_v62 = vld [vmem:[#allocation200_spill] sm:$0xff]  ;;  %v10009_v56 = vpop.permute.xlu1 %4276 }
 0xaec   :  { %12420 = vst [vmem:[#allocation234_spill] sm:$0xff] %v10009_v56 }
 0xaee   :  { %4584 = vperm.xlu2 %6570, %v12409_v9  }
 0xaf0   :  { %4609 = vperm.xlu1 %6573, %v12416_v55  }
 0xaf3   :  { %v10016_v6 = vpop.permute.xlu1 %4288 }
 0xaf4   :  { %12422 = vst [vmem:[#allocation200_spill] sm:$0xff] %v10016_v6 }
 0xaf6   :  { %6572 = vset.pattern.permute.xlu2 %v6914_v10 }
 0xaf8   :  { %v4510_v21 = vpop.permute.xlu2 %4509  ;;  %6575 = vset.pattern.permute.xlu1 %v6986_v26 }
 0xaf9   :  { %v4968_v18 = vmul.f32 %v4510_v21, %v9984_v58  ;;  %v3754_v21 = vmul.f32 %v12419_v62, %v9966_v33  ;;  %v1995_v62 = vadd.f32 %v1931_v50, %v1387_v27  ;;  %v12426_v27 = vld [vmem:[#allocation36_spill] sm:$0xff] }
 0xafa   :  { %v4363_v31 = vmul.f32 %v12426_v27, %v9972_v59 }
 0xafb   :  { %v9993_v17 = vadd.f32 %v4968_v18, %v4424_v12 }
 0xafd   :  { %12415 = vst [vmem:[#allocation56_spill] sm:$0xff] %v9993_v17  ;;  %v12439_v17 = vld [vmem:[#allocation207_spill] sm:$0xff] }
 0xafe   :  { %4602 = vperm.xlu2 %6572, %v12409_v9   ;;  %v3818_v9 = vadd.f32 %v3754_v21, %v3210_v11  ;;  %v2539_v11 = vmul.f32 %v12425_v15, %v9043_v61  ;;  %v3147_v21 = vmul.f32 %v9122_v16, %v9969_v13 }
 0xb00   :  { %v4426_v12 = vadd.f32 %v4362_v14, %v3818_v9  ;;  %4621 = vperm.xlu1 %6575, %v12416_v55   ;;  %v2603_v14 = vadd.f32 %v2539_v11, %v1995_v62  ;;  %v3755_v9 = vmul.f32 %v9383_v41, %v9966_v33  ;;  %v12429_v62 = vld [vmem:[#allocation118_spill] sm:$0xff] }
 0xb06   :  { %6574 = vset.pattern.permute.xlu2 %v6957_v20 }
 0xb08   :  { %v4522_v25 = vpop.permute.xlu2 %4521  ;;  %6577 = vset.pattern.permute.xlu1 %v6957_v20 }
 0xb09   :  { %v4970_v30 = vmul.f32 %v4522_v25, %v9984_v58  ;;  %v6805_v25 = vld [vmem:[%s11507_s1 + $0x28] sm:$0xff] }
 0xb0b   :  { %v10012_v18 = vadd.f32 %v4970_v30, %v4426_v12  ;;  %v4629_v12 = vperm.slane %v6805_v25, 6  ;;  %v3211_v30 = vadd.f32 %v3147_v21, %v2603_v14 }
 0xb0d   :  { %12421 = vst [vmem:[#allocation180_spill] sm:$0xff] %v10012_v18  ;;  %v3819_v2 = vadd.f32 %v3755_v9, %v3211_v30  ;;  %v10071_v30 = vperm.slane %v9030_v35, 3 }
 0xb0e   :  { %4615 = vperm.xlu2 %6574, %v12416_v55   ;;  %v10028_v55 = vpop.permute.xlu1 %4515 }
 0xb0f   :  { %v4427_v16 = vadd.f32 %v4363_v31, %v3819_v2  ;;  %v10078_v31 = vperm.slane %v9030_v35, 4 }
 0xb10   :  { %4640 = vperm.xlu1 %6577, %v4629_v12  }
 0xb16   :  { %6576 = vset.pattern.permute.xlu2 %v6908_v8  ;;  %v4528_v50 = vpop.permute.xlu1 %4527 }
 0xb17   :  { %v4971_v15 = vmul.f32 %v4528_v50, %v9984_v58  ;;  %v3164_v50 = vmul.f32 %v9223_v4, %v10071_v30 }
 0xb18   :  { %6579 = vset.pattern.permute.xlu1 %v6914_v10  ;;  %v10048_v41 = vpop.permute.xlu2 %4540 }
 0xb19   :  { %v10038_v11 = vadd.f32 %v4971_v15, %v4427_v16  ;;  %12428 = vst [vmem:[#allocation84_spill] sm:$0xff] %v10048_v41  ;;  %v10083_v16 = vperm.slane %v9030_v35, 5  ;;  %v3772_v15 = vmul.f32 %v9463_v47, %v10078_v31  ;;  %v12434_v47 = vld [vmem:[#allocation22_spill] sm:$0xff] }
 0xb1b   :  { %12427 = vst [vmem:[#allocation10_spill] sm:$0xff] %v10038_v11  ;;  %v4380_v6 = vmul.f32 %v9771_v51, %v10083_v16  ;;  %v12437_v11 = vld [vmem:[#allocation220_spill] sm:$0xff] }
 0xb1e   :  { %4634 = vperm.xlu2 %6576, %v4629_v12  }
 0xb20   :  { %4652 = vperm.xlu1 %6579, %v4629_v12  }
 0xb22   :  { %v10064_v25 = vpop.permute.xlu1 %4546 }
 0xb26   :  { %6578 = vset.pattern.permute.xlu2 %v6986_v26 }
 0xb28   :  { %6581 = vset.pattern.permute.xlu1 %v6986_v26  ;;  %v10052_v21 = vpop.permute.xlu2 %4552 }
 0xb29   :  { %12430 = vst [vmem:[#allocation192_spill] sm:$0xff] %v10052_v21 }
 0xb2e   :  { %4646 = vperm.xlu2 %6578, %v4629_v12   ;;  %v12432_v12 = vld [vmem:[#allocation173_spill] sm:$0xff] }
 0xb30   :  { %4671 = vperm.xlu1 %6581, %v9015_v40  }
 0xb32   :  { %v10073_v2 = vpop.permute.xlu1 %4559 }
 0xb33   :  { %12433 = vst [vmem:[#allocation118_spill] sm:$0xff] %v10073_v2 }
 0xb36   :  { %6580 = vset.pattern.permute.xlu2 %v6957_v20 }
 0xb38   :  { %6583 = vset.pattern.permute.xlu1 %v6908_v8  ;;  %v10056_v14 = vpop.permute.xlu2 %4571 }
 0xb39   :  { %12431 = vst [vmem:[#allocation36_spill] sm:$0xff] %v10056_v14 }
 0xb3e   :  { %4665 = vperm.xlu2 %6580, %v9015_v40  }
 0xb40   :  { %4684 = vperm.xlu1 %6583, %v12429_v62  }
 0xb42   :  { %v10095_v4 = vpop.permute.xlu1 %4577 }
 0xb46   :  { %6582 = vset.pattern.permute.xlu2 %v6914_v10 }
 0xb48   :  { %6585 = vset.pattern.permute.xlu1 %v6914_v10  ;;  %v10060_v9 = vpop.permute.xlu2 %4584 }
 0xb4e   :  { %4677 = vperm.xlu2 %6582, %v9015_v40  }
 0xb50   :  { %4702 = vperm.xlu1 %6585, %v12429_v62  }
 0xb56   :  { %6584 = vset.pattern.permute.xlu2 %v6986_v26 }
 0xb58   :  { %6587 = vset.pattern.permute.xlu1 %v6957_v20  ;;  %v10066_v40 = vpop.permute.xlu2 %4602 }
 0xb5e   :  { %4696 = vperm.xlu2 %6584, %v12429_v62   ;;  %v3228_v62 = vadd.f32 %v3164_v50, %v9090_v7  ;;  %v1406_v7 = vmul.f32 %v12434_v47, %v9048_v37  ;;  %v12435_v50 = vld [vmem:[#allocation104_spill] sm:$0xff] }
 0xb5f   :  { %v1950_v51 = vmul.f32 %v12435_v50, %v9051_v46  ;;  %v3774_v50 = vmul.f32 %v12439_v17, %v10078_v31 }
 0xb60   :  { %4715 = vperm.xlu1 %6587, %v12432_v12   ;;  %v3836_v56 = vadd.f32 %v3772_v15, %v3228_v62  ;;  %v2558_v15 = vmul.f32 %v12437_v11, %v9072_v44  ;;  %v12438_v62 = vld [vmem:[#allocation238_spill] sm:$0xff] }
 0xb61   :  { %v2014_v41 = vadd.f32 %v1950_v51, %v1406_v7 }
 0xb62   :  { %v4444_v21 = vadd.f32 %v4380_v6, %v3836_v56  ;;  %v3166_v56 = vmul.f32 %v9207_v54, %v10071_v30  ;;  %v10110_v6 = vpop.permute.xlu1 %4590 }
 0xb66   :  { %6586 = vset.pattern.permute.xlu2 %v6908_v8 }
 0xb68   :  { %v10075_v27 = vpop.permute.xlu2 %4615  ;;  %6589 = vset.pattern.permute.xlu1 %v6908_v8 }
 0xb6e   :  { %4709 = vperm.xlu2 %6586, %v12432_v12  }
 0xb70   :  { %4734 = vperm.xlu1 %6589, %v12438_v62  }
 0xb76   :  { %6588 = vset.pattern.permute.xlu2 %v6914_v10 }
 0xb78   :  { %v4635_v14 = vpop.permute.xlu2 %4634  ;;  %6591 = vset.pattern.permute.xlu1 %v6986_v26 }
 0xb79   :  { %v4988_v2 = vmul.f32 %v4635_v14, %v10093_v23  ;;  %v2622_v14 = vadd.f32 %v2558_v15, %v2014_v41  ;;  %v12441_v15 = vld [vmem:[#allocation106_spill] sm:$0xff] }
 0xb7b   :  { %v10102_v18 = vadd.f32 %v4988_v2, %v4444_v21  ;;  %v3230_v47 = vadd.f32 %v3166_v56, %v2622_v14  ;;  %v4382_v21 = vmul.f32 %v9794_v63, %v10083_v16  ;;  %v12440_v63 = vld [vmem:[#allocation218_spill] sm:$0xff]  ;;  %v1951_v56 = vmul.f32 %v12441_v15, %v9051_v46 }
 0xb7c   :  { %v1407_v41 = vmul.f32 %v12440_v63, %v9048_v37 }
 0xb7d   :  { %12436 = vst [vmem:[#allocation173_spill] sm:$0xff] %v10102_v18  ;;  %v3838_v11 = vadd.f32 %v3774_v50, %v3230_v47  ;;  %v12442_v47 = vld [vmem:[#allocation226_spill] sm:$0xff] }
 0xb7e   :  { %4727 = vperm.xlu2 %6588, %v12432_v12   ;;  %v10118_v12 = vpop.permute.xlu1 %4609  ;;  %v2015_v14 = vadd.f32 %v1951_v56, %v1407_v41  ;;  %v2559_v50 = vmul.f32 %v12442_v47, %v9072_v44  ;;  %v12444_v56 = vld [vmem:[#allocation43_spill] sm:$0xff] }
 0xb7f   :  { %v4446_v7 = vadd.f32 %v4382_v21, %v3838_v11  ;;  %v3167_v21 = vmul.f32 %v9232_v3, %v10071_v30  ;;  %v4383_v47 = vmul.f32 %v12444_v56, %v10083_v16 }
 0xb80   :  { %4746 = vperm.xlu1 %6591, %v12438_v62   ;;  %v2623_v11 = vadd.f32 %v2559_v50, %v2015_v14  ;;  %v12445_v50 = vld [vmem:[#allocation89_spill] sm:$0xff] }
 0xb82   :  { %v3231_v41 = vadd.f32 %v3167_v21, %v2623_v11 }
 0xb86   :  { %6590 = vset.pattern.permute.xlu2 %v6957_v20  ;;  %v10125_v17 = vpop.permute.xlu1 %4621 }
 0xb88   :  { %v4647_v2 = vpop.permute.xlu2 %4646  ;;  %6593 = vset.pattern.permute.xlu1 %v6957_v20 }
 0xb89   :  { %v4990_v54 = vmul.f32 %v4647_v2, %v10093_v23  ;;  %v12443_v2 = vld [vmem:[#allocation328_spill] sm:$0xff] }
 0xb8b   :  { %v10121_v51 = vadd.f32 %v4990_v54, %v4446_v7  ;;  %v3775_v7 = vmul.f32 %v12443_v2, %v10078_v31  ;;  %v6806_v54 = vld [vmem:[%s11507_s1 + $0x50] sm:$0xff] }
 0xb8c   :  { %v4754_v63 = vperm.slane %v6806_v54, 6 }
 0xb8d   :  { %v3839_v15 = vadd.f32 %v3775_v7, %v3231_v41  ;;  %v12453_v41 = vld [vmem:[#allocation182_spill] sm:$0xff] }
 0xb8e   :  { %4740 = vperm.xlu2 %6590, %v12438_v62   ;;  %v10137_v62 = vpop.permute.xlu1 %4640 }
 0xb8f   :  { %v4447_v3 = vadd.f32 %v4383_v47, %v3839_v15  ;;  %v12454_v15 = vld [vmem:[#allocation82_spill] sm:$0xff] }
 0xb90   :  { %4765 = vperm.xlu1 %6593, %v4754_v63   ;;  %v10182_v56 = vperm.slane %v12454_v15, 3  ;;  %v10194_v22 = vperm.slane %v12454_v15, 5  ;;  %v10204_v49 = vperm.slane %v12454_v15, 6 }
 0xb92   :  { %12459 = vst [vmem:[#allocation43_spill] sm:$0xff] %v10194_v22  ;;  %v4400_v0 = vmul.f32 %v9893_v53, %v10194_v22 }
 0xb93   :  { %12461 = vst [vmem:[#allocation89_spill] sm:$0xff] %v10204_v49 }
 0xb96   :  { %6592 = vset.pattern.permute.xlu2 %v6908_v8  ;;  %v4653_v18 = vpop.permute.xlu1 %4652 }
 0xb97   :  { %v4991_v36 = vmul.f32 %v4653_v18, %v10093_v23  ;;  %v12447_v18 = vld [vmem:[#allocation122_spill] sm:$0xff] }
 0xb98   :  { %6595 = vset.pattern.permute.xlu1 %v6914_v10 }
 0xb99   :  { %v10147_v14 = vadd.f32 %v4991_v36, %v4447_v3  ;;  %v10157_v36 = vpop.permute.xlu2 %4665 }
 0xb9a   :  { %12446 = vst [vmem:[#allocation22_spill] sm:$0xff] %v10157_v36 }
 0xb9e   :  { %4759 = vperm.xlu2 %6592, %v4754_v63  }
 0xba0   :  { %4777 = vperm.xlu1 %6595, %v4754_v63  }
 0xba2   :  { %v10169_v2 = vpop.permute.xlu1 %4671 }
 0xba6   :  { %6594 = vset.pattern.permute.xlu2 %v6986_v26 }
 0xba8   :  { %6597 = vset.pattern.permute.xlu1 %v6986_v26  ;;  %v10161_v21 = vpop.permute.xlu2 %4677 }
 0xba9   :  { %12448 = vst [vmem:[#allocation104_spill] sm:$0xff] %v10161_v21 }
 0xbae   :  { %4771 = vperm.xlu2 %6594, %v4754_v63  }
 0xbb0   :  { %4796 = vperm.xlu1 %6597, %v12445_v50  }
 0xbb2   :  { %v10175_v54 = vpop.permute.xlu1 %4684 }
 0xbb3   :  { %12451 = vst [vmem:[#allocation207_spill] sm:$0xff] %v10175_v54  ;;  %v12469_v54 = vld [vmem:[#allocation60_spill] sm:$0xff] }
 0xbb6   :  { %6596 = vset.pattern.permute.xlu2 %v6957_v20 }
 0xbb8   :  { %6599 = vset.pattern.permute.xlu1 %v6908_v8  ;;  %v10165_v11 = vpop.permute.xlu2 %4696 }
 0xbb9   :  { %12449 = vst [vmem:[#allocation220_spill] sm:$0xff] %v10165_v11  ;;  %v12466_v11 = vld [vmem:[#allocation45_spill] sm:$0xff] }
 0xbbe   :  { %4790 = vperm.xlu2 %6596, %v12445_v50  }
 0xbc0   :  { %4809 = vperm.xlu1 %6599, %v12447_v18  }
 0xbc2   :  { %v10184_v47 = vpop.permute.xlu1 %4702 }
 0xbc3   :  { %12455 = vst [vmem:[#allocation106_spill] sm:$0xff] %v10184_v47 }
 0xbc6   :  { %6598 = vset.pattern.permute.xlu2 %v6914_v10 }
 0xbc8   :  { %6601 = vset.pattern.permute.xlu1 %v6914_v10  ;;  %v10171_v7 = vpop.permute.xlu2 %4709 }
 0xbc9   :  { %12450 = vst [vmem:[#allocation238_spill] sm:$0xff] %v10171_v7 }
 0xbce   :  { %4802 = vperm.xlu2 %6598, %v12445_v50   ;;  %v10189_v50 = vperm.slane %v12454_v15, 4  ;;  %v12468_v15 = vld [vmem:[#allocation152_spill] sm:$0xff] }
 0xbd0   :  { %4827 = vperm.xlu1 %6601, %v12447_v18   ;;  %12457 = vst [vmem:[#allocation328_spill] sm:$0xff] %v10189_v50 }
 0xbd6   :  { %6600 = vset.pattern.permute.xlu2 %v6986_v26 }
 0xbd8   :  { %6603 = vset.pattern.permute.xlu1 %v6957_v20  ;;  %v10177_v63 = vpop.permute.xlu2 %4727 }
 0xbd9   :  { %12452 = vst [vmem:[#allocation218_spill] sm:$0xff] %v10177_v63  ;;  %v3792_v63 = vmul.f32 %v9590_v60, %v10189_v50 }
 0xbde   :  { %4821 = vperm.xlu2 %6600, %v12447_v18   ;;  %v12458_v18 = vld [vmem:[#allocation304_spill] sm:$0xff] }
 0xbdf   :  { %v3184_v36 = vmul.f32 %v12458_v18, %v10182_v56  ;;  %v10206_v18 = vpop.permute.xlu1 %4715 }
 0xbe0   :  { %4840 = vperm.xlu1 %6603, %v12453_v41   ;;  %12462 = vst [vmem:[#allocation122_spill] sm:$0xff] %v10206_v18  ;;  %v12470_v18 = vld [vmem:[#allocation86_spill] sm:$0xff] }
 0xbe1   :  { %v3248_v42 = vadd.f32 %v3184_v36, %v12460_v52  ;;  %v12464_v52 = vld [vmem:[#allocation241_spill] sm:$0xff]  ;;  %v12465_v36 = vld [vmem:[#allocation55_spill] sm:$0xff]  ;;  %v2577_v32 = vmul.f32 %v12470_v18, %v12469_v54 }
 0xbe3   :  { %v3856_v38 = vadd.f32 %v3792_v63, %v3248_v42  ;;  %v1425_v42 = vmul.f32 %v12466_v11, %v12465_v36  ;;  %v12467_v63 = vld [vmem:[#allocation88_spill] sm:$0xff]  ;;  %v3793_v11 = vmul.f32 %v9604_v29, %v10189_v50 }
 0xbe4   :  { %v1969_v21 = vmul.f32 %v12468_v15, %v12467_v63  ;;  %v4401_v15 = vmul.f32 %v9849_v28, %v10194_v22  ;;  %v12473_v29 = vld [vmem:[#allocation156_spill] sm:$0xff] }
 0xbe5   :  { %v4464_v7 = vadd.f32 %v4400_v0, %v3856_v38 }
 0xbe6   :  { %6602 = vset.pattern.permute.xlu2 %v6908_v8  ;;  %v2033_v38 = vadd.f32 %v1969_v21, %v1425_v42 }
 0xbe7   :  { %v10213_v53 = vpop.permute.xlu1 %4734 }
 0xbe8   :  { %v10186_v3 = vpop.permute.xlu2 %4740  ;;  %6605 = vset.pattern.permute.xlu1 %v6908_v8 }
 0xbe9   :  { %12456 = vst [vmem:[#allocation226_spill] sm:$0xff] %v10186_v3 }
 0xbee   :  { %4834 = vperm.xlu2 %6602, %v12453_v41  }
 0xbf0   :  { %4859 = vperm.xlu1 %6605, %v12464_v52  }
 0xbf2   :  { %v10223_v0 = vpop.permute.xlu1 %4746 }
 0xbf6   :  { %6604 = vset.pattern.permute.xlu2 %v6914_v10 }
 0xbf8   :  { %v4760_v3 = vpop.permute.xlu2 %4759  ;;  %6607 = vset.pattern.permute.xlu1 %v6986_v26 }
 0xbf9   :  { %v5008_v47 = vmul.f32 %v4760_v3, %v10204_v49 }
 0xbfb   :  { %v10209_v60 = vadd.f32 %v5008_v47, %v4464_v7  ;;  %v2641_v7 = vadd.f32 %v2577_v32, %v2033_v38  ;;  %v12472_v32 = vld [vmem:[#allocation221_spill] sm:$0xff] }
 0xbfc   :  { %v1427_v38 = vmul.f32 %v12472_v32, %v12465_v36 }
 0xbfd   :  { %12463 = vst [vmem:[#allocation182_spill] sm:$0xff] %v10209_v60 }
 0xbfe   :  { %4852 = vperm.xlu2 %6604, %v12453_v41   ;;  %v12471_v41 = vld [vmem:[#allocation133_spill] sm:$0xff] }
 0xbff   :  { %v3185_v47 = vmul.f32 %v12471_v41, %v10182_v56 }
 0xc00   :  { %4871 = vperm.xlu1 %6607, %v12464_v52  }
 0xc01   :  { %v3249_v3 = vadd.f32 %v3185_v47, %v2641_v7  ;;  %v1971_v7 = vmul.f32 %v12473_v29, %v12467_v63  ;;  %v12474_v47 = vld [vmem:[#allocation253_spill] sm:$0xff]  ;;  %v12476_v29 = vld [vmem:[#allocation51_spill] sm:$0xff] }
 0xc02   :  { %v4766_v60 = vpop.permute.xlu1 %4765  ;;  %v2579_v28 = vmul.f32 %v12474_v47, %v12469_v54  ;;  %v4403_v47 = vmul.f32 %v12476_v29, %v10194_v22  ;;  %v12487_v29 = vld [vmem:[#allocation246_spill] sm:$0xff] }
 0xc03   :  { %v3857_v18 = vadd.f32 %v3793_v11, %v3249_v3  ;;  %v5009_v42 = vmul.f32 %v4766_v60, %v10204_v49  ;;  %v12475_v11 = vld [vmem:[#allocation306_spill] sm:$0xff] }
 0xc04   :  { %v3187_v3 = vmul.f32 %v12475_v11, %v10182_v56 }
 0xc05   :  { %v4465_v21 = vadd.f32 %v4401_v15, %v3857_v18  ;;  %v3795_v15 = vmul.f32 %v9596_v34, %v10189_v50  ;;  %v6807_v18 = vld [vmem:[%s11507_s1 + $0x78] sm:$0xff]  ;;  %v12478_v34 = vld [vmem:[#allocation101_spill] sm:$0xff] }
 0xc06   :  { %6606 = vset.pattern.permute.xlu2 %v6957_v20 }
 0xc07   :  { %v10236_v41 = vadd.f32 %v5009_v42, %v4465_v21  ;;  %v4879_v21 = vperm.slane %v6807_v18, 6 }
 0xc08   :  { %6609 = vset.pattern.permute.xlu1 %v6957_v20 }
 0xc0e   :  { %4865 = vperm.xlu2 %6606, %v12464_v52   ;;  %v2035_v52 = vadd.f32 %v1971_v7, %v1427_v38 }
 0xc10   :  { %v2643_v60 = vadd.f32 %v2579_v28, %v2035_v52  ;;  %4890 = vperm.xlu1 %6609, %v4879_v21   ;;  %v12479_v52 = vld [vmem:[#allocation126_spill] sm:$0xff] }
 0xc12   :  { %v3251_v42 = vadd.f32 %v3187_v3, %v2643_v60  ;;  %v4778_v38 = vpop.permute.xlu1 %4777  ;;  %v10266_v3 = vpop.permute.xlu2 %4771 }
 0xc13   :  { %v5011_v11 = vmul.f32 %v4778_v38, %v10204_v49  ;;  %12480 = vst [vmem:[#allocation284_spill] sm:$0xff] %v10266_v3  ;;  %v12489_v38 = vld [vmem:[#allocation18_spill] sm:$0xff] }
 0xc14   :  { %v3859_v32 = vadd.f32 %v3795_v15, %v3251_v42 }
 0xc16   :  { %6608 = vset.pattern.permute.xlu2 %v6908_v8  ;;  %v4467_v7 = vadd.f32 %v4403_v47, %v3859_v32 }
 0xc18   :  { %v10254_v28 = vadd.f32 %v5011_v11, %v4467_v7  ;;  %6611 = vset.pattern.permute.xlu1 %v6914_v10  ;;  %v1385_v7 = vmul.f32 %v12489_v38, %v9019_v1  ;;  %v12490_v11 = vld [vmem:[#allocation81_spill] sm:$0xff]  ;;  %v12496_v1 = vld [vmem:[#allocation130_spill] sm:$0xff]  ;;  %v12497_v38 = vld [vmem:[#allocation215_spill] sm:$0xff] }
 0xc1a   :  { %12477 = vst [vmem:[#allocation304_spill] sm:$0xff] %v10254_v28  ;;  %v10270_v60 = vpop.permute.xlu2 %4790 }
 0xc1b   :  { %12481 = vst [vmem:[#allocation241_spill] sm:$0xff] %v10270_v60 }
 0xc1e   :  { %4884 = vperm.xlu2 %6608, %v4879_v21  }
 0xc20   :  { %4902 = vperm.xlu1 %6611, %v4879_v21  }
 0xc26   :  { %6610 = vset.pattern.permute.xlu2 %v6986_v26 }
 0xc28   :  { %6613 = vset.pattern.permute.xlu1 %v6986_v26  ;;  %v10274_v15 = vpop.permute.xlu2 %4802 }
 0xc29   :  { %12482 = vst [vmem:[#allocation55_spill] sm:$0xff] %v10274_v15 }
 0xc2e   :  { %4896 = vperm.xlu2 %6610, %v4879_v21   ;;  %v12484_v21 = vld [vmem:[#allocation184_spill] sm:$0xff] }
 0xc30   :  { %5129 = vperm.xlu1 %6613, %v12478_v34  }
 0xc36   :  { %6612 = vset.pattern.permute.xlu2 %v6957_v20 }
 0xc38   :  { %6615 = vset.pattern.permute.xlu1 %v6908_v8  ;;  %v10278_v18 = vpop.permute.xlu2 %4821 }
 0xc39   :  { %12483 = vst [vmem:[#allocation45_spill] sm:$0xff] %v10278_v18 }
 0xc3e   :  { %5123 = vperm.xlu2 %6612, %v12478_v34  }
 0xc40   :  { %5142 = vperm.xlu1 %6615, %v12479_v52  }
 0xc46   :  { %6614 = vset.pattern.permute.xlu2 %v6914_v10 }
 0xc48   :  { %6617 = vset.pattern.permute.xlu1 %v6914_v10  ;;  %v10282_v42 = vpop.permute.xlu2 %4834 }
 0xc49   :  { %12485 = vst [vmem:[#allocation88_spill] sm:$0xff] %v10282_v42  ;;  %v12493_v42 = vld [vmem:[#allocation186_spill] sm:$0xff] }
 0xc4e   :  { %5135 = vperm.xlu2 %6614, %v12478_v34   ;;  %v1929_v34 = vmul.f32 %v12490_v11, %v9022_v5  ;;  %v3145_v5 = vmul.f32 %v12496_v1, %v9969_v13  ;;  %v3753_v11 = vmul.f32 %v12497_v38, %v9966_v33  ;;  %v12504_v38 = vld [vmem:[#allocation11_spill] sm:$0xff] }
 0xc50   :  { %5160 = vperm.xlu1 %6617, %v12479_v52  }
 0xc56   :  { %6616 = vset.pattern.permute.xlu2 %v6986_v26 }
 0xc58   :  { %6619 = vset.pattern.permute.xlu1 %v6957_v20  ;;  %v10286_v32 = vpop.permute.xlu2 %4852 }
 0xc59   :  { %12486 = vst [vmem:[#allocation152_spill] sm:$0xff] %v10286_v32  ;;  %v1993_v32 = vadd.f32 %v1929_v34, %v1385_v7  ;;  %v12498_v7 = vld [vmem:[#allocation341_spill] sm:$0xff] }
 0xc5a   :  { %v4361_v34 = vmul.f32 %v12498_v7, %v9972_v59  ;;  %v6808_v59 = vld [vmem:[%s11507_s1 + $0x20] sm:$0xff]  ;;  %v12505_v7 = vld [vmem:[#allocation190_spill] sm:$0xff] }
 0xc5e   :  { %5154 = vperm.xlu2 %6616, %v12479_v52   ;;  %v10298_v52 = vpop.permute.xlu1 %4796 }
 0xc5f   :  { %12491 = vst [vmem:[#allocation86_spill] sm:$0xff] %v10298_v52 }
 0xc60   :  { %5173 = vperm.xlu1 %6619, %v12484_v21  }
 0xc66   :  { %6618 = vset.pattern.permute.xlu2 %v6908_v8  ;;  %v10306_v15 = vpop.permute.xlu1 %4809 }
 0xc67   :  { %12494 = vst [vmem:[#allocation221_spill] sm:$0xff] %v10306_v15  ;;  %v12515_v15 = vld [vmem:[#allocation344_spill] sm:$0xff] }
 0xc68   :  { %6621 = vset.pattern.permute.xlu1 %v6908_v8  ;;  %v10290_v47 = vpop.permute.xlu2 %4865 }
 0xc69   :  { %12488 = vst [vmem:[#allocation60_spill] sm:$0xff] %v10290_v47 }
 0xc6e   :  { %5167 = vperm.xlu2 %6618, %v12484_v21   ;;  %v10323_v13 = vpop.permute.xlu1 %4827 }
 0xc6f   :  { %12500 = vst [vmem:[#allocation306_spill] sm:$0xff] %v10323_v13  ;;  %v12514_v13 = vld [vmem:[#allocation323_spill] sm:$0xff] }
 0xc70   :  { %5192 = vperm.xlu1 %6621, %v12487_v29  }
 0xc76   :  { %6620 = vset.pattern.permute.xlu2 %v6914_v10 }
 0xc78   :  { %6623 = vset.pattern.permute.xlu1 %v6986_v26  ;;  %v10300_v18 = vpop.permute.xlu2 %4884 }
 0xc79   :  { %12492 = vst [vmem:[#allocation133_spill] sm:$0xff] %v10300_v18 }
 0xc7e   :  { %5185 = vperm.xlu2 %6620, %v12484_v21   ;;  %v2537_v21 = vmul.f32 %v12493_v42, %v9043_v61  ;;  %v4969_v42 = vmul.f32 %v10028_v55, %v9984_v58  ;;  %v10329_v55 = vpop.permute.xlu1 %4840 }
 0xc7f   :  { %12501 = vst [vmem:[#allocation51_spill] sm:$0xff] %v10329_v55  ;;  %v12513_v55 = vld [vmem:[#allocation343_spill] sm:$0xff] }
 0xc80   :  { %5204 = vperm.xlu1 %6623, %v12487_v29   ;;  %v2601_v47 = vadd.f32 %v2537_v21, %v1993_v32  ;;  %v10321_v32 = vperm.slane %v8996_v19, 7  ;;  %v12511_v19 = vld [vmem:[#allocation342_spill] sm:$0xff] }
 0xc82   :  { %v3209_v18 = vadd.f32 %v3145_v5, %v2601_v47  ;;  %12499 = vst [vmem:[#allocation253_spill] sm:$0xff] %v10321_v32  ;;  %v12503_v5 = vld [vmem:[#allocation189_spill] sm:$0xff] }
 0xc84   :  { %v3817_v61 = vadd.f32 %v3753_v11, %v3209_v18  ;;  %v5212_v18 = vperm.slane %v6808_v59, 7  ;;  %v1390_v11 = vmul.f32 %v12504_v38, %v12503_v5  ;;  %v3758_v5 = vmul.f32 %v12514_v13, %v12513_v55 }
 0xc86   :  { %6622 = vset.pattern.permute.xlu2 %v6957_v20  ;;  %v10333_v1 = vpop.permute.xlu1 %4859 }
 0xc87   :  { %12502 = vst [vmem:[#allocation101_spill] sm:$0xff] %v10333_v1 }
 0xc88   :  { %v10308_v60 = vpop.permute.xlu2 %4896  ;;  %6625 = vset.pattern.permute.xlu1 %v6957_v20 }
 0xc89   :  { %12495 = vst [vmem:[#allocation156_spill] sm:$0xff] %v10308_v60  ;;  %v12512_v60 = vld [vmem:[#allocation181_spill] sm:$0xff] }
 0xc8a   :  { %v3150_v1 = vmul.f32 %v12512_v60, %v12511_v19 }
 0xc8e   :  { %5198 = vperm.xlu2 %6622, %v12487_v29   ;;  %v4425_v29 = vadd.f32 %v4361_v34, %v3817_v61  ;;  %v12506_v34 = vld [vmem:[#allocation87_spill] sm:$0xff]  ;;  %v10341_v59 = vpop.permute.xlu1 %4871 }
 0xc8f   :  { %v1934_v61 = vmul.f32 %v12506_v34, %v12505_v7  ;;  %12509 = vst [vmem:[#allocation126_spill] sm:$0xff] %v10341_v59  ;;  %v12516_v7 = vld [vmem:[#allocation195_spill] sm:$0xff] }
 0xc90   :  { %v5033_v33 = vadd.f32 %v4969_v42, %v4425_v29  ;;  %5223 = vperm.xlu1 %6625, %v5212_v18   ;;  %v12507_v42 = vld [vmem:[#allocation191_spill] sm:$0xff]  ;;  %v4366_v34 = vmul.f32 %v12516_v7, %v12515_v15 }
 0xc91   :  { %v12508_v29 = vld [vmem:[#allocation199_spill] sm:$0xff] }
 0xc92   :  { %v12521_v15 = vld [vmem:[#allocation283_spill] sm:$0xff] }
 0xc96   :  { %6624 = vset.pattern.permute.xlu2 %v6908_v8  ;;  %v10358_v19 = vpop.permute.xlu1 %4890 }
 0xc97   :  { %12520 = vst [vmem:[#allocation18_spill] sm:$0xff] %v10358_v19  ;;  %v12535_v19 = vld [vmem:[#allocation202_spill] sm:$0xff] }
 0xc98   :  { %v5124_v21 = vpop.permute.xlu2 %5123  ;;  %6627 = vset.pattern.permute.xlu1 %v6914_v10  ;;  %v10384_v59 = vperm.slane %v12535_v19, 6 }
 0xc99   :  { %v5577_v47 = vmul.f32 %v5124_v21, %v10321_v32  ;;  %v2542_v21 = vmul.f32 %v12508_v29, %v12507_v42  ;;  %v12517_v42 = vld [vmem:[#allocation346_spill] sm:$0xff] }
 0xc9a   :  { %12536 = vst [vmem:[#allocation341_spill] sm:$0xff] %v10384_v59 }
 0xc9b   :  { %v5641_v58 = vadd.f32 %v5577_v47, %v5033_v33  ;;  %v1998_v33 = vadd.f32 %v1934_v61, %v1390_v11  ;;  %v4974_v11 = vmul.f32 %v10064_v25, %v12517_v42  ;;  %v12518_v61 = vld [vmem:[#allocation187_spill] sm:$0xff] }
 0xc9c   :  { %v10356_v29 = vperm.slane %v12518_v61, 7  ;;  %v12534_v61 = vld [vmem:[#allocation108_spill] sm:$0xff] }
 0xc9d   :  { %5772 = vperm.xlu0 %6667, %v5641_v58   ;;  %v2606_v47 = vadd.f32 %v2542_v21, %v1998_v33  ;;  %v12524_v21 = vld [vmem:[#allocation129_spill] sm:$0xff] }
 0xc9e   :  { %5217 = vperm.xlu2 %6624, %v5212_v18   ;;  %12519 = vst [vmem:[#allocation246_spill] sm:$0xff] %v10356_v29  ;;  %v10363_v25 = vpop.permute.xlu1 %4902 }
 0xc9f   :  { %v3214_v38 = vadd.f32 %v3150_v1, %v2606_v47  ;;  %12522 = vst [vmem:[#allocation81_spill] sm:$0xff] %v10363_v25 }
 0xca0   :  { %5235 = vperm.xlu1 %6627, %v5212_v18  }
 0xca1   :  { %v3822_v32 = vadd.f32 %v3758_v5, %v3214_v38  ;;  %v12527_v5 = vld [vmem:[#allocation204_spill] sm:$0xff]  ;;  %v12528_v38 = vld [vmem:[#allocation13_spill] sm:$0xff] }
 0xca2   :  { %v1393_v7 = vmul.f32 %v12528_v38, %v12527_v5  ;;  %v10393_v38 = vperm.slane %v12535_v19, 7 }
 0xca4   :  { %12539 = vst [vmem:[#allocation189_spill] sm:$0xff] %v10393_v38 }
 0xca6   :  { %6626 = vset.pattern.permute.xlu2 %v6986_v26 }
 0xca8   :  { %v10343_v58 = vpop.permute.xlu2 %5135  ;;  %6629 = vset.pattern.permute.xlu1 %v6986_v26 }
 0xca9   :  { %12510 = vst [vmem:[#allocation184_spill] sm:$0xff] %v10343_v58 }
 0xcae   :  { %5229 = vperm.xlu2 %6626, %v5212_v18   ;;  %v4430_v18 = vadd.f32 %v4366_v34, %v3822_v32  ;;  %v10367_v32 = vpop.permute.xlu1 %5129  ;;  %v12529_v34 = vld [vmem:[#allocation205_spill] sm:$0xff] }
 0xcaf   :  { %12523 = vst [vmem:[#allocation186_spill] sm:$0xff] %v10367_v32 }
 0xcb0   :  { %v5038_v13 = vadd.f32 %v4974_v11, %v4430_v18  ;;  %5254 = vperm.xlu1 %6629, %v12521_v15   ;;  %v12530_v11 = vld [vmem:[#allocation39_spill] sm:$0xff] }
 0xcb1   :  { %v1937_v18 = vmul.f32 %v12530_v11, %v12529_v34  ;;  %v12540_v34 = vld [vmem:[#allocation321_spill] sm:$0xff] }
 0xcb6   :  { %6628 = vset.pattern.permute.xlu2 %v6957_v20  ;;  %v10371_v33 = vpop.permute.xlu1 %5142 }
 0xcb7   :  { %12525 = vst [vmem:[#allocation130_spill] sm:$0xff] %v10371_v33  ;;  %v12538_v33 = vld [vmem:[#allocation291_spill] sm:$0xff] }
 0xcb8   :  { %v5155_v60 = vpop.permute.xlu2 %5154  ;;  %6631 = vset.pattern.permute.xlu1 %v6908_v8 }
 0xcb9   :  { %v5582_v55 = vmul.f32 %v5155_v60, %v10356_v29  ;;  %v12531_v60 = vld [vmem:[#allocation208_spill] sm:$0xff] }
 0xcba   :  { %v12537_v29 = vld [vmem:[#allocation320_spill] sm:$0xff] }
 0xcbb   :  { %v5646_v1 = vadd.f32 %v5582_v55, %v5038_v13  ;;  %v12532_v13 = vld [vmem:[#allocation209_spill] sm:$0xff]  ;;  %v3153_v32 = vmul.f32 %v12538_v33, %v12537_v29  ;;  %v12544_v33 = vld [vmem:[#allocation279_spill] sm:$0xff] }
 0xcbc   :  { %v2545_v55 = vmul.f32 %v12532_v13, %v12531_v60  ;;  %v12542_v60 = vld [vmem:[#allocation249_spill] sm:$0xff] }
 0xcbd   :  { %5787 = vperm.xlu0 %6667, %v5646_v1   ;;  %v12533_v1 = vld [vmem:[#allocation175_spill] sm:$0xff] }
 0xcbe   :  { %5248 = vperm.xlu2 %6628, %v12521_v15   ;;  %v4371_v25 = vmul.f32 %v12534_v61, %v12533_v1  ;;  %v12541_v61 = vld [vmem:[#allocation324_spill] sm:$0xff] }
 0xcbf   :  { %v3761_v11 = vmul.f32 %v12541_v61, %v12540_v34  ;;  %v12550_v61 = vld [vmem:[#allocation14_spill] sm:$0xff] }
 0xcc0   :  { %5267 = vperm.xlu1 %6631, %v12524_v21   ;;  %v4435_v13 = vadd.f32 %v4371_v25, %v12542_v60  ;;  %v12547_v25 = vld [vmem:[#allocation212_spill] sm:$0xff] }
 0xcc6   :  { %6630 = vset.pattern.permute.xlu2 %v6914_v10 }
 0xcc8   :  { %v10373_v47 = vpop.permute.xlu2 %5167  ;;  %6633 = vset.pattern.permute.xlu1 %v6914_v10 }
 0xcc9   :  { %12526 = vst [vmem:[#allocation215_spill] sm:$0xff] %v10373_v47  ;;  %v4979_v47 = vmul.f32 %v10095_v4, %v10384_v59  ;;  %v4369_v4 = vmul.f32 %v12544_v33, %v12533_v1  ;;  %v12554_v33 = vld [vmem:[#allocation33_spill] sm:$0xff] }
 0xccb   :  { %v5043_v42 = vadd.f32 %v4979_v47, %v4435_v13  ;;  %v12549_v47 = vld [vmem:[#allocation197_spill] sm:$0xff] }
 0xccc   :  { %v1396_v60 = vmul.f32 %v12550_v61, %v12549_v47 }
 0xcce   :  { %5260 = vperm.xlu2 %6630, %v12521_v15   ;;  %v2001_v15 = vadd.f32 %v1937_v18, %v1393_v7  ;;  %v10398_v7 = vpop.permute.xlu1 %5160 }
 0xccf   :  { %12543 = vst [vmem:[#allocation11_spill] sm:$0xff] %v10398_v7  ;;  %v12556_v7 = vld [vmem:[#allocation16_spill] sm:$0xff] }
 0xcd0   :  { %v2609_v5 = vadd.f32 %v2545_v55, %v2001_v15  ;;  %v12546_v15 = vld [vmem:[#allocation194_spill] sm:$0xff]  ;;  %5285 = vperm.xlu1 %6633, %v12524_v21  }
 0xcd1   :  { %v10406_v19 = vperm.slane %v12546_v15, 4 }
 0xcd2   :  { %v3217_v29 = vadd.f32 %v3153_v32, %v2609_v5  ;;  %v12548_v5 = vld [vmem:[#allocation141_spill] sm:$0xff] }
 0xcd3   :  { %v3765_v32 = vmul.f32 %v12547_v25, %v10406_v19  ;;  %v4977_v34 = vmul.f32 %v12548_v5, %v10384_v59  ;;  %v10425_v25 = vperm.slane %v12546_v15, 6  ;;  %v12555_v5 = vld [vmem:[#allocation203_spill] sm:$0xff]  ;;  %v12557_v59 = vld [vmem:[#allocation293_spill] sm:$0xff] }
 0xcd4   :  { %v3825_v52 = vadd.f32 %v3761_v11, %v3217_v29  ;;  %v3156_v49 = vmul.f32 %v12557_v59, %v12556_v7  ;;  %v12560_v59 = vld [vmem:[#allocation63_spill] sm:$0xff] }
 0xcd6   :  { %6632 = vset.pattern.permute.xlu2 %v6986_v26  ;;  %v4433_v3 = vadd.f32 %v4369_v4, %v3825_v52  ;;  %v5174_v11 = vpop.permute.xlu1 %5173 }
 0xcd7   :  { %v5585_v29 = vmul.f32 %v5174_v11, %v10393_v38  ;;  %v10437_v11 = vperm.slane %v12546_v15, 7 }
 0xcd8   :  { %v5186_v18 = vpop.permute.xlu2 %5185  ;;  %v5041_v52 = vadd.f32 %v4977_v34, %v4433_v3  ;;  %v4981_v3 = vmul.f32 %v10110_v6, %v10425_v25  ;;  %6635 = vset.pattern.permute.xlu1 %v6957_v20 }
 0xcd9   :  { %v5587_v58 = vmul.f32 %v5186_v18, %v10393_v38  ;;  %v10419_v18 = vperm.slane %v12546_v15, 5  ;;  %v12563_v15 = vld [vmem:[#allocation350_spill] sm:$0xff] }
 0xcda   :  { %v5649_v1 = vadd.f32 %v5585_v29, %v5041_v52 }
 0xcdb   :  { %v10403_v55 = vadd.f32 %v5587_v58, %v5043_v42  ;;  %v12551_v58 = vld [vmem:[#allocation198_spill] sm:$0xff]  ;;  %v12552_v42 = vld [vmem:[#allocation61_spill] sm:$0xff] }
 0xcdc   :  { %v1940_v13 = vmul.f32 %v12552_v42, %v12551_v58  ;;  %v12558_v42 = vld [vmem:[#allocation138_spill] sm:$0xff]  ;;  %5796 = vperm.xlu0 %6667, %v5649_v1   ;;  %v1943_v52 = vmul.f32 %v12560_v59, %v12551_v58  ;;  %v12561_v1 = vld [vmem:[#allocation239_spill] sm:$0xff] }
 0xcdd   :  { %12545 = vst [vmem:[#allocation190_spill] sm:$0xff] %v10403_v55  ;;  %v3829_v55 = vadd.f32 %v3765_v32, %v12555_v5  ;;  %v4373_v28 = vmul.f32 %v12558_v42, %v10419_v18 }
 0xcde   :  { %5279 = vperm.xlu2 %6632, %v12524_v21   ;;  %v12553_v21 = vld [vmem:[#allocation295_spill] sm:$0xff]  ;;  %v2004_v61 = vadd.f32 %v1940_v13, %v1396_v60 }
 0xcdf   :  { %v2548_v4 = vmul.f32 %v12554_v33, %v12553_v21  ;;  %v4437_v32 = vadd.f32 %v4373_v28, %v3829_v55  ;;  %v12559_v60 = vld [vmem:[#allocation15_spill] sm:$0xff]  ;;  %v2551_v42 = vmul.f32 %v12561_v1, %v12553_v21  ;;  %v4372_v28 = vmul.f32 %v12563_v15, %v10419_v18  ;;  %v12567_v21 = vld [vmem:[#allocation121_spill] sm:$0xff] }
 0xce0   :  { %v1399_v13 = vmul.f32 %v12559_v60, %v12549_v47  ;;  %v12565_v60 = vld [vmem:[#allocation92_spill] sm:$0xff]  ;;  %v12568_v15 = vld [vmem:[#allocation53_spill] sm:$0xff] }
 0xce1   :  { %v2612_v34 = vadd.f32 %v2548_v4, %v2004_v61  ;;  %v5045_v5 = vadd.f32 %v4981_v3, %v4437_v32  ;;  %v12562_v4 = vld [vmem:[#allocation300_spill] sm:$0xff]  ;;  %v3159_v58 = vmul.f32 %v12565_v60, %v12556_v7  ;;  %v10459_v32 = vperm.slane %v12567_v21, 4 }
 0xce2   :  { %v3764_v61 = vmul.f32 %v12562_v4, %v10406_v19  ;;  %v2007_v47 = vadd.f32 %v1943_v52, %v1399_v13  ;;  %v10464_v13 = vperm.slane %v12567_v21, 5  ;;  %v5193_v52 = vpop.permute.xlu1 %5192 }
 0xce3   :  { %v3220_v33 = vadd.f32 %v3156_v49, %v2612_v34  ;;  %v4980_v49 = vmul.f32 %v10060_v9, %v10425_v25  ;;  %v12566_v34 = vld [vmem:[#allocation188_spill] sm:$0xff]  ;;  %v5588_v4 = vmul.f32 %v5193_v52, %v10437_v11  ;;  %v10486_v52 = vperm.slane %v12567_v21, 7 }
 0xce4   :  { %v2615_v3 = vadd.f32 %v2551_v42, %v2007_v47  ;;  %5298 = vperm.xlu1 %6635, %v12566_v34  }
 0xce5   :  { %v3828_v59 = vadd.f32 %v3764_v61, %v3220_v33  ;;  %v12569_v33 = vld [vmem:[#allocation327_spill] sm:$0xff]  ;;  %v10472_v61 = vperm.slane %v12567_v21, 6 }
 0xce6   :  { %6634 = vset.pattern.permute.xlu2 %v6908_v8  ;;  %v3223_v7 = vadd.f32 %v3159_v58, %v2615_v3  ;;  %v3768_v9 = vmul.f32 %v12569_v33, %v10459_v32  ;;  %v4983_v58 = vmul.f32 %v10066_v40, %v10425_v25  ;;  %v12572_v3 = vld [vmem:[#allocation289_spill] sm:$0xff] }
 0xce7   :  { %v12574_v40 = vld [vmem:[#allocation69_spill] sm:$0xff] }
 0xce8   :  { %v5199_v29 = vpop.permute.xlu2 %5198 }
 0xce9   :  { %v5589_v6 = vmul.f32 %v5199_v29, %v10437_v11  ;;  %v3767_v29 = vmul.f32 %v12568_v15, %v10406_v19  ;;  %v3832_v15 = vadd.f32 %v3768_v9, %v12572_v3  ;;  %v12579_v3 = vld [vmem:[#allocation349_spill] sm:$0xff] }
 0xceb   :  { %v10450_v55 = vadd.f32 %v5589_v6, %v5045_v5  ;;  %v4436_v5 = vadd.f32 %v4372_v28, %v3828_v59  ;;  %v12570_v6 = vld [vmem:[#allocation161_spill] sm:$0xff]  ;;  %v3831_v47 = vadd.f32 %v3767_v29, %v3223_v7  ;;  %v12571_v28 = vld [vmem:[#allocation351_spill] sm:$0xff] }
 0xcec   :  { %v4375_v1 = vmul.f32 %v12570_v6, %v10419_v18  ;;  %v4376_v60 = vmul.f32 %v12571_v28, %v10464_v13  ;;  %v4984_v6 = vmul.f32 %v10118_v12, %v10472_v61  ;;  %6637 = vset.pattern.permute.xlu1 %v6908_v8  ;;  %v12578_v28 = vld [vmem:[#allocation268_spill] sm:$0xff] }
 0xced   :  { %12564 = vst [vmem:[#allocation87_spill] sm:$0xff] %v10450_v55  ;;  %v5044_v42 = vadd.f32 %v4980_v49, %v4436_v5  ;;  %v12573_v49 = vld [vmem:[#allocation326_spill] sm:$0xff]  ;;  %v4374_v55 = vmul.f32 %v12579_v3, %v10419_v18  ;;  %v12586_v18 = vld [vmem:[#allocation59_spill] sm:$0xff] }
 0xcee   :  { %5292 = vperm.xlu2 %6634, %v12566_v34   ;;  %v4439_v33 = vadd.f32 %v4375_v1, %v3831_v47  ;;  %v3766_v29 = vmul.f32 %v12573_v49, %v10406_v19  ;;  %v4440_v5 = vadd.f32 %v4376_v60, %v3832_v15  ;;  %v12576_v1 = vld [vmem:[#allocation23_spill] sm:$0xff]  ;;  %v12580_v60 = vld [vmem:[#allocation42_spill] sm:$0xff] }
 0xcef   :  { %v5652_v59 = vadd.f32 %v5588_v4, %v5044_v42  ;;  %v12575_v42 = vld [vmem:[#allocation99_spill] sm:$0xff]  ;;  %v12577_v4 = vld [vmem:[#allocation154_spill] sm:$0xff] }
 0xcf0   :  { %v5047_v7 = vadd.f32 %v4983_v58, %v4439_v33  ;;  %v1946_v9 = vmul.f32 %v12575_v42, %v12574_v40  ;;  %v1402_v47 = vmul.f32 %v12577_v4, %v12576_v1  ;;  %v5048_v38 = vadd.f32 %v4984_v6, %v4440_v5  ;;  %v12581_v58 = vld [vmem:[#allocation219_spill] sm:$0xff]  ;;  %v12582_v33 = vld [vmem:[#allocation201_spill] sm:$0xff]  ;;  %v12584_v4 = vld [vmem:[#allocation298_spill] sm:$0xff] }
 0xcf1   :  { %5805 = vperm.xlu0 %6667, %v5652_v59   ;;  %v5591_v59 = vmul.f32 %v12578_v28, %v10437_v11  ;;  %v2554_v15 = vmul.f32 %v12581_v58, %v12580_v60  ;;  %v3830_v49 = vadd.f32 %v3766_v29, %v12582_v33  ;;  %v12583_v1 = vld [vmem:[#allocation287_spill] sm:$0xff]  ;;  %v12585_v28 = vld [vmem:[#allocation125_spill] sm:$0xff]  ;;  %v4982_v6 = vmul.f32 %v12586_v18, %v10425_v25  ;;  %v12591_v33 = vld [vmem:[#allocation222_spill] sm:$0xff] }
 0xcf2   :  { %v2010_v42 = vadd.f32 %v1946_v9, %v1402_v47  ;;  %v3162_v22 = vmul.f32 %v12584_v4, %v12583_v1  ;;  %v12593_v1 = vld [vmem:[#allocation353_spill] sm:$0xff] }
 0xcf3   :  { %v5655_v21 = vadd.f32 %v5591_v59, %v5047_v7  ;;  %v4438_v50 = vadd.f32 %v4374_v55, %v3830_v49  ;;  %v5205_v7 = vpop.permute.xlu1 %5204  ;;  %v12588_v55 = vld [vmem:[#allocation97_spill] sm:$0xff]  ;;  %v2557_v49 = vmul.f32 %v12591_v33, %v9072_v44  ;;  %v4377_v4 = vmul.f32 %v12593_v1, %v10464_v13  ;;  %v12600_v33 = vld [vmem:[#allocation296_spill] sm:$0xff] }
 0xcf4   :  { %5317 = vperm.xlu1 %6637, %v12585_v28   ;;  %v2618_v5 = vadd.f32 %v2554_v15, %v2010_v42  ;;  %v5590_v9 = vmul.f32 %v5205_v7, %v10437_v11  ;;  %v12590_v11 = vld [vmem:[#allocation103_spill] sm:$0xff]  ;;  %v12595_v7 = vld [vmem:[#allocation132_spill] sm:$0xff] }
 0xcf5   :  { %v5046_v59 = vadd.f32 %v4982_v6, %v4438_v50  ;;  %v1949_v60 = vmul.f32 %v12590_v11, %v9051_v46 }
 0xcf6   :  { %6636 = vset.pattern.permute.xlu2 %v6914_v10 }
 0xcf7   :  { %v10511_v3 = vadd.f32 %v5590_v9, %v5046_v59  ;;  %v12596_v59 = vld [vmem:[#allocation331_spill] sm:$0xff] }
 0xcf8   :  { %v5218_v12 = vpop.permute.xlu2 %5217  ;;  %v3773_v9 = vmul.f32 %v12596_v59, %v10078_v31  ;;  %v12598_v31 = vld [vmem:[#allocation151_spill] sm:$0xff] }
 0xcf9   :  { %v5592_v19 = vmul.f32 %v5218_v12, %v10486_v52  ;;  %5814 = vperm.xlu0 %6667, %v5655_v21   ;;  %v12587_v12 = vld [vmem:[#allocation98_spill] sm:$0xff]  ;;  %v4378_v21 = vmul.f32 %v12588_v55, %v10464_v13 }
 0xcfa   :  { %v3770_v29 = vmul.f32 %v12587_v12, %v10459_v32 }
 0xcfb   :  { %v10500_v40 = vadd.f32 %v5592_v19, %v5048_v38  ;;  %v3226_v38 = vadd.f32 %v3162_v22, %v2618_v5  ;;  %v12589_v22 = vld [vmem:[#allocation24_spill] sm:$0xff] }
 0xcfc   :  { %6639 = vset.pattern.permute.xlu1 %v6986_v26  ;;  %v1405_v50 = vmul.f32 %v12589_v22, %v9048_v37  ;;  %v12594_v5 = vld [vmem:[#allocation44_spill] sm:$0xff]  ;;  %v4985_v37 = vmul.f32 %v10075_v27, %v10472_v61  ;;  %v12597_v27 = vld [vmem:[#allocation354_spill] sm:$0xff]  ;;  %v3771_v22 = vmul.f32 %v12598_v31, %v10459_v32  ;;  %v12608_v31 = vld [vmem:[#allocation217_spill] sm:$0xff] }
 0xcfd   :  { %v3834_v47 = vadd.f32 %v3770_v29, %v3226_v38  ;;  %v3165_v38 = vmul.f32 %v12595_v7, %v10071_v30  ;;  %v10549_v30 = vperm.slane %v9030_v35, 7  ;;  %v12604_v7 = vld [vmem:[#allocation355_spill] sm:$0xff] }
 0xcfe   :  { %5310 = vperm.xlu2 %6636, %v12566_v34   ;;  %v4986_v34 = vmul.f32 %v10125_v17, %v10472_v61  ;;  %v12592_v17 = vld [vmem:[#allocation135_spill] sm:$0xff]  ;;  %v2013_v6 = vadd.f32 %v1949_v60, %v1405_v50 }
 0xcff   :  { %v4442_v25 = vadd.f32 %v4378_v21, %v3834_v47  ;;  %v3769_v42 = vmul.f32 %v12592_v17, %v10459_v32  ;;  %v12601_v32 = vld [vmem:[#allocation256_spill] sm:$0xff] }
 0xd00   :  { %v2621_v46 = vadd.f32 %v2557_v49, %v2013_v6  ;;  %v3835_v49 = vadd.f32 %v3771_v22, %v12600_v33  ;;  %v4987_v1 = vmul.f32 %v12601_v32, %v10472_v61  ;;  %v12603_v61 = vld [vmem:[#allocation280_spill] sm:$0xff]  ;;  %v3776_v22 = vmul.f32 %v12608_v31, %v9779_v45  ;;  %v12610_v33 = vld [vmem:[#allocation286_spill] sm:$0xff]  ;;  %v12612_v32 = vld [vmem:[#allocation27_spill] sm:$0xff] }
 0xd01   :  { %v5050_v58 = vadd.f32 %v4986_v34, %v4442_v25  ;;  %v3833_v12 = vadd.f32 %v3769_v42, %v12594_v5  ;;  %v4381_v34 = vmul.f32 %v12597_v27, %v10083_v16  ;;  %v12599_v16 = vld [vmem:[#allocation352_spill] sm:$0xff]  ;;  %v12607_v27 = vld [vmem:[#allocation297_spill] sm:$0xff] }
 0xd02   :  { %v5224_v29 = vpop.permute.xlu1 %5223  ;;  %v3229_v21 = vadd.f32 %v3165_v38, %v2621_v46  ;;  %v4379_v60 = vmul.f32 %v12599_v16, %v10464_v13  ;;  %v12602_v46 = vld [vmem:[#allocation356_spill] sm:$0xff]  ;;  %v12609_v16 = vld [vmem:[#allocation29_spill] sm:$0xff] }
 0xd03   :  { %v4441_v44 = vadd.f32 %v4377_v4, %v3833_v12  ;;  %v5593_v55 = vmul.f32 %v5224_v29, %v10486_v52 }
 0xd04   :  { %5329 = vperm.xlu1 %6639, %v12585_v28   ;;  %v4443_v42 = vadd.f32 %v4379_v60, %v3835_v49  ;;  %v4384_v60 = vmul.f32 %v12609_v16, %v9792_v39  ;;  %v12611_v49 = vld [vmem:[#allocation160_spill] sm:$0xff] }
 0xd05   :  { %v5049_v47 = vadd.f32 %v4985_v37, %v4441_v44  ;;  %v1952_v44 = vmul.f32 %v12603_v61, %v12602_v46  ;;  %v12615_v61 = vld [vmem:[#allocation85_spill] sm:$0xff] }
 0xd06   :  { %6638 = vset.pattern.permute.xlu2 %v6957_v20  ;;  %v5051_v13 = vadd.f32 %v4987_v1, %v4443_v42  ;;  %v1411_v1 = vmul.f32 %v12612_v32, %v12604_v7  ;;  %v12627_v32 = vld [vmem:[#allocation112_spill] sm:$0xff] }
 0xd07   :  { %v10542_v25 = vadd.f32 %v5593_v55, %v5049_v47  ;;  %v10577_v47 = vperm.slane %v9746_v48, 6 }
 0xd08   :  { %v5230_v19 = vpop.permute.xlu2 %5229 }
 0xd09   :  { %v5594_v15 = vmul.f32 %v5230_v19, %v10486_v52  ;;  %v3837_v19 = vadd.f32 %v3773_v9, %v3229_v21 }
 0xd0b   :  { %v5658_v18 = vadd.f32 %v5594_v15, %v5050_v58  ;;  %v4445_v50 = vadd.f32 %v4381_v34, %v3837_v19  ;;  %v3168_v34 = vmul.f32 %v12607_v27, %v9776_v43  ;;  %v4994_v19 = vmul.f32 %v10169_v2, %v10577_v47  ;;  %v12621_v27 = vld [vmem:[#allocation113_spill] sm:$0xff] }
 0xd0c   :  { %6641 = vset.pattern.permute.xlu1 %v6957_v20 }
 0xd0d   :  { %5823 = vperm.xlu0 %6667, %v5658_v18  }
 0xd0e   :  { %5323 = vperm.xlu2 %6638, %v12585_v28   ;;  %v4989_v28 = vmul.f32 %v10137_v62, %v10093_v23  ;;  %v6809_v23 = vld [vmem:[%s11507_s1 + $0x48] sm:$0xff] }
 0xd0f   :  { %v5337_v62 = vperm.slane %v6809_v23, 7 }
 0xd10   :  { %v5053_v58 = vadd.f32 %v4989_v28, %v4445_v50 }
 0xd12   :  { %v5236_v4 = vpop.permute.xlu1 %5235 }
 0xd13   :  { %v5595_v18 = vmul.f32 %v5236_v4, %v10486_v52  ;;  %v12605_v52 = vld [vmem:[#allocation26_spill] sm:$0xff] }
 0xd14   :  { %5348 = vperm.xlu1 %6641, %v5337_v62   ;;  %v1408_v38 = vmul.f32 %v12605_v52, %v12604_v7  ;;  %v12613_v4 = vld [vmem:[#allocation110_spill] sm:$0xff] }
 0xd15   :  { %v10563_v6 = vadd.f32 %v5595_v18, %v5051_v13 }
 0xd16   :  { %6640 = vset.pattern.permute.xlu2 %v6908_v8  ;;  %v2016_v9 = vadd.f32 %v1952_v44, %v1408_v38  ;;  %v10613_v44 = vperm.slane %v12615_v61, 6  ;;  %v12616_v38 = vld [vmem:[#allocation299_spill] sm:$0xff] }
 0xd18   :  { %v5249_v11 = vpop.permute.xlu2 %5248 }
 0xd19   :  { %v5597_v15 = vmul.f32 %v5249_v11, %v10549_v30 }
 0xd1b   :  { %v5661_v17 = vadd.f32 %v5597_v15, %v5053_v58  ;;  %v5058_v58 = vadd.f32 %v4994_v19, %v9801_v24  ;;  %v1955_v24 = vmul.f32 %v12613_v4, %v12602_v46  ;;  %v12618_v46 = vld [vmem:[#allocation329_spill] sm:$0xff]  ;;  %v5103_v19 = vperm.slane %v12615_v61, 7 }
 0xd1c   :  { %6643 = vset.pattern.permute.xlu1 %v6914_v10 }
 0xd1d   :  { %5832 = vperm.xlu0 %6667, %v5661_v17   ;;  %v4992_v17 = vmul.f32 %v12611_v49, %v10577_v47  ;;  %v2019_v52 = vadd.f32 %v1955_v24, %v1411_v1  ;;  %v12625_v49 = vld [vmem:[#allocation276_spill] sm:$0xff]  ;;  %v12628_v1 = vld [vmem:[#allocation58_spill] sm:$0xff] }
 0xd1e   :  { %5342 = vperm.xlu2 %6640, %v5337_v62   ;;  %v3174_v4 = vmul.f32 %v12628_v1, %v12627_v32  ;;  %v12643_v1 = vld [vmem:[#allocation214_spill] sm:$0xff] }
 0xd22   :  { %v5255_v29 = vpop.permute.xlu1 %5254 }
 0xd23   :  { %v5598_v59 = vmul.f32 %v5255_v29, %v10549_v30 }
 0xd24   :  { %5360 = vperm.xlu1 %6643, %v5337_v62  }
 0xd25   :  { %v10580_v55 = vadd.f32 %v5598_v59, %v10121_v51  ;;  %v10593_v51 = vperm.slane %v9746_v48, 7  ;;  %v3171_v59 = vmul.f32 %v12616_v38, %v9776_v43  ;;  %v12622_v43 = vld [vmem:[#allocation32_spill] sm:$0xff] }
 0xd26   :  { %6642 = vset.pattern.permute.xlu2 %v6986_v26 }
 0xd28   :  { %v5261_v5 = vpop.permute.xlu2 %5260 }
 0xd29   :  { %v5599_v12 = vmul.f32 %v5261_v5, %v10549_v30  ;;  %v12614_v5 = vld [vmem:[#allocation228_spill] sm:$0xff] }
 0xd2b   :  { %v10569_v37 = vadd.f32 %v5599_v12, %v10147_v14  ;;  %v12606_v14 = vld [vmem:[#allocation224_spill] sm:$0xff]  ;;  %v2563_v12 = vmul.f32 %v12614_v5, %v9761_v57  ;;  %v12630_v5 = vld [vmem:[#allocation131_spill] sm:$0xff] }
 0xd2c   :  { %v2560_v21 = vmul.f32 %v12606_v14, %v9761_v57  ;;  %6645 = vset.pattern.permute.xlu1 %v6986_v26  ;;  %v12619_v14 = vld [vmem:[#allocation30_spill] sm:$0xff] }
 0xd2d   :  { %v12620_v57 = vld [vmem:[#allocation330_spill] sm:$0xff] }
 0xd2e   :  { %5354 = vperm.xlu2 %6642, %v5337_v62   ;;  %v2624_v28 = vadd.f32 %v2560_v21, %v2016_v9  ;;  %v12617_v9 = vld [vmem:[#allocation207_spill] sm:$0xff]  ;;  %v1414_v21 = vmul.f32 %v12619_v14, %v12618_v46 }
 0xd2f   :  { %v4996_v7 = vmul.f32 %v12617_v9, %v10613_v44  ;;  %v12633_v9 = vld [vmem:[#allocation231_spill] sm:$0xff] }
 0xd30   :  { %v3232_v11 = vadd.f32 %v3168_v34, %v2624_v28  ;;  %v1958_v34 = vmul.f32 %v12621_v27, %v12620_v57  ;;  %v2627_v28 = vadd.f32 %v2563_v12, %v2019_v52  ;;  %v12631_v12 = vld [vmem:[#allocation233_spill] sm:$0xff] }
 0xd31   :  { %v12635_v27 = vld [vmem:[#allocation229_spill] sm:$0xff] }
 0xd32   :  { %v3840_v15 = vadd.f32 %v3776_v22, %v3232_v11  ;;  %v5268_v42 = vpop.permute.xlu1 %5267  ;;  %v3235_v22 = vadd.f32 %v3171_v59, %v2627_v28  ;;  %v2022_v16 = vadd.f32 %v1958_v34, %v1414_v21  ;;  %v4391_v34 = vmul.f32 %v12635_v27, %v12633_v9  ;;  %v12636_v28 = vld [vmem:[#allocation220_spill] sm:$0xff]  ;;  %v12650_v27 = vld [vmem:[#allocation94_spill] sm:$0xff] }
 0xd33   :  { %v5600_v18 = vmul.f32 %v5268_v42, %v10593_v51 }
 0xd34   :  { %v4448_v62 = vadd.f32 %v4384_v60, %v3840_v15  ;;  %5379 = vperm.xlu1 %6645, %v12610_v33   ;;  %v12623_v60 = vld [vmem:[#allocation7_spill] sm:$0xff] }
 0xd36   :  { %6644 = vset.pattern.permute.xlu2 %v6957_v20  ;;  %v5056_v13 = vadd.f32 %v4992_v17, %v4448_v62  ;;  %v12626_v17 = vld [vmem:[#allocation176_spill] sm:$0xff] }
 0xd37   :  { %v2566_v42 = vmul.f32 %v12626_v17, %v12625_v49  ;;  %v12641_v49 = vld [vmem:[#allocation211_spill] sm:$0xff] }
 0xd38   :  { %v5280_v50 = vpop.permute.xlu2 %5279  ;;  %v5664_v29 = vadd.f32 %v5600_v18, %v5056_v13  ;;  %v12629_v13 = vld [vmem:[#allocation104_spill] sm:$0xff]  ;;  %v12642_v17 = vld [vmem:[#allocation119_spill] sm:$0xff] }
 0xd39   :  { %v5602_v2 = vmul.f32 %v5280_v50, %v10593_v51  ;;  %v5060_v50 = vadd.f32 %v4996_v7, %v12622_v43  ;;  %v4995_v18 = vmul.f32 %v12629_v13, %v10577_v47  ;;  %v12634_v7 = vld [vmem:[#allocation124_spill] sm:$0xff]  ;;  %v12637_v43 = vld [vmem:[#allocation106_spill] sm:$0xff] }
 0xd3a   :  { %5841 = vperm.xlu0 %6667, %v5664_v29   ;;  %v12632_v29 = vld [vmem:[#allocation115_spill] sm:$0xff]  ;;  %v4390_v46 = vmul.f32 %v12634_v7, %v12633_v9  ;;  %v12647_v7 = vld [vmem:[#allocation145_spill] sm:$0xff] }
 0xd3b   :  { %v10599_v23 = vadd.f32 %v5602_v2, %v5058_v58  ;;  %v3779_v58 = vmul.f32 %v12623_v60, %v9779_v45  ;;  %v12624_v2 = vld [vmem:[#allocation25_spill] sm:$0xff]  ;;  %v2630_v45 = vadd.f32 %v2566_v42, %v2022_v16  ;;  %v1961_v42 = vmul.f32 %v12642_v17, %v12641_v49  ;;  %v12655_v17 = vld [vmem:[#allocation122_spill] sm:$0xff] }
 0xd3c   :  { %6647 = vset.pattern.permute.xlu1 %v6908_v8  ;;  %v4387_v15 = vmul.f32 %v12624_v2, %v9792_v39  ;;  %v3782_v39 = vmul.f32 %v12632_v29, %v12631_v12  ;;  %v12640_v2 = vld [vmem:[#allocation28_spill] sm:$0xff]  ;;  %v12645_v12 = vld [vmem:[#allocation235_spill] sm:$0xff] }
 0xd3d   :  { %v3843_v24 = vadd.f32 %v3779_v58, %v3235_v22  ;;  %v3238_v59 = vadd.f32 %v3174_v4, %v2630_v45  ;;  %v12639_v58 = vld [vmem:[#allocation210_spill] sm:$0xff]  ;;  %v5606_v4 = vmul.f32 %v12643_v1, %v5103_v19  ;;  %v12646_v29 = vld [vmem:[#allocation240_spill] sm:$0xff] }
 0xd3e   :  { %5373 = vperm.xlu2 %6644, %v12610_v33  }
 0xd3f   :  { %v4451_v52 = vadd.f32 %v4387_v15, %v3843_v24  ;;  %v3846_v57 = vadd.f32 %v3782_v39, %v3238_v59  ;;  %v1417_v15 = vmul.f32 %v12640_v2, %v12639_v58  ;;  %v12644_v24 = vld [vmem:[#allocation227_spill] sm:$0xff]  ;;  %v2569_v39 = vmul.f32 %v12646_v29, %v12645_v12 }
 0xd40   :  { %v4389_v13 = vmul.f32 %v12644_v24, %v12633_v9  ;;  %v12656_v24 = vld [vmem:[#allocation244_spill] sm:$0xff]  ;;  %v12659_v12 = vld [vmem:[#allocation123_spill] sm:$0xff] }
 0xd41   :  { %v5059_v14 = vadd.f32 %v4995_v18, %v4451_v52  ;;  %v4454_v22 = vadd.f32 %v4390_v46, %v3846_v57  ;;  %v2025_v59 = vadd.f32 %v1961_v42, %v1417_v15  ;;  %v12648_v46 = vld [vmem:[#allocation242_spill] sm:$0xff] }
 0xd42   :  { %v5286_v38 = vpop.permute.xlu1 %5285 }
 0xd43   :  { %v5603_v21 = vmul.f32 %v5286_v38, %v10593_v51  ;;  %v2633_v9 = vadd.f32 %v2569_v39, %v2025_v59  ;;  %v12660_v39 = vld [vmem:[#allocation164_spill] sm:$0xff] }
 0xd44   :  { %5392 = vperm.xlu1 %6647, %v12630_v5  }
 0xd46   :  { %6646 = vset.pattern.permute.xlu2 %v6914_v10 }
 0xd48   :  { %v5293_v31 = vpop.permute.xlu2 %5292 }
 0xd49   :  { %v5604_v11 = vmul.f32 %v5293_v31, %v5103_v19  ;;  %v5667_v31 = vadd.f32 %v5603_v21, %v5059_v14  ;;  %v3177_v14 = vmul.f32 %v12648_v46, %v12647_v7  ;;  %v12649_v21 = vld [vmem:[#allocation31_spill] sm:$0xff]  ;;  %v12661_v7 = vld [vmem:[#allocation40_spill] sm:$0xff] }
 0xd4a   :  { %v4453_v57 = vadd.f32 %v4389_v13, %v12649_v21  ;;  %v12657_v13 = vld [vmem:[#allocation35_spill] sm:$0xff]  ;;  %v12663_v21 = vld [vmem:[#allocation70_spill] sm:$0xff] }
 0xd4b   :  { %v10631_v62 = vadd.f32 %v5604_v11, %v5060_v50  ;;  %v4999_v50 = vmul.f32 %v12637_v43, %v10613_v44  ;;  %5850 = vperm.xlu0 %6667, %v5667_v31   ;;  %v12638_v11 = vld [vmem:[#allocation64_spill] sm:$0xff]  ;;  %v3241_v43 = vadd.f32 %v3177_v14, %v2633_v9  ;;  %v12662_v46 = vld [vmem:[#allocation243_spill] sm:$0xff]  ;;  %v12664_v9 = vld [vmem:[#allocation238_spill] sm:$0xff] }
 0xd4c   :  { %6650 = vset.pattern.permute.xlu1 %v6914_v10  ;;  %v4455_v16 = vadd.f32 %v4391_v34, %v12638_v11  ;;  %v12651_v34 = vld [vmem:[#allocation9_spill] sm:$0xff]  ;;  %v2572_v14 = vmul.f32 %v12662_v46, %v12661_v7 }
 0xd4e   :  { %5385 = vperm.xlu2 %6646, %v12610_v33   ;;  %v4998_v33 = vmul.f32 %v12636_v28, %v10613_v44  ;;  %v5063_v18 = vadd.f32 %v4999_v50, %v4455_v16  ;;  %v3785_v28 = vmul.f32 %v12651_v34, %v12650_v27  ;;  %v12653_v50 = vld [vmem:[#allocation206_spill] sm:$0xff] }
 0xd4f   :  { %v10676_v11 = vperm.slane %v12653_v50, 5  ;;  %v10679_v58 = vperm.slane %v12653_v50, 6 }
 0xd50   :  { %v5062_v60 = vadd.f32 %v4998_v33, %v4454_v22  ;;  %v12652_v33 = vld [vmem:[#allocation142_spill] sm:$0xff]  ;;  %v3849_v2 = vadd.f32 %v3785_v28, %v3241_v43  ;;  %v12665_v28 = vld [vmem:[#allocation196_spill] sm:$0xff]  ;;  %v10711_v43 = vperm.slane %v12663_v21, 4 }
 0xd51   :  { %v4997_v31 = vmul.f32 %v12652_v33, %v10613_v44  ;;  %v5001_v42 = vmul.f32 %v12655_v17, %v10679_v58  ;;  %v10690_v44 = vperm.slane %v12653_v50, 7  ;;  %v5000_v34 = vmul.f32 %v12664_v9, %v10679_v58  ;;  %v12668_v17 = vld [vmem:[#allocation102_spill] sm:$0xff]  ;;  %v12778_v50 = vld [vmem:[#allocation325_spill] sm:$0xff] }
 0xd52   :  { %v5670_v52 = vadd.f32 %v5606_v4, %v5062_v60 }
 0xd53   :  { %v5061_v16 = vadd.f32 %v4997_v31, %v4453_v57  ;;  %v10702_v57 = vperm.slane %v12663_v21, 3  ;;  %v12666_v31 = vld [vmem:[#allocation290_spill] sm:$0xff] }
 0xd54   :  { %5859 = vperm.xlu0 %6667, %v5670_v52   ;;  %5410 = vperm.xlu1 %6650, %v12630_v5   ;;  %v4392_v52 = vmul.f32 %v12660_v39, %v10676_v11 }
 0xd56   :  { %6649 = vset.pattern.permute.xlu2 %v6986_v26  ;;  %v5299_v22 = vpop.permute.xlu1 %5298 }
 0xd57   :  { %v5605_v60 = vmul.f32 %v5299_v22, %v5103_v19  ;;  %v3180_v22 = vmul.f32 %v12666_v31, %v10702_v57 }
 0xd58   :  { %v5311_v32 = vpop.permute.xlu2 %5310 }
 0xd59   :  { %v5607_v45 = vmul.f32 %v5311_v32, %v5103_v19  ;;  %v10681_v15 = vadd.f32 %v5605_v60, %v5061_v16  ;;  %v12667_v16 = vld [vmem:[#allocation301_spill] sm:$0xff] }
 0xd5a   :  { %v4456_v60 = vadd.f32 %v4392_v52, %v12667_v16  ;;  %v12670_v52 = vld [vmem:[#allocation275_spill] sm:$0xff]  ;;  %v12672_v16 = vld [vmem:[#allocation236_spill] sm:$0xff] }
 0xd5b   :  { %v10664_v38 = vadd.f32 %v5607_v45, %v5063_v18  ;;  %v1420_v18 = vmul.f32 %v12657_v13, %v12656_v24  ;;  %v12658_v45 = vld [vmem:[#allocation245_spill] sm:$0xff]  ;;  %v12669_v13 = vld [vmem:[#allocation107_spill] sm:$0xff] }
 0xd5c   :  { %6652 = vset.pattern.permute.xlu1 %v6957_v20  ;;  %v1964_v29 = vmul.f32 %v12659_v12, %v12658_v45 }
 0xd5e   :  { %5404 = vperm.xlu2 %6649, %v12630_v5   ;;  %v12654_v5 = vld [vmem:[#allocation139_spill] sm:$0xff]  ;;  %v2028_v33 = vadd.f32 %v1964_v29, %v1420_v18 }
 0xd5f   :  { %v4393_v49 = vmul.f32 %v12654_v5, %v10676_v11 }
 0xd61   :  { %v4457_v19 = vadd.f32 %v4393_v49, %v3849_v2  ;;  %v10715_v2 = vperm.slane %v12663_v21, 5  ;;  %v2636_v49 = vadd.f32 %v2572_v14, %v2028_v33  ;;  %v10734_v14 = vperm.slane %v12663_v21, 7 }
 0xd63   :  { %v5065_v1 = vadd.f32 %v5001_v42, %v4457_v19  ;;  %v3788_v42 = vmul.f32 %v12668_v17, %v10711_v43  ;;  %v5064_v19 = vadd.f32 %v5000_v34, %v4456_v60  ;;  %v4396_v18 = vmul.f32 %v12669_v13, %v10715_v2  ;;  %v12671_v34 = vld [vmem:[#allocation185_spill] sm:$0xff] }
 0xd64   :  { %5423 = vperm.xlu1 %6652, %v12665_v28   ;;  %v4394_v33 = vmul.f32 %v12671_v34, %v10676_v11  ;;  %v12678_v34 = vld [vmem:[#allocation96_spill] sm:$0xff] }
 0xd66   :  { %6651 = vset.pattern.permute.xlu2 %v6908_v8  ;;  %v5318_v5 = vpop.permute.xlu1 %5317 }
 0xd68   :  { %v5324_v32 = vpop.permute.xlu2 %5323 }
 0xd69   :  { %v5609_v4 = vmul.f32 %v5324_v32, %v10690_v44  ;;  %v5608_v32 = vmul.f32 %v5318_v5, %v10690_v44  ;;  %v12673_v5 = vld [vmem:[#allocation303_spill] sm:$0xff] }
 0xd6b   :  { %v5673_v59 = vadd.f32 %v5609_v4, %v5065_v1  ;;  %v10721_v1 = vperm.slane %v12663_v21, 6  ;;  %v3244_v4 = vadd.f32 %v3180_v22, %v2636_v49  ;;  %v10725_v12 = vadd.f32 %v5608_v32, %v5064_v19  ;;  %v12675_v19 = vld [vmem:[#allocation120_spill] sm:$0xff] }
 0xd6c   :  { %6655 = vset.pattern.permute.xlu1 %v6908_v8  ;;  %v3182_v49 = vmul.f32 %v12673_v5, %v10702_v57  ;;  %v5002_v32 = vmul.f32 %v12675_v19, %v10679_v58  ;;  %v12681_v19 = vld [vmem:[#allocation179_spill] sm:$0xff] }
 0xd6d   :  { %5868 = vperm.xlu0 %6667, %v5673_v59   ;;  %v3852_v29 = vadd.f32 %v3788_v42, %v3244_v4  ;;  %v5004_v39 = vmul.f32 %v10213_v53, %v10721_v1  ;;  %v3786_v59 = vmul.f32 %v12670_v52, %v12650_v27  ;;  %v12674_v42 = vld [vmem:[#allocation250_spill] sm:$0xff]  ;;  %v12676_v4 = vld [vmem:[#allocation251_spill] sm:$0xff] }
 0xd6e   :  { %5417 = vperm.xlu2 %6651, %v12665_v28   ;;  %v3790_v13 = vmul.f32 %v12676_v4, %v10711_v43  ;;  %v12682_v4 = vld [vmem:[#allocation136_spill] sm:$0xff] }
 0xd6f   :  { %v4460_v46 = vadd.f32 %v4396_v18, %v3852_v29  ;;  %v3850_v53 = vadd.f32 %v3786_v59, %v12672_v16  ;;  %v12677_v29 = vld [vmem:[#allocation20_spill] sm:$0xff] }
 0xd71   :  { %v5068_v31 = vadd.f32 %v5004_v39, %v4460_v46  ;;  %v4458_v17 = vadd.f32 %v4394_v33, %v3850_v53  ;;  %v3246_v39 = vadd.f32 %v3182_v49, %v12677_v29  ;;  %v4398_v33 = vmul.f32 %v12678_v34, %v10715_v2 }
 0xd73   :  { %v5066_v52 = vadd.f32 %v5002_v32, %v4458_v17  ;;  %v3854_v46 = vadd.f32 %v3790_v13, %v3246_v39  ;;  %v10763_v32 = vperm.slane %v12681_v19, 4  ;;  %v3789_v13 = vmul.f32 %v12682_v4, %v10711_v43  ;;  %v12688_v4 = vld [vmem:[#allocation213_spill] sm:$0xff] }
 0xd74   :  { %5442 = vperm.xlu1 %6655, %v12674_v42  }
 0xd75   :  { %v4462_v16 = vadd.f32 %v4398_v33, %v3854_v46  ;;  %6765 = vrcp.f32 %v10763_v32  ;;  %v12685_v33 = vld [vmem:[#allocation232_spill] sm:$0xff]  ;;  %vm849_vm10 = vweird.f32 %v10763_v32 }
 0xd76   :  { %6654 = vset.pattern.permute.xlu2 %v6914_v10  ;;  %v5330_v18 = vpop.permute.xlu1 %5329 }
 0xd77   :  { %v5610_v59 = vmul.f32 %v5330_v18, %v10690_v44  ;;  %v12683_v18 = vld [vmem:[#allocation47_spill] sm:$0xff] }
 0xd78   :  { %v5343_v9 = vpop.permute.xlu2 %5342 }
 0xd79   :  { %v5612_v22 = vmul.f32 %v5343_v9, %v10734_v14  ;;  %v10750_v9 = vadd.f32 %v5610_v59, %v5066_v52  ;;  %v12684_v52 = vld [vmem:[#allocation226_spill] sm:$0xff] }
 0xd7a   :  { %v5005_v59 = vmul.f32 %v12684_v52, %v10721_v1 }
 0xd7b   :  { %v5676_v60 = vadd.f32 %v5612_v22, %v5068_v31  ;;  %v5006_v22 = vmul.f32 %v10223_v0, %v10721_v1  ;;  %v4397_v0 = vmul.f32 %v12683_v18, %v10715_v2  ;;  %v12689_v18 = vld [vmem:[#allocation82_spill] sm:$0xff] }
 0xd7c   :  { %6657 = vset.pattern.permute.xlu1 %v6986_v26 }
 0xd7d   :  { %5877 = vperm.xlu0 %6667, %v5676_v60   ;;  %v12680_v60 = vld [vmem:[#allocation248_spill] sm:$0xff]  ;;  %v5070_v49 = vadd.f32 %v5006_v22, %v4462_v16  ;;  %v12686_v16 = vld [vmem:[#allocation38_spill] sm:$0xff] }
 0xd7e   :  { %5435 = vperm.xlu2 %6654, %v12665_v28   ;;  %v12679_v28 = vld [vmem:[#allocation147_spill] sm:$0xff] }
 0xd7f   :  { %v3181_v31 = vmul.f32 %v12679_v28, %v10702_v57  ;;  %v1967_v28 = vmul.f32 %v12685_v33, %v12658_v45 }
 0xd81   :  { %v3245_v5 = vadd.f32 %v3181_v31, %v12680_v60  ;;  %v12687_v60 = vld [vmem:[#allocation254_spill] sm:$0xff] }
 0xd83   :  { %v3853_v39 = vadd.f32 %v3789_v13, %v3245_v5  ;;  %v2575_v5 = vmul.f32 %v12687_v60, %v12661_v7  ;;  %v3183_v13 = vmul.f32 %v12688_v4, %v10702_v57  ;;  %v12694_v4 = vld [vmem:[#allocation153_spill] sm:$0xff] }
 0xd84   :  { %5454 = vperm.xlu1 %6657, %v12674_v42  }
 0xd85   :  { %v4461_v46 = vadd.f32 %v4397_v0, %v3853_v39  ;;  %v10790_v0 = vperm.slane %v12689_v18, 7  ;;  %v12749_v18 = vld [vmem:[#allocation10_spill] sm:$0xff] }
 0xd86   :  { %6656 = vset.pattern.permute.xlu2 %v6957_v20  ;;  %v5349_v34 = vpop.permute.xlu1 %5348 }
 0xd87   :  { %v5069_v31 = vadd.f32 %v5005_v59, %v4461_v46  ;;  %v5613_v22 = vmul.f32 %v5349_v34, %v10734_v14  ;;  %v12691_v46 = vld [vmem:[#allocation111_spill] sm:$0xff] }
 0xd88   :  { %v5355_v53 = vpop.permute.xlu2 %5354  ;;  %v4399_v34 = vmul.f32 %v12691_v46, %v10715_v2 }
 0xd89   :  { %v5614_v17 = vmul.f32 %v5355_v53, %v10734_v14  ;;  %v1423_v53 = vmul.f32 %v12686_v16, %v12656_v24  ;;  %v12690_v24 = vld [vmem:[#allocation155_spill] sm:$0xff] }
 0xd8a   :  { %v3791_v39 = vmul.f32 %v12690_v24, %v10711_v43  ;;  %v12692_v16 = vld [vmem:[#allocation259_spill] sm:$0xff] }
 0xd8b   :  { %v10769_v29 = vadd.f32 %v5614_v17, %v5070_v49  ;;  %v10783_v49 = vadd.f32 %v5613_v22, %v5069_v31  ;;  %v6766_v17 = vpop.eup %6765 }
 0xd8c   :  { %6660 = vset.pattern.permute.xlu1 %v6957_v20  ;;  %v845_v7 = vmul.f32 %v6766_v17, %v10763_v32  ;;  %vm850_vm9 = vweird.f32 %v6766_v17 }
 0xd8d   :  { %vm851_vm11 = vmor %vm849_vm10, %vm850_vm9  ;;  %vm5963_vm10 = vcmask 130112  }
 0xd8e   :  { %5448 = vperm.xlu2 %6656, %v12674_v42   ;;  %v2031_v42 = vadd.f32 %v1967_v28, %v1423_v53  ;;  %v846_v22 = vsub.f32 1.0, %v845_v7  ;;  %v5007_v53 = vmul.f32 %v12692_v16, %v10721_v1  ;;  %v12696_v1 = vld [vmem:[#allocation302_spill] sm:$0xff] }
 0xd8f   :  { %v3186_v46 = vmul.f32 %v12696_v1, %v10182_v56 }
 0xd90   :  { %v2639_v45 = vadd.f32 %v2575_v5, %v2031_v42  ;;  %v847_v60 = vmul.f32 %v6766_v17, %v846_v22  ;;  %v12693_v5 = vld [vmem:[#allocation62_spill] sm:$0xff] }
 0xd91   :  { %v1426_v42 = vmul.f32 %v12693_v5, %v12465_v36  ;;  %v855_v36 = vand.u32 2147483648, %v10763_v32  ;;  %v12702_v5 = vld [vmem:[#allocation117_spill] sm:$0xff] }
 0xd92   :  { %v3247_v59 = vadd.f32 %v3183_v13, %v2639_v45  ;;  %v1970_v13 = vmul.f32 %v12694_v4, %v12467_v63 }
 0xd94   :  { %v3855_v28 = vadd.f32 %v3791_v39, %v3247_v59  ;;  %v2034_v59 = vadd.f32 %v1970_v13, %v1426_v42  ;;  %v12704_v13 = vld [vmem:[#allocation230_spill] sm:$0xff] }
 0xd96   :  { %6659 = vset.pattern.permute.xlu2 %v6908_v8  ;;  %v6810_v8 = vld [vmem:[%s11507_s1 + $0x70] sm:$0xff]  ;;  %v4463_v43 = vadd.f32 %v4399_v34, %v3855_v28  ;;  %v5361_v2 = vpop.permute.xlu1 %5360  ;;  %v853_v34 = vand.u32 2147483647, %v10763_v32  ;;  %v12703_v32 = vld [vmem:[#allocation43_spill] sm:$0xff]  ;;  %s6838_s1 = smov [#allocation3]  }
 0xd97   :  { %v5462_v33 = vperm.slane %v6810_v8, 7  ;;  %v5615_v24 = vmul.f32 %v5361_v2, %v10734_v14  ;;  %v12698_v14 = vld [vmem:[#allocation65_spill] sm:$0xff]  ;;  %v12701_v2 = vld [vmem:[#allocation328_spill] sm:$0xff]  ;;  %s6198_s6 = sshll.u32 %s6838_s1, 4  ;;  %s6199_s6 = int_to_ptr.vmem [resolvable:$true] %s6198_s6 }
 0xd98   :  { %v5374_v52 = vpop.permute.xlu2 %5373  ;;  %v5071_v45 = vadd.f32 %v5007_v53, %v4463_v43  ;;  %v12699_v8 = vld [vmem:[#allocation281_spill] sm:$0xff]  ;;  %vm854_vm12 = vcmp.eq.f32.partialorder %v853_v34, 8.507059e+37  ;;  %v3794_v42 = vmul.f32 %v12702_v5, %v12701_v2  ;;  %v12717_v2 = vld [vmem:[#allocation260_spill] sm:$0xff]  ;;  %v12718_v5 = vld [vmem:[#allocation255_spill] sm:$0xff] }
 0xd99   :  { %v5617_v57 = vmul.f32 %v5374_v52, %v10790_v0  ;;  %5473 = vperm.xlu1 %6660, %v5462_v33   ;;  %v848_v52 = vadd.f32 %v6766_v17, %v847_v60  ;;  %v12700_v28 = vld [vmem:[#allocation157_spill] sm:$0xff]  ;;  %v856_v60 = vor.u32 1.1754944e-38, %v855_v36  ;;  %v12712_v36 = vld [vmem:[#allocation284_spill] sm:$0xff] }
 0xd9a   :  { %v5679_v7 = vadd.f32 %v5615_v24, %v5071_v45  ;;  %v1973_v22 = vmul.f32 %v12700_v28, %v12699_v8  ;;  %v4402_v45 = vmul.f32 %v12704_v13, %v12703_v32  ;;  %v12705_v24 = vld [vmem:[#allocation304_spill] sm:$0xff]  ;;  %v12711_v34 = vld [vmem:[#allocation89_spill] sm:$0xff]  ;;  %v12714_v8 = vld [vmem:[#allocation83_spill] sm:$0xff]  ;;  %v4405_v32 = vmul.f32 %v12718_v5, %v12717_v2 }
 0xd9b   :  { %v10802_v31 = vadd.f32 %v5617_v57, %v10236_v41  ;;  %v12695_v41 = vld [vmem:[#allocation257_spill] sm:$0xff]  ;;  %v852_v43 = vsel %vm851_vm11, %v6766_v17, %v848_v52  ;;  %v12710_v52 = vld [vmem:[#allocation307_spill] sm:$0xff]  ;;  %vm5967_vm11 = vcmask 195712  }
 0xd9c   :  { %v2578_v39 = vmul.f32 %v12695_v41, %v12469_v54  ;;  %5886 = vperm.xlu0 %6667, %v5679_v7   ;;  %v12697_v54 = vld [vmem:[#allocation90_spill] sm:$0xff]  ;;  %v12709_v17 = vld [vmem:[#allocation357_spill] sm:$0xff] }
 0xd9d   :  { %v1429_v57 = vmul.f32 %v12698_v14, %v12697_v54  ;;  %v12707_v7 = vld [vmem:[#allocation358_spill] sm:$0xff]  ;;  %v5010_v54 = vmul.f32 %v12712_v36, %v12711_v34 }
 0xd9e   :  { %5467 = vperm.xlu2 %6659, %v5462_v33   ;;  %v2642_v63 = vadd.f32 %v2578_v39, %v2034_v59  ;;  %v857_v39 = vsel %vm854_vm12, %v856_v60, %v852_v43  ;;  %v12708_v59 = vld [vmem:[#allocation128_spill] sm:$0xff]  ;;  %vm5971_vm12 = vcmask 261312  }
 0xd9f   :  { %v2037_v4 = vadd.f32 %v1973_v22, %v1429_v57  ;;  %v2581_v1 = vmul.f32 %v12708_v59, %v12707_v7  ;;  %v12713_v57 = vld [vmem:[#allocation359_spill] sm:$0xff]  ;;  %v12720_v7 = vld [vmem:[#allocation241_spill] sm:$0xff] }
 0xda0   :  { %v3250_v16 = vadd.f32 %v3186_v46, %v2642_v63  ;;  %v3189_v46 = vmul.f32 %v12710_v52, %v12709_v17  ;;  %v3797_v28 = vmul.f32 %v12714_v8, %v12713_v57  ;;  %v12722_v52 = vld [vmem:[#allocation76_spill] sm:$0xff]  ;;  %v12725_v8 = vld [vmem:[#allocation159_spill] sm:$0xff] }
 0xda1   :  { %6662 = vset.pattern.permute.xlu1 %v6914_v10  ;;  %v2645_v14 = vadd.f32 %v2581_v1, %v2037_v4  ;;  %v12721_v1 = vld [vmem:[#allocation86_spill] sm:$0xff] }
 0xda2   :  { %v3858_v63 = vadd.f32 %v3794_v42, %v3250_v16 }
 0xda3   :  { %v3253_v60 = vadd.f32 %v3189_v46, %v2645_v14  ;;  %v10857_v46 = vperm.slane %v12722_v52, 7  ;;  %v12724_v14 = vld [vmem:[#allocation162_spill] sm:$0xff] }
 0xda4   :  { %v4466_v22 = vadd.f32 %v4402_v45, %v3858_v63  ;;  %v12723_v63 = vld [vmem:[#allocation278_spill] sm:$0xff] }
 0xda5   :  { %v3861_v42 = vadd.f32 %v3797_v28, %v3253_v60 }
 0xda6   :  { %6661 = vset.pattern.permute.xlu2 %v6986_v26  ;;  %v5380_v43 = vpop.permute.xlu1 %5379  ;;  %v5074_v13 = vadd.f32 %v5010_v54, %v4466_v22  ;;  %v12726_v22 = vld [vmem:[#allocation148_spill] sm:$0xff] }
 0xda7   :  { %v5618_v16 = vmul.f32 %v5380_v43, %v10790_v0 }
 0xda8   :  { %v5386_v56 = vpop.permute.xlu2 %5385 }
 0xda9   :  { %v5619_v53 = vmul.f32 %v5386_v56, %v10790_v0  ;;  %5485 = vperm.xlu1 %6662, %v5462_v33   ;;  %v12715_v56 = vld [vmem:[#allocation73_spill] sm:$0xff]  ;;  %v5682_v4 = vadd.f32 %v5618_v16, %v5074_v13 }
 0xdaa   :  { %v12730_v16 = vld [vmem:[#allocation309_spill] sm:$0xff] }
 0xdab   :  { %v10830_v41 = vadd.f32 %v5619_v53, %v12705_v24  ;;  %v10841_v53 = vmul.f32 %v12715_v56, %v857_v39  ;;  %v12719_v24 = vld [vmem:[#allocation114_spill] sm:$0xff]  ;;  %v4469_v39 = vadd.f32 %v4405_v32, %v3861_v42  ;;  %5895 = vperm.xlu0 %6667, %v5682_v4   ;;  %v5621_v56 = vmul.f32 %v12726_v22, %v10857_v46  ;;  %v12736_v22 = vld [vmem:[#allocation361_spill] sm:$0xff] }
 0xdac   :  { %v5014_v17 = vmul.f32 %v12721_v1, %v12719_v24  ;;  %v12729_v32 = vld [vmem:[#allocation258_spill] sm:$0xff] }
 0xdad   :  { %12706 = vst [vmem:[#allocation191_spill] sm:$0xff] %v10830_v41  ;;  %v10849_v59 = vperm.slane %v10841_v53, 0  ;;  %v10852_v45 = vperm.slane %v10841_v53, 1  ;;  %v10870_v60 = vperm.slane %v10841_v53, 2  ;;  %v12777_v41 = vld [vmem:[#allocation264_spill] sm:$0xff] }
 0xdae   :  { %5479 = vperm.xlu2 %6661, %v5462_v33   ;;  %12716 = vst [vmem:[#allocation199_spill] sm:$0xff] %v10841_v53  ;;  %v5013_v33 = vmul.f32 %v12720_v7, %v12719_v24  ;;  %v5078_v28 = vadd.f32 %v5014_v17, %v12725_v8  ;;  %v10882_v7 = vperm.slane %v10841_v53, 4  ;;  %v5118_v17 = vpop.permute.xlu0 %5117 }
 0xdaf   :  { %v1432_v34 = vmul.f32 %v12723_v63, %v10849_v59  ;;  %v1976_v57 = vmul.f32 %v12724_v14, %v10852_v45  ;;  %v2584_v13 = vmul.f32 %v12729_v32, %v10870_v60  ;;  %v12735_v14 = vld [vmem:[#allocation253_spill] sm:$0xff] }
 0xdb0   :  { %v5077_v36 = vadd.f32 %v5013_v33, %v4469_v39  ;;  %12731 = vst [vmem:[#allocation343_spill] sm:$0xff] %v10882_v7  ;;  %v12732_v33 = vld [vmem:[#allocation288_spill] sm:$0xff] }
 0xdb1   :  { %6664 = vset.pattern.permute.xlu1 %v6986_v26  ;;  %v2040_v26 = vadd.f32 %v1976_v57, %v1432_v34  ;;  %v12733_v39 = vld [vmem:[#allocation332_spill] sm:$0xff]  ;;  %v5576_v57 = vmul.f32 %v5118_v17, %v12735_v14 }
 0xdb2   :  { %v5685_v2 = vadd.f32 %v5621_v56, %v5077_v36  ;;  %v3800_v1 = vmul.f32 %v12733_v39, %v10882_v7 }
 0xdb3   :  { %v2648_v4 = vadd.f32 %v2584_v13, %v2040_v26  ;;  %v12740_v13 = vld [vmem:[#allocation221_spill] sm:$0xff] }
 0xdb4   :  { %5904 = vperm.xlu0 %6667, %v5685_v2   ;;  %v12739_v2 = vld [vmem:[#allocation56_spill] sm:$0xff] }
 0xdb5   :  { %v5640_v32 = vadd.f32 %v5576_v57, %v12739_v2 }
 0xdb6   :  { %6663 = vset.pattern.permute.xlu2 %v6957_v20  ;;  %v10873_v20 = vperm.slane %v10841_v53, 3  ;;  %v5393_v63 = vpop.permute.xlu1 %5392 }
 0xdb7   :  { %v5620_v36 = vmul.f32 %v5393_v63, %v10857_v46 }
 0xdb8   :  { %v5405_v54 = vpop.permute.xlu2 %5404  ;;  %12727 = vst [vmem:[#allocation342_spill] sm:$0xff] %v10873_v20  ;;  %v3192_v42 = vmul.f32 %v12730_v16, %v10873_v20 }
 0xdb9   :  { %v5622_v43 = vmul.f32 %v5405_v54, %v10857_v46  ;;  %5504 = vperm.xlu1 %6664, %v12732_v33   ;;  %v10890_v54 = vperm.slane %v10841_v53, 5  ;;  %v10897_v56 = vadd.f32 %v5620_v36, %v12736_v22  ;;  %v12744_v22 = vld [vmem:[#allocation184_spill] sm:$0xff] }
 0xdba   :  { %v3256_v34 = vadd.f32 %v3192_v42, %v2648_v4  ;;  %v12741_v42 = vmov 0   ;;  %v10907_v4 = vperm.slane %v10841_v53, 7 }
 0xdbb   :  { %v10875_v5 = vadd.f32 %v5622_v43, %v5078_v28  ;;  %12734 = vst [vmem:[#allocation323_spill] sm:$0xff] %v10890_v54  ;;  %v10894_v28 = vperm.slane %v10841_v53, 6  ;;  %v12738_v43 = vld [vmem:[#allocation6_spill] sm:$0xff] }
 0xdbc   :  { %v3864_v8 = vadd.f32 %v3800_v1, %v3256_v34  ;;  %12737 = vst [vmem:[#allocation344_spill] sm:$0xff] %v10897_v56  ;;  %v4408_v26 = vmul.f32 %v12738_v43, %v10890_v54  ;;  %v12742_v1 = vld [vmem:[#allocation49_spill] sm:$0xff]  ;;  %v5579_v43 = vmul.f32 %v12744_v22, %v12735_v14  ;;  %v12753_v22 = vld [vmem:[#allocation335_spill] sm:$0xff] }
 0xdbd   :  { %12728 = vst [vmem:[#allocation181_spill] sm:$0xff] %v10875_v5  ;;  %v5016_v16 = vmul.f32 %v12740_v13, %v10894_v28  ;;  %v1435_v17 = vmul.f32 %v12742_v1, %v10849_v59  ;;  %v12743_v34 = vld [vmem:[#allocation165_spill] sm:$0xff]  ;;  %v12748_v1 = vld [vmem:[#allocation55_spill] sm:$0xff]  ;;  %v12760_v5 = vld [vmem:[#allocation144_spill] sm:$0xff] }
 0xdbe   :  { %5498 = vperm.xlu2 %6663, %v12732_v33   ;;  %v4472_v39 = vadd.f32 %v4408_v26, %v3864_v8  ;;  %v1979_v36 = vmul.f32 %v12743_v34, %v10852_v45  ;;  %v12746_v8 = vld [vmem:[#allocation346_spill] sm:$0xff]  ;;  %v12747_v26 = vld [vmem:[#allocation84_spill] sm:$0xff]  ;;  %v5015_v48 = vmul.f32 %v12748_v1, %v12719_v24  ;;  %v5643_v61 = vadd.f32 %v5579_v43, %v12749_v18 }
 0xdbf   :  { %v12751_v34 = vld [vmem:[#allocation48_spill] sm:$0xff] }
 0xdc0   :  { %v5080_v57 = vadd.f32 %v5016_v16, %v4472_v39  ;;  %v2043_v21 = vadd.f32 %v1979_v36, %v1435_v17  ;;  %v12750_v39 = vld [vmem:[#allocation252_spill] sm:$0xff] }
 0xdc1   :  { %6666 = vset.pattern.permute.xlu1 %v12741_v42  ;;  %v12752_v17 = vld [vmem:[#allocation100_spill] sm:$0xff] }
 0xdc2   :  { %5769 = vperm.xlu1 %6666, %v5640_v32   ;;  %v4973_v32 = vmul.f32 %v12747_v26, %v12746_v8  ;;  %v1977_v36 = vmul.f32 %v12752_v17, %v10852_v45  ;;  %v12759_v17 = vld [vmem:[#allocation246_spill] sm:$0xff] }
 0xdc6   :  { %6665 = vset.pattern.permute.xlu2 %v6914_v10  ;;  %v12745_v10 = vld [vmem:[#allocation261_spill] sm:$0xff]  ;;  %v5411_v24 = vpop.permute.xlu1 %5410 }
 0xdc7   :  { %v2587_v13 = vmul.f32 %v12745_v10, %v10870_v60  ;;  %v12754_v10 = vld [vmem:[#allocation223_spill] sm:$0xff] }
 0xdc8   :  { %v5418_v63 = vpop.permute.xlu2 %5417  ;;  %v5037_v18 = vadd.f32 %v4973_v32, %v12754_v10 }
 0xdc9   :  { %v5624_v2 = vmul.f32 %v5418_v63, %v10907_v4  ;;  %v2651_v16 = vadd.f32 %v2587_v13, %v2043_v21  ;;  %v3195_v63 = vmul.f32 %v12750_v39, %v10873_v20  ;;  %v12756_v21 = vld [vmem:[#allocation186_spill] sm:$0xff]  ;;  %v12757_v13 = vld [vmem:[#allocation267_spill] sm:$0xff] }
 0xdca   :  { %5778 = vperm.xlu1 %6666, %v5643_v61   ;;  %v5578_v61 = vmul.f32 %v12756_v21, %v12735_v14  ;;  %v2585_v26 = vmul.f32 %v12757_v13, %v10870_v60  ;;  %v12758_v39 = vld [vmem:[#allocation263_spill] sm:$0xff]  ;;  %v12764_v21 = vld [vmem:[#allocation180_spill] sm:$0xff] }
 0xdcb   :  { %v5688_v53 = vadd.f32 %v5624_v2, %v5080_v57  ;;  %v1433_v57 = vmul.f32 %v12751_v34, %v10849_v59  ;;  %v3803_v2 = vmul.f32 %v12753_v22, %v10882_v7  ;;  %v3259_v1 = vadd.f32 %v3195_v63, %v2651_v16  ;;  %v12765_v63 = vld [vmem:[#allocation105_spill] sm:$0xff] }
 0xdcc   :  { %v4411_v34 = vmul.f32 %v12758_v39, %v10890_v54  ;;  %v5581_v22 = vmul.f32 %v12760_v5, %v12759_v17  ;;  %v5642_v13 = vadd.f32 %v5578_v61, %v12764_v21  ;;  %v3801_v39 = vmul.f32 %v12765_v63, %v10882_v7  ;;  %v12772_v61 = vld [vmem:[#allocation66_spill] sm:$0xff]  ;;  %v12775_v63 = vld [vmem:[#allocation215_spill] sm:$0xff] }
 0xdcd   :  { %5913 = vperm.xlu0 %6667, %v5688_v53   ;;  %v12755_v53 = vld [vmem:[#allocation193_spill] sm:$0xff]  ;;  %v2041_v32 = vadd.f32 %v1977_v36, %v1433_v57  ;;  %v12768_v36 = vld [vmem:[#allocation311_spill] sm:$0xff]  ;;  %v12773_v21 = vld [vmem:[#allocation130_spill] sm:$0xff] }
 0xdce   :  { %5510 = vperm.xlu2 %6665, %v12732_v33   ;;  %v5079_v43 = vadd.f32 %v5015_v48, %v12755_v53  ;;  %v5623_v33 = vmul.f32 %v5411_v24, %v10857_v46  ;;  %v12762_v48 = vld [vmem:[#allocation305_spill] sm:$0xff]  ;;  %v3867_v53 = vadd.f32 %v3803_v2, %v3259_v1  ;;  %v5645_v14 = vadd.f32 %v5581_v22, %v5037_v18  ;;  %v12763_v46 = vld [vmem:[#allocation306_spill] sm:$0xff]  ;;  %v12770_v1 = vld [vmem:[#allocation312_spill] sm:$0xff] }
 0xdcf   :  { %v3193_v10 = vmul.f32 %v12762_v48, %v10873_v20  ;;  %v5019_v24 = vmul.f32 %v12763_v46, %v10894_v28  ;;  %v2649_v16 = vadd.f32 %v2585_v26, %v2041_v32  ;;  %v12769_v2 = vld [vmem:[#allocation37_spill] sm:$0xff]  ;;  %v12771_v22 = vld [vmem:[#allocation168_spill] sm:$0xff]  ;;  %v4409_v26 = vmul.f32 %v12772_v61, %v10890_v54  ;;  %v12781_v7 = vld [vmem:[#allocation347_spill] sm:$0xff] }
 0xdd0   :  { %v10943_v52 = vadd.f32 %v5623_v33, %v5079_v43  ;;  %v4475_v5 = vadd.f32 %v4411_v34, %v3867_v53  ;;  %v12766_v43 = vld [vmem:[#allocation341_spill] sm:$0xff]  ;;  %v12767_v33 = vld [vmem:[#allocation118_spill] sm:$0xff]  ;;  %v1437_v18 = vmul.f32 %v12769_v2, %v12768_v36  ;;  %v1981_v48 = vmul.f32 %v12771_v22, %v12770_v1 }
 0xdd1   :  { %v4976_v57 = vmul.f32 %v12767_v33, %v12766_v43  ;;  %v3257_v46 = vadd.f32 %v3193_v10, %v2649_v16  ;;  %v5580_v34 = vmul.f32 %v12773_v21, %v12759_v17  ;;  %v12774_v53 = vld [vmem:[#allocation189_spill] sm:$0xff]  ;;  %v10970_v16 = vperm.slane %v12681_v19, 7 }
 0xdd2   :  { %12761 = vst [vmem:[#allocation195_spill] sm:$0xff] %v10943_v52  ;;  %5784 = vperm.xlu1 %6666, %v5645_v14   ;;  %v5083_v32 = vadd.f32 %v5019_v24, %v4475_v5  ;;  %v5584_v33 = vmul.f32 %v12775_v63, %v12774_v53  ;;  %v2045_v61 = vadd.f32 %v1981_v48, %v1437_v18  ;;  %v12779_v24 = vld [vmem:[#allocation68_spill] sm:$0xff]  ;;  %v12780_v5 = vld [vmem:[#allocation315_spill] sm:$0xff] }
 0xdd3   :  { %v3865_v52 = vadd.f32 %v3801_v39, %v3257_v46  ;;  %v5040_v22 = vadd.f32 %v4976_v57, %v12778_v50  ;;  %v3197_v54 = vmul.f32 %v12780_v5, %v12779_v24  ;;  %v5644_v56 = vadd.f32 %v5580_v34, %v12781_v7  ;;  %v12783_v39 = vld [vmem:[#allocation314_spill] sm:$0xff]  ;;  %v12784_v46 = vld [vmem:[#allocation333_spill] sm:$0xff]  ;;  %v12785_v57 = vld [vmem:[#allocation192_spill] sm:$0xff] }
 0xdd4   :  { %v3805_v50 = vmul.f32 %v12784_v46, %v12783_v39  ;;  %v4975_v19 = vmul.f32 %v12785_v57, %v12746_v8  ;;  %6767 = vrcp.f32 %v10970_v16  ;;  %v12786_v18 = vld [vmem:[#allocation91_spill] sm:$0xff]  ;;  %v12798_v57 = vld [vmem:[#allocation21_spill] sm:$0xff]  ;;  %vm894_vm14 = vweird.f32 %v10970_v16 }
 0xdd5   :  { %v4473_v21 = vadd.f32 %v4409_v26, %v3865_v52  ;;  %v5648_v63 = vadd.f32 %v5584_v33, %v5040_v22  ;;  %v10983_v52 = vperm.slane %v12786_v18, 5  ;;  %v12788_v26 = vld [vmem:[#allocation11_spill] sm:$0xff]  ;;  %v12791_v22 = vld [vmem:[#allocation348_spill] sm:$0xff] }
 0xdd6   :  { %6668 = vset.pattern.permute.xlu2 %v12741_v42  ;;  %v5424_v7 = vpop.permute.xlu1 %5423  ;;  %v12790_v8 = vld [vmem:[#allocation175_spill] sm:$0xff] }
 0xdd7   :  { %5775 = vperm.xlu2 %6668, %v5642_v13   ;;  %v12776_v13 = vld [vmem:[#allocation313_spill] sm:$0xff]  ;;  %12787 = vst [vmem:[#allocation283_spill] sm:$0xff] %v10983_v52  ;;  %v5625_v33 = vmul.f32 %v5424_v7, %v10907_v4 }
 0xdd8   :  { %v5436_v42 = vpop.permute.xlu2 %5435  ;;  %v2589_v2 = vmul.f32 %v12777_v41, %v12776_v13 }
 0xdd9   :  { %v5627_v14 = vmul.f32 %v5436_v42, %v10907_v4  ;;  %v12782_v42 = vld [vmem:[#allocation143_spill] sm:$0xff] }
 0xdda   :  { %v5017_v20 = vmul.f32 %v12782_v42, %v10894_v28  ;;  %v2653_v41 = vadd.f32 %v2589_v2, %v2045_v61  ;;  %5793 = vperm.xlu1 %6666, %v5648_v63   ;;  %v12794_v63 = vld [vmem:[#allocation36_spill] sm:$0xff]  ;;  %v11002_v46 = vpop.eup %6767 }
 0xddb   :  { %v5691_v10 = vadd.f32 %v5627_v14, %v5083_v32  ;;  %v5583_v32 = vmul.f32 %v12788_v26, %v12759_v17  ;;  %v10989_v14 = vperm.slane %v12786_v18, 6  ;;  %v12795_v42 = vld [vmem:[#allocation140_spill] sm:$0xff]  ;;  %vm895_vm13 = vweird.f32 %v11002_v46 }
 0xddc   :  { %v3261_v48 = vadd.f32 %v3197_v54, %v2653_v41  ;;  %v5081_v34 = vadd.f32 %v5017_v20, %v4473_v21  ;;  %v4978_v54 = vmul.f32 %v12794_v63, %v12766_v43  ;;  %v4413_v17 = vmul.f32 %v12795_v42, %v10983_v52  ;;  %v12796_v20 = vld [vmem:[#allocation51_spill] sm:$0xff]  ;;  %vm896_vm15 = vmor %vm894_vm14, %vm895_vm13 }
 0xddd   :  { %5922 = vperm.xlu0 %6667, %v5691_v10   ;;  %12789 = vst [vmem:[#allocation129_spill] sm:$0xff] %v10989_v14  ;;  %v12792_v10 = vld [vmem:[#allocation17_spill] sm:$0xff]  ;;  %v5021_v21 = vmul.f32 %v12796_v20, %v10989_v14 }
 0xdde   :  { %v3869_v2 = vadd.f32 %v3805_v50, %v3261_v48  ;;  %v5039_v61 = vadd.f32 %v4975_v19, %v12792_v10  ;;  %v10994_v5 = vadd.f32 %v5625_v33, %v5081_v34  ;;  %v11005_v50 = vperm.slane %v12786_v18, 7  ;;  %v12799_v48 = vld [vmem:[#allocation190_spill] sm:$0xff]  ;;  %v12801_v10 = vld [vmem:[#allocation167_spill] sm:$0xff] }
 0xddf   :  { %5781 = vperm.xlu2 %6668, %v5644_v56   ;;  %v4370_v56 = vmul.f32 %v12791_v22, %v12790_v8  ;;  %v890_v8 = vmul.f32 %v11002_v46, %v10970_v16 }
 0xde0   :  { %12793 = vst [vmem:[#allocation204_spill] sm:$0xff] %v10994_v5  ;;  %v5647_v41 = vadd.f32 %v5583_v32, %v5039_v61  ;;  %v4477_v19 = vadd.f32 %v4413_v17, %v3869_v2  ;;  %v12800_v32 = vld [vmem:[#allocation116_spill] sm:$0xff]  ;;  %v4412_v61 = vmul.f32 %v12801_v10, %v10983_v52  ;;  %v12820_v5 = vld [vmem:[#allocation319_spill] sm:$0xff] }
 0xde1   :  { %12797 = vst [vmem:[#allocation13_spill] sm:$0xff] %v11005_v50  ;;  %v4434_v7 = vadd.f32 %v4370_v56, %v12798_v57  ;;  %v5586_v22 = vmul.f32 %v12800_v32, %v12774_v53  ;;  %v12803_v56 = vld [vmem:[#allocation88_spill] sm:$0xff]  ;;  %v891_v17 = vsub.f32 1.0, %v890_v8  ;;  %v12806_v53 = vld [vmem:[#allocation50_spill] sm:$0xff] }
 0xde2   :  { %5802 = vperm.xlu1 %6666, %v12799_v48   ;;  %v5085_v34 = vadd.f32 %v5021_v21, %v4477_v19  ;;  %v5020_v42 = vmul.f32 %v12803_v56, %v10989_v14  ;;  %v12805_v21 = vld [vmem:[#allocation317_spill] sm:$0xff]  ;;  %v1438_v57 = vmul.f32 %v12806_v53, %v12768_v36  ;;  %v12812_v53 = vld [vmem:[#allocation308_spill] sm:$0xff] }
 0xde3   :  { %v5042_v43 = vadd.f32 %v4978_v54, %v4434_v7  ;;  %v12804_v54 = vld [vmem:[#allocation79_spill] sm:$0xff]  ;;  %v892_v32 = vmul.f32 %v11002_v46, %v891_v17 }
 0xde4   :  { %v11021_v20 = vperm.slane %v12804_v54, 4  ;;  %v12807_v7 = vld [vmem:[#allocation171_spill] sm:$0xff] }
 0xde5   :  { %v5650_v2 = vadd.f32 %v5586_v22, %v5042_v43  ;;  %v1982_v19 = vmul.f32 %v12807_v7, %v12770_v1  ;;  %v12808_v43 = vld [vmem:[#allocation339_spill] sm:$0xff]  ;;  %v12809_v22 = vld [vmem:[#allocation270_spill] sm:$0xff]  ;;  %v3198_v7 = vmul.f32 %v12812_v53, %v12779_v24 }
 0xde6   :  { %v5443_v48 = vpop.permute.xlu1 %5442  ;;  %v2590_v10 = vmul.f32 %v12809_v22, %v12776_v13  ;;  %v900_v22 = vand.u32 2147483648, %v10970_v16 }
 0xde7   :  { %5790 = vperm.xlu2 %6668, %v5647_v41   ;;  %v4476_v41 = vadd.f32 %v4412_v61, %v12805_v21  ;;  %v5628_v8 = vmul.f32 %v5443_v48, %v11005_v50  ;;  %v12810_v61 = vld [vmem:[#allocation362_spill] sm:$0xff]  ;;  %v2046_v21 = vadd.f32 %v1982_v19, %v1438_v57  ;;  %v12814_v48 = vld [vmem:[#allocation101_spill] sm:$0xff]  ;;  %v11057_v57 = vperm.slane %v12804_v54, 7  ;;  %v12816_v19 = vld [vmem:[#allocation87_spill] sm:$0xff] }
 0xde8   :  { %v5449_v26 = vpop.permute.xlu2 %5448 }
 0xde9   :  { %v5629_v33 = vmul.f32 %v5449_v26, %v11005_v50  ;;  %v11030_v26 = vperm.slane %v12804_v54, 5  ;;  %v2654_v18 = vadd.f32 %v2590_v10, %v2046_v21  ;;  %v12817_v10 = vld [vmem:[#allocation8_spill] sm:$0xff] }
 0xdea   :  { %5811 = vperm.xlu1 %6666, %v10511_v3   ;;  %v11037_v3 = vperm.slane %v12804_v54, 6  ;;  %v4414_v21 = vmul.f32 %v12817_v10, %v10983_v52 }
 0xdeb   :  { %v11016_v63 = vadd.f32 %v5629_v33, %v5085_v34  ;;  %v3808_v34 = vmul.f32 %v12808_v43, %v11021_v20  ;;  %v5084_v33 = vadd.f32 %v5020_v42, %v4476_v41  ;;  %v12813_v42 = vld [vmem:[#allocation294_spill] sm:$0xff]  ;;  %v893_v43 = vadd.f32 %v11002_v46, %v892_v32  ;;  %v5243_v32 = vpop.permute.xlu0 %5242 }
 0xdec   :  { %v5024_v17 = vmul.f32 %v12814_v48, %v11037_v3 }
 0xded   :  { %12802 = vst [vmem:[#allocation205_spill] sm:$0xff] %v11016_v63  ;;  %v11043_v56 = vadd.f32 %v5628_v8, %v5084_v33  ;;  %v3872_v41 = vadd.f32 %v3808_v34, %v12813_v42  ;;  %v898_v34 = vand.u32 2147483647, %v10970_v16  ;;  %v3262_v42 = vadd.f32 %v3198_v7, %v2654_v18  ;;  %v12821_v7 = vld [vmem:[#allocation173_spill] sm:$0xff] }
 0xdef   :  { %5799 = vperm.xlu2 %6668, %v5650_v2   ;;  %v4416_v2 = vmul.f32 %v12810_v61, %v11030_v26  ;;  %12811 = vst [vmem:[#allocation39_spill] sm:$0xff] %v11043_v56  ;;  %v12815_v61 = vld [vmem:[#allocation337_spill] sm:$0xff]  ;;  %vm899_vm9 = vcmp.eq.f32.partialorder %v898_v34, 8.507059e+37 }
 0xdf0   :  { %v3806_v33 = vmul.f32 %v12815_v61, %v12783_v39  ;;  %v5596_v61 = vmul.f32 %v5243_v32, %v10549_v30  ;;  %v12819_v39 = vld [vmem:[#allocation292_spill] sm:$0xff]  ;;  %v12824_v30 = vld [vmem:[#allocation75_spill] sm:$0xff] }
 0xdf1   :  { %v4480_v8 = vadd.f32 %v4416_v2, %v3872_v41  ;;  %v901_v41 = vor.u32 1.1754944e-38, %v900_v22  ;;  %v3202_v63 = vmul.f32 %v12820_v5, %v12819_v39  ;;  %v12825_v22 = vld [vmem:[#allocation265_spill] sm:$0xff]  ;;  %v12827_v5 = vld [vmem:[#allocation266_spill] sm:$0xff] }
 0xdf2   :  { %5820 = vperm.xlu1 %6666, %v10542_v25   ;;  %v897_v25 = vsel %vm896_vm15, %v11002_v46, %v893_v43  ;;  %v5660_v24 = vadd.f32 %v5596_v61, %v12821_v7  ;;  %v12831_v61 = vld [vmem:[#allocation273_spill] sm:$0xff] }
 0xdf3   :  { %v5088_v48 = vadd.f32 %v5024_v17, %v4480_v8  ;;  %v902_v16 = vsel %vm899_vm9, %v901_v41, %v897_v25  ;;  %v12822_v17 = vld [vmem:[#allocation12_spill] sm:$0xff] }
 0xdf4   :  { %v5022_v8 = vmul.f32 %v12822_v17, %v10989_v14  ;;  %v11078_v43 = vmul.f32 %v12824_v30, %v902_v16  ;;  %v12830_v41 = vld [vmem:[#allocation52_spill] sm:$0xff]  ;;  %v12832_v17 = vld [vmem:[#allocation57_spill] sm:$0xff] }
 0xdf6   :  { %v5455_v32 = vpop.permute.xlu1 %5454  ;;  %v11089_v16 = vperm.slane %v11078_v43, 0  ;;  %v11092_v7 = vperm.slane %v11078_v43, 1 }
 0xdf7   :  { %5808 = vperm.xlu2 %6668, %v12816_v19   ;;  %v3870_v19 = vadd.f32 %v3806_v33, %v3262_v42  ;;  %v12826_v33 = vld [vmem:[#allocation74_spill] sm:$0xff]  ;;  %v5630_v25 = vmul.f32 %v5455_v32, %v11005_v50  ;;  %v12846_v50 = vld [vmem:[#allocation60_spill] sm:$0xff] }
 0xdf8   :  { %v5468_v53 = vpop.permute.xlu2 %5467  ;;  %v1441_v34 = vmul.f32 %v12826_v33, %v12825_v22  ;;  %v12828_v42 = vld [vmem:[#allocation170_spill] sm:$0xff] }
 0xdf9   :  { %v5632_v2 = vmul.f32 %v5468_v53, %v11057_v57  ;;  %v4478_v18 = vadd.f32 %v4414_v21, %v3870_v19  ;;  %v12823_v53 = vld [vmem:[#allocation336_spill] sm:$0xff]  ;;  %v1985_v10 = vmul.f32 %v12828_v42, %v12827_v5  ;;  %v12829_v21 = vld [vmem:[#allocation271_spill] sm:$0xff]  ;;  %v12835_v5 = vld [vmem:[#allocation54_spill] sm:$0xff] }
 0xdfa   :  { %v3810_v46 = vmul.f32 %v12823_v53, %v11021_v20  ;;  %5829 = vperm.xlu1 %6666, %v5660_v24   ;;  %v2593_v24 = vmul.f32 %v12831_v61, %v12830_v41  ;;  %v4418_v53 = vmul.f32 %v12832_v17, %v11030_v26  ;;  %v1445_v42 = vmul.f32 %v12835_v5, %v11089_v16  ;;  %v12842_v5 = vld [vmem:[#allocation150_spill] sm:$0xff] }
 0xdfb   :  { %v11067_v56 = vadd.f32 %v5632_v2, %v5088_v48  ;;  %v3266_v48 = vadd.f32 %v3202_v63, %v12829_v21  ;;  %v5086_v2 = vadd.f32 %v5022_v8, %v4478_v18  ;;  %v2049_v30 = vadd.f32 %v1985_v10, %v1441_v34  ;;  %v12833_v63 = vld [vmem:[#allocation310_spill] sm:$0xff]  ;;  %v12837_v21 = vld [vmem:[#allocation77_spill] sm:$0xff] }
 0xdfc   :  { %v3201_v18 = vmul.f32 %v12833_v63, %v12819_v39  ;;  %v12834_v8 = vld [vmem:[#allocation126_spill] sm:$0xff]  ;;  %v12841_v63 = vld [vmem:[#allocation137_spill] sm:$0xff] }
 0xdfd   :  { %12818 = vst [vmem:[#allocation208_spill] sm:$0xff] %v11067_v56  ;;  %v3874_v19 = vadd.f32 %v3810_v46, %v3266_v48  ;;  %v5026_v22 = vmul.f32 %v12834_v8, %v11037_v3  ;;  %v2657_v33 = vadd.f32 %v2593_v24, %v2049_v30  ;;  %v11101_v46 = vperm.slane %v11078_v43, 2  ;;  %v12836_v34 = vld [vmem:[#allocation174_spill] sm:$0xff]  ;;  %v11121_v30 = vpop.permute.xlu0 %5367 }
 0xdfe   :  { %v1989_v10 = vmul.f32 %v12836_v34, %v11092_v7  ;;  %v1444_v48 = vmul.f32 %v12837_v21, %v11089_v16  ;;  %v3809_v8 = vmul.f32 %v12841_v63, %v11021_v20  ;;  %v12844_v34 = vld [vmem:[#allocation149_spill] sm:$0xff]  ;;  %v5025_v63 = vmul.f32 %v12846_v50, %v11037_v3 }
 0xdff   :  { %5817 = vperm.xlu2 %6668, %v10500_v40   ;;  %v5694_v40 = vadd.f32 %v5630_v25, %v5086_v2  ;;  %v4482_v32 = vadd.f32 %v4418_v53, %v3874_v19  ;;  %v12838_v2 = vld [vmem:[#allocation172_spill] sm:$0xff]  ;;  %v3265_v61 = vadd.f32 %v3201_v18, %v2657_v33  ;;  %v11119_v53 = vperm.slane %v11078_v43, 3 }
 0xe00   :  { %v1988_v25 = vmul.f32 %v12838_v2, %v11092_v7  ;;  %v4417_v18 = vmul.f32 %v12842_v5, %v11030_v26  ;;  %v2053_v33 = vadd.f32 %v1989_v10, %v1445_v42  ;;  %v11132_v2 = vperm.slane %v11078_v43, 4  ;;  %v12847_v42 = vld [vmem:[#allocation338_spill] sm:$0xff] }
 0xe01   :  { %5931 = vperm.xlu0 %6667, %v5694_v40   ;;  %v5090_v24 = vadd.f32 %v5026_v22, %v4482_v32  ;;  %v12840_v40 = vld [vmem:[#allocation285_spill] sm:$0xff]  ;;  %v3204_v21 = vmul.f32 %v12844_v34, %v11119_v53 }
 0xe02   :  { %5838 = vperm.xlu1 %6666, %v10569_v37   ;;  %v12839_v37 = vld [vmem:[#allocation46_spill] sm:$0xff]  ;;  %v2596_v17 = vmul.f32 %v12840_v40, %v11101_v46  ;;  %v2052_v32 = vadd.f32 %v1988_v25, %v1444_v48  ;;  %v3812_v10 = vmul.f32 %v12847_v42, %v11132_v2  ;;  %v12854_v42 = vld [vmem:[#allocation133_spill] sm:$0xff] }
 0xe04   :  { %v2660_v14 = vadd.f32 %v2596_v17, %v2052_v32 }
 0xe05   :  { %v5493_v52 = vpop.permute.xlu0 %5492 }
 0xe06   :  { %v3268_v25 = vadd.f32 %v3204_v21, %v2660_v14  ;;  %v12852_v14 = vld [vmem:[#allocation146_spill] sm:$0xff] }
 0xe07   :  { %5826 = vperm.xlu2 %6668, %v10563_v6   ;;  %v2597_v6 = vmul.f32 %v12839_v37, %v11101_v46  ;;  %v12845_v37 = vld [vmem:[#allocation22_spill] sm:$0xff]  ;;  %v5601_v34 = vmul.f32 %v12852_v14, %v10593_v51  ;;  %v11167_v51 = vperm.slane %v11078_v43, 7  ;;  %v12861_v14 = vld [vmem:[#allocation364_spill] sm:$0xff] }
 0xe08   :  { %v5480_v41 = vpop.permute.xlu2 %5479  ;;  %v4993_v40 = vmul.f32 %v12845_v37, %v10577_v47  ;;  %v3876_v21 = vadd.f32 %v3812_v10, %v3268_v25  ;;  %v12857_v10 = vld [vmem:[#allocation158_spill] sm:$0xff] }
 0xe09   :  { %v5634_v19 = vmul.f32 %v5480_v41, %v11057_v57  ;;  %v3873_v41 = vadd.f32 %v3809_v8, %v3265_v61  ;;  %v2661_v56 = vadd.f32 %v2597_v6, %v2053_v33  ;;  %v12848_v61 = vld [vmem:[#allocation134_spill] sm:$0xff]  ;;  %v11150_v6 = vperm.slane %v11078_v43, 6  ;;  %v12851_v33 = vld [vmem:[#allocation109_spill] sm:$0xff] }
 0xe0a   :  { %5847 = vperm.xlu1 %6666, %v10599_v23   ;;  %v3205_v47 = vmul.f32 %v12848_v61, %v11119_v53  ;;  %v12850_v8 = vld [vmem:[#allocation234_spill] sm:$0xff]  ;;  %v3811_v25 = vmul.f32 %v12857_v10, %v11021_v20 }
 0xe0b   :  { %v11127_v22 = vadd.f32 %v5634_v19, %v5090_v24  ;;  %v11139_v24 = vperm.slane %v11078_v43, 5  ;;  %v4481_v48 = vadd.f32 %v4417_v18, %v3873_v41  ;;  %v12849_v19 = vld [vmem:[#allocation345_spill] sm:$0xff]  ;;  %v5474_v17 = vpop.permute.xlu1 %5473  ;;  %v5057_v18 = vadd.f32 %v4993_v40, %v12851_v33  ;;  %v12867_v10 = vld [vmem:[#allocation218_spill] sm:$0xff] }
 0xe0c   :  { %v3813_v50 = vmul.f32 %v12849_v19, %v11132_v2  ;;  %v5633_v23 = vmul.f32 %v5474_v17, %v11057_v57  ;;  %v12853_v41 = vld [vmem:[#allocation365_spill] sm:$0xff]  ;;  %v5028_v61 = vmul.f32 %v12854_v42, %v11150_v6 }
 0xe0d   :  { %12843 = vst [vmem:[#allocation209_spill] sm:$0xff] %v11127_v22  ;;  %v4420_v5 = vmul.f32 %v12850_v8, %v11139_v24  ;;  %v5089_v32 = vadd.f32 %v5025_v63, %v4481_v48  ;;  %v4421_v37 = vmul.f32 %v12853_v41, %v11139_v24  ;;  %v12855_v22 = vld [vmem:[#allocation95_spill] sm:$0xff]  ;;  %v5665_v48 = vadd.f32 %v5601_v34, %v5057_v18 }
 0xe0e   :  { %v3203_v8 = vmul.f32 %v12855_v22, %v12819_v39  ;;  %v12858_v39 = vld [vmem:[#allocation225_spill] sm:$0xff]  ;;  %v4419_v34 = vmul.f32 %v12861_v14, %v11030_v26 }
 0xe0f   :  { %5835 = vperm.xlu2 %6668, %v10580_v55   ;;  %v3269_v55 = vadd.f32 %v3205_v47, %v2661_v56  ;;  %v5697_v19 = vadd.f32 %v5633_v23, %v5089_v32  ;;  %v4484_v63 = vadd.f32 %v4420_v5, %v3876_v21  ;;  %v12856_v56 = vld [vmem:[#allocation18_spill] sm:$0xff]  ;;  %v1447_v22 = vmul.f32 %v12858_v39, %v11089_v16  ;;  %v12860_v23 = vld [vmem:[#allocation237_spill] sm:$0xff] }
 0xe10   :  { %v5029_v47 = vmul.f32 %v12856_v56, %v11150_v6  ;;  %v12859_v5 = vld [vmem:[#allocation274_spill] sm:$0xff] }
 0xe11   :  { %v3877_v40 = vadd.f32 %v3813_v50, %v3269_v55  ;;  %5940 = vperm.xlu0 %6667, %v5697_v19   ;;  %v5092_v33 = vadd.f32 %v5028_v61, %v4484_v63  ;;  %v5636_v50 = vmul.f32 %v5493_v52, %v11167_v51  ;;  %v3267_v18 = vadd.f32 %v3203_v8, %v12859_v5  ;;  %v12864_v52 = vld [vmem:[#allocation360_spill] sm:$0xff]  ;;  %v12865_v63 = vld [vmem:[#allocation322_spill] sm:$0xff] }
 0xe12   :  { %5856 = vperm.xlu1 %6666, %v10681_v15   ;;  %v3787_v55 = vmul.f32 %v12860_v23, %v12650_v27  ;;  %v12862_v15 = vld [vmem:[#allocation177_spill] sm:$0xff]  ;;  %v4395_v19 = vmul.f32 %v12864_v52, %v10676_v11  ;;  %v3207_v26 = vmul.f32 %v12865_v63, %v11119_v53  ;;  %v12868_v39 = vld [vmem:[#allocation262_spill] sm:$0xff]  ;;  %v12869_v11 = vld [vmem:[#allocation340_spill] sm:$0xff] }
 0xe13   :  { %v4485_v17 = vadd.f32 %v4421_v37, %v3877_v40  ;;  %v1991_v41 = vmul.f32 %v12862_v15, %v11092_v7  ;;  %v12863_v37 = vld [vmem:[#allocation19_spill] sm:$0xff]  ;;  %v3875_v61 = vadd.f32 %v3811_v25, %v3267_v18  ;;  %v5700_v8 = vadd.f32 %v5636_v50, %v5092_v33 }
 0xe14   :  { %v2599_v42 = vmul.f32 %v12863_v37, %v11101_v46  ;;  %v5027_v25 = vmul.f32 %v12868_v39, %v11037_v3  ;;  %v3815_v33 = vmul.f32 %v12869_v11, %v11132_v2  ;;  %v12876_v39 = vld [vmem:[#allocation163_spill] sm:$0xff] }
 0xe15   :  { %v5093_v20 = vadd.f32 %v5029_v47, %v4485_v17  ;;  %v2055_v27 = vadd.f32 %v1991_v41, %v1447_v22  ;;  %v4483_v47 = vadd.f32 %v4419_v34, %v3875_v61  ;;  %v5003_v17 = vmul.f32 %v12867_v10, %v10679_v58  ;;  %v12870_v58 = vld [vmem:[#allocation269_spill] sm:$0xff]  ;;  %v12875_v10 = vld [vmem:[#allocation67_spill] sm:$0xff] }
 0xe16   :  { %v5611_v14 = vmul.f32 %v12870_v58, %v10690_v44  ;;  %v5773_v44 = vpop.permute.xlu0 %5772  ;;  %v12883_v58 = vld [vmem:[#allocation277_spill] sm:$0xff] }
 0xe17   :  { %5844 = vperm.xlu2 %6668, %v5665_v48   ;;  %v12866_v48 = vld [vmem:[#allocation247_spill] sm:$0xff]  ;;  %v2663_v5 = vadd.f32 %v2599_v42, %v2055_v27  ;;  %v5091_v23 = vadd.f32 %v5027_v25, %v4483_v47  ;;  %v12874_v27 = vld [vmem:[#allocation41_spill] sm:$0xff]  ;;  %v1978_v25 = vmul.f32 %v12876_v39, %v10852_v45 }
 0xe18   :  { %v5499_v32 = vpop.permute.xlu2 %5498  ;;  %v3851_v56 = vadd.f32 %v3787_v55, %v12866_v48  ;;  %v11217_v63 = vadd.s32 4294967288, %v12874_v27 }
 0xe19   :  { %v5637_v21 = vmul.f32 %v5499_v32, %v11167_v51  ;;  %5949 = vperm.xlu0 %6667, %v5700_v8   ;;  %v3271_v18 = vadd.f32 %v3207_v26, %v2663_v5  ;;  %v12873_v8 = vld [vmem:[#allocation202_spill] sm:$0xff]  ;;  %v11220_v26 = vadd.s32 4294967280, %v12874_v27 }
 0xe1a   :  { %v4459_v50 = vadd.f32 %v4395_v19, %v3851_v56  ;;  %5865 = vperm.xlu1 %6666, %v10725_v12   ;;  %v12872_v12 = vld [vmem:[#allocation81_spill] sm:$0xff]  ;;  %v5962_v56 = vperm.slane %v5773_v44, %v11217_v63  ;;  %v12877_v5 = vld [vmem:[#allocation178_spill] sm:$0xff] }
 0xe1b   :  { %v11187_v40 = vadd.f32 %v5637_v21, %v5093_v20  ;;  %v5486_v22 = vpop.permute.xlu1 %5485  ;;  %v3879_v34 = vadd.f32 %v3815_v33, %v3271_v18  ;;  %v12871_v20 = vld [vmem:[#allocation93_spill] sm:$0xff]  ;;  %v5031_v41 = vmul.f32 %v12872_v12, %v11150_v6  ;;  %v2586_v11 = vmul.f32 %v12877_v5, %v10870_v60  ;;  %v12878_v33 = vld [vmem:[#allocation182_spill] sm:$0xff]  ;;  %v12882_v60 = vld [vmem:[#allocation343_spill] sm:$0xff] }
 0xe1c   :  { %v5067_v32 = vadd.f32 %v5003_v17, %v4459_v50  ;;  %v5635_v55 = vmul.f32 %v5486_v22, %v11057_v57  ;;  %v4423_v21 = vmul.f32 %v12871_v20, %v11139_v24  ;;  %v1434_v17 = vmul.f32 %v12875_v10, %v10849_v59  ;;  %v12885_v12 = vld [vmem:[#allocation363_spill] sm:$0xff] }
 0xe1e   :  { %v11203_v3 = vadd.f32 %v5635_v55, %v5091_v23  ;;  %v5675_v15 = vadd.f32 %v5611_v14, %v5067_v32  ;;  %v2042_v59 = vadd.f32 %v1978_v25, %v1434_v17  ;;  %v12879_v32 = vld [vmem:[#allocation342_spill] sm:$0xff]  ;;  %v12881_v55 = vld [vmem:[#allocation344_spill] sm:$0xff]  ;;  %v3802_v14 = vmul.f32 %v12883_v58, %v12882_v60 }
 0xe1f   :  { %5853 = vperm.xlu2 %6668, %v10631_v62   ;;  %v4487_v62 = vadd.f32 %v4423_v21, %v3879_v34  ;;  %v12880_v23 = vld [vmem:[#allocation166_spill] sm:$0xff] }
 0xe20   :  { %v3194_v45 = vmul.f32 %v12880_v23, %v12879_v32  ;;  %v12893_v32 = vld [vmem:[#allocation71_spill] sm:$0xff] }
 0xe21   :  { %v5095_v42 = vadd.f32 %v5031_v41, %v4487_v62  ;;  %v1439_v23 = vmul.f32 %v12893_v32, %v12768_v36  ;;  %v12900_v36 = vld [vmem:[#allocation314_spill] sm:$0xff] }
 0xe22   :  { %5874 = vperm.xlu1 %6666, %v5675_v15   ;;  %v12884_v15 = vld [vmem:[#allocation323_spill] sm:$0xff] }
 0xe23   :  { %v4410_v41 = vmul.f32 %v12885_v12, %v12884_v15 }
 0xe27   :  { %5862 = vperm.xlu2 %6668, %v10664_v38   ;;  %v5788_v38 = vpop.permute.xlu0 %5787 }
 0xe28   :  { %v5511_v37 = vpop.permute.xlu2 %5510 }
 0xe29   :  { %v5639_v57 = vmul.f32 %v5511_v37, %v11167_v51 }
 0xe2a   :  { %5883 = vperm.xlu1 %6666, %v10769_v29  }
 0xe2b   :  { %v5703_v61 = vadd.f32 %v5639_v57, %v5095_v42  ;;  %v11213_v52 = vpop.permute.xlu1 %5504  ;;  %v12886_v42 = vld [vmem:[#allocation45_spill] sm:$0xff] }
 0xe2c   :  { %v5018_v57 = vmul.f32 %v12886_v42, %v10894_v28  ;;  %v12890_v28 = vld [vmem:[#allocation216_spill] sm:$0xff]  ;;  %v12903_v42 = vld [vmem:[#allocation183_spill] sm:$0xff] }
 0xe2d   :  { %5958 = vperm.xlu0 %6667, %v5703_v61   ;;  %v12887_v61 = vld [vmem:[#allocation206_spill] sm:$0xff]  ;;  %v5626_v25 = vmul.f32 %v12890_v28, %v10907_v4 }
 0xe2f   :  { %5871 = vperm.xlu2 %6668, %v10750_v9   ;;  %v11239_v18 = vpop.permute.xlu0 %5796 }
 0xe31   :  { %v5776_v19 = vpop.permute.xlu2 %5775 }
 0xe32   :  { %5892 = vperm.xlu1 %6666, %v10802_v31   ;;  %v5966_v9 = vperm.slane %v5776_v19, %v11220_v26  ;;  %v5616_v31 = vmul.f32 %v11121_v30, %v10790_v0  ;;  %v11245_v0 = vadd.s32 4294967272, %v12874_v27  ;;  %v2650_v30 = vadd.f32 %v2586_v11, %v2042_v59 }
 0xe34   :  { %v5770_v29 = vpop.permute.xlu1 %5769  ;;  %v5680_v50 = vadd.f32 %v5616_v31, %v12878_v33  ;;  %v3258_v21 = vadd.f32 %v3194_v45, %v2650_v30  ;;  %v5976_v31 = vperm.slane %v5788_v38, %v11220_v26  ;;  %v12891_v33 = vld [vmem:[#allocation76_spill] sm:$0xff]  ;;  %v12894_v45 = vld [vmem:[#allocation169_spill] sm:$0xff]  ;;  %v12895_v30 = vld [vmem:[#allocation127_spill] sm:$0xff] }
 0xe35   :  { %6119 = vperm.xlu0 %6667, %v12873_v8   ;;  %v5960_v47 = vperm.slane %v5770_v29, %v12874_v27  ;;  %v12888_v8 = vld [vmem:[#allocation195_spill] sm:$0xff]  ;;  %v2591_v60 = vmul.f32 %v12895_v30, %v12776_v13  ;;  %v12902_v13 = vld [vmem:[#allocation80_spill] sm:$0xff]  ;;  %v12914_v30 = vld [vmem:[#allocation34_spill] sm:$0xff] }
 0xe36   :  { %v3866_v37 = vadd.f32 %v3802_v14, %v3258_v21  ;;  %v12889_v29 = vld [vmem:[#allocation191_spill] sm:$0xff]  ;;  %v12896_v14 = vld [vmem:[#allocation68_spill] sm:$0xff] }
 0xe37   :  { %5880 = vperm.xlu2 %6668, %v10783_v49   ;;  %v5964_v49 = vsel %vm5963_vm10, %v5962_v56, %v5960_v47  ;;  %v11256_v44 = vpop.permute.xlu0 %5805  ;;  %v12899_v21 = vld [vmem:[#allocation204_spill] sm:$0xff] }
 0xe38   :  { %v5968_v22 = vsel %vm5967_vm11, %v5966_v9, %v5964_v49  ;;  %v4474_v19 = vadd.f32 %v4410_v41, %v3866_v37  ;;  %v12901_v41 = vld [vmem:[#allocation334_spill] sm:$0xff] }
 0xe39   :  { %v5782_v48 = vpop.permute.xlu2 %5781 }
 0xe3a   :  { %5901 = vperm.xlu1 %6666, %v12881_v55   ;;  %v5973_v9 = vperm.slane %v5782_v48, %v12874_v27  ;;  %v5082_v56 = vadd.f32 %v5018_v57, %v4474_v19  ;;  %v1983_v55 = vmul.f32 %v12894_v45, %v12770_v1  ;;  %v1990_v57 = vmul.f32 %v12903_v42, %v11092_v7  ;;  %v12904_v19 = vld [vmem:[#allocation283_spill] sm:$0xff] }
 0xe3c   :  { %v5779_v34 = vpop.permute.xlu1 %5778  ;;  %v5690_v5 = vadd.f32 %v5626_v25, %v5082_v56  ;;  %v2047_v58 = vadd.f32 %v1983_v55, %v1439_v23  ;;  %v12913_v23 = vld [vmem:[#allocation272_spill] sm:$0xff] }
 0xe3d   :  { %6128 = vperm.xlu0 %6667, %v9030_v35   ;;  %v5970_v35 = vperm.slane %v5779_v34, %v11245_v0  ;;  %v12897_v34 = vld [vmem:[#allocation318_spill] sm:$0xff] }
 0xe3e   :  { %v2655_v12 = vadd.f32 %v2591_v60, %v2047_v58  ;;  %v3814_v60 = vmul.f32 %v12914_v30, %v11132_v2  ;;  %v12921_v30 = vld [vmem:[#allocation85_spill] sm:$0xff] }
 0xe3f   :  { %5889 = vperm.xlu2 %6668, %v5680_v50   ;;  %v5972_v62 = vsel %vm5971_vm12, %v5970_v35, %v5968_v22  ;;  %v12892_v22 = vld [vmem:[#allocation181_spill] sm:$0xff]  ;;  %v11276_v59 = vpop.permute.xlu0 %5814 }
 0xe40   :  { %v12898_v35 = vld [vmem:[#allocation205_spill] sm:$0xff] }
 0xe41   :  { %v5791_v20 = vpop.permute.xlu2 %5790 }
 0xe42   :  { %5910 = vperm.xlu1 %6666, %v12888_v8   ;;  %v5978_v39 = vperm.slane %v5791_v20, %v11245_v0  ;;  %v3199_v20 = vmul.f32 %v12897_v34, %v12896_v14  ;;  %v12905_v8 = vld [vmem:[#allocation366_spill] sm:$0xff] }
 0xe44   :  { %v5785_v47 = vpop.permute.xlu1 %5784 }
 0xe45   :  { %6137 = vperm.xlu0 %6667, %v12887_v61   ;;  %v5974_v17 = vperm.slane %v5785_v47, %v11217_v63  ;;  %v3263_v61 = vadd.f32 %v3199_v20, %v2655_v12  ;;  %v12916_v20 = vld [vmem:[#allocation156_spill] sm:$0xff] }
 0xe47   :  { %5898 = vperm.xlu2 %6668, %v12889_v29   ;;  %v5975_v49 = vsel %vm5963_vm10, %v5974_v17, %v5973_v9  ;;  %v11293_v15 = vpop.permute.xlu0 %5823  ;;  %v4415_v29 = vmul.f32 %v12905_v8, %v12904_v19  ;;  %v12906_v9 = vld [vmem:[#allocation282_spill] sm:$0xff]  ;;  %v12907_v17 = vld [vmem:[#allocation129_spill] sm:$0xff] }
 0xe48   :  { %v5977_v11 = vsel %vm5967_vm11, %v5976_v31, %v5975_v49  ;;  %v2598_v56 = vmul.f32 %v12906_v9, %v11101_v46  ;;  %v12909_v31 = vld [vmem:[#allocation316_spill] sm:$0xff]  ;;  %v12912_v46 = vld [vmem:[#allocation13_spill] sm:$0xff]  ;;  %v12920_v9 = vld [vmem:[#allocation78_spill] sm:$0xff] }
 0xe49   :  { %v11261_v10 = vpop.permute.xlu2 %5799  ;;  %v5979_v48 = vsel %vm5971_vm12, %v5978_v39, %v5977_v11  ;;  %v12908_v39 = vld [vmem:[#allocation152_spill] sm:$0xff]  ;;  %v3206_v49 = vmul.f32 %v12909_v31, %v11119_v53  ;;  %v12911_v11 = vld [vmem:[#allocation39_spill] sm:$0xff]  ;;  %v5631_v45 = vmul.f32 %v12913_v23, %v12912_v46  ;;  %v5997_v23 = vperm.slane %v11293_v15, %v11220_v26 }
 0xe4a   :  { %5919 = vperm.xlu1 %6666, %v5690_v5   ;;  %v11273_v50 = vsel %vm416_vm1, %v5979_v48, %v5972_v62  ;;  %v3807_v62 = vmul.f32 %v12901_v41, %v12900_v36  ;;  %v5023_v28 = vmul.f32 %v12908_v39, %v12907_v17  ;;  %v12915_v53 = vld [vmem:[#allocation200_spill] sm:$0xff]  ;;  %v5638_v36 = vmul.f32 %v11213_v52, %v11167_v51 }
 0xe4b   :  { %v4422_v58 = vmul.f32 %v12915_v53, %v11139_v24  ;;  %v5987_v52 = vperm.slane %v11256_v44, %v12874_v27 }
 0xe4c   :  { %v11278_v4 = vpop.permute.xlu1 %5793  ;;  %v3871_v47 = vadd.f32 %v3807_v62, %v3263_v61  ;;  %v12918_v61 = vld [vmem:[#allocation187_spill] sm:$0xff] }
 0xe4d   :  { %6146 = vperm.xlu0 %6667, %v12891_v33   ;;  %v5980_v8 = vperm.slane %v11278_v4, %v12874_v27 }
 0xe4e   :  { %v4479_v5 = vadd.f32 %v4415_v29, %v3871_v47  ;;  %v12919_v29 = vld [vmem:[#allocation121_spill] sm:$0xff] }
 0xe4f   :  { %5907 = vperm.xlu2 %6668, %v12892_v22   ;;  %v5833_v7 = vpop.permute.xlu0 %5832 }
 0xe50   :  { %v5087_v48 = vadd.f32 %v5023_v28, %v4479_v5  ;;  %v6002_v5 = vperm.slane %v5833_v7, %v11217_v63 }
 0xe51   :  { %v11280_v38 = vpop.permute.xlu2 %5808 }
 0xe52   :  { %5928 = vperm.xlu1 %6666, %v12898_v35   ;;  %v5695_v14 = vadd.f32 %v5631_v45, %v5087_v48  ;;  %v5030_v35 = vmul.f32 %v12916_v20, %v11150_v6  ;;  %v5988_v51 = vperm.slane %v11280_v38, %v11217_v63 }
 0xe54   :  { %v11297_v1 = vpop.permute.xlu1 %5802  ;;  %v5989_v47 = vsel %vm5963_vm10, %v5988_v51, %v5987_v52  ;;  %v12924_v51 = vld [vmem:[#allocation72_spill] sm:$0xff] }
 0xe55   :  { %6155 = vperm.xlu0 %6667, %v12804_v54   ;;  %v1446_v54 = vmul.f32 %v12902_v13, %v11089_v16  ;;  %v12910_v16 = vld [vmem:[#allocation208_spill] sm:$0xff] }
 0xe57   :  { %5916 = vperm.xlu2 %6668, %v12899_v21   ;;  %v2054_v25 = vadd.f32 %v1990_v57, %v1446_v54  ;;  %v5842_v21 = vpop.permute.xlu0 %5841  ;;  %v12917_v54 = vld [vmem:[#allocation209_spill] sm:$0xff] }
 0xe58   :  { %v6008_v31 = vperm.slane %v5842_v21, %v12874_v27 }
 0xe59   :  { %v11299_v37 = vpop.permute.xlu2 %5817  ;;  %v2662_v33 = vadd.f32 %v2598_v56, %v2054_v25  ;;  %v5983_v56 = vperm.slane %v11261_v10, %v11220_v26 }
 0xe5a   :  { %5937 = vperm.xlu1 %6666, %v12910_v16   ;;  %v5994_v38 = vperm.slane %v11299_v37, %v12874_v27  ;;  %v5992_v37 = vperm.slane %v11276_v59, %v11245_v0 }
 0xe5b   :  { %v3270_v55 = vadd.f32 %v3206_v49, %v2662_v33  ;;  %v5985_v33 = vperm.slane %v11297_v1, %v11245_v0 }
 0xe5c   :  { %v5812_v22 = vpop.permute.xlu1 %5811 }
 0xe5d   :  { %v3878_v34 = vadd.f32 %v3814_v60, %v3270_v55  ;;  %v5990_v28 = vperm.slane %v5812_v22, %v11220_v26  ;;  %v12922_v60 = vld [vmem:[#allocation194_spill] sm:$0xff] }
 0xe5f   :  { %5925 = vperm.xlu2 %6668, %v12911_v11   ;;  %v4486_v12 = vadd.f32 %v4422_v58, %v3878_v34  ;;  %v5851_v24 = vpop.permute.xlu0 %5850  ;;  %v5991_v11 = vsel %vm5967_vm11, %v5990_v28, %v5989_v47 }
 0xe60   :  { %v5993_v55 = vsel %vm5971_vm12, %v5992_v37, %v5991_v11 }
 0xe61   :  { %v11315_v32 = vpop.permute.xlu2 %5826  ;;  %v5094_v13 = vadd.f32 %v5030_v35, %v4486_v12 }
 0xe62   :  { %5946 = vperm.xlu1 %6666, %v11203_v3   ;;  %v5999_v22 = vperm.slane %v11315_v32, %v11245_v0 }
 0xe63   :  { %v5702_v2 = vadd.f32 %v5638_v36, %v5094_v13 }
 0xe64   :  { %v5821_v41 = vpop.permute.xlu1 %5820 }
 0xe67   :  { %5934 = vperm.xlu2 %6668, %v5695_v14   ;;  %v5860_v19 = vpop.permute.xlu0 %5859  ;;  %v6013_v14 = vperm.slane %v5851_v24, %v11245_v0 }
 0xe68   :  { %v6018_v13 = vperm.slane %v5860_v19, %v11220_v26 }
 0xe69   :  { %v5836_v62 = vpop.permute.xlu2 %5835 }
 0xe6a   :  { %5955 = vperm.xlu1 %6666, %v5702_v2   ;;  %v6004_v49 = vperm.slane %v5836_v62, %v11220_v26 }
 0xe6c   :  { %v5830_v42 = vpop.permute.xlu1 %5829 }
 0xe6d   :  { %v6001_v25 = vperm.slane %v5830_v42, %v12874_v27 }
 0xe6f   :  { %5943 = vperm.xlu2 %6668, %v12917_v54   ;;  %v5869_v4 = vpop.permute.xlu0 %5868  ;;  %v6003_v59 = vsel %vm5963_vm10, %v6002_v5, %v6001_v25 }
 0xe70   :  { %v6005_v1 = vsel %vm5967_vm11, %v6004_v49, %v6003_v59  ;;  %v12927_v49 = vld [vmem:[#allocation199_spill] sm:$0xff] }
 0xe71   :  { %v5845_v57 = vpop.permute.xlu2 %5844 }
 0xe72   :  { %6116 = vperm.xlu1 %6666, %v12918_v61   ;;  %v6009_v44 = vperm.slane %v5845_v57, %v11217_v63 }
 0xe74   :  { %v5839_v6 = vpop.permute.xlu1 %5838  ;;  %v6010_v46 = vsel %vm5963_vm10, %v6009_v44, %v6008_v31  ;;  %v12926_v44 = vld [vmem:[#allocation70_spill] sm:$0xff] }
 0xe75   :  { %v6006_v32 = vperm.slane %v5839_v6, %v11245_v0 }
 0xe77   :  { %5952 = vperm.xlu2 %6668, %v11187_v40   ;;  %v5981_v40 = vperm.slane %v11239_v18, %v11217_v63  ;;  %v5995_v18 = vperm.slane %v5821_v41, %v11217_v63  ;;  %v5878_v21 = vpop.permute.xlu0 %5877  ;;  %v6007_v36 = vsel %vm5971_vm12, %v6006_v32, %v6005_v1 }
 0xe79   :  { %v5854_v3 = vpop.permute.xlu2 %5853  ;;  %v5982_v10 = vsel %vm5963_vm10, %v5981_v40, %v5980_v8  ;;  %v5996_v48 = vsel %vm5963_vm10, %v5995_v18, %v5994_v38  ;;  %v6029_v18 = vperm.slane %v5878_v21, %v12874_v27 }
 0xe7a   :  { %6125 = vperm.xlu1 %6666, %v12919_v29   ;;  %v5984_v16 = vsel %vm5967_vm11, %v5983_v56, %v5982_v10  ;;  %v5998_v53 = vsel %vm5967_vm11, %v5997_v23, %v5996_v48  ;;  %v6015_v58 = vperm.slane %v5854_v3, %v12874_v27  ;;  %v12923_v3 = vld [vmem:[#allocation82_spill] sm:$0xff] }
 0xe7b   :  { %v5986_v45 = vsel %vm5971_vm12, %v5985_v33, %v5984_v16  ;;  %v6000_v34 = vsel %vm5971_vm12, %v5999_v22, %v5998_v53 }
 0xe7c   :  { %v5848_v17 = vpop.permute.xlu1 %5847  ;;  %v6079_v12 = vsel %vm418_vm2, %v5986_v45, %v11273_v50 }
 0xe7d   :  { %v6011_v7 = vperm.slane %v5848_v17, %v11220_v26  ;;  %v6080_v2 = vsel %vm420_vm3, %v5993_v55, %v6079_v12  ;;  %v12925_v17 = vld [vmem:[#allocation91_spill] sm:$0xff] }
 0xe7e   :  { %v6081_v24 = vsel %vm422_vm5, %v6000_v34, %v6080_v2 }
 0xe7f   :  { %6113 = vperm.xlu2 %6668, %v12920_v9   ;;  %v6012_v15 = vsel %vm5967_vm11, %v6011_v7, %v6010_v46  ;;  %v6082_v57 = vsel %vm424_vm4, %v6007_v36, %v6081_v24  ;;  %v6023_v9 = vperm.slane %v5869_v4, %v11217_v63  ;;  %v5887_v56 = vpop.permute.xlu0 %5886 }
 0xe80   :  { %v6014_v54 = vsel %vm5971_vm12, %v6013_v14, %v6012_v15  ;;  %v6034_v33 = vperm.slane %v5887_v56, %v11245_v0 }
 0xe81   :  { %v5863_v39 = vpop.permute.xlu2 %5862  ;;  %v6083_v6 = vsel %vm426_vm6, %v6014_v54, %v6082_v57 }
 0xe82   :  { %6134 = vperm.xlu1 %6666, %v12921_v30   ;;  %v6020_v62 = vperm.slane %v5863_v39, %v11245_v0 }
 0xe84   :  { %v5857_v20 = vpop.permute.xlu1 %5856 }
 0xe85   :  { %v6016_v41 = vperm.slane %v5857_v20, %v11217_v63 }
 0xe87   :  { %6122 = vperm.xlu2 %6668, %v12922_v60   ;;  %v6017_v42 = vsel %vm5963_vm10, %v6016_v41, %v6015_v58  ;;  %v5896_v25 = vpop.permute.xlu0 %5895 }
 0xe88   :  { %v6019_v50 = vsel %vm5967_vm11, %v6018_v13, %v6017_v42 }
 0xe89   :  { %v5872_v35 = vpop.permute.xlu2 %5871  ;;  %v6021_v61 = vsel %vm5971_vm12, %v6020_v62, %v6019_v50 }
 0xe8a   :  { %6143 = vperm.xlu1 %6666, %v12923_v3   ;;  %v6084_v19 = vsel %vm428_vm7, %v6021_v61, %v6083_v6  ;;  %v6025_v8 = vperm.slane %v5872_v35, %v11220_v26  ;;  %v6039_v6 = vperm.slane %v5896_v25, %v11220_v26 }
 0xe8b   :  { %6094 = vst.msk [vmem:[#allocation3] sm:$0xff] %vm60_vm0, %v6084_v19 }
 0xe8c   :  { %v5866_v52 = vpop.permute.xlu1 %5865 }
 0xe8d   :  { %v6022_v40 = vperm.slane %v5866_v52, %v12874_v27 }
 0xe8f   :  { %6131 = vperm.xlu2 %6668, %v12924_v51   ;;  %v6024_v47 = vsel %vm5963_vm10, %v6023_v9, %v6022_v40  ;;  %v5905_v48 = vpop.permute.xlu0 %5904 }
 0xe90   :  { %v6026_v38 = vsel %vm5967_vm11, %v6025_v8, %v6024_v47  ;;  %v6044_v24 = vperm.slane %v5905_v48, %v11217_v63 }
 0xe91   :  { %v5881_v29 = vpop.permute.xlu2 %5880 }
 0xe92   :  { %6152 = vperm.xlu1 %6666, %v12925_v17   ;;  %v6030_v4 = vperm.slane %v5881_v29, %v11217_v63 }
 0xe94   :  { %v5875_v39 = vpop.permute.xlu1 %5874  ;;  %v6031_v5 = vsel %vm5963_vm10, %v6030_v4, %v6029_v18 }
 0xe95   :  { %v6027_v31 = vperm.slane %v5875_v39, %v11245_v0 }
 0xe97   :  { %6140 = vperm.xlu2 %6668, %v12926_v44   ;;  %v6028_v10 = vsel %vm5971_vm12, %v6027_v31, %v6026_v38  ;;  %v5914_v45 = vpop.permute.xlu0 %5913 }
 0xe98   :  { %v6050_v2 = vperm.slane %v5914_v45, %v12874_v27 }
 0xe99   :  { %v5890_v28 = vpop.permute.xlu2 %5889 }
 0xe9a   :  { %v6036_v36 = vperm.slane %v5890_v28, %v12874_v27 }
 0xe9c   :  { %v5884_v37 = vpop.permute.xlu1 %5883 }
 0xe9d   :  { %v6032_v11 = vperm.slane %v5884_v37, %v11220_v26 }
 0xe9f   :  { %6149 = vperm.xlu2 %6668, %v12927_v49   ;;  %v6033_v22 = vsel %vm5967_vm11, %v6032_v11, %v6031_v5  ;;  %v5923_v30 = vpop.permute.xlu0 %5922 }
 0xea0   :  { %v6035_v46 = vsel %vm5971_vm12, %v6034_v33, %v6033_v22  ;;  %v6055_v25 = vperm.slane %v5923_v30, %v11245_v0 }
 0xea1   :  { %v5899_v16 = vpop.permute.xlu2 %5898  ;;  %v6085_v23 = vsel %vm416_vm1, %v6035_v46, %v6028_v10 }
 0xea2   :  { %v6041_v3 = vperm.slane %v5899_v16, %v11245_v0 }
 0xea4   :  { %v5893_v59 = vpop.permute.xlu1 %5892 }
 0xea5   :  { %v6037_v62 = vperm.slane %v5893_v59, %v11217_v63 }
 0xea7   :  { %6158 = vperm.xlu2 %6668, %v11078_v43   ;;  %v5932_v53 = vpop.permute.xlu0 %5931  ;;  %v6038_v42 = vsel %vm5963_vm10, %v6037_v62, %v6036_v36 }
 0xea8   :  { %v6040_v47 = vsel %vm5967_vm11, %v6039_v6, %v6038_v42  ;;  %v6060_v31 = vperm.slane %v5932_v53, %v11220_v26 }
 0xea9   :  { %v5908_v7 = vpop.permute.xlu2 %5907  ;;  %v6042_v10 = vsel %vm5971_vm12, %v6041_v3, %v6040_v47 }
 0xeaa   :  { %v6046_v54 = vperm.slane %v5908_v7, %v11220_v26  ;;  %v6086_v33 = vsel %vm418_vm2, %v6042_v10, %v6085_v23 }
 0xeac   :  { %v5902_v55 = vpop.permute.xlu1 %5901 }
 0xead   :  { %v6043_v13 = vperm.slane %v5902_v55, %v12874_v27 }
 0xeaf   :  { %v5941_v14 = vpop.permute.xlu0 %5940  ;;  %v6045_v52 = vsel %vm5963_vm10, %v6044_v24, %v6043_v13 }
 0xeb0   :  { %v6065_v56 = vperm.slane %v5941_v14, %v11217_v63  ;;  %v6047_v38 = vsel %vm5967_vm11, %v6046_v54, %v6045_v52 }
 0xeb1   :  { %v5917_v1 = vpop.permute.xlu2 %5916 }
 0xeb2   :  { %v6051_v41 = vperm.slane %v5917_v1, %v11217_v63 }
 0xeb4   :  { %v5911_v60 = vpop.permute.xlu1 %5910  ;;  %v6052_v19 = vsel %vm5963_vm10, %v6051_v41, %v6050_v2 }
 0xeb5   :  { %v6048_v40 = vperm.slane %v5911_v60, %v11245_v0 }
 0xeb7   :  { %v5950_v35 = vpop.permute.xlu0 %5949  ;;  %v6049_v49 = vsel %vm5971_vm12, %v6048_v40, %v6047_v38 }
 0xeb8   :  { %v6071_v18 = vperm.slane %v5950_v35, %v12874_v27  ;;  %v6087_v7 = vsel %vm420_vm3, %v6049_v49, %v6086_v33 }
 0xeb9   :  { %v5926_v32 = vpop.permute.xlu2 %5925 }
 0xeba   :  { %v6057_v57 = vperm.slane %v5926_v32, %v12874_v27 }
 0xebc   :  { %v5920_v15 = vpop.permute.xlu1 %5919 }
 0xebd   :  { %v6053_v8 = vperm.slane %v5920_v15, %v11220_v26 }
 0xebf   :  { %v5959_v43 = vpop.permute.xlu0 %5958  ;;  %v6054_v17 = vsel %vm5967_vm11, %v6053_v8, %v6052_v19 }
 0xec0   :  { %v6056_v16 = vsel %vm5971_vm12, %v6055_v25, %v6054_v17  ;;  %v6076_v23 = vperm.slane %v5959_v43, %v11245_v0 }
 0xec1   :  { %v5935_v58 = vpop.permute.xlu2 %5934  ;;  %v6088_v1 = vsel %vm422_vm5, %v6056_v16, %v6087_v7 }
 0xec2   :  { %v6062_v39 = vperm.slane %v5935_v58, %v11245_v0 }
 0xec4   :  { %v5929_v34 = vpop.permute.xlu1 %5928 }
 0xec5   :  { %v6058_v29 = vperm.slane %v5929_v34, %v11217_v63 }
 0xec7   :  { %v6059_v44 = vsel %vm5963_vm10, %v6058_v29, %v6057_v57  ;;  %v6120_v5 = vpop.permute.xlu0 %6119 }
 0xec9   :  { %v5944_v20 = vpop.permute.xlu2 %5943 }
 0xeca   :  { %v6067_v9 = vperm.slane %v5944_v20, %v11220_v26 }
 0xecc   :  { %v5938_v21 = vpop.permute.xlu1 %5937 }
 0xecd   :  { %v6064_v51 = vperm.slane %v5938_v21, %v12874_v27  ;;  %v6162_v21 = vperm.slane %v6120_v5, %v12874_v27 }
 0xecf   :  { %v6066_v4 = vsel %vm5963_vm10, %v6065_v56, %v6064_v51  ;;  %v6129_v58 = vpop.permute.xlu0 %6128 }
 0xed0   :  { %v6068_v37 = vsel %vm5967_vm11, %v6067_v9, %v6066_v4  ;;  %v6165_v24 = vperm.slane %v6129_v58, %v12874_v27 }
 0xed1   :  { %v5953_v12 = vpop.permute.xlu2 %5952 }
 0xed2   :  { %v6072_v28 = vperm.slane %v5953_v12, %v11217_v63  ;;  %v6061_v63 = vsel %vm5967_vm11, %v6060_v31, %v6059_v44 }
 0xed3   :  { %v6063_v48 = vsel %vm5971_vm12, %v6062_v39, %v6061_v63 }
 0xed4   :  { %v5947_v50 = vpop.permute.xlu1 %5946  ;;  %v6073_v46 = vsel %vm5963_vm10, %v6072_v28, %v6071_v18  ;;  %v6089_v30 = vsel %vm424_vm4, %v6063_v48, %v6088_v1 }
 0xed5   :  { %v6069_v11 = vperm.slane %v5947_v50, %v11245_v0 }
 0xed7   :  { %v6070_v55 = vsel %vm5971_vm12, %v6069_v11, %v6068_v37  ;;  %v6138_v13 = vpop.permute.xlu0 %6137 }
 0xed8   :  { %v6090_v32 = vsel %vm426_vm6, %v6070_v55, %v6089_v30  ;;  %v6168_v52 = vperm.slane %v6138_v13, %v12874_v27 }
 0xed9   :  { %v6114_v61 = vpop.permute.xlu2 %6113 }
 0xeda   :  { %v6160_v14 = vperm.slane %v6114_v61, %v12874_v27 }
 0xedc   :  { %v5956_v22 = vpop.permute.xlu1 %5955 }
 0xedd   :  { %v6074_v45 = vperm.slane %v5956_v22, %v11220_v26 }
 0xedf   :  { %v6075_v60 = vsel %vm5967_vm11, %v6074_v45, %v6073_v46  ;;  %v6147_v19 = vpop.permute.xlu0 %6146 }
 0xee0   :  { %v6077_v53 = vsel %vm5971_vm12, %v6076_v23, %v6075_v60  ;;  %v6171_v47 = vperm.slane %v6147_v19, %v12874_v27 }
 0xee1   :  { %v6123_v59 = vpop.permute.xlu2 %6122  ;;  %v6091_v15 = vsel %vm428_vm7, %v6077_v53, %v6090_v32 }
 0xee2   :  { %6095 = vst.msk [vmem:[#allocation3 + $0x8] sm:$0xff] %vm60_vm0, %v6091_v15  ;;  %v6163_v35 = vperm.slane %v6123_v59, %v12874_v27 }
 0xee3   :  { %6206 = dma.vmem_to_hbm [thread:$0]  %s6199_s6, 256, %s6201_s18, [#allocation4], %s6839_s8, %s6839_s8, %s6840_s19  }
 0xee4   :  { %v6117_v26 = vpop.permute.xlu1 %6116 }
 0xee5   :  { %v6161_v34 = vperm.slane %v6117_v26, %v12874_v27 }
 0xee7   :  { %v6176_v20 = vsel %vm416_vm1, %v6161_v34, %v6160_v14  ;;  %v6156_v17 = vpop.permute.xlu0 %6155 }
 0xee8   :  { %v6177_v36 = vsel %vm418_vm2, %v6162_v21, %v6176_v20  ;;  %v6174_v10 = vperm.slane %v6156_v17, %v12874_v27 }
 0xee9   :  { %v6132_v0 = vpop.permute.xlu2 %6131  ;;  %v6178_v43 = vsel %vm420_vm3, %v6163_v35, %v6177_v36 }
 0xeea   :  { %v6166_v54 = vperm.slane %v6132_v0, %v12874_v27 }
 0xeec   :  { %v6126_v12 = vpop.permute.xlu1 %6125 }
 0xeed   :  { %v6164_v41 = vperm.slane %v6126_v12, %v12874_v27 }
 0xeef   :  { %v6179_v2 = vsel %vm422_vm5, %v6164_v41, %v6178_v43 }
 0xef0   :  { %v6180_v42 = vsel %vm424_vm4, %v6165_v24, %v6179_v2 }
 0xef1   :  { %v6141_v62 = vpop.permute.xlu2 %6140  ;;  %v6181_v50 = vsel %vm426_vm6, %v6166_v54, %v6180_v42 }
 0xef2   :  { %v6169_v51 = vperm.slane %v6141_v62, %v12874_v27 }
 0xef4   :  { %v6135_v57 = vpop.permute.xlu1 %6134  ;;  %v6183_v29 = vsel %vm416_vm1, %v6169_v51, %v6168_v52 }
 0xef5   :  { %v6167_v61 = vperm.slane %v6135_v57, %v12874_v27 }
 0xef7   :  { %v6182_v6 = vsel %vm428_vm7, %v6167_v61, %v6181_v50 }
 0xef8   :  { %6192 = vst.msk [vmem:[%s11515_s9] sm:$0xff] %vm439_vm8, %v6182_v6 }
 0xef9   :  { %v6150_v3 = vpop.permute.xlu2 %6149 }
 0xefa   :  { %v6172_v40 = vperm.slane %v6150_v3, %v12874_v27 }
 0xefc   :  { %v6144_v8 = vpop.permute.xlu1 %6143 }
 0xefd   :  { %v6170_v9 = vperm.slane %v6144_v8, %v12874_v27 }
 0xeff   :  { %v6184_v56 = vsel %vm418_vm2, %v6170_v9, %v6183_v29 }
 0xf00   :  { %v6185_v44 = vsel %vm420_vm3, %v6171_v47, %v6184_v56 }
 0xf01   :  { %v6159_v38 = vpop.permute.xlu2 %6158  ;;  %v6186_v28 = vsel %vm422_vm5, %v6172_v40, %v6185_v44 }
 0xf02   :  { %v6175_v31 = vperm.slane %v6159_v38, %v12874_v27 }
 0xf04   :  { %v6153_v39 = vpop.permute.xlu1 %6152 }
 0xf05   :  { %v6173_v25 = vperm.slane %v6153_v39, %v12874_v27 }
 0xf07   :  { %v6187_v4 = vsel %vm424_vm4, %v6173_v25, %v6186_v28 }
 0xf08   :  { %v6188_v18 = vsel %vm426_vm6, %v6174_v10, %v6187_v4 }
 0xf09   :  { %v6189_v49 = vsel %vm428_vm7, %v6175_v31, %v6188_v18 }
 0xf0a   :  { %6193 = vst.msk [vmem:[%s11515_s9 + $0x8] sm:$0xff] %vm439_vm8, %v6189_v49 }
 0xf0b   :  { %6835 = dma.done.wait [#allocation4], 256  }
 0xf0c   :  { %6836 = vsyncadd [#allocation4], 4294967040 }
 0xf0d   :  { %6215 = vsyncpa [#allocation4], 1 }

</bundles_post_ra>
